<compile_context>
chip_gen: v7x
topology: tpu7x:2x2x1
jax: 0.10.0
libtpu: 0.0.40
codegen_flags: <defaults>
</compile_context>

<pallas_src>
import functools

import numpy as np
import jax
import jax.numpy as jnp
from jax.experimental import pallas as pl
from jax.experimental.pallas import tpu as pltpu


# ----------------------------------------------------------------------------
# Pallas kernel: fused GEMM (bf16 operands, f32 accumulate) + bias + ReLU
# ----------------------------------------------------------------------------
def _mm_bias_kernel(a_ref, b_ref, c_ref, o_ref, *, apply_relu):
    acc = jnp.dot(a_ref[...], b_ref[...], preferred_element_type=jnp.float32)
    acc = acc + c_ref[...]          # f32 epilogue (BN scale pre-folded into B)
    if apply_relu:
        acc = jnp.maximum(acc, 0.0)
    o_ref[...] = acc.astype(o_ref.dtype)


def _round_up(x, m):
    return (x + m - 1) // m * m


def matmul_bias_relu(a, b, bias, apply_relu, out_dtype=jnp.bfloat16):
    """relu(a @ b + bias).  a: [M, K], b: [K, N] (bf16), bias: [N] (f32)."""
    M, K = a.shape
    K2, N = b.shape
    assert K == K2

    # M tiling: big tiles for big M, >=2 blocks when M>=256 (megacore/2-TC),
    # one 8-aligned block otherwise.  K is never padded (full-dim block).
    if M >= 1024:
        TM = 512
    elif M >= 256:
        TM = _round_up((M + 1) // 2, 8)
    else:
        TM = _round_up(M, 8)
    M_pad = _round_up(M, TM)
    N_pad = _round_up(N, 128)

    a = a.astype(jnp.bfloat16)
    b = b.astype(jnp.bfloat16)
    if M_pad != M:
        a = jnp.pad(a, ((0, M_pad - M), (0, 0)))
    if N_pad != N:
        b = jnp.pad(b, ((0, 0), (0, N_pad - N)))
    bias_p = jnp.pad(bias.astype(jnp.float32), (0, N_pad - N)).reshape(1, N_pad)

    kernel = functools.partial(_mm_bias_kernel, apply_relu=apply_relu)
    out = pl.pallas_call(
        kernel,
        out_shape=jax.ShapeDtypeStruct((M_pad, N_pad), out_dtype),
        grid=(M_pad // TM,),
        in_specs=[
            pl.BlockSpec((TM, K), lambda i: (i, 0)),       # A tile (K = full dim)
            pl.BlockSpec((K, N_pad), lambda i: (0, 0)),    # B resident
            pl.BlockSpec((1, N_pad), lambda i: (0, 0)),    # bias resident
        ],
        out_specs=pl.BlockSpec((TM, N_pad), lambda i: (i, 0)),
        compiler_params=pltpu.CompilerParams(dimension_semantics=("parallel",)),
    )(a, b, bias_p)
    return out[:M, :N]


# ----------------------------------------------------------------------------
# Conv3d via im2col + Pallas GEMM (BN folded into weights, bias+ReLU in kernel)
# ----------------------------------------------------------------------------
def conv3d_bias_relu(x, w, bias, *, stride=1, dilation=1, padding=0,
                     apply_relu=True, out_dtype=jnp.bfloat16):
    """x: (N, D, H, W, Cin) bf16;  w: (kd, kh, kw, Cin, Cout) bf16."""
    Nb, D, H, W, Cin = x.shape
    kd, kh, kw, _, Cout = w.shape

    # Fast path: 1x1x1 conv -> plain reshape, no im2col pass.
    if kd == kh == kw == 1 and stride == 1 and padding == 0 and dilation == 1:
        a = x.reshape(Nb * D * H * W, Cin)
        out = matmul_bias_relu(a, w.reshape(Cin, Cout), bias, apply_relu,
                               out_dtype)
        return out.reshape(Nb, D, H, W, Cout)

    sd = sh = sw = stride
    dd = dh = dw = dilation
    pd = ph = pw = padding

    xp = jnp.pad(x, ((0, 0), (pd, pd), (ph, ph), (pw, pw), (0, 0)))
    Do = (D + 2 * pd - dd * (kd - 1) - 1) // sd + 1
    Ho = (H + 2 * ph - dh * (kh - 1) - 1) // sh + 1
    Wo = (W + 2 * pw - dw * (kw - 1) - 1) // sw + 1

    patches = []
    for i in range(kd):
        for j in range(kh):
            for k in range(kw):
                sl = xp[:,
                        i * dd: i * dd + (Do - 1) * sd + 1: sd,
                        j * dh: j * dh + (Ho - 1) * sh + 1: sh,
                        k * dw: k * dw + (Wo - 1) * sw + 1: sw,
                        :]
                patches.append(sl)
    # patch ordering (i, j, k, Cin) matches w.reshape(kd*kh*kw*Cin, Cout)
    a = jnp.concatenate(patches, axis=-1).reshape(Nb * Do * Ho * Wo,
                                                  kd * kh * kw * Cin)
    b = w.reshape(kd * kh * kw * Cin, Cout)
    out = matmul_bias_relu(a, b, bias, apply_relu, out_dtype)
    return out.reshape(Nb, Do, Ho, Wo, Cout)


# ----------------------------------------------------------------------------
# Trilinear interpolation (align_corners=True) as per-axis interpolation
# matmuls against precomputed [out_len, in_len] weight matrices.
# TODO(synk): resize kept as XLA einsum glue (MXU, lane-dense) rather than a
#             dedicated Pallas gather kernel.
# ----------------------------------------------------------------------------
def _linear_resize_matrix(in_len, out_len):
    if in_len == out_len:
        return None
    m = np.zeros((out_len, in_len), dtype=np.float32)
    if out_len == 1 or in_len == 1:
        m[:, 0] = 1.0
        return jnp.asarray(m)
    scale = (in_len - 1) / (out_len - 1)
    for o in range(out_len):
        pos = o * scale
        lo = int(np.floor(pos))
        hi = min(lo + 1, in_len - 1)
        wgt = pos - lo
        m[o, lo] += 1.0 - wgt
        m[o, hi] += wgt
    return jnp.asarray(m)


def _resize_axis_matmul(x, axis, out_len):
    mat = _linear_resize_matrix(x.shape[axis], out_len)
    if mat is None:
        return x.astype(jnp.float32)
    x = x.astype(jnp.float32)
    if axis == 1:
        return jnp.einsum('oi,nihwc->nohwc', mat, x)
    if axis == 2:
        return jnp.einsum('oi,ndiwc->ndowc', mat, x)
    return jnp.einsum('oi,ndhic->ndhoc', mat, x)


def trilinear_resize(x, size):
    """x: (N, D, H, W, C) -> (N, D', H', W', C), align_corners=True, f32 out."""
    x = _resize_axis_matmul(x, 1, size[0])
    x = _resize_axis_matmul(x, 2, size[1])
    x = _resize_axis_matmul(x, 3, size[2])
    return x


# ----------------------------------------------------------------------------
# Deterministic parameter construction (BN folded into weights, bf16 weights)
# ----------------------------------------------------------------------------
class _KeyGen:
    def __init__(self, seed=0):
        self._key = jax.random.PRNGKey(seed)

    def __call__(self):
        self._key, sub = jax.random.split(self._key)
        return sub


def _make_conv_bn(kg, cin, cout, k):
    fan_in = k * k * k * cin
    w = jax.random.normal(kg(), (k, k, k, cin, cout), jnp.float32) / jnp.sqrt(
        float(fan_in))
    gamma = 1.0 + 0.1 * jax.random.normal(kg(), (cout,), jnp.float32)
    beta = 0.1 * jax.random.normal(kg(), (cout,), jnp.float32)
    mean = 0.1 * jax.random.normal(kg(), (cout,), jnp.float32)
    var = 1.0 + 0.1 * jax.random.uniform(kg(), (cout,), jnp.float32)
    scale = gamma / jnp.sqrt(var + 1e-5)
    bias = beta - mean * scale
    # fold BN scale into the conv weights, pre-cast to bf16 once
    w_folded = (w * scale).astype(jnp.bfloat16)
    return {"w": w_folded, "bias": bias.astype(jnp.float32)}


def _make_conv(kg, cin, cout, k, with_bias=True):
    fan_in = k * k * k * cin
    w = jax.random.normal(kg(), (k, k, k, cin, cout), jnp.float32) / jnp.sqrt(
        float(fan_in))
    b = (0.01 * jax.random.normal(kg(), (cout,), jnp.float32)
         if with_bias else jnp.zeros((cout,), jnp.float32))
    return {"w": w.astype(jnp.bfloat16), "bias": b.astype(jnp.float32)}


def build_deeplab_params(in_ch=1, num_classes=2, seed=0):
    kg = _KeyGen(seed)
    p = {}
    # --- simplified ResNet-style backbone (output_stride = 16) ---
    p["bb1"] = _make_conv_bn(kg, in_ch, 16, 3)   # stride 2
    p["bb2"] = _make_conv_bn(kg, 16, 32, 3)      # stride 4  -> low_level_feat
    p["bb3"] = _make_conv_bn(kg, 32, 64, 3)      # stride 8
    p["bb4"] = _make_conv_bn(kg, 64, 64, 3)      # stride 16 -> x
    # --- ASPP (dilations 1, 6, 12, 18 for output_stride=16) ---
    p["aspp1"] = _make_conv_bn(kg, 64, 32, 1)
    p["aspp2"] = _make_conv_bn(kg, 64, 32, 3)
    p["aspp3"] = _make_conv_bn(kg, 64, 32, 3)
    p["aspp4"] = _make_conv_bn(kg, 64, 32, 3)
    p["aspp_gp"] = _make_conv_bn(kg, 64, 32, 1)
    p["aspp_proj"] = _make_conv_bn(kg, 5 * 32, 32, 1)
    # --- decoder ---
    p["dec_low"] = _make_conv_bn(kg, 32, 16, 1)
    p["dec_c1"] = _make_conv_bn(kg, 32 + 16, 32, 3)
    p["dec_c2"] = _make_conv_bn(kg, 32, 32, 3)
    p["dec_cls"] = _make_conv(kg, 32, num_classes, 1, with_bias=True)
    return p


# ----------------------------------------------------------------------------
# DeepLab-3D forward
# ----------------------------------------------------------------------------
def deeplab_forward(params, x_ncdhw):
    """x_ncdhw: (N, C, D, H, W) float32  ->  (N, num_classes, D, H, W)."""
    in_size = x_ncdhw.shape[2:5]
    x = jnp.transpose(x_ncdhw, (0, 2, 3, 4, 1)).astype(jnp.bfloat16)  # NDHWC

    def cbr(name, h, **kw):
        q = params[name]
        return conv3d_bias_relu(h, q["w"], q["bias"], **kw)

    # backbone (output_stride = 16)
    h = cbr("bb1", x, stride=2, padding=1)
    h = cbr("bb2", h, stride=2, padding=1)
    low_level_feat = h                                   # stride 4
    h = cbr("bb3", h, stride=2, padding=1)
    h = cbr("bb4", h, stride=2, padding=1)               # stride 16

    # ---- ASPP ----
    Nb, Dh, Hh, Wh, Ch = h.shape
    M = Nb * Dh * Hh * Wh
    # Fuse the 1x1 branch and the global-pool 1x1 branch into one GEMM:
    # rows = [all voxels | pooled voxel], cols = [W_aspp1 | W_aspp_gp].
    h_flat = h.reshape(M, Ch)
    gp_row = jnp.mean(h.astype(jnp.float32), axis=(1, 2, 3)).astype(jnp.bfloat16)
    a_fused = jnp.concatenate([h_flat, gp_row], axis=0)              # (M+Nb, Ch)
    w1 = params["aspp1"]["w"].reshape(Ch, -1)
    wg = params["aspp_gp"]["w"].reshape(Ch, -1)
    n1 = w1.shape[1]
    ng = wg.shape[1]
    w_fused = jnp.concatenate([w1, wg], axis=1)                      # (Ch, n1+ng)
    b_fused = jnp.concatenate([params["aspp1"]["bias"],
                               params["aspp_gp"]["bias"]], axis=0)
    fused = matmul_bias_relu(a_fused, w_fused, b_fused, True, jnp.bfloat16)
    a1 = fused[:M, :n1].reshape(Nb, Dh, Hh, Wh, n1)
    gp = fused[M:, n1:n1 + ng].reshape(Nb, 1, 1, 1, ng)
    gp = jnp.broadcast_to(gp, a1.shape)      # == trilinear upsample of 1x1x1

    a2 = cbr("aspp2", h, padding=6, dilation=6)
    a3 = cbr("aspp3", h, padding=12, dilation=12)
    a4 = cbr("aspp4", h, padding=18, dilation=18)
    cat = jnp.concatenate([a1, a2, a3, a4, gp], axis=-1)
    h = cbr("aspp_proj", cat)                            # dropout: eval -> identity

    # ---- decoder ----
    low = cbr("dec_low", low_level_feat)
    h = trilinear_resize(h, low.shape[1:4]).astype(jnp.bfloat16)     # x4 upsample
    h = jnp.concatenate([h, low], axis=-1)
    h = cbr("dec_c1", h, padding=1)
    h = cbr("dec_c2", h, padding=1)
    q = params["dec_cls"]
    h = conv3d_bias_relu(h, q["w"], q["bias"], apply_relu=False,
                         out_dtype=jnp.float32)          # logits in f32

    # final trilinear upsample to input size, align_corners=True
    h = trilinear_resize(h, in_size)
    return jnp.transpose(h, (0, 4, 1, 2, 3)).astype(jnp.float32)  # -> NCDHW


# ----------------------------------------------------------------------------
if __name__ == "__main__":
    num_classes = 2
    params = build_deeplab_params(in_ch=1, num_classes=num_classes, seed=0)

    key = jax.random.PRNGKey(0)
    x = jax.random.normal(key, (1, 1, 32, 32, 32), jnp.float32)  # NCDHW

    fwd = jax.jit(functools.partial(deeplab_forward, params))
    out = fwd(x)
    jax.block_until_ready(out)

    assert out.shape == (1, num_classes, 32, 32, 32), out.shape
    assert jnp.all(jnp.isfinite(out))
    print("KERNEL_OK")
</pallas_src>

<mosaic_0001>
module attributes {stable_mosaic.version = 11 : i64} {
  func.func @_mm_bias_kernel(%arg0: i32, %arg1: memref<512x27xbf16, #tpu.memory_space<vmem>>, %arg2: memref<27x128xbf16, #tpu.memory_space<vmem>>, %arg3: memref<1x128xf32, #tpu.memory_space<vmem>>, %arg4: memref<512x128xbf16, #tpu.memory_space<vmem>>) attributes {dimension_semantics = [#tpu.dimension_semantics<parallel>], iteration_bounds = array<i64: 8>, scalar_prefetch = 0 : i64, scratch_operands = 0 : i64, tpu.core_type = #tpu.core_type<tc>, window_params = [{transform_indices = @transform_0, window_bounds = array<i64: 512, 27>}, {pipeline_mode = #tpu.pipeline_mode<synchronous>, transform_indices = @transform_1, window_bounds = array<i64: 27, 128>}, {pipeline_mode = #tpu.pipeline_mode<synchronous>, transform_indices = @transform_2, window_bounds = array<i64: 1, 128>}, {transform_indices = @transform_3, window_bounds = array<i64: 512, 128>}]} {
    %c0 = arith.constant 0 : index
    %c0_0 = arith.constant 0 : index
    %0 = vector.load %arg1[%c0, %c0_0] : memref<512x27xbf16, #tpu.memory_space<vmem>>, vector<512x27xbf16>
    %c0_1 = arith.constant 0 : index
    %c0_2 = arith.constant 0 : index
    %1 = vector.load %arg2[%c0_1, %c0_2] : memref<27x128xbf16, #tpu.memory_space<vmem>>, vector<27x128xbf16>
    %cst = arith.constant dense<0.000000e+00> : vector<512x128xf32>
    %2 = tpu.matmul %0, %1, %cst {dimension_numbers = #tpu.dot_dimension_numbers<[1], [0], [0], [1], [0, 0, 1, 1], [], []>} : vector<512x27xbf16>, vector<27x128xbf16>, vector<512x128xf32> -> vector<512x128xf32>
    %c0_3 = arith.constant 0 : index
    %c0_4 = arith.constant 0 : index
    %3 = vector.load %arg3[%c0_3, %c0_4] : memref<1x128xf32, #tpu.memory_space<vmem>>, vector<1x128xf32>
    %4 = vector.broadcast %3 : vector<1x128xf32> to vector<512x128xf32>
    %5 = arith.addf %2, %4 : vector<512x128xf32>
    %cst_5 = arith.constant 0.000000e+00 : f32
    %6 = vector.broadcast %cst_5 : f32 to vector<512x128xf32>
    %7 = arith.maximumf %5, %6 : vector<512x128xf32>
    %8 = arith.truncf %7 : vector<512x128xf32> to vector<512x128xbf16>
    %c0_6 = arith.constant 0 : index
    %c0_7 = arith.constant 0 : index
    %9 = vector.load %arg4[%c0_6, %c0_7] : memref<512x128xbf16, #tpu.memory_space<vmem>>, vector<512x128xbf16>
    tpu.vector_store %arg4[%c0_6, %c0_7], %8 {strides = array<i32>} : memref<512x128xbf16, #tpu.memory_space<vmem>>, vector<512x128xbf16>,
    return
  }
  func.func @transform_0(%arg0: i32) -> (i32, i32) {
    %c0_i32 = arith.constant 0 : i32
    %c0_i32_0 = arith.constant 0 : i32
    return %arg0, %c0_i32 : i32, i32
  }
  func.func @transform_1(%arg0: i32) -> (i32, i32) {
    %c0_i32 = arith.constant 0 : i32
    %c0_i32_0 = arith.constant 0 : i32
    %c0_i32_1 = arith.constant 0 : i32
    return %c0_i32, %c0_i32_0 : i32, i32
  }
  func.func @transform_2(%arg0: i32) -> (i32, i32) {
    %c0_i32 = arith.constant 0 : i32
    %c0_i32_0 = arith.constant 0 : i32
    %c0_i32_1 = arith.constant 0 : i32
    return %c0_i32, %c0_i32_0 : i32, i32
  }
  func.func @transform_3(%arg0: i32) -> (i32, i32) {
    %c0_i32 = arith.constant 0 : i32
    %c0_i32_0 = arith.constant 0 : i32
    return %arg0, %c0_i32 : i32, i32
  }
}

module attributes {stable_mosaic.version = 11 : i64} {
  func.func @_mm_bias_kernel(%arg0: i32, %arg1: memref<256x432xbf16, #tpu.memory_space<vmem>>, %arg2: memref<432x128xbf16, #tpu.memory_space<vmem>>, %arg3: memref<1x128xf32, #tpu.memory_space<vmem>>, %arg4: memref<256x128xbf16, #tpu.memory_space<vmem>>) attributes {dimension_semantics = [#tpu.dimension_semantics<parallel>], iteration_bounds = array<i64: 2>, scalar_prefetch = 0 : i64, scratch_operands = 0 : i64, tpu.core_type = #tpu.core_type<tc>, window_params = [{transform_indices = @transform_0, window_bounds = array<i64: 256, 432>}, {pipeline_mode = #tpu.pipeline_mode<synchronous>, transform_indices = @transform_1, window_bounds = array<i64: 432, 128>}, {pipeline_mode = #tpu.pipeline_mode<synchronous>, transform_indices = @transform_2, window_bounds = array<i64: 1, 128>}, {transform_indices = @transform_3, window_bounds = array<i64: 256, 128>}]} {
    %c0 = arith.constant 0 : index
    %c0_0 = arith.constant 0 : index
    %0 = vector.load %arg1[%c0, %c0_0] : memref<256x432xbf16, #tpu.memory_space<vmem>>, vector<256x432xbf16>
    %c0_1 = arith.constant 0 : index
    %c0_2 = arith.constant 0 : index
    %1 = vector.load %arg2[%c0_1, %c0_2] : memref<432x128xbf16, #tpu.memory_space<vmem>>, vector<432x128xbf16>
    %cst = arith.constant dense<0.000000e+00> : vector<256x128xf32>
    %2 = tpu.matmul %0, %1, %cst {dimension_numbers = #tpu.dot_dimension_numbers<[1], [0], [0], [1], [0, 0, 1, 1], [], []>} : vector<256x432xbf16>, vector<432x128xbf16>, vector<256x128xf32> -> vector<256x128xf32>
    %c0_3 = arith.constant 0 : index
    %c0_4 = arith.constant 0 : index
    %3 = vector.load %arg3[%c0_3, %c0_4] : memref<1x128xf32, #tpu.memory_space<vmem>>, vector<1x128xf32>
    %4 = vector.broadcast %3 : vector<1x128xf32> to vector<256x128xf32>
    %5 = arith.addf %2, %4 : vector<256x128xf32>
    %cst_5 = arith.constant 0.000000e+00 : f32
    %6 = vector.broadcast %cst_5 : f32 to vector<256x128xf32>
    %7 = arith.maximumf %5, %6 : vector<256x128xf32>
    %8 = arith.truncf %7 : vector<256x128xf32> to vector<256x128xbf16>
    %c0_6 = arith.constant 0 : index
    %c0_7 = arith.constant 0 : index
    %9 = vector.load %arg4[%c0_6, %c0_7] : memref<256x128xbf16, #tpu.memory_space<vmem>>, vector<256x128xbf16>
    tpu.vector_store %arg4[%c0_6, %c0_7], %8 {strides = array<i32>} : memref<256x128xbf16, #tpu.memory_space<vmem>>, vector<256x128xbf16>,
    return
  }
  func.func @transform_0(%arg0: i32) -> (i32, i32) {
    %c0_i32 = arith.constant 0 : i32
    %c0_i32_0 = arith.constant 0 : i32
    return %arg0, %c0_i32 : i32, i32
  }
  func.func @transform_1(%arg0: i32) -> (i32, i32) {
    %c0_i32 = arith.constant 0 : i32
    %c0_i32_0 = arith.constant 0 : i32
    %c0_i32_1 = arith.constant 0 : i32
    return %c0_i32, %c0_i32_0 : i32, i32
  }
  func.func @transform_2(%arg0: i32) -> (i32, i32) {
    %c0_i32 = arith.constant 0 : i32
    %c0_i32_0 = arith.constant 0 : i32
    %c0_i32_1 = arith.constant 0 : i32
    return %c0_i32, %c0_i32_0 : i32, i32
  }
  func.func @transform_3(%arg0: i32) -> (i32, i32) {
    %c0_i32 = arith.constant 0 : i32
    %c0_i32_0 = arith.constant 0 : i32
    return %arg0, %c0_i32 : i32, i32
  }
}

module attributes {stable_mosaic.version = 11 : i64} {
  func.func @_mm_bias_kernel(%arg0: i32, %arg1: memref<64x864xbf16, #tpu.memory_space<vmem>>, %arg2: memref<864x128xbf16, #tpu.memory_space<vmem>>, %arg3: memref<1x128xf32, #tpu.memory_space<vmem>>, %arg4: memref<64x128xbf16, #tpu.memory_space<vmem>>) attributes {dimension_semantics = [#tpu.dimension_semantics<parallel>], iteration_bounds = array<i64: 1>, scalar_prefetch = 0 : i64, scratch_operands = 0 : i64, tpu.core_type = #tpu.core_type<tc>, window_params = [{transform_indices = @transform_0, window_bounds = array<i64: 64, 864>}, {pipeline_mode = #tpu.pipeline_mode<synchronous>, transform_indices = @transform_1, window_bounds = array<i64: 864, 128>}, {pipeline_mode = #tpu.pipeline_mode<synchronous>, transform_indices = @transform_2, window_bounds = array<i64: 1, 128>}, {transform_indices = @transform_3, window_bounds = array<i64: 64, 128>}]} {
    %c0 = arith.constant 0 : index
    %c0_0 = arith.constant 0 : index
    %0 = vector.load %arg1[%c0, %c0_0] : memref<64x864xbf16, #tpu.memory_space<vmem>>, vector<64x864xbf16>
    %c0_1 = arith.constant 0 : index
    %c0_2 = arith.constant 0 : index
    %1 = vector.load %arg2[%c0_1, %c0_2] : memref<864x128xbf16, #tpu.memory_space<vmem>>, vector<864x128xbf16>
    %cst = arith.constant dense<0.000000e+00> : vector<64x128xf32>
    %2 = tpu.matmul %0, %1, %cst {dimension_numbers = #tpu.dot_dimension_numbers<[1], [0], [0], [1], [0, 0, 1, 1], [], []>} : vector<64x864xbf16>, vector<864x128xbf16>, vector<64x128xf32> -> vector<64x128xf32>
    %c0_3 = arith.constant 0 : index
    %c0_4 = arith.constant 0 : index
    %3 = vector.load %arg3[%c0_3, %c0_4] : memref<1x128xf32, #tpu.memory_space<vmem>>, vector<1x128xf32>
    %4 = vector.broadcast %3 : vector<1x128xf32> to vector<64x128xf32>
    %5 = arith.addf %2, %4 : vector<64x128xf32>
    %cst_5 = arith.constant 0.000000e+00 : f32
    %6 = vector.broadcast %cst_5 : f32 to vector<64x128xf32>
    %7 = arith.maximumf %5, %6 : vector<64x128xf32>
    %8 = arith.truncf %7 : vector<64x128xf32> to vector<64x128xbf16>
    %c0_6 = arith.constant 0 : index
    %c0_7 = arith.constant 0 : index
    %9 = vector.load %arg4[%c0_6, %c0_7] : memref<64x128xbf16, #tpu.memory_space<vmem>>, vector<64x128xbf16>
    tpu.vector_store %arg4[%c0_6, %c0_7], %8 {strides = array<i32>} : memref<64x128xbf16, #tpu.memory_space<vmem>>, vector<64x128xbf16>,
    return
  }
  func.func @transform_0(%arg0: i32) -> (i32, i32) {
    %c0_i32 = arith.constant 0 : i32
    %c0_i32_0 = arith.constant 0 : i32
    return %arg0, %c0_i32 : i32, i32
  }
  func.func @transform_1(%arg0: i32) -> (i32, i32) {
    %c0_i32 = arith.constant 0 : i32
    %c0_i32_0 = arith.constant 0 : i32
    %c0_i32_1 = arith.constant 0 : i32
    return %c0_i32, %c0_i32_0 : i32, i32
  }
  func.func @transform_2(%arg0: i32) -> (i32, i32) {
    %c0_i32 = arith.constant 0 : i32
    %c0_i32_0 = arith.constant 0 : i32
    %c0_i32_1 = arith.constant 0 : i32
    return %c0_i32, %c0_i32_0 : i32, i32
  }
  func.func @transform_3(%arg0: i32) -> (i32, i32) {
    %c0_i32 = arith.constant 0 : i32
    %c0_i32_0 = arith.constant 0 : i32
    return %arg0, %c0_i32 : i32, i32
  }
}

module attributes {stable_mosaic.version = 11 : i64} {
  func.func @_mm_bias_kernel(%arg0: i32, %arg1: memref<8x1728xbf16, #tpu.memory_space<vmem>>, %arg2: memref<1728x128xbf16, #tpu.memory_space<vmem>>, %arg3: memref<1x128xf32, #tpu.memory_space<vmem>>, %arg4: memref<8x128xbf16, #tpu.memory_space<vmem>>) attributes {dimension_semantics = [#tpu.dimension_semantics<parallel>], iteration_bounds = array<i64: 1>, scalar_prefetch = 0 : i64, scratch_operands = 0 : i64, tpu.core_type = #tpu.core_type<tc>, window_params = [{transform_indices = @transform_0, window_bounds = array<i64: 8, 1728>}, {pipeline_mode = #tpu.pipeline_mode<synchronous>, transform_indices = @transform_1, window_bounds = array<i64: 1728, 128>}, {pipeline_mode = #tpu.pipeline_mode<synchronous>, transform_indices = @transform_2, window_bounds = array<i64: 1, 128>}, {transform_indices = @transform_3, window_bounds = array<i64: 8, 128>}]} {
    %c0 = arith.constant 0 : index
    %c0_0 = arith.constant 0 : index
    %0 = vector.load %arg1[%c0, %c0_0] : memref<8x1728xbf16, #tpu.memory_space<vmem>>, vector<8x1728xbf16>
    %c0_1 = arith.constant 0 : index
    %c0_2 = arith.constant 0 : index
    %1 = vector.load %arg2[%c0_1, %c0_2] : memref<1728x128xbf16, #tpu.memory_space<vmem>>, vector<1728x128xbf16>
    %cst = arith.constant dense<0.000000e+00> : vector<8x128xf32>
    %2 = tpu.matmul %0, %1, %cst {dimension_numbers = #tpu.dot_dimension_numbers<[1], [0], [0], [1], [0, 0, 1, 1], [], []>} : vector<8x1728xbf16>, vector<1728x128xbf16>, vector<8x128xf32> -> vector<8x128xf32>
    %c0_3 = arith.constant 0 : index
    %c0_4 = arith.constant 0 : index
    %3 = vector.load %arg3[%c0_3, %c0_4] : memref<1x128xf32, #tpu.memory_space<vmem>>, vector<1x128xf32>
    %4 = vector.broadcast %3 : vector<1x128xf32> to vector<8x128xf32>
    %5 = arith.addf %2, %4 : vector<8x128xf32>
    %cst_5 = arith.constant 0.000000e+00 : f32
    %6 = vector.broadcast %cst_5 : f32 to vector<8x128xf32>
    %7 = arith.maximumf %5, %6 : vector<8x128xf32>
    %8 = arith.truncf %7 : vector<8x128xf32> to vector<8x128xbf16>
    %c0_6 = arith.constant 0 : index
    %c0_7 = arith.constant 0 : index
    %9 = vector.load %arg4[%c0_6, %c0_7] : memref<8x128xbf16, #tpu.memory_space<vmem>>, vector<8x128xbf16>
    tpu.vector_store %arg4[%c0_6, %c0_7], %8 {strides = array<i32>} : memref<8x128xbf16, #tpu.memory_space<vmem>>, vector<8x128xbf16>,
    return
  }
  func.func @transform_0(%arg0: i32) -> (i32, i32) {
    %c0_i32 = arith.constant 0 : i32
    %c0_i32_0 = arith.constant 0 : i32
    return %arg0, %c0_i32 : i32, i32
  }
  func.func @transform_1(%arg0: i32) -> (i32, i32) {
    %c0_i32 = arith.constant 0 : i32
    %c0_i32_0 = arith.constant 0 : i32
    %c0_i32_1 = arith.constant 0 : i32
    return %c0_i32, %c0_i32_0 : i32, i32
  }
  func.func @transform_2(%arg0: i32) -> (i32, i32) {
    %c0_i32 = arith.constant 0 : i32
    %c0_i32_0 = arith.constant 0 : i32
    %c0_i32_1 = arith.constant 0 : i32
    return %c0_i32, %c0_i32_0 : i32, i32
  }
  func.func @transform_3(%arg0: i32) -> (i32, i32) {
    %c0_i32 = arith.constant 0 : i32
    %c0_i32_0 = arith.constant 0 : i32
    return %arg0, %c0_i32 : i32, i32
  }
}

module attributes {stable_mosaic.version = 11 : i64} {
  func.func @_mm_bias_kernel(%arg0: i32, %arg1: memref<16x64xbf16, #tpu.memory_space<vmem>>, %arg2: memref<64x128xbf16, #tpu.memory_space<vmem>>, %arg3: memref<1x128xf32, #tpu.memory_space<vmem>>, %arg4: memref<16x128xbf16, #tpu.memory_space<vmem>>) attributes {dimension_semantics = [#tpu.dimension_semantics<parallel>], iteration_bounds = array<i64: 1>, scalar_prefetch = 0 : i64, scratch_operands = 0 : i64, tpu.core_type = #tpu.core_type<tc>, window_params = [{transform_indices = @transform_0, window_bounds = array<i64: 16, 64>}, {pipeline_mode = #tpu.pipeline_mode<synchronous>, transform_indices = @transform_1, window_bounds = array<i64: 64, 128>}, {pipeline_mode = #tpu.pipeline_mode<synchronous>, transform_indices = @transform_2, window_bounds = array<i64: 1, 128>}, {transform_indices = @transform_3, window_bounds = array<i64: 16, 128>}]} {
    %c0 = arith.constant 0 : index
    %c0_0 = arith.constant 0 : index
    %0 = vector.load %arg1[%c0, %c0_0] : memref<16x64xbf16, #tpu.memory_space<vmem>>, vector<16x64xbf16>
    %c0_1 = arith.constant 0 : index
    %c0_2 = arith.constant 0 : index
    %1 = vector.load %arg2[%c0_1, %c0_2] : memref<64x128xbf16, #tpu.memory_space<vmem>>, vector<64x128xbf16>
    %cst = arith.constant dense<0.000000e+00> : vector<16x128xf32>
    %2 = tpu.matmul %0, %1, %cst {dimension_numbers = #tpu.dot_dimension_numbers<[1], [0], [0], [1], [0, 0, 1, 1], [], []>} : vector<16x64xbf16>, vector<64x128xbf16>, vector<16x128xf32> -> vector<16x128xf32>
    %c0_3 = arith.constant 0 : index
    %c0_4 = arith.constant 0 : index
    %3 = vector.load %arg3[%c0_3, %c0_4] : memref<1x128xf32, #tpu.memory_space<vmem>>, vector<1x128xf32>
    %4 = vector.broadcast %3 : vector<1x128xf32> to vector<16x128xf32>
    %5 = arith.addf %2, %4 : vector<16x128xf32>
    %cst_5 = arith.constant 0.000000e+00 : f32
    %6 = vector.broadcast %cst_5 : f32 to vector<16x128xf32>
    %7 = arith.maximumf %5, %6 : vector<16x128xf32>
    %8 = arith.truncf %7 : vector<16x128xf32> to vector<16x128xbf16>
    %c0_6 = arith.constant 0 : index
    %c0_7 = arith.constant 0 : index
    %9 = vector.load %arg4[%c0_6, %c0_7] : memref<16x128xbf16, #tpu.memory_space<vmem>>, vector<16x128xbf16>
    tpu.vector_store %arg4[%c0_6, %c0_7], %8 {strides = array<i32>} : memref<16x128xbf16, #tpu.memory_space<vmem>>, vector<16x128xbf16>,
    return
  }
  func.func @transform_0(%arg0: i32) -> (i32, i32) {
    %c0_i32 = arith.constant 0 : i32
    %c0_i32_0 = arith.constant 0 : i32
    return %arg0, %c0_i32 : i32, i32
  }
  func.func @transform_1(%arg0: i32) -> (i32, i32) {
    %c0_i32 = arith.constant 0 : i32
    %c0_i32_0 = arith.constant 0 : i32
    %c0_i32_1 = arith.constant 0 : i32
    return %c0_i32, %c0_i32_0 : i32, i32
  }
  func.func @transform_2(%arg0: i32) -> (i32, i32) {
    %c0_i32 = arith.constant 0 : i32
    %c0_i32_0 = arith.constant 0 : i32
    %c0_i32_1 = arith.constant 0 : i32
    return %c0_i32, %c0_i32_0 : i32, i32
  }
  func.func @transform_3(%arg0: i32) -> (i32, i32) {
    %c0_i32 = arith.constant 0 : i32
    %c0_i32_0 = arith.constant 0 : i32
    return %arg0, %c0_i32 : i32, i32
  }
}

module attributes {stable_mosaic.version = 11 : i64} {
  func.func @_mm_bias_kernel(%arg0: i32, %arg1: memref<8x160xbf16, #tpu.memory_space<vmem>>, %arg2: memref<160x128xbf16, #tpu.memory_space<vmem>>, %arg3: memref<1x128xf32, #tpu.memory_space<vmem>>, %arg4: memref<8x128xbf16, #tpu.memory_space<vmem>>) attributes {dimension_semantics = [#tpu.dimension_semantics<parallel>], iteration_bounds = array<i64: 1>, scalar_prefetch = 0 : i64, scratch_operands = 0 : i64, tpu.core_type = #tpu.core_type<tc>, window_params = [{transform_indices = @transform_0, window_bounds = array<i64: 8, 160>}, {pipeline_mode = #tpu.pipeline_mode<synchronous>, transform_indices = @transform_1, window_bounds = array<i64: 160, 128>}, {pipeline_mode = #tpu.pipeline_mode<synchronous>, transform_indices = @transform_2, window_bounds = array<i64: 1, 128>}, {transform_indices = @transform_3, window_bounds = array<i64: 8, 128>}]} {
    %c0 = arith.constant 0 : index
    %c0_0 = arith.constant 0 : index
    %0 = vector.load %arg1[%c0, %c0_0] : memref<8x160xbf16, #tpu.memory_space<vmem>>, vector<8x160xbf16>
    %c0_1 = arith.constant 0 : index
    %c0_2 = arith.constant 0 : index
    %1 = vector.load %arg2[%c0_1, %c0_2] : memref<160x128xbf16, #tpu.memory_space<vmem>>, vector<160x128xbf16>
    %cst = arith.constant dense<0.000000e+00> : vector<8x128xf32>
    %2 = tpu.matmul %0, %1, %cst {dimension_numbers = #tpu.dot_dimension_numbers<[1], [0], [0], [1], [0, 0, 1, 1], [], []>} : vector<8x160xbf16>, vector<160x128xbf16>, vector<8x128xf32> -> vector<8x128xf32>
    %c0_3 = arith.constant 0 : index
    %c0_4 = arith.constant 0 : index
    %3 = vector.load %arg3[%c0_3, %c0_4] : memref<1x128xf32, #tpu.memory_space<vmem>>, vector<1x128xf32>
    %4 = vector.broadcast %3 : vector<1x128xf32> to vector<8x128xf32>
    %5 = arith.addf %2, %4 : vector<8x128xf32>
    %cst_5 = arith.constant 0.000000e+00 : f32
    %6 = vector.broadcast %cst_5 : f32 to vector<8x128xf32>
    %7 = arith.maximumf %5, %6 : vector<8x128xf32>
    %8 = arith.truncf %7 : vector<8x128xf32> to vector<8x128xbf16>
    %c0_6 = arith.constant 0 : index
    %c0_7 = arith.constant 0 : index
    %9 = vector.load %arg4[%c0_6, %c0_7] : memref<8x128xbf16, #tpu.memory_space<vmem>>, vector<8x128xbf16>
    tpu.vector_store %arg4[%c0_6, %c0_7], %8 {strides = array<i32>} : memref<8x128xbf16, #tpu.memory_space<vmem>>, vector<8x128xbf16>,
    return
  }
  func.func @transform_0(%arg0: i32) -> (i32, i32) {
    %c0_i32 = arith.constant 0 : i32
    %c0_i32_0 = arith.constant 0 : i32
    return %arg0, %c0_i32 : i32, i32
  }
  func.func @transform_1(%arg0: i32) -> (i32, i32) {
    %c0_i32 = arith.constant 0 : i32
    %c0_i32_0 = arith.constant 0 : i32
    %c0_i32_1 = arith.constant 0 : i32
    return %c0_i32, %c0_i32_0 : i32, i32
  }
  func.func @transform_2(%arg0: i32) -> (i32, i32) {
    %c0_i32 = arith.constant 0 : i32
    %c0_i32_0 = arith.constant 0 : i32
    %c0_i32_1 = arith.constant 0 : i32
    return %c0_i32, %c0_i32_0 : i32, i32
  }
  func.func @transform_3(%arg0: i32) -> (i32, i32) {
    %c0_i32 = arith.constant 0 : i32
    %c0_i32_0 = arith.constant 0 : i32
    return %arg0, %c0_i32 : i32, i32
  }
}

module attributes {stable_mosaic.version = 11 : i64} {
  func.func @_mm_bias_kernel(%arg0: i32, %arg1: memref<256x32xbf16, #tpu.memory_space<vmem>>, %arg2: memref<32x128xbf16, #tpu.memory_space<vmem>>, %arg3: memref<1x128xf32, #tpu.memory_space<vmem>>, %arg4: memref<256x128xbf16, #tpu.memory_space<vmem>>) attributes {dimension_semantics = [#tpu.dimension_semantics<parallel>], iteration_bounds = array<i64: 2>, scalar_prefetch = 0 : i64, scratch_operands = 0 : i64, tpu.core_type = #tpu.core_type<tc>, window_params = [{transform_indices = @transform_0, window_bounds = array<i64: 256, 32>}, {pipeline_mode = #tpu.pipeline_mode<synchronous>, transform_indices = @transform_1, window_bounds = array<i64: 32, 128>}, {pipeline_mode = #tpu.pipeline_mode<synchronous>, transform_indices = @transform_2, window_bounds = array<i64: 1, 128>}, {transform_indices = @transform_3, window_bounds = array<i64: 256, 128>}]} {
    %c0 = arith.constant 0 : index
    %c0_0 = arith.constant 0 : index
    %0 = vector.load %arg1[%c0, %c0_0] : memref<256x32xbf16, #tpu.memory_space<vmem>>, vector<256x32xbf16>
    %c0_1 = arith.constant 0 : index
    %c0_2 = arith.constant 0 : index
    %1 = vector.load %arg2[%c0_1, %c0_2] : memref<32x128xbf16, #tpu.memory_space<vmem>>, vector<32x128xbf16>
    %cst = arith.constant dense<0.000000e+00> : vector<256x128xf32>
    %2 = tpu.matmul %0, %1, %cst {dimension_numbers = #tpu.dot_dimension_numbers<[1], [0], [0], [1], [0, 0, 1, 1], [], []>} : vector<256x32xbf16>, vector<32x128xbf16>, vector<256x128xf32> -> vector<256x128xf32>
    %c0_3 = arith.constant 0 : index
    %c0_4 = arith.constant 0 : index
    %3 = vector.load %arg3[%c0_3, %c0_4] : memref<1x128xf32, #tpu.memory_space<vmem>>, vector<1x128xf32>
    %4 = vector.broadcast %3 : vector<1x128xf32> to vector<256x128xf32>
    %5 = arith.addf %2, %4 : vector<256x128xf32>
    %cst_5 = arith.constant 0.000000e+00 : f32
    %6 = vector.broadcast %cst_5 : f32 to vector<256x128xf32>
    %7 = arith.maximumf %5, %6 : vector<256x128xf32>
    %8 = arith.truncf %7 : vector<256x128xf32> to vector<256x128xbf16>
    %c0_6 = arith.constant 0 : index
    %c0_7 = arith.constant 0 : index
    %9 = vector.load %arg4[%c0_6, %c0_7] : memref<256x128xbf16, #tpu.memory_space<vmem>>, vector<256x128xbf16>
    tpu.vector_store %arg4[%c0_6, %c0_7], %8 {strides = array<i32>} : memref<256x128xbf16, #tpu.memory_space<vmem>>, vector<256x128xbf16>,
    return
  }
  func.func @transform_0(%arg0: i32) -> (i32, i32) {
    %c0_i32 = arith.constant 0 : i32
    %c0_i32_0 = arith.constant 0 : i32
    return %arg0, %c0_i32 : i32, i32
  }
  func.func @transform_1(%arg0: i32) -> (i32, i32) {
    %c0_i32 = arith.constant 0 : i32
    %c0_i32_0 = arith.constant 0 : i32
    %c0_i32_1 = arith.constant 0 : i32
    return %c0_i32, %c0_i32_0 : i32, i32
  }
  func.func @transform_2(%arg0: i32) -> (i32, i32) {
    %c0_i32 = arith.constant 0 : i32
    %c0_i32_0 = arith.constant 0 : i32
    %c0_i32_1 = arith.constant 0 : i32
    return %c0_i32, %c0_i32_0 : i32, i32
  }
  func.func @transform_3(%arg0: i32) -> (i32, i32) {
    %c0_i32 = arith.constant 0 : i32
    %c0_i32_0 = arith.constant 0 : i32
    return %arg0, %c0_i32 : i32, i32
  }
}

module attributes {stable_mosaic.version = 11 : i64} {
  func.func @_mm_bias_kernel(%arg0: i32, %arg1: memref<256x1296xbf16, #tpu.memory_space<vmem>>, %arg2: memref<1296x128xbf16, #tpu.memory_space<vmem>>, %arg3: memref<1x128xf32, #tpu.memory_space<vmem>>, %arg4: memref<256x128xbf16, #tpu.memory_space<vmem>>) attributes {dimension_semantics = [#tpu.dimension_semantics<parallel>], iteration_bounds = array<i64: 2>, scalar_prefetch = 0 : i64, scratch_operands = 0 : i64, tpu.core_type = #tpu.core_type<tc>, window_params = [{transform_indices = @transform_0, window_bounds = array<i64: 256, 1296>}, {pipeline_mode = #tpu.pipeline_mode<synchronous>, transform_indices = @transform_1, window_bounds = array<i64: 1296, 128>}, {pipeline_mode = #tpu.pipeline_mode<synchronous>, transform_indices = @transform_2, window_bounds = array<i64: 1, 128>}, {transform_indices = @transform_3, window_bounds = array<i64: 256, 128>}]} {
    %c0 = arith.constant 0 : index
    %c0_0 = arith.constant 0 : index
    %0 = vector.load %arg1[%c0, %c0_0] : memref<256x1296xbf16, #tpu.memory_space<vmem>>, vector<256x1296xbf16>
    %c0_1 = arith.constant 0 : index
    %c0_2 = arith.constant 0 : index
    %1 = vector.load %arg2[%c0_1, %c0_2] : memref<1296x128xbf16, #tpu.memory_space<vmem>>, vector<1296x128xbf16>
    %cst = arith.constant dense<0.000000e+00> : vector<256x128xf32>
    %2 = tpu.matmul %0, %1, %cst {dimension_numbers = #tpu.dot_dimension_numbers<[1], [0], [0], [1], [0, 0, 1, 1], [], []>} : vector<256x1296xbf16>, vector<1296x128xbf16>, vector<256x128xf32> -> vector<256x128xf32>
    %c0_3 = arith.constant 0 : index
    %c0_4 = arith.constant 0 : index
    %3 = vector.load %arg3[%c0_3, %c0_4] : memref<1x128xf32, #tpu.memory_space<vmem>>, vector<1x128xf32>
    %4 = vector.broadcast %3 : vector<1x128xf32> to vector<256x128xf32>
    %5 = arith.addf %2, %4 : vector<256x128xf32>
    %cst_5 = arith.constant 0.000000e+00 : f32
    %6 = vector.broadcast %cst_5 : f32 to vector<256x128xf32>
    %7 = arith.maximumf %5, %6 : vector<256x128xf32>
    %8 = arith.truncf %7 : vector<256x128xf32> to vector<256x128xbf16>
    %c0_6 = arith.constant 0 : index
    %c0_7 = arith.constant 0 : index
    %9 = vector.load %arg4[%c0_6, %c0_7] : memref<256x128xbf16, #tpu.memory_space<vmem>>, vector<256x128xbf16>
    tpu.vector_store %arg4[%c0_6, %c0_7], %8 {strides = array<i32>} : memref<256x128xbf16, #tpu.memory_space<vmem>>, vector<256x128xbf16>,
    return
  }
  func.func @transform_0(%arg0: i32) -> (i32, i32) {
    %c0_i32 = arith.constant 0 : i32
    %c0_i32_0 = arith.constant 0 : i32
    return %arg0, %c0_i32 : i32, i32
  }
  func.func @transform_1(%arg0: i32) -> (i32, i32) {
    %c0_i32 = arith.constant 0 : i32
    %c0_i32_0 = arith.constant 0 : i32
    %c0_i32_1 = arith.constant 0 : i32
    return %c0_i32, %c0_i32_0 : i32, i32
  }
  func.func @transform_2(%arg0: i32) -> (i32, i32) {
    %c0_i32 = arith.constant 0 : i32
    %c0_i32_0 = arith.constant 0 : i32
    %c0_i32_1 = arith.constant 0 : i32
    return %c0_i32, %c0_i32_0 : i32, i32
  }
  func.func @transform_3(%arg0: i32) -> (i32, i32) {
    %c0_i32 = arith.constant 0 : i32
    %c0_i32_0 = arith.constant 0 : i32
    return %arg0, %c0_i32 : i32, i32
  }
}

module attributes {stable_mosaic.version = 11 : i64} {
  func.func @_mm_bias_kernel(%arg0: i32, %arg1: memref<256x864xbf16, #tpu.memory_space<vmem>>, %arg2: memref<864x128xbf16, #tpu.memory_space<vmem>>, %arg3: memref<1x128xf32, #tpu.memory_space<vmem>>, %arg4: memref<256x128xbf16, #tpu.memory_space<vmem>>) attributes {dimension_semantics = [#tpu.dimension_semantics<parallel>], iteration_bounds = array<i64: 2>, scalar_prefetch = 0 : i64, scratch_operands = 0 : i64, tpu.core_type = #tpu.core_type<tc>, window_params = [{transform_indices = @transform_0, window_bounds = array<i64: 256, 864>}, {pipeline_mode = #tpu.pipeline_mode<synchronous>, transform_indices = @transform_1, window_bounds = array<i64: 864, 128>}, {pipeline_mode = #tpu.pipeline_mode<synchronous>, transform_indices = @transform_2, window_bounds = array<i64: 1, 128>}, {transform_indices = @transform_3, window_bounds = array<i64: 256, 128>}]} {
    %c0 = arith.constant 0 : index
    %c0_0 = arith.constant 0 : index
    %0 = vector.load %arg1[%c0, %c0_0] : memref<256x864xbf16, #tpu.memory_space<vmem>>, vector<256x864xbf16>
    %c0_1 = arith.constant 0 : index
    %c0_2 = arith.constant 0 : index
    %1 = vector.load %arg2[%c0_1, %c0_2] : memref<864x128xbf16, #tpu.memory_space<vmem>>, vector<864x128xbf16>
    %cst = arith.constant dense<0.000000e+00> : vector<256x128xf32>
    %2 = tpu.matmul %0, %1, %cst {dimension_numbers = #tpu.dot_dimension_numbers<[1], [0], [0], [1], [0, 0, 1, 1], [], []>} : vector<256x864xbf16>, vector<864x128xbf16>, vector<256x128xf32> -> vector<256x128xf32>
    %c0_3 = arith.constant 0 : index
    %c0_4 = arith.constant 0 : index
    %3 = vector.load %arg3[%c0_3, %c0_4] : memref<1x128xf32, #tpu.memory_space<vmem>>, vector<1x128xf32>
    %4 = vector.broadcast %3 : vector<1x128xf32> to vector<256x128xf32>
    %5 = arith.addf %2, %4 : vector<256x128xf32>
    %cst_5 = arith.constant 0.000000e+00 : f32
    %6 = vector.broadcast %cst_5 : f32 to vector<256x128xf32>
    %7 = arith.maximumf %5, %6 : vector<256x128xf32>
    %8 = arith.truncf %7 : vector<256x128xf32> to vector<256x128xbf16>
    %c0_6 = arith.constant 0 : index
    %c0_7 = arith.constant 0 : index
    %9 = vector.load %arg4[%c0_6, %c0_7] : memref<256x128xbf16, #tpu.memory_space<vmem>>, vector<256x128xbf16>
    tpu.vector_store %arg4[%c0_6, %c0_7], %8 {strides = array<i32>} : memref<256x128xbf16, #tpu.memory_space<vmem>>, vector<256x128xbf16>,
    return
  }
  func.func @transform_0(%arg0: i32) -> (i32, i32) {
    %c0_i32 = arith.constant 0 : i32
    %c0_i32_0 = arith.constant 0 : i32
    return %arg0, %c0_i32 : i32, i32
  }
  func.func @transform_1(%arg0: i32) -> (i32, i32) {
    %c0_i32 = arith.constant 0 : i32
    %c0_i32_0 = arith.constant 0 : i32
    %c0_i32_1 = arith.constant 0 : i32
    return %c0_i32, %c0_i32_0 : i32, i32
  }
  func.func @transform_2(%arg0: i32) -> (i32, i32) {
    %c0_i32 = arith.constant 0 : i32
    %c0_i32_0 = arith.constant 0 : i32
    %c0_i32_1 = arith.constant 0 : i32
    return %c0_i32, %c0_i32_0 : i32, i32
  }
  func.func @transform_3(%arg0: i32) -> (i32, i32) {
    %c0_i32 = arith.constant 0 : i32
    %c0_i32_0 = arith.constant 0 : i32
    return %arg0, %c0_i32 : i32, i32
  }
}

module attributes {stable_mosaic.version = 11 : i64} {
  func.func @_mm_bias_kernel(%arg0: i32, %arg1: memref<256x32xbf16, #tpu.memory_space<vmem>>, %arg2: memref<32x128xbf16, #tpu.memory_space<vmem>>, %arg3: memref<1x128xf32, #tpu.memory_space<vmem>>, %arg4: memref<256x128xf32, #tpu.memory_space<vmem>>) attributes {dimension_semantics = [#tpu.dimension_semantics<parallel>], iteration_bounds = array<i64: 2>, scalar_prefetch = 0 : i64, scratch_operands = 0 : i64, tpu.core_type = #tpu.core_type<tc>, window_params = [{transform_indices = @transform_0, window_bounds = array<i64: 256, 32>}, {pipeline_mode = #tpu.pipeline_mode<synchronous>, transform_indices = @transform_1, window_bounds = array<i64: 32, 128>}, {pipeline_mode = #tpu.pipeline_mode<synchronous>, transform_indices = @transform_2, window_bounds = array<i64: 1, 128>}, {transform_indices = @transform_3, window_bounds = array<i64: 256, 128>}]} {
    %c0 = arith.constant 0 : index
    %c0_0 = arith.constant 0 : index
    %0 = vector.load %arg1[%c0, %c0_0] : memref<256x32xbf16, #tpu.memory_space<vmem>>, vector<256x32xbf16>
    %c0_1 = arith.constant 0 : index
    %c0_2 = arith.constant 0 : index
    %1 = vector.load %arg2[%c0_1, %c0_2] : memref<32x128xbf16, #tpu.memory_space<vmem>>, vector<32x128xbf16>
    %cst = arith.constant dense<0.000000e+00> : vector<256x128xf32>
    %2 = tpu.matmul %0, %1, %cst {dimension_numbers = #tpu.dot_dimension_numbers<[1], [0], [0], [1], [0, 0, 1, 1], [], []>} : vector<256x32xbf16>, vector<32x128xbf16>, vector<256x128xf32> -> vector<256x128xf32>
    %c0_3 = arith.constant 0 : index
    %c0_4 = arith.constant 0 : index
    %3 = vector.load %arg3[%c0_3, %c0_4] : memref<1x128xf32, #tpu.memory_space<vmem>>, vector<1x128xf32>
    %4 = vector.broadcast %3 : vector<1x128xf32> to vector<256x128xf32>
    %5 = arith.addf %2, %4 : vector<256x128xf32>
    %c0_5 = arith.constant 0 : index
    %c0_6 = arith.constant 0 : index
    %6 = vector.load %arg4[%c0_5, %c0_6] : memref<256x128xf32, #tpu.memory_space<vmem>>, vector<256x128xf32>
    tpu.vector_store %arg4[%c0_5, %c0_6], %5 {strides = array<i32>} : memref<256x128xf32, #tpu.memory_space<vmem>>, vector<256x128xf32>,
    return
  }
  func.func @transform_0(%arg0: i32) -> (i32, i32) {
    %c0_i32 = arith.constant 0 : i32
    %c0_i32_0 = arith.constant 0 : i32
    return %arg0, %c0_i32 : i32, i32
  }
  func.func @transform_1(%arg0: i32) -> (i32, i32) {
    %c0_i32 = arith.constant 0 : i32
    %c0_i32_0 = arith.constant 0 : i32
    %c0_i32_1 = arith.constant 0 : i32
    return %c0_i32, %c0_i32_0 : i32, i32
  }
  func.func @transform_2(%arg0: i32) -> (i32, i32) {
    %c0_i32 = arith.constant 0 : i32
    %c0_i32_0 = arith.constant 0 : i32
    %c0_i32_1 = arith.constant 0 : i32
    return %c0_i32, %c0_i32_0 : i32, i32
  }
  func.func @transform_3(%arg0: i32) -> (i32, i32) {
    %c0_i32 = arith.constant 0 : i32
    %c0_i32_0 = arith.constant 0 : i32
    return %arg0, %c0_i32 : i32, i32
  }
}

</mosaic_0001>

<bundles_post_ra>
// kernel: deeplab_forward.13
= control target key start
LH: loop header
LB: loop body
LE: loop exit
PB: predicated region body
PF: predicated region fallthrough
CT: control target
= control target key end

     0   :  { %s1829_s12 = smov 0   ;;  %s2028_s0 = inlined_call_operand.vmem [shape: bf16[4096,27], index: 0, kind: input, shape index: {}]   ;;  %s2029_s1 = inlined_call_operand.vmem [shape: bf16[27,128], index: 1, kind: input, shape index: {}]   ;;  %s2030_s2 = inlined_call_operand.vmem [shape: f32[1,128], index: 2, kind: input, shape index: {}]   ;;  %s2031_s3 = inlined_call_operand.vmem [shape: bf16[4096,128], index: 3, kind: output, shape index: {}]  }
   0x1 LB: > { %s1254_s13 = sadd.s32 4294967295, %s1806_s12   ;;  %p1258_p0 = scmp.ge.s32.totalorder %s1806_s12, 1  ;;  %s1806_s12 = sphi %s1829_s12, %s13_s12  }
   0x2   : > { %p138_p1 = scmp.lt.s32.totalorder %s1806_s12, 9 }
   0x4   : > { %p139_p2 = pnand %p1258_p0, %p138_p1 }
   0x5   : > { %v1766_v0 = vld [vmem:[%s2029_s1] sm:$0xff] (!%p139_p2)   ;;  %vm518_vm0 = vcmask (!%p139_p2), 1044480   ;;  %v1767_v1 = vld [vmem:[%s2029_s1 + $0x8] sm:$0x3f] (!%p139_p2)   ;;  %vm519_vm1 = vcmask (!%p139_p2), 1045504   ;;  %s1259_s18 = sshll.u32 (!%p139_p2), %s1254_s13, 6 }
   0x6   : > { %142 = sbr.rel (%p139_p2) target bundleno = 297 (0x129), region = 32  ;;  %1685 = vmatprep.subr.bf16.mxu0 (!%p139_p2), %v1766_v0  ;;  %1753 = vmatprep.subr.bf16.mxu1 (!%p139_p2), %v1766_v0  ;;  %v1808_v2 = vmov (!%p139_p2), 65535   ;;  %p163_p3 = scmp.lt.s32.totalorder (!%p139_p2), %s1259_s18, 511  ;;  %vm421_vm2 = vcmask (!%p139_p2), 220160   ;;  %v1920_v38 = vld [vmem:[%s2030_s2] ss:$0 sm:$0xff] (!%p139_p2) }
   0x7   : > { %1686 = vmatpush3.bf16.msra.mxu0 (!%p139_p2), %v1766_v0  ;;  %1755 = vmatpush3.bf16.msra.mxu1 (!%p139_p2), %v1766_v0  ;;  %v520_v3 = vsel (!%p139_p2), %vm518_vm0, 4294967295, %v1808_v2 }
   0x8   : > { %v521_v4 = vsel (!%p139_p2), %vm519_vm1, %v520_v3, 0 }
   0x9   : > { %v523_v5 = vand.u32 (!%p139_p2), %v1767_v1, %v521_v4 }
   0xb   : > { %1687 = vmatprep.subr.bf16.mxu0 (!%p139_p2), %v523_v5  ;;  %1754 = vmatprep.subr.bf16.mxu1 (!%p139_p2), %v523_v5 }
   0xc   : > { %1688 = vmatpush3.bf16.msra.mxu0 (!%p139_p2), %v523_v5  ;;  %1756 = vmatpush3.bf16.msra.mxu1 (!%p139_p2), %v523_v5 }
   0xd   : > { %s2033_s18 = smov (!%p163_p3, %s1259_s18), 511 }
   0xe   : > { %s1260_s19 = sshll.u32 %s2033_s18, 2 }
   0xf   : > { %s1851_s22 = scalar_lea.vmem %s2028_s0, %s1260_s19  ;;  %s1935_s27 = scalar_lea.vmem %s2031_s3, %s1260_s19 }
  0x10   : > { %v1768_v6 = vld [vmem:[%s1851_s22] sm:$0xff]   ;;  %v1770_v8 = vld [vmem:[%s1851_s22 + $0x8] sm:$0xff]   ;;  %v1772_v10 = vld [vmem:[%s1851_s22 + $0x10] sm:$0xff]  }
  0x11   : > { %v1769_v7 = vld [vmem:[%s1851_s22 + $0x80] sm:$0xff]   ;;  %1689 = vmatprep.mubr.msk.bf16.mxu0 %vm421_vm2, %v1768_v6  ;;  %v1771_v9 = vld [vmem:[%s1851_s22 + $0x88] sm:$0xff]   ;;  %v1773_v11 = vld [vmem:[%s1851_s22 + $0x90] sm:$0xff]  }
  0x12   : > { %1721 = vmatprep.mubr.msk.bf16.mxu1 %vm421_vm2, %v1769_v7  ;;  %1690 = vmatmul.mubr.msk.bf16.vlgmr.msra.gmra.mrb[0].mxu0 %vm421_vm2, %v1770_v8  ;;  %v1774_v12 = vld [vmem:[%s1851_s22 + $0x18] sm:$0xff]   ;;  %v1776_v14 = vld [vmem:[%s1851_s22 + $0x20] sm:$0xff]   ;;  %v1778_v16 = vld [vmem:[%s1851_s22 + $0x28] sm:$0xff]  }
  0x13   : > { %1722 = vmatmul.mubr.msk.bf16.vlgmr.msra.gmra.mrb[0].mxu1 %vm421_vm2, %v1771_v9  ;;  %1693 = vmatprep.mubr.msk.bf16.mxu0 %vm421_vm2, %v1772_v10  ;;  %v1775_v13 = vld [vmem:[%s1851_s22 + $0x98] sm:$0xff]   ;;  %v1777_v15 = vld [vmem:[%s1851_s22 + $0xa0] sm:$0xff]   ;;  %v1779_v17 = vld [vmem:[%s1851_s22 + $0xa8] sm:$0xff]  }
  0x14   : > { %1725 = vmatprep.mubr.msk.bf16.mxu1 %vm421_vm2, %v1773_v11  ;;  %v1780_v18 = vld [vmem:[%s1851_s22 + $0x30] sm:$0xff]   ;;  %v1782_v20 = vld [vmem:[%s1851_s22 + $0x38] sm:$0xff]   ;;  %v1784_v22 = vld [vmem:[%s1851_s22 + $0x40] sm:$0xff]  }
  0x15   : > { %v1781_v19 = vld [vmem:[%s1851_s22 + $0xb0] sm:$0xff]   ;;  %v1783_v21 = vld [vmem:[%s1851_s22 + $0xb8] sm:$0xff]   ;;  %v1785_v23 = vld [vmem:[%s1851_s22 + $0xc0] sm:$0xff]  }
  0x16   : > { %v1786_v24 = vld [vmem:[%s1851_s22 + $0x48] sm:$0xff]   ;;  %v1788_v26 = vld [vmem:[%s1851_s22 + $0x50] sm:$0xff]   ;;  %v1790_v28 = vld [vmem:[%s1851_s22 + $0x58] sm:$0xff]  }
  0x17   : > { %v1787_v25 = vld [vmem:[%s1851_s22 + $0xc8] sm:$0xff]   ;;  %v1789_v27 = vld [vmem:[%s1851_s22 + $0xd0] sm:$0xff]   ;;  %v1791_v29 = vld [vmem:[%s1851_s22 + $0xd8] sm:$0xff]  }
  0x18   : > { %v1792_v30 = vld [vmem:[%s1851_s22 + $0x60] sm:$0xff]   ;;  %v1794_v32 = vld [vmem:[%s1851_s22 + $0x68] sm:$0xff]   ;;  %v1796_v34 = vld [vmem:[%s1851_s22 + $0x70] sm:$0xff]  }
  0x19   : > { %v1793_v31 = vld [vmem:[%s1851_s22 + $0xe0] sm:$0xff]   ;;  %v1795_v33 = vld [vmem:[%s1851_s22 + $0xe8] sm:$0xff]   ;;  %v1797_v35 = vld [vmem:[%s1851_s22 + $0xf0] sm:$0xff]  }
  0x1a   : > { %1694 = vmatmul.mubr.msk.bf16.gmra.mrb[4].mxu0 %vm421_vm2, %v1774_v12  ;;  %v1798_v36 = vld [vmem:[%s1851_s22 + $0x78] sm:$0xff]  }
  0x1b   : > { %1726 = vmatmul.mubr.msk.bf16.gmra.mrb[4].mxu1 %vm421_vm2, %v1775_v13  ;;  %1697 = vmatprep.mubr.msk.bf16.mxu0 %vm421_vm2, %v1776_v14  ;;  %v1799_v37 = vld [vmem:[%s1851_s22 + $0xf8] sm:$0xff]  }
  0x1c   : > { %1729 = vmatprep.mubr.msk.bf16.mxu1 %vm421_vm2, %v1777_v15 }
  0x22   : > { %1698 = vmatmul.mubr.msk.bf16.gmra.mrb[8].mxu0 %vm421_vm2, %v1778_v16 }
  0x23   : > { %1730 = vmatmul.mubr.msk.bf16.gmra.mrb[8].mxu1 %vm421_vm2, %v1779_v17  ;;  %1701 = vmatprep.mubr.msk.bf16.mxu0 %vm421_vm2, %v1780_v18 }
  0x24   : > { %1733 = vmatprep.mubr.msk.bf16.mxu1 %vm421_vm2, %v1781_v19 }
  0x2a   : > { %1702 = vmatmul.mubr.msk.bf16.gmra.mrb[12].mxu0 %vm421_vm2, %v1782_v20 }
  0x2b   : > { %1734 = vmatmul.mubr.msk.bf16.gmra.mrb[12].mxu1 %vm421_vm2, %v1783_v21  ;;  %1705 = vmatprep.mubr.msk.bf16.mxu0 %vm421_vm2, %v1784_v22 }
  0x2c   : > { %1737 = vmatprep.mubr.msk.bf16.mxu1 %vm421_vm2, %v1785_v23 }
  0x32   : > { %1706 = vmatmul.mubr.msk.bf16.gmra.mrb[16].mxu0 %vm421_vm2, %v1786_v24 }
  0x33   : > { %1738 = vmatmul.mubr.msk.bf16.gmra.mrb[16].mxu1 %vm421_vm2, %v1787_v25  ;;  %1709 = vmatprep.mubr.msk.bf16.mxu0 %vm421_vm2, %v1788_v26 }
  0x34   : > { %1741 = vmatprep.mubr.msk.bf16.mxu1 %vm421_vm2, %v1789_v27 }
  0x3a   : > { %1710 = vmatmul.mubr.msk.bf16.gmra.mrb[20].mxu0 %vm421_vm2, %v1790_v28 }
  0x3b   : > { %1742 = vmatmul.mubr.msk.bf16.gmra.mrb[20].mxu1 %vm421_vm2, %v1791_v29  ;;  %1713 = vmatprep.mubr.msk.bf16.mxu0 %vm421_vm2, %v1792_v30 }
  0x3c   : > { %1745 = vmatprep.mubr.msk.bf16.mxu1 %vm421_vm2, %v1793_v31 }
  0x42   : > { %1714 = vmatmul.mubr.msk.bf16.gmra.mrb[24].mxu0 %vm421_vm2, %v1794_v32 }
  0x43   : > { %1746 = vmatmul.mubr.msk.bf16.gmra.mrb[24].mxu1 %vm421_vm2, %v1795_v33  ;;  %1717 = vmatprep.mubr.msk.bf16.mxu0 %vm421_vm2, %v1796_v34 }
  0x44   : > { %1749 = vmatprep.mubr.msk.bf16.mxu1 %vm421_vm2, %v1797_v35 }
  0x4a   : > { %1718 = vmatmul.mubr.msk.bf16.gmra.mrb[28].mxu0 %vm421_vm2, %v1798_v36 }
  0x4b   : > { %1750 = vmatmul.mubr.msk.bf16.gmra.mrb[28].mxu1 %vm421_vm2, %v1799_v37 }
  0xe5   : > { %v1691_v39 = vpop.f32.mrb[0].mxu0 }
  0xe6   : > { %v568_v40 = vadd.f32 %v1691_v39, %v1920_v38  ;;  %v1723_v41 = vpop.f32.mrb[0].mxu1  ;;  %v559_v42 = vpop.f32.mrb[1].mxu0 }
  0xe7   : > { %v696_v43 = vadd.f32 %v1723_v41, %v1920_v38  ;;  %v560_v44 = vadd.f32 %v1920_v38, %v559_v42  ;;  %v687_v45 = vpop.f32.mrb[1].mxu1  ;;  %v1692_v46 = vpop.f32.mrb[2].mxu0 }
  0xe8   : > { %v688_v47 = vadd.f32 %v1920_v38, %v687_v45  ;;  %v571_v48 = vadd.f32 %v1692_v46, %v1920_v38  ;;  %v1724_v49 = vpop.f32.mrb[2].mxu1  ;;  %v562_v50 = vpop.f32.mrb[3].mxu0  ;;  %v816_v54 = vmax.f32 %v568_v40, 0.0 }
  0xe9   : > { %v699_v51 = vadd.f32 %v1724_v49, %v1920_v38  ;;  %v563_v52 = vadd.f32 %v1920_v38, %v562_v50  ;;  %v690_v53 = vpop.f32.mrb[3].mxu1  ;;  %v848_v57 = vmax.f32 %v696_v43, 0.0  ;;  %v814_v58 = vmax.f32 %v560_v44, 0.0 }
  0xea   : > { %v817_v55 = vmax.f32 %v571_v48, 0.0  ;;  %v691_v56 = vadd.f32 %v1920_v38, %v690_v53  ;;  %v846_v61 = vmax.f32 %v688_v47, 0.0 }
  0xeb   : > { %v849_v59 = vmax.f32 %v699_v51, 0.0  ;;  %v815_v60 = vmax.f32 %v563_v52, 0.0 }
  0xec   : > { %v1468_v62 = vpack.c.bf16 %v817_v55, %v816_v54  ;;  %v847_v63 = vmax.f32 %v691_v56, 0.0 }
  0xed   : > { %v1548_v0 = vpack.c.bf16 %v849_v59, %v848_v57  ;;  %v1463_v1 = vpack.c.bf16 %v815_v60, %v814_v58  ;;  %v1695_v2 = vpop.f32.mrb[4].mxu0 }
  0xee   : > { %1620 = vst [vmem:[%s1935_s27 + $0x8] sm:$0xff] %v1468_v62   ;;  %v1543_v3 = vpack.c.bf16 %v847_v63, %v846_v61  ;;  %v584_v4 = vadd.f32 %v1695_v2, %v1920_v38  ;;  %v1727_v5 = vpop.f32.mrb[4].mxu1  ;;  %v575_v6 = vpop.f32.mrb[5].mxu0 }
  0xef   : > { %1636 = vst [vmem:[%s1935_s27 + $0x88] sm:$0xff] %v1548_v0   ;;  %1464 = vst [vmem:[%s1935_s27] sm:$0xff] %v1463_v1   ;;  %v712_v7 = vadd.f32 %v1727_v5, %v1920_v38  ;;  %v576_v8 = vadd.f32 %v1920_v38, %v575_v6  ;;  %v703_v9 = vpop.f32.mrb[5].mxu1  ;;  %v1696_v10 = vpop.f32.mrb[6].mxu0 }
  0xf0   : > { %1635 = vst [vmem:[%s1935_s27 + $0x80] sm:$0xff] %v1543_v3   ;;  %v704_v11 = vadd.f32 %v1920_v38, %v703_v9  ;;  %v587_v12 = vadd.f32 %v1696_v10, %v1920_v38  ;;  %v1728_v13 = vpop.f32.mrb[6].mxu1  ;;  %v578_v14 = vpop.f32.mrb[7].mxu0  ;;  %v820_v18 = vmax.f32 %v584_v4, 0.0 }
  0xf1   : > { %v715_v15 = vadd.f32 %v1728_v13, %v1920_v38  ;;  %v579_v16 = vadd.f32 %v1920_v38, %v578_v14  ;;  %v706_v17 = vpop.f32.mrb[7].mxu1  ;;  %v852_v21 = vmax.f32 %v712_v7, 0.0  ;;  %v818_v22 = vmax.f32 %v576_v8, 0.0 }
  0xf2   : > { %v821_v19 = vmax.f32 %v587_v12, 0.0  ;;  %v707_v20 = vadd.f32 %v1920_v38, %v706_v17  ;;  %v850_v25 = vmax.f32 %v704_v11, 0.0 }
  0xf3   : > { %v853_v23 = vmax.f32 %v715_v15, 0.0  ;;  %v819_v24 = vmax.f32 %v579_v16, 0.0 }
  0xf4   : > { %v1478_v26 = vpack.c.bf16 %v821_v19, %v820_v18  ;;  %v851_v27 = vmax.f32 %v707_v20, 0.0 }
  0xf5   : > { %v1558_v28 = vpack.c.bf16 %v853_v23, %v852_v21  ;;  %v1473_v29 = vpack.c.bf16 %v819_v24, %v818_v22  ;;  %v1699_v30 = vpop.f32.mrb[8].mxu0 }
  0xf6   : > { %1622 = vst [vmem:[%s1935_s27 + $0x18] sm:$0xff] %v1478_v26   ;;  %v1553_v31 = vpack.c.bf16 %v851_v27, %v850_v25  ;;  %v600_v32 = vadd.f32 %v1699_v30, %v1920_v38  ;;  %v1731_v33 = vpop.f32.mrb[8].mxu1  ;;  %v591_v34 = vpop.f32.mrb[9].mxu0 }
  0xf7   : > { %1638 = vst [vmem:[%s1935_s27 + $0x98] sm:$0xff] %v1558_v28   ;;  %1621 = vst [vmem:[%s1935_s27 + $0x10] sm:$0xff] %v1473_v29   ;;  %v728_v35 = vadd.f32 %v1731_v33, %v1920_v38  ;;  %v592_v36 = vadd.f32 %v1920_v38, %v591_v34  ;;  %v719_v37 = vpop.f32.mrb[9].mxu1  ;;  %v1700_v39 = vpop.f32.mrb[10].mxu0 }
  0xf8   : > { %1637 = vst [vmem:[%s1935_s27 + $0x90] sm:$0xff] %v1553_v31   ;;  %v720_v40 = vadd.f32 %v1920_v38, %v719_v37  ;;  %v603_v41 = vadd.f32 %v1700_v39, %v1920_v38  ;;  %v1732_v42 = vpop.f32.mrb[10].mxu1  ;;  %v594_v43 = vpop.f32.mrb[11].mxu0  ;;  %v824_v47 = vmax.f32 %v600_v32, 0.0 }
  0xf9   : > { %v731_v44 = vadd.f32 %v1732_v42, %v1920_v38  ;;  %v595_v45 = vadd.f32 %v1920_v38, %v594_v43  ;;  %v722_v46 = vpop.f32.mrb[11].mxu1  ;;  %v856_v50 = vmax.f32 %v728_v35, 0.0  ;;  %v822_v51 = vmax.f32 %v592_v36, 0.0 }
  0xfa   : > { %v825_v48 = vmax.f32 %v603_v41, 0.0  ;;  %v723_v49 = vadd.f32 %v1920_v38, %v722_v46  ;;  %v854_v54 = vmax.f32 %v720_v40, 0.0 }
  0xfb   : > { %v857_v52 = vmax.f32 %v731_v44, 0.0  ;;  %v823_v53 = vmax.f32 %v595_v45, 0.0 }
  0xfc   : > { %v1488_v55 = vpack.c.bf16 %v825_v48, %v824_v47  ;;  %v855_v56 = vmax.f32 %v723_v49, 0.0 }
  0xfd   : > { %v1568_v57 = vpack.c.bf16 %v857_v52, %v856_v50  ;;  %v1483_v58 = vpack.c.bf16 %v823_v53, %v822_v51  ;;  %v1703_v59 = vpop.f32.mrb[12].mxu0 }
  0xfe   : > { %1624 = vst [vmem:[%s1935_s27 + $0x28] sm:$0xff] %v1488_v55   ;;  %v1563_v60 = vpack.c.bf16 %v855_v56, %v854_v54  ;;  %v616_v61 = vadd.f32 %v1703_v59, %v1920_v38  ;;  %v1735_v62 = vpop.f32.mrb[12].mxu1  ;;  %v607_v63 = vpop.f32.mrb[13].mxu0 }
  0xff   : > { %1640 = vst [vmem:[%s1935_s27 + $0xa8] sm:$0xff] %v1568_v57   ;;  %1623 = vst [vmem:[%s1935_s27 + $0x20] sm:$0xff] %v1483_v58   ;;  %v744_v0 = vadd.f32 %v1735_v62, %v1920_v38  ;;  %v608_v1 = vadd.f32 %v1920_v38, %v607_v63  ;;  %v735_v2 = vpop.f32.mrb[13].mxu1  ;;  %v1704_v3 = vpop.f32.mrb[14].mxu0 }
 0x100   : > { %1639 = vst [vmem:[%s1935_s27 + $0xa0] sm:$0xff] %v1563_v60   ;;  %v736_v4 = vadd.f32 %v1920_v38, %v735_v2  ;;  %v619_v5 = vadd.f32 %v1704_v3, %v1920_v38  ;;  %v1736_v6 = vpop.f32.mrb[14].mxu1  ;;  %v610_v7 = vpop.f32.mrb[15].mxu0  ;;  %v828_v11 = vmax.f32 %v616_v61, 0.0 }
 0x101   : > { %v747_v8 = vadd.f32 %v1736_v6, %v1920_v38  ;;  %v611_v9 = vadd.f32 %v1920_v38, %v610_v7  ;;  %v738_v10 = vpop.f32.mrb[15].mxu1  ;;  %v860_v14 = vmax.f32 %v744_v0, 0.0  ;;  %v826_v15 = vmax.f32 %v608_v1, 0.0 }
 0x102   : > { %v829_v12 = vmax.f32 %v619_v5, 0.0  ;;  %v739_v13 = vadd.f32 %v1920_v38, %v738_v10  ;;  %v858_v18 = vmax.f32 %v736_v4, 0.0 }
 0x103   : > { %v861_v16 = vmax.f32 %v747_v8, 0.0  ;;  %v827_v17 = vmax.f32 %v611_v9, 0.0 }
 0x104   : > { %v1498_v19 = vpack.c.bf16 %v829_v12, %v828_v11  ;;  %v859_v20 = vmax.f32 %v739_v13, 0.0 }
 0x105   : > { %v1578_v21 = vpack.c.bf16 %v861_v16, %v860_v14  ;;  %v1493_v22 = vpack.c.bf16 %v827_v17, %v826_v15  ;;  %v1707_v23 = vpop.f32.mrb[16].mxu0 }
 0x106   : > { %1626 = vst [vmem:[%s1935_s27 + $0x38] sm:$0xff] %v1498_v19   ;;  %v1573_v24 = vpack.c.bf16 %v859_v20, %v858_v18  ;;  %v632_v25 = vadd.f32 %v1707_v23, %v1920_v38  ;;  %v1739_v26 = vpop.f32.mrb[16].mxu1  ;;  %v623_v27 = vpop.f32.mrb[17].mxu0 }
 0x107   : > { %1642 = vst [vmem:[%s1935_s27 + $0xb8] sm:$0xff] %v1578_v21   ;;  %1625 = vst [vmem:[%s1935_s27 + $0x30] sm:$0xff] %v1493_v22   ;;  %v760_v28 = vadd.f32 %v1739_v26, %v1920_v38  ;;  %v624_v29 = vadd.f32 %v1920_v38, %v623_v27  ;;  %v751_v30 = vpop.f32.mrb[17].mxu1  ;;  %v1708_v31 = vpop.f32.mrb[18].mxu0 }
 0x108   : > { %1641 = vst [vmem:[%s1935_s27 + $0xb0] sm:$0xff] %v1573_v24   ;;  %v752_v32 = vadd.f32 %v1920_v38, %v751_v30  ;;  %v635_v33 = vadd.f32 %v1708_v31, %v1920_v38  ;;  %v1740_v34 = vpop.f32.mrb[18].mxu1  ;;  %v626_v35 = vpop.f32.mrb[19].mxu0  ;;  %v832_v40 = vmax.f32 %v632_v25, 0.0 }
 0x109   : > { %v763_v36 = vadd.f32 %v1740_v34, %v1920_v38  ;;  %v627_v37 = vadd.f32 %v1920_v38, %v626_v35  ;;  %v754_v39 = vpop.f32.mrb[19].mxu1  ;;  %v864_v43 = vmax.f32 %v760_v28, 0.0  ;;  %v830_v44 = vmax.f32 %v624_v29, 0.0 }
 0x10a   : > { %v833_v41 = vmax.f32 %v635_v33, 0.0  ;;  %v755_v42 = vadd.f32 %v1920_v38, %v754_v39  ;;  %v862_v47 = vmax.f32 %v752_v32, 0.0 }
 0x10b   : > { %v865_v45 = vmax.f32 %v763_v36, 0.0  ;;  %v831_v46 = vmax.f32 %v627_v37, 0.0 }
 0x10c   : > { %v1508_v48 = vpack.c.bf16 %v833_v41, %v832_v40  ;;  %v863_v49 = vmax.f32 %v755_v42, 0.0 }
 0x10d   : > { %v1588_v50 = vpack.c.bf16 %v865_v45, %v864_v43  ;;  %v1503_v51 = vpack.c.bf16 %v831_v46, %v830_v44  ;;  %v1711_v52 = vpop.f32.mrb[20].mxu0 }
 0x10e   : > { %1628 = vst [vmem:[%s1935_s27 + $0x48] sm:$0xff] %v1508_v48   ;;  %v1583_v53 = vpack.c.bf16 %v863_v49, %v862_v47  ;;  %v648_v54 = vadd.f32 %v1711_v52, %v1920_v38  ;;  %v1743_v55 = vpop.f32.mrb[20].mxu1  ;;  %v639_v56 = vpop.f32.mrb[21].mxu0 }
 0x10f   : > { %1644 = vst [vmem:[%s1935_s27 + $0xc8] sm:$0xff] %v1588_v50   ;;  %1627 = vst [vmem:[%s1935_s27 + $0x40] sm:$0xff] %v1503_v51   ;;  %v776_v57 = vadd.f32 %v1743_v55, %v1920_v38  ;;  %v640_v58 = vadd.f32 %v1920_v38, %v639_v56  ;;  %v767_v59 = vpop.f32.mrb[21].mxu1  ;;  %v1712_v60 = vpop.f32.mrb[22].mxu0 }
 0x110   : > { %1643 = vst [vmem:[%s1935_s27 + $0xc0] sm:$0xff] %v1583_v53   ;;  %v768_v61 = vadd.f32 %v1920_v38, %v767_v59  ;;  %v651_v62 = vadd.f32 %v1712_v60, %v1920_v38  ;;  %v1744_v63 = vpop.f32.mrb[22].mxu1  ;;  %v642_v0 = vpop.f32.mrb[23].mxu0  ;;  %v836_v4 = vmax.f32 %v648_v54, 0.0 }
 0x111   : > { %v779_v1 = vadd.f32 %v1744_v63, %v1920_v38  ;;  %v643_v2 = vadd.f32 %v1920_v38, %v642_v0  ;;  %v770_v3 = vpop.f32.mrb[23].mxu1  ;;  %v868_v7 = vmax.f32 %v776_v57, 0.0  ;;  %v834_v8 = vmax.f32 %v640_v58, 0.0 }
 0x112   : > { %v837_v5 = vmax.f32 %v651_v62, 0.0  ;;  %v771_v6 = vadd.f32 %v1920_v38, %v770_v3  ;;  %v866_v11 = vmax.f32 %v768_v61, 0.0 }
 0x113   : > { %v869_v9 = vmax.f32 %v779_v1, 0.0  ;;  %v835_v10 = vmax.f32 %v643_v2, 0.0 }
 0x114   : > { %v1518_v12 = vpack.c.bf16 %v837_v5, %v836_v4  ;;  %v867_v13 = vmax.f32 %v771_v6, 0.0 }
 0x115   : > { %v1598_v14 = vpack.c.bf16 %v869_v9, %v868_v7  ;;  %v1513_v15 = vpack.c.bf16 %v835_v10, %v834_v8  ;;  %v1715_v16 = vpop.f32.mrb[24].mxu0 }
 0x116   : > { %1630 = vst [vmem:[%s1935_s27 + $0x58] sm:$0xff] %v1518_v12   ;;  %v1593_v17 = vpack.c.bf16 %v867_v13, %v866_v11  ;;  %v664_v18 = vadd.f32 %v1715_v16, %v1920_v38  ;;  %v1747_v19 = vpop.f32.mrb[24].mxu1  ;;  %v655_v20 = vpop.f32.mrb[25].mxu0 }
 0x117   : > { %1646 = vst [vmem:[%s1935_s27 + $0xd8] sm:$0xff] %v1598_v14   ;;  %1629 = vst [vmem:[%s1935_s27 + $0x50] sm:$0xff] %v1513_v15   ;;  %v792_v21 = vadd.f32 %v1747_v19, %v1920_v38  ;;  %v656_v22 = vadd.f32 %v1920_v38, %v655_v20  ;;  %v783_v23 = vpop.f32.mrb[25].mxu1  ;;  %v1716_v24 = vpop.f32.mrb[26].mxu0 }
 0x118   : > { %1645 = vst [vmem:[%s1935_s27 + $0xd0] sm:$0xff] %v1593_v17   ;;  %v784_v25 = vadd.f32 %v1920_v38, %v783_v23  ;;  %v667_v26 = vadd.f32 %v1716_v24, %v1920_v38  ;;  %v1748_v27 = vpop.f32.mrb[26].mxu1  ;;  %v658_v28 = vpop.f32.mrb[27].mxu0  ;;  %v840_v32 = vmax.f32 %v664_v18, 0.0 }
 0x119   : > { %v795_v29 = vadd.f32 %v1748_v27, %v1920_v38  ;;  %v659_v30 = vadd.f32 %v1920_v38, %v658_v28  ;;  %v786_v31 = vpop.f32.mrb[27].mxu1  ;;  %v872_v35 = vmax.f32 %v792_v21, 0.0  ;;  %v838_v36 = vmax.f32 %v656_v22, 0.0 }
 0x11a   : > { %v841_v33 = vmax.f32 %v667_v26, 0.0  ;;  %v787_v34 = vadd.f32 %v1920_v38, %v786_v31  ;;  %v870_v40 = vmax.f32 %v784_v25, 0.0 }
 0x11b   : > { %v873_v37 = vmax.f32 %v795_v29, 0.0  ;;  %v839_v39 = vmax.f32 %v659_v30, 0.0 }
 0x11c   : > { %v1528_v41 = vpack.c.bf16 %v841_v33, %v840_v32  ;;  %v871_v42 = vmax.f32 %v787_v34, 0.0 }
 0x11d   : > { %v1608_v43 = vpack.c.bf16 %v873_v37, %v872_v35  ;;  %v1523_v44 = vpack.c.bf16 %v839_v39, %v838_v36  ;;  %v1719_v45 = vpop.f32.mrb[28].mxu0 }
 0x11e   : > { %1632 = vst [vmem:[%s1935_s27 + $0x68] sm:$0xff] %v1528_v41   ;;  %v1603_v46 = vpack.c.bf16 %v871_v42, %v870_v40  ;;  %v680_v47 = vadd.f32 %v1719_v45, %v1920_v38  ;;  %v1751_v48 = vpop.f32.mrb[28].mxu1  ;;  %v671_v49 = vpop.f32.mrb[29].mxu0 }
 0x11f   : > { %1648 = vst [vmem:[%s1935_s27 + $0xe8] sm:$0xff] %v1608_v43   ;;  %1631 = vst [vmem:[%s1935_s27 + $0x60] sm:$0xff] %v1523_v44   ;;  %v808_v50 = vadd.f32 %v1751_v48, %v1920_v38  ;;  %v672_v51 = vadd.f32 %v1920_v38, %v671_v49  ;;  %v799_v52 = vpop.f32.mrb[29].mxu1  ;;  %v1720_v53 = vpop.f32.mrb[30].mxu0 }
 0x120   : > { %1647 = vst [vmem:[%s1935_s27 + $0xe0] sm:$0xff] %v1603_v46   ;;  %v800_v54 = vadd.f32 %v1920_v38, %v799_v52  ;;  %v683_v55 = vadd.f32 %v1720_v53, %v1920_v38  ;;  %v1752_v56 = vpop.f32.mrb[30].mxu1  ;;  %v674_v57 = vpop.f32.mrb[31].mxu0  ;;  %v844_v61 = vmax.f32 %v680_v47, 0.0 }
 0x121   : > { %v811_v58 = vadd.f32 %v1752_v56, %v1920_v38  ;;  %v675_v59 = vadd.f32 %v1920_v38, %v674_v57  ;;  %v802_v60 = vpop.f32.mrb[31].mxu1  ;;  %v876_v0 = vmax.f32 %v808_v50, 0.0  ;;  %v842_v1 = vmax.f32 %v672_v51, 0.0 }
 0x122   : > { %v845_v62 = vmax.f32 %v683_v55, 0.0  ;;  %v803_v63 = vadd.f32 %v1920_v38, %v802_v60  ;;  %v874_v4 = vmax.f32 %v800_v54, 0.0 }
 0x123   : > { %v877_v2 = vmax.f32 %v811_v58, 0.0  ;;  %v843_v3 = vmax.f32 %v675_v59, 0.0 }
 0x124   : > { %v1538_v5 = vpack.c.bf16 %v845_v62, %v844_v61  ;;  %v875_v6 = vmax.f32 %v803_v63, 0.0 }
 0x125   : > { %v1618_v7 = vpack.c.bf16 %v877_v2, %v876_v0  ;;  %v1533_v8 = vpack.c.bf16 %v843_v3, %v842_v1 }
 0x126   : > { %1634 = vst [vmem:[%s1935_s27 + $0x78] sm:$0xff] %v1538_v5   ;;  %v1613_v9 = vpack.c.bf16 %v875_v6, %v874_v4 }
 0x127   : > { %1650 = vst [vmem:[%s1935_s27 + $0xf8] sm:$0xff] %v1618_v7   ;;  %1633 = vst [vmem:[%s1935_s27 + $0x70] sm:$0xff] %v1533_v8  }
 0x128   : > { %1649 = vst [vmem:[%s1935_s27 + $0xf0] sm:$0xff] %v1613_v9  }
 0x129 PF: > { %s13_s12 = sadd.s32 1, %s1806_s12  }
 0x12a   : > { %p10_p4 = scmp.ge.s32.totalorder %s13_s12, 10  }
 0x12c   :  { %12 = sbr.rel (!%p10_p4) target bundleno = 1 (0x1), region = 62 }

// kernel: deeplab_forward.14
= control target key start
LH: loop header
LB: loop body
LE: loop exit
PB: predicated region body
PF: predicated region fallthrough
CT: control target
= control target key end

     0   :  { %s1941_s12 = smov 0   ;;  %s2191_s0 = inlined_call_operand.vmem [shape: bf16[512,432], index: 0, kind: input, shape index: {}]   ;;  %s2192_s1 = inlined_call_operand.vmem [shape: bf16[432,128], index: 1, kind: input, shape index: {}]   ;;  %s2193_s2 = inlined_call_operand.vmem [shape: f32[1,128], index: 2, kind: input, shape index: {}]   ;;  %s2194_s3 = inlined_call_operand.vmem [shape: bf16[512,128], index: 3, kind: output, shape index: {}]  }
   0x1 LB: > { %s1388_s13 = sadd.s32 4294967295, %s1918_s12   ;;  %p1392_p0 = scmp.ge.s32.totalorder %s1918_s12, 1  ;;  %s1918_s12 = sphi %s1941_s12, %s13_s12  }
   0x2   : > { %p139_p1 = scmp.lt.s32.totalorder %s1918_s12, 3 }
   0x4   : > { %p140_p2 = pnand %p1392_p0, %p139_p1 }
   0x5   : > { %v1789_v0 = vld [vmem:[%s2192_s1 + $0x80] sm:$0xff] (!%p140_p2)   ;;  %v1920_v1 = vmov (!%p140_p2), 0   ;;  %v1792_v4 = vld [vmem:[%s2192_s1 + $0x88] sm:$0xff] (!%p140_p2)   ;;  %v1795_v7 = vld [vmem:[%s2192_s1 + $0x90] sm:$0xff] (!%p140_p2)   ;;  %s1393_s7 = sshll.u32 (!%p140_p2), %s1388_s13, 5  ;;  %vm769_vm0 = vcmask (!%p140_p2), 392192  }
   0x6   : > { %143 = sbr.rel (%p140_p2) target bundleno = 391 (0x187), region = 32  ;;  %979 = vmatprep.subr.bf16.mxu1 (!%p140_p2), %v1920_v1  ;;  %v1790_v2 = vld [vmem:[%s2192_s1 + $0x40] sm:$0xff] (!%p140_p2)   ;;  %v1793_v5 = vld [vmem:[%s2192_s1 + $0x48] sm:$0xff] (!%p140_p2)   ;;  %v1796_v8 = vld [vmem:[%s2192_s1 + $0x50] sm:$0xff] (!%p140_p2)   ;;  %p165_p3 = scmp.lt.s32.totalorder (!%p140_p2), %s1393_s7, 63 }
   0x7   : > { %980 = vmatpush1.bf16.msra.mxu1 (!%p140_p2), %v1789_v0  ;;  %v1791_v3 = vld [vmem:[%s2192_s1] sm:$0xff] (!%p140_p2)   ;;  %1668 = vmatprep.subr.bf16.mxu0 (!%p140_p2), %v1790_v2  ;;  %v1794_v6 = vld [vmem:[%s2192_s1 + $0x8] sm:$0xff] (!%p140_p2)   ;;  %v1797_v9 = vld [vmem:[%s2192_s1 + $0x10] sm:$0xff] (!%p140_p2)  }
   0x8   : > { %981 = vmatprep.subr.bf16.mxu1 (!%p140_p2), %v1920_v1  ;;  %1669 = vmatpush3.bf16.msra.mxu0 (!%p140_p2), %v1791_v3  ;;  %v1798_v10 = vld [vmem:[%s2192_s1 + $0x98] sm:$0xff] (!%p140_p2)   ;;  %v1802_v13 = vld [vmem:[%s2192_s1 + $0x60] sm:$0xff] (!%p140_p2)   ;;  %v1805_v16 = vld [vmem:[%s2192_s1 + $0x68] sm:$0xff] (!%p140_p2)  }
   0x9   : > { %1670 = vmatprep.subr.bf16.mxu0 (!%p140_p2), %v1793_v5  ;;  %v1799_v11 = vld [vmem:[%s2192_s1 + $0x58] sm:$0xff] (!%p140_p2)   ;;  %v1801_v14 = vld [vmem:[%s2192_s1 + $0xa0] sm:$0xff] (!%p140_p2)   ;;  %v1804_v17 = vld [vmem:[%s2192_s1 + $0xa8] sm:$0xff] (!%p140_p2)  }
   0xa   : > { %v1800_v12 = vld [vmem:[%s2192_s1 + $0x18] sm:$0xff] (!%p140_p2)   ;;  %v1803_v15 = vld [vmem:[%s2192_s1 + $0x20] sm:$0xff] (!%p140_p2)   ;;  %v1806_v18 = vld [vmem:[%s2192_s1 + $0x28] sm:$0xff] (!%p140_p2)  }
   0xb   : > { %982 = vmatpush1.bf16.msra.mxu1 (!%p140_p2), %v1792_v4  ;;  %v1808_v19 = vld [vmem:[%s2192_s1 + $0x70] sm:$0xff] (!%p140_p2)   ;;  %v1810_v22 = vld [vmem:[%s2192_s1 + $0xb8] sm:$0xff] (!%p140_p2)   ;;  %v1813_v26 = vld [vmem:[%s2192_s1 + $0xc0] sm:$0xff] (!%p140_p2)  }
   0xc   : > { %983 = vmatprep.subr.bf16.mxu1 (!%p140_p2), %v1920_v1  ;;  %1671 = vmatpush3.bf16.msra.mxu0 (!%p140_p2), %v1794_v6  ;;  %v1807_v20 = vld [vmem:[%s2192_s1 + $0xb0] sm:$0xff] (!%p140_p2)   ;;  %v1811_v23 = vld [vmem:[%s2192_s1 + $0x78] sm:$0xff] (!%p140_p2)   ;;  %v1817_v30 = vld [vmem:[%s2192_s1 + $0xc8] sm:$0xff] (!%p140_p2)  }
   0xd   : > { %1672 = vmatprep.subr.bf16.mxu0 %v1796_v8  ;;  %s2196_s7 = smov (!%p165_p3, %s1393_s7), 63  ;;  %v1809_v21 = vld [vmem:[%s2192_s1 + $0x30] sm:$0xff]   ;;  %v1812_v25 = vld [vmem:[%s2192_s1 + $0x38] sm:$0xff]  }
   0xe   : > { %s1540_s25 = sshll.u32 %s2196_s7, 4  ;;  %v1818_v31 = vld [vmem:[%s2192_s1 + $0xd0] sm:$0xff]   ;;  %s1397_s24 = sshll.u32 %s2196_s7, 2 }
   0xf   : > { %984 = vmatpush1.bf16.msra.mxu1 %v1795_v7  ;;  %s2025_s8 = scalar_lea.vmem %s2191_s0, %s1540_s25  ;;  %s2141_s27 = scalar_lea.vmem %s2194_s3, %s1397_s24 }
  0x10   : > { %985 = vmatprep.subr.bf16.mxu1 %v1920_v1  ;;  %1673 = vmatpush3.bf16.msra.mxu0 %v1797_v9  ;;  %v1816_v24 = vld [vmem:[%s2025_s8 + $0x4] ss:$16 sps:$4 sm:$0xff]   ;;  %v1823_v27 = vld [vmem:[%s2025_s8 + $0xc] ss:$16 sps:$4 sm:$0xff]   ;;  %v1814_v28 = vld [vmem:[%s2025_s8] ss:$16 sps:$4 sm:$0xff]  }
  0x11   : > { %1674 = vmatprep.subr.bf16.mxu0 %v1799_v11  ;;  %850 = vmatprep.mubr.bf16.mxu0 %v1816_v24  ;;  %v1819_v29 = vld [vmem:[%s2025_s8 + $0x24] ss:$16 sps:$4 sm:$0xff]   ;;  %v1824_v32 = vld [vmem:[%s2025_s8 + $0x20] ss:$16 sps:$4 sm:$0xff]   ;;  %v1821_v34 = vld [vmem:[%s2025_s8 + $0x8] ss:$16 sps:$4 sm:$0xff]  }
  0x12   : > { %1490 = vmatprep.mubr.msk.bf16.mxu1 %vm769_vm0, %v1823_v27  ;;  %v1825_v33 = vld [vmem:[%s2025_s8 + $0x44] ss:$16 sps:$4 sm:$0xff]   ;;  %v1827_v35 = vld [vmem:[%s2025_s8 + $0x2c] ss:$16 sps:$4 sm:$0xff]   ;;  %v1829_v36 = vld [vmem:[%s2025_s8 + $0x40] ss:$16 sps:$4 sm:$0xff]  }
  0x13   : > { %986 = vmatpush1.bf16.msra.mxu1 %v1798_v10  ;;  %v1831_v37 = vld [vmem:[%s2025_s8 + $0x64] ss:$16 sps:$4 sm:$0xff]   ;;  %v1830_v38 = vld [vmem:[%s2025_s8 + $0x28] ss:$16 sps:$4 sm:$0xff]   ;;  %v1833_v39 = vld [vmem:[%s2025_s8 + $0x4c] ss:$16 sps:$4 sm:$0xff]  }
  0x14   : > { %987 = vmatprep.subr.bf16.mxu1 %v1920_v1  ;;  %1675 = vmatpush3.bf16.msra.mxu0 %v1800_v12  ;;  %v1835_v40 = vld [vmem:[%s2025_s8 + $0x60] ss:$16 sps:$4 sm:$0xff]   ;;  %v1837_v41 = vld [vmem:[%s2025_s8 + $0x84] ss:$16 sps:$4 sm:$0xff]   ;;  %v1836_v42 = vld [vmem:[%s2025_s8 + $0x48] ss:$16 sps:$4 sm:$0xff]  }
  0x15   : > { %1676 = vmatprep.subr.bf16.mxu0 %v1802_v13  ;;  %v1839_v43 = vld [vmem:[%s2025_s8 + $0x6c] ss:$16 sps:$4 sm:$0xff]   ;;  %v1841_v44 = vld [vmem:[%s2025_s8 + $0x80] ss:$16 sps:$4 sm:$0xff]   ;;  %v1843_v45 = vld [vmem:[%s2025_s8 + $0xa4] ss:$16 sps:$4 sm:$0xff]  }
  0x16   : > { %v1842_v46 = vld [vmem:[%s2025_s8 + $0x68] ss:$16 sps:$4 sm:$0xff]   ;;  %v1845_v47 = vld [vmem:[%s2025_s8 + $0x8c] ss:$16 sps:$4 sm:$0xff]   ;;  %v1847_v48 = vld [vmem:[%s2025_s8 + $0xa0] ss:$16 sps:$4 sm:$0xff]  }
  0x17   : > { %988 = vmatpush1.bf16.msra.mxu1 %v1801_v14  ;;  %v1849_v49 = vld [vmem:[%s2025_s8 + $0xc4] ss:$16 sps:$4 sm:$0xff]   ;;  %v1848_v50 = vld [vmem:[%s2025_s8 + $0x88] ss:$16 sps:$4 sm:$0xff]   ;;  %v1851_v51 = vld [vmem:[%s2025_s8 + $0xac] ss:$16 sps:$4 sm:$0xff]  }
  0x18   : > { %989 = vmatprep.subr.bf16.mxu1 %v1920_v1  ;;  %1677 = vmatpush3.bf16.msra.mxu0 %v1803_v15  ;;  %v1853_v52 = vld [vmem:[%s2025_s8 + $0xc0] ss:$16 sps:$4 sm:$0xff]   ;;  %v1855_v53 = vld [vmem:[%s2025_s8 + $0xe4] ss:$16 sps:$4 sm:$0xff]   ;;  %v1854_v54 = vld [vmem:[%s2025_s8 + $0xa8] ss:$16 sps:$4 sm:$0xff]  }
  0x19   : > { %1678 = vmatprep.subr.bf16.mxu0 %v1805_v16  ;;  %v1857_v55 = vld [vmem:[%s2025_s8 + $0xcc] ss:$16 sps:$4 sm:$0xff]   ;;  %v1859_v56 = vld [vmem:[%s2025_s8 + $0xe0] ss:$16 sps:$4 sm:$0xff]   ;;  %v1861_v57 = vld [vmem:[%s2025_s8 + $0x104] ss:$16 sps:$4 sm:$0xff]  }
  0x1a   : > { %v1860_v58 = vld [vmem:[%s2025_s8 + $0xc8] ss:$16 sps:$4 sm:$0xff]   ;;  %v1863_v59 = vld [vmem:[%s2025_s8 + $0xec] ss:$16 sps:$4 sm:$0xff]   ;;  %v1865_v60 = vld [vmem:[%s2025_s8 + $0x100] ss:$16 sps:$4 sm:$0xff]  }
  0x1b   : > { %990 = vmatpush1.bf16.msra.mxu1 %v1804_v17  ;;  %v1867_v61 = vld [vmem:[%s2025_s8 + $0x124] ss:$16 sps:$4 sm:$0xff]   ;;  %v1866_v62 = vld [vmem:[%s2025_s8 + $0xe8] ss:$16 sps:$4 sm:$0xff]   ;;  %v1869_v63 = vld [vmem:[%s2025_s8 + $0x10c] ss:$16 sps:$4 sm:$0xff]  }
  0x1c   : > { %991 = vmatprep.subr.bf16.mxu1 %v1920_v1  ;;  %1679 = vmatpush3.bf16.msra.mxu0 %v1806_v18  ;;  %v1871_v0 = vld [vmem:[%s2025_s8 + $0x120] ss:$16 sps:$4 sm:$0xff]   ;;  %v1872_v2 = vld [vmem:[%s2025_s8 + $0x108] ss:$16 sps:$4 sm:$0xff]   ;;  %v1875_v3 = vld [vmem:[%s2025_s8 + $0x12c] ss:$16 sps:$4 sm:$0xff]  }
  0x1d   : > { %1680 = vmatprep.subr.bf16.mxu0 %v1808_v19  ;;  %v1877_v4 = vld [vmem:[%s2025_s8 + $0x140] ss:$16 sps:$4 sm:$0xff]   ;;  %v1879_v5 = vld [vmem:[%s2025_s8 + $0x164] ss:$16 sps:$4 sm:$0xff]   ;;  %v1878_v6 = vld [vmem:[%s2025_s8 + $0x128] ss:$16 sps:$4 sm:$0xff]  }
  0x1e   : > { %v1881_v7 = vld [vmem:[%s2025_s8 + $0x14c] ss:$16 sps:$4 sm:$0xff]   ;;  %v1883_v8 = vld [vmem:[%s2025_s8 + $0x160] ss:$16 sps:$4 sm:$0xff]   ;;  %v1885_v9 = vld [vmem:[%s2025_s8 + $0x184] ss:$16 sps:$4 sm:$0xff]  }
  0x1f   : > { %992 = vmatpush1.bf16.msra.mxu1 %v1807_v20  ;;  %v1884_v10 = vld [vmem:[%s2025_s8 + $0x148] ss:$16 sps:$4 sm:$0xff]   ;;  %v1887_v11 = vld [vmem:[%s2025_s8 + $0x16c] ss:$16 sps:$4 sm:$0xff]   ;;  %v1889_v12 = vld [vmem:[%s2025_s8 + $0x180] ss:$16 sps:$4 sm:$0xff]  }
  0x20   : > { %993 = vmatprep.subr.bf16.mxu1 %v1920_v1  ;;  %1681 = vmatpush3.bf16.msra.mxu0 %v1809_v21  ;;  %v1891_v13 = vld [vmem:[%s2025_s8 + $0x1a4] ss:$16 sps:$4 sm:$0xff]   ;;  %v1890_v14 = vld [vmem:[%s2025_s8 + $0x168] ss:$16 sps:$4 sm:$0xff]   ;;  %v1893_v15 = vld [vmem:[%s2025_s8 + $0x18c] ss:$16 sps:$4 sm:$0xff]  }
  0x21   : > { %1682 = vmatprep.subr.bf16.mxu0 %v1811_v23  ;;  %v1895_v16 = vld [vmem:[%s2025_s8 + $0x1a0] ss:$16 sps:$4 sm:$0xff]   ;;  %v1897_v17 = vld [vmem:[%s2025_s8 + $0x1c4] ss:$16 sps:$4 sm:$0xff]   ;;  %v1896_v18 = vld [vmem:[%s2025_s8 + $0x188] ss:$16 sps:$4 sm:$0xff]  }
  0x22   : > { %v1899_v19 = vld [vmem:[%s2025_s8 + $0x1ac] ss:$16 sps:$4 sm:$0xff]   ;;  %v1901_v20 = vld [vmem:[%s2025_s8 + $0x1c0] ss:$16 sps:$4 sm:$0xff]   ;;  %v1903_v21 = vld [vmem:[%s2025_s8 + $0x1e4] ss:$16 sps:$4 sm:$0xff]  }
  0x23   : > { %994 = vmatpush1.bf16.msra.mxu1 %v1810_v22  ;;  %v1902_v22 = vld [vmem:[%s2025_s8 + $0x1a8] ss:$16 sps:$4 sm:$0xff]   ;;  %v1905_v23 = vld [vmem:[%s2025_s8 + $0x1cc] ss:$16 sps:$4 sm:$0xff]   ;;  %v1907_v24 = vld [vmem:[%s2025_s8 + $0x1e0] ss:$16 sps:$4 sm:$0xff]  }
  0x24   : > { %995 = vmatprep.subr.bf16.mxu1 %v1920_v1  ;;  %1683 = vmatpush3.bf16.msra.mxu0 %v1812_v25  ;;  %v1908_v25 = vld [vmem:[%s2025_s8 + $0x1c8] ss:$16 sps:$4 sm:$0xff]  }
  0x25   : > { %v1911_v27 = vld [vmem:[%s2025_s8 + $0x1e8] ss:$16 sps:$4 sm:$0xff]  }
  0x27   : > { %996 = vmatpush1.bf16.msra.mxu1 %v1813_v26  ;;  %851 = vmatmul.mubr.bf16.vlgmr.msra.gmra.mrb[0].mxu0 %v1814_v28  ;;  %v1909_v26 = vld [vmem:[%s2025_s8 + $0x1ec] ss:$16 sps:$4 sm:$0xff]  }
  0x28   : > { %997 = vmatprep.subr.bf16.mxu1 %v1920_v1  ;;  %858 = vmatprep.mubr.bf16.mxu0 %v1819_v29 }
  0x2b   : > { %998 = vmatpush1.bf16.msra.mxu1 %v1817_v30 }
  0x2c   : > { %999 = vmatprep.subr.bf16.mxu1 %v1920_v1  ;;  %v1873_v1 = vld [vmem:[%s2025_s8 + $0x144] ss:$16 sps:$4 sm:$0xff]  }
  0x2f   : > { %1000 = vmatpush1.bf16.msra.mxu1 %v1818_v31  ;;  %859 = vmatmul.mubr.bf16.gmra.mrb[4].mxu0 %v1824_v32 }
  0x30   : > { %866 = vmatprep.mubr.bf16.mxu0 %v1825_v33 }
  0x32   : > { %1012 = vmatmul.mubr.bf16.vlgmr.msra.gmra.mrb[0].mxu1 %v1821_v34  ;;  %v2132_v34 = vld [vmem:[%s2193_s2] ss:$0 sm:$0xff] }
  0x33   : > { %1491 = vmatprep.mubr.msk.bf16.mxu1 %vm769_vm0, %v1827_v35 }
  0x37   : > { %867 = vmatmul.mubr.bf16.gmra.mrb[8].mxu0 %v1829_v36 }
  0x38   : > { %874 = vmatprep.mubr.bf16.mxu0 %v1831_v37 }
  0x3a   : > { %1020 = vmatmul.mubr.bf16.gmra.mrb[4].mxu1 %v1830_v38 }
  0x3b   : > { %1492 = vmatprep.mubr.msk.bf16.mxu1 %vm769_vm0, %v1833_v39 }
  0x3f   : > { %875 = vmatmul.mubr.bf16.gmra.mrb[12].mxu0 %v1835_v40 }
  0x40   : > { %882 = vmatprep.mubr.bf16.mxu0 %v1837_v41 }
  0x42   : > { %1028 = vmatmul.mubr.bf16.gmra.mrb[8].mxu1 %v1836_v42 }
  0x43   : > { %1493 = vmatprep.mubr.msk.bf16.mxu1 %vm769_vm0, %v1839_v43 }
  0x47   : > { %883 = vmatmul.mubr.bf16.gmra.mrb[16].mxu0 %v1841_v44 }
  0x48   : > { %890 = vmatprep.mubr.bf16.mxu0 %v1843_v45 }
  0x4a   : > { %1036 = vmatmul.mubr.bf16.gmra.mrb[12].mxu1 %v1842_v46 }
  0x4b   : > { %1494 = vmatprep.mubr.msk.bf16.mxu1 %vm769_vm0, %v1845_v47 }
  0x4f   : > { %891 = vmatmul.mubr.bf16.gmra.mrb[20].mxu0 %v1847_v48 }
  0x50   : > { %898 = vmatprep.mubr.bf16.mxu0 %v1849_v49 }
  0x52   : > { %1044 = vmatmul.mubr.bf16.gmra.mrb[16].mxu1 %v1848_v50 }
  0x53   : > { %1495 = vmatprep.mubr.msk.bf16.mxu1 %vm769_vm0, %v1851_v51 }
  0x57   : > { %899 = vmatmul.mubr.bf16.gmra.mrb[24].mxu0 %v1853_v52 }
  0x58   : > { %906 = vmatprep.mubr.bf16.mxu0 %v1855_v53 }
  0x5a   : > { %1052 = vmatmul.mubr.bf16.gmra.mrb[20].mxu1 %v1854_v54 }
  0x5b   : > { %1496 = vmatprep.mubr.msk.bf16.mxu1 %vm769_vm0, %v1857_v55 }
  0x5f   : > { %907 = vmatmul.mubr.bf16.gmra.mrb[28].mxu0 %v1859_v56 }
  0x60   : > { %914 = vmatprep.mubr.bf16.mxu0 %v1861_v57 }
  0x62   : > { %1060 = vmatmul.mubr.bf16.gmra.mrb[24].mxu1 %v1860_v58 }
  0x63   : > { %1497 = vmatprep.mubr.msk.bf16.mxu1 %vm769_vm0, %v1863_v59 }
  0x67   : > { %915 = vmatmul.mubr.bf16.gmra.mrb[32].mxu0 %v1865_v60 }
  0x68   : > { %922 = vmatprep.mubr.bf16.mxu0 %v1867_v61 }
  0x6a   : > { %1068 = vmatmul.mubr.bf16.gmra.mrb[28].mxu1 %v1866_v62 }
  0x6b   : > { %1498 = vmatprep.mubr.msk.bf16.mxu1 %vm769_vm0, %v1869_v63 }
  0x6f   : > { %923 = vmatmul.mubr.bf16.gmra.mrb[36].mxu0 %v1871_v0 }
  0x70   : > { %930 = vmatprep.mubr.bf16.mxu0 %v1873_v1 }
  0x72   : > { %1076 = vmatmul.mubr.bf16.gmra.mrb[32].mxu1 %v1872_v2 }
  0x73   : > { %1499 = vmatprep.mubr.msk.bf16.mxu1 %vm769_vm0, %v1875_v3 }
  0x77   : > { %931 = vmatmul.mubr.bf16.gmra.mrb[40].mxu0 %v1877_v4 }
  0x78   : > { %938 = vmatprep.mubr.bf16.mxu0 %v1879_v5 }
  0x7a   : > { %1084 = vmatmul.mubr.bf16.gmra.mrb[36].mxu1 %v1878_v6 }
  0x7b   : > { %1500 = vmatprep.mubr.msk.bf16.mxu1 %vm769_vm0, %v1881_v7 }
  0x7f   : > { %939 = vmatmul.mubr.bf16.gmra.mrb[44].mxu0 %v1883_v8 }
  0x80   : > { %946 = vmatprep.mubr.bf16.mxu0 %v1885_v9 }
  0x82   : > { %1092 = vmatmul.mubr.bf16.gmra.mrb[40].mxu1 %v1884_v10 }
  0x83   : > { %1501 = vmatprep.mubr.msk.bf16.mxu1 %vm769_vm0, %v1887_v11 }
  0x87   : > { %947 = vmatmul.mubr.bf16.gmra.mrb[48].mxu0 %v1889_v12 }
  0x88   : > { %954 = vmatprep.mubr.bf16.mxu0 %v1891_v13 }
  0x8a   : > { %1100 = vmatmul.mubr.bf16.gmra.mrb[44].mxu1 %v1890_v14 }
  0x8b   : > { %1502 = vmatprep.mubr.msk.bf16.mxu1 %vm769_vm0, %v1893_v15 }
  0x8f   : > { %955 = vmatmul.mubr.bf16.gmra.mrb[52].mxu0 %v1895_v16 }
  0x90   : > { %962 = vmatprep.mubr.bf16.mxu0 %v1897_v17 }
  0x92   : > { %1108 = vmatmul.mubr.bf16.gmra.mrb[48].mxu1 %v1896_v18 }
  0x93   : > { %1503 = vmatprep.mubr.msk.bf16.mxu1 %vm769_vm0, %v1899_v19 }
  0x97   : > { %963 = vmatmul.mubr.bf16.gmra.mrb[56].mxu0 %v1901_v20 }
  0x98   : > { %970 = vmatprep.mubr.bf16.mxu0 %v1903_v21 }
  0x9a   : > { %1116 = vmatmul.mubr.bf16.gmra.mrb[52].mxu1 %v1902_v22 }
  0x9b   : > { %1504 = vmatprep.mubr.msk.bf16.mxu1 %vm769_vm0, %v1905_v23 }
  0x9f   : > { %971 = vmatmul.mubr.bf16.gmra.mrb[60].mxu0 %v1907_v24 }
  0xa2   : > { %1124 = vmatmul.mubr.bf16.gmra.mrb[56].mxu1 %v1908_v25 }
  0xa3   : > { %1505 = vmatprep.mubr.msk.bf16.mxu1 %vm769_vm0, %v1909_v26 }
  0xaa   : > { %1132 = vmatmul.mubr.bf16.gmra.mrb[60].mxu1 %v1911_v27 }
  0xfa   : > { %v1684_v28 = vpop.f32.mrb[0].mxu0 }
  0xfb   : > { %v1685_v29 = vpop.f32.mrb[1].mxu0 }
  0xfc   : > { %v1686_v30 = vadd.f32 %v1685_v29, %v1684_v28  ;;  %v1687_v31 = vpop.f32.mrb[2].mxu0 }
  0xfd   : > { %v1688_v32 = vpop.f32.mrb[3].mxu0 }
  0xfe   : > { %v1689_v33 = vadd.f32 %v1688_v32, %v1687_v31  ;;  %v853_v35 = vadd.f32 %v1686_v30, %v2132_v34 }
 0x100   : > { %v856_v43 = vadd.f32 %v1689_v33, %v2132_v34 }
 0x102   : > { %v1690_v36 = vpop.f32.mrb[4].mxu0 }
 0x103   : > { %v1691_v37 = vpop.f32.mrb[5].mxu0 }
 0x104   : > { %v1692_v39 = vadd.f32 %v1691_v37, %v1690_v36  ;;  %v1693_v40 = vpop.f32.mrb[6].mxu0 }
 0x105   : > { %v1013_v38 = vpop.f32.mrb[0].mxu1  ;;  %v1694_v44 = vpop.f32.mrb[7].mxu0 }
 0x106   : > { %v1014_v41 = vadd.f32 %v1013_v38, %v853_v35  ;;  %v1015_v42 = vpop.f32.mrb[1].mxu1  ;;  %v1695_v46 = vadd.f32 %v1694_v44, %v1693_v40  ;;  %v861_v51 = vadd.f32 %v1692_v39, %v2132_v34 }
 0x107   : > { %v1016_v45 = vpop.f32.mrb[2].mxu1 }
 0x108   : > { %v1017_v47 = vadd.f32 %v1016_v45, %v856_v43  ;;  %v1018_v48 = vpop.f32.mrb[3].mxu1  ;;  %v1140_v49 = vmax.f32 %v1014_v41, 0.0  ;;  %v864_v60 = vadd.f32 %v1695_v46, %v2132_v34 }
 0x10a   : > { %v1141_v50 = vmax.f32 %v1017_v47, 0.0  ;;  %v1696_v52 = vpop.f32.mrb[8].mxu0 }
 0x10b   : > { %v1697_v54 = vpop.f32.mrb[9].mxu0 }
 0x10c   : > { %v1576_v53 = vpack.c.bf16 %v1141_v50, %v1140_v49  ;;  %v1698_v56 = vadd.f32 %v1697_v54, %v1696_v52  ;;  %v1699_v57 = vpop.f32.mrb[10].mxu0 }
 0x10d   : > { %v1021_v55 = vpop.f32.mrb[4].mxu1  ;;  %v1700_v61 = vpop.f32.mrb[11].mxu0 }
 0x10e   : > { %1577 = vst [vmem:[%s2141_s27] sm:$0xff] %v1576_v53   ;;  %v1022_v58 = vadd.f32 %v1021_v55, %v861_v51  ;;  %v1023_v59 = vpop.f32.mrb[5].mxu1  ;;  %v1701_v63 = vadd.f32 %v1700_v61, %v1699_v57  ;;  %v869_v4 = vadd.f32 %v1698_v56, %v2132_v34 }
 0x10f   : > { %v1024_v62 = vpop.f32.mrb[6].mxu1 }
 0x110   : > { %v1025_v0 = vadd.f32 %v1024_v62, %v864_v60  ;;  %v1026_v1 = vpop.f32.mrb[7].mxu1  ;;  %v1142_v2 = vmax.f32 %v1022_v58, 0.0  ;;  %v872_v13 = vadd.f32 %v1701_v63, %v2132_v34 }
 0x112   : > { %v1143_v3 = vmax.f32 %v1025_v0, 0.0  ;;  %v1702_v5 = vpop.f32.mrb[12].mxu0 }
 0x113   : > { %v1703_v7 = vpop.f32.mrb[13].mxu0 }
 0x114   : > { %v1581_v6 = vpack.c.bf16 %v1143_v3, %v1142_v2  ;;  %v1704_v9 = vadd.f32 %v1703_v7, %v1702_v5  ;;  %v1705_v10 = vpop.f32.mrb[14].mxu0 }
 0x115   : > { %v1029_v8 = vpop.f32.mrb[8].mxu1  ;;  %v1706_v14 = vpop.f32.mrb[15].mxu0 }
 0x116   : > { %1653 = vst [vmem:[%s2141_s27 + $0x8] sm:$0xff] %v1581_v6   ;;  %v1030_v11 = vadd.f32 %v1029_v8, %v869_v4  ;;  %v1031_v12 = vpop.f32.mrb[9].mxu1  ;;  %v1707_v16 = vadd.f32 %v1706_v14, %v1705_v10  ;;  %v877_v21 = vadd.f32 %v1704_v9, %v2132_v34 }
 0x117   : > { %v1032_v15 = vpop.f32.mrb[10].mxu1 }
 0x118   : > { %v1033_v17 = vadd.f32 %v1032_v15, %v872_v13  ;;  %v1034_v18 = vpop.f32.mrb[11].mxu1  ;;  %v1144_v19 = vmax.f32 %v1030_v11, 0.0  ;;  %v880_v30 = vadd.f32 %v1707_v16, %v2132_v34 }
 0x11a   : > { %v1145_v20 = vmax.f32 %v1033_v17, 0.0  ;;  %v1708_v22 = vpop.f32.mrb[16].mxu0 }
 0x11b   : > { %v1709_v24 = vpop.f32.mrb[17].mxu0 }
 0x11c   : > { %v1586_v23 = vpack.c.bf16 %v1145_v20, %v1144_v19  ;;  %v1710_v26 = vadd.f32 %v1709_v24, %v1708_v22  ;;  %v1711_v27 = vpop.f32.mrb[18].mxu0 }
 0x11d   : > { %v1037_v25 = vpop.f32.mrb[12].mxu1  ;;  %v1712_v31 = vpop.f32.mrb[19].mxu0 }
 0x11e   : > { %1654 = vst [vmem:[%s2141_s27 + $0x10] sm:$0xff] %v1586_v23   ;;  %v1038_v28 = vadd.f32 %v1037_v25, %v877_v21  ;;  %v1039_v29 = vpop.f32.mrb[13].mxu1  ;;  %v1713_v33 = vadd.f32 %v1712_v31, %v1711_v27  ;;  %v885_v39 = vadd.f32 %v1710_v26, %v2132_v34 }
 0x11f   : > { %v1040_v32 = vpop.f32.mrb[14].mxu1 }
 0x120   : > { %v1041_v35 = vadd.f32 %v1040_v32, %v880_v30  ;;  %v1042_v36 = vpop.f32.mrb[15].mxu1  ;;  %v1146_v37 = vmax.f32 %v1038_v28, 0.0  ;;  %v888_v48 = vadd.f32 %v1713_v33, %v2132_v34 }
 0x122   : > { %v1147_v38 = vmax.f32 %v1041_v35, 0.0  ;;  %v1714_v40 = vpop.f32.mrb[20].mxu0 }
 0x123   : > { %v1715_v42 = vpop.f32.mrb[21].mxu0 }
 0x124   : > { %v1591_v41 = vpack.c.bf16 %v1147_v38, %v1146_v37  ;;  %v1716_v44 = vadd.f32 %v1715_v42, %v1714_v40  ;;  %v1717_v45 = vpop.f32.mrb[22].mxu0 }
 0x125   : > { %v1045_v43 = vpop.f32.mrb[16].mxu1  ;;  %v1718_v49 = vpop.f32.mrb[23].mxu0 }
 0x126   : > { %1655 = vst [vmem:[%s2141_s27 + $0x18] sm:$0xff] %v1591_v41   ;;  %v1046_v46 = vadd.f32 %v1045_v43, %v885_v39  ;;  %v1047_v47 = vpop.f32.mrb[17].mxu1  ;;  %v1719_v51 = vadd.f32 %v1718_v49, %v1717_v45  ;;  %v893_v56 = vadd.f32 %v1716_v44, %v2132_v34 }
 0x127   : > { %v1048_v50 = vpop.f32.mrb[18].mxu1 }
 0x128   : > { %v1049_v52 = vadd.f32 %v1048_v50, %v888_v48  ;;  %v1050_v53 = vpop.f32.mrb[19].mxu1  ;;  %v1148_v54 = vmax.f32 %v1046_v46, 0.0  ;;  %v896_v1 = vadd.f32 %v1719_v51, %v2132_v34 }
 0x12a   : > { %v1149_v55 = vmax.f32 %v1049_v52, 0.0  ;;  %v1720_v57 = vpop.f32.mrb[24].mxu0 }
 0x12b   : > { %v1721_v59 = vpop.f32.mrb[25].mxu0 }
 0x12c   : > { %v1596_v58 = vpack.c.bf16 %v1149_v55, %v1148_v54  ;;  %v1722_v61 = vadd.f32 %v1721_v59, %v1720_v57  ;;  %v1723_v62 = vpop.f32.mrb[26].mxu0 }
 0x12d   : > { %v1053_v60 = vpop.f32.mrb[20].mxu1  ;;  %v1724_v2 = vpop.f32.mrb[27].mxu0 }
 0x12e   : > { %1656 = vst [vmem:[%s2141_s27 + $0x20] sm:$0xff] %v1596_v58   ;;  %v1054_v63 = vadd.f32 %v1053_v60, %v893_v56  ;;  %v1055_v0 = vpop.f32.mrb[21].mxu1  ;;  %v1725_v4 = vadd.f32 %v1724_v2, %v1723_v62  ;;  %v901_v9 = vadd.f32 %v1722_v61, %v2132_v34 }
 0x12f   : > { %v1056_v3 = vpop.f32.mrb[22].mxu1 }
 0x130   : > { %v1057_v5 = vadd.f32 %v1056_v3, %v896_v1  ;;  %v1058_v6 = vpop.f32.mrb[23].mxu1  ;;  %v1150_v7 = vmax.f32 %v1054_v63, 0.0  ;;  %v904_v18 = vadd.f32 %v1725_v4, %v2132_v34 }
 0x132   : > { %v1151_v8 = vmax.f32 %v1057_v5, 0.0  ;;  %v1726_v10 = vpop.f32.mrb[28].mxu0 }
 0x133   : > { %v1727_v12 = vpop.f32.mrb[29].mxu0 }
 0x134   : > { %v1601_v11 = vpack.c.bf16 %v1151_v8, %v1150_v7  ;;  %v1728_v14 = vadd.f32 %v1727_v12, %v1726_v10  ;;  %v1729_v15 = vpop.f32.mrb[30].mxu0 }
 0x135   : > { %v1061_v13 = vpop.f32.mrb[24].mxu1  ;;  %v1730_v19 = vpop.f32.mrb[31].mxu0 }
 0x136   : > { %1657 = vst [vmem:[%s2141_s27 + $0x28] sm:$0xff] %v1601_v11   ;;  %v1062_v16 = vadd.f32 %v1061_v13, %v901_v9  ;;  %v1063_v17 = vpop.f32.mrb[25].mxu1  ;;  %v1731_v21 = vadd.f32 %v1730_v19, %v1729_v15  ;;  %v909_v26 = vadd.f32 %v1728_v14, %v2132_v34 }
 0x137   : > { %v1064_v20 = vpop.f32.mrb[26].mxu1 }
 0x138   : > { %v1065_v22 = vadd.f32 %v1064_v20, %v904_v18  ;;  %v1066_v23 = vpop.f32.mrb[27].mxu1  ;;  %v1152_v24 = vmax.f32 %v1062_v16, 0.0  ;;  %v912_v36 = vadd.f32 %v1731_v21, %v2132_v34 }
 0x13a   : > { %v1153_v25 = vmax.f32 %v1065_v22, 0.0  ;;  %v1732_v27 = vpop.f32.mrb[32].mxu0 }
 0x13b   : > { %v1733_v29 = vpop.f32.mrb[33].mxu0 }
 0x13c   : > { %v1606_v28 = vpack.c.bf16 %v1153_v25, %v1152_v24  ;;  %v1734_v31 = vadd.f32 %v1733_v29, %v1732_v27  ;;  %v1735_v32 = vpop.f32.mrb[34].mxu0 }
 0x13d   : > { %v1069_v30 = vpop.f32.mrb[28].mxu1  ;;  %v1736_v37 = vpop.f32.mrb[35].mxu0 }
 0x13e   : > { %1658 = vst [vmem:[%s2141_s27 + $0x30] sm:$0xff] %v1606_v28   ;;  %v1070_v33 = vadd.f32 %v1069_v30, %v909_v26  ;;  %v1071_v35 = vpop.f32.mrb[29].mxu1  ;;  %v1737_v39 = vadd.f32 %v1736_v37, %v1735_v32  ;;  %v917_v44 = vadd.f32 %v1734_v31, %v2132_v34 }
 0x13f   : > { %v1072_v38 = vpop.f32.mrb[30].mxu1 }
 0x140   : > { %v1073_v40 = vadd.f32 %v1072_v38, %v912_v36  ;;  %v1074_v41 = vpop.f32.mrb[31].mxu1  ;;  %v1154_v42 = vmax.f32 %v1070_v33, 0.0  ;;  %v920_v53 = vadd.f32 %v1737_v39, %v2132_v34 }
 0x142   : > { %v1155_v43 = vmax.f32 %v1073_v40, 0.0  ;;  %v1738_v45 = vpop.f32.mrb[36].mxu0 }
 0x143   : > { %v1739_v47 = vpop.f32.mrb[37].mxu0 }
 0x144   : > { %v1611_v46 = vpack.c.bf16 %v1155_v43, %v1154_v42  ;;  %v1740_v49 = vadd.f32 %v1739_v47, %v1738_v45  ;;  %v1741_v50 = vpop.f32.mrb[38].mxu0 }
 0x145   : > { %v1077_v48 = vpop.f32.mrb[32].mxu1  ;;  %v1742_v54 = vpop.f32.mrb[39].mxu0 }
 0x146   : > { %1659 = vst [vmem:[%s2141_s27 + $0x38] sm:$0xff] %v1611_v46   ;;  %v1078_v51 = vadd.f32 %v1077_v48, %v917_v44  ;;  %v1079_v52 = vpop.f32.mrb[33].mxu1  ;;  %v1743_v56 = vadd.f32 %v1742_v54, %v1741_v50  ;;  %v925_v61 = vadd.f32 %v1740_v49, %v2132_v34 }
 0x147   : > { %v1080_v55 = vpop.f32.mrb[34].mxu1 }
 0x148   : > { %v1081_v57 = vadd.f32 %v1080_v55, %v920_v53  ;;  %v1082_v58 = vpop.f32.mrb[35].mxu1  ;;  %v1156_v59 = vmax.f32 %v1078_v51, 0.0  ;;  %v928_v6 = vadd.f32 %v1743_v56, %v2132_v34 }
 0x14a   : > { %v1157_v60 = vmax.f32 %v1081_v57, 0.0  ;;  %v1744_v62 = vpop.f32.mrb[40].mxu0 }
 0x14b   : > { %v1745_v0 = vpop.f32.mrb[41].mxu0 }
 0x14c   : > { %v1616_v63 = vpack.c.bf16 %v1157_v60, %v1156_v59  ;;  %v1746_v2 = vadd.f32 %v1745_v0, %v1744_v62  ;;  %v1747_v3 = vpop.f32.mrb[42].mxu0 }
 0x14d   : > { %v1085_v1 = vpop.f32.mrb[36].mxu1  ;;  %v1748_v7 = vpop.f32.mrb[43].mxu0 }
 0x14e   : > { %1660 = vst [vmem:[%s2141_s27 + $0x40] sm:$0xff] %v1616_v63   ;;  %v1086_v4 = vadd.f32 %v1085_v1, %v925_v61  ;;  %v1087_v5 = vpop.f32.mrb[37].mxu1  ;;  %v1749_v9 = vadd.f32 %v1748_v7, %v1747_v3  ;;  %v933_v14 = vadd.f32 %v1746_v2, %v2132_v34 }
 0x14f   : > { %v1088_v8 = vpop.f32.mrb[38].mxu1 }
 0x150   : > { %v1089_v10 = vadd.f32 %v1088_v8, %v928_v6  ;;  %v1090_v11 = vpop.f32.mrb[39].mxu1  ;;  %v1158_v12 = vmax.f32 %v1086_v4, 0.0  ;;  %v936_v23 = vadd.f32 %v1749_v9, %v2132_v34 }
 0x152   : > { %v1159_v13 = vmax.f32 %v1089_v10, 0.0  ;;  %v1750_v15 = vpop.f32.mrb[44].mxu0 }
 0x153   : > { %v1751_v17 = vpop.f32.mrb[45].mxu0 }
 0x154   : > { %v1621_v16 = vpack.c.bf16 %v1159_v13, %v1158_v12  ;;  %v1752_v19 = vadd.f32 %v1751_v17, %v1750_v15  ;;  %v1753_v20 = vpop.f32.mrb[46].mxu0 }
 0x155   : > { %v1093_v18 = vpop.f32.mrb[40].mxu1  ;;  %v1754_v24 = vpop.f32.mrb[47].mxu0 }
 0x156   : > { %1661 = vst [vmem:[%s2141_s27 + $0x48] sm:$0xff] %v1621_v16   ;;  %v1094_v21 = vadd.f32 %v1093_v18, %v933_v14  ;;  %v1095_v22 = vpop.f32.mrb[41].mxu1  ;;  %v1755_v26 = vadd.f32 %v1754_v24, %v1753_v20  ;;  %v941_v31 = vadd.f32 %v1752_v19, %v2132_v34 }
 0x157   : > { %v1096_v25 = vpop.f32.mrb[42].mxu1 }
 0x158   : > { %v1097_v27 = vadd.f32 %v1096_v25, %v936_v23  ;;  %v1098_v28 = vpop.f32.mrb[43].mxu1  ;;  %v1160_v29 = vmax.f32 %v1094_v21, 0.0  ;;  %v944_v41 = vadd.f32 %v1755_v26, %v2132_v34 }
 0x15a   : > { %v1161_v30 = vmax.f32 %v1097_v27, 0.0  ;;  %v1756_v32 = vpop.f32.mrb[48].mxu0 }
 0x15b   : > { %v1757_v35 = vpop.f32.mrb[49].mxu0 }
 0x15c   : > { %v1626_v33 = vpack.c.bf16 %v1161_v30, %v1160_v29  ;;  %v1758_v37 = vadd.f32 %v1757_v35, %v1756_v32  ;;  %v1759_v38 = vpop.f32.mrb[50].mxu0 }
 0x15d   : > { %v1101_v36 = vpop.f32.mrb[44].mxu1  ;;  %v1760_v42 = vpop.f32.mrb[51].mxu0 }
 0x15e   : > { %1662 = vst [vmem:[%s2141_s27 + $0x50] sm:$0xff] %v1626_v33   ;;  %v1102_v39 = vadd.f32 %v1101_v36, %v941_v31  ;;  %v1103_v40 = vpop.f32.mrb[45].mxu1  ;;  %v1761_v44 = vadd.f32 %v1760_v42, %v1759_v38  ;;  %v949_v49 = vadd.f32 %v1758_v37, %v2132_v34 }
 0x15f   : > { %v1104_v43 = vpop.f32.mrb[46].mxu1 }
 0x160   : > { %v1105_v45 = vadd.f32 %v1104_v43, %v944_v41  ;;  %v1106_v46 = vpop.f32.mrb[47].mxu1  ;;  %v1162_v47 = vmax.f32 %v1102_v39, 0.0  ;;  %v952_v58 = vadd.f32 %v1761_v44, %v2132_v34 }
 0x162   : > { %v1163_v48 = vmax.f32 %v1105_v45, 0.0  ;;  %v1762_v50 = vpop.f32.mrb[52].mxu0 }
 0x163   : > { %v1763_v52 = vpop.f32.mrb[53].mxu0 }
 0x164   : > { %v1631_v51 = vpack.c.bf16 %v1163_v48, %v1162_v47  ;;  %v1764_v54 = vadd.f32 %v1763_v52, %v1762_v50  ;;  %v1765_v55 = vpop.f32.mrb[54].mxu0 }
 0x165   : > { %v1109_v53 = vpop.f32.mrb[48].mxu1  ;;  %v1766_v59 = vpop.f32.mrb[55].mxu0 }
 0x166   : > { %1663 = vst [vmem:[%s2141_s27 + $0x58] sm:$0xff] %v1631_v51   ;;  %v1110_v56 = vadd.f32 %v1109_v53, %v949_v49  ;;  %v1111_v57 = vpop.f32.mrb[49].mxu1  ;;  %v1767_v61 = vadd.f32 %v1766_v59, %v1765_v55  ;;  %v957_v2 = vadd.f32 %v1764_v54, %v2132_v34 }
 0x167   : > { %v1112_v60 = vpop.f32.mrb[50].mxu1 }
 0x168   : > { %v1113_v62 = vadd.f32 %v1112_v60, %v952_v58  ;;  %v1114_v63 = vpop.f32.mrb[51].mxu1  ;;  %v1164_v0 = vmax.f32 %v1110_v56, 0.0  ;;  %v960_v11 = vadd.f32 %v1767_v61, %v2132_v34 }
 0x16a   : > { %v1165_v1 = vmax.f32 %v1113_v62, 0.0  ;;  %v1768_v3 = vpop.f32.mrb[56].mxu0 }
 0x16b   : > { %v1769_v5 = vpop.f32.mrb[57].mxu0 }
 0x16c   : > { %v1636_v4 = vpack.c.bf16 %v1165_v1, %v1164_v0  ;;  %v1770_v7 = vadd.f32 %v1769_v5, %v1768_v3  ;;  %v1771_v8 = vpop.f32.mrb[58].mxu0 }
 0x16d   : > { %v1117_v6 = vpop.f32.mrb[52].mxu1  ;;  %v1772_v12 = vpop.f32.mrb[59].mxu0 }
 0x16e   : > { %1664 = vst [vmem:[%s2141_s27 + $0x60] sm:$0xff] %v1636_v4   ;;  %v1118_v9 = vadd.f32 %v1117_v6, %v957_v2  ;;  %v1119_v10 = vpop.f32.mrb[53].mxu1  ;;  %v1773_v14 = vadd.f32 %v1772_v12, %v1771_v8  ;;  %v965_v19 = vadd.f32 %v1770_v7, %v2132_v34 }
 0x16f   : > { %v1120_v13 = vpop.f32.mrb[54].mxu1 }
 0x170   : > { %v1121_v15 = vadd.f32 %v1120_v13, %v960_v11  ;;  %v1122_v16 = vpop.f32.mrb[55].mxu1  ;;  %v1166_v17 = vmax.f32 %v1118_v9, 0.0  ;;  %v968_v28 = vadd.f32 %v1773_v14, %v2132_v34 }
 0x172   : > { %v1167_v18 = vmax.f32 %v1121_v15, 0.0  ;;  %v1774_v20 = vpop.f32.mrb[60].mxu0 }
 0x173   : > { %v1775_v22 = vpop.f32.mrb[61].mxu0 }
 0x174   : > { %v1641_v21 = vpack.c.bf16 %v1167_v18, %v1166_v17  ;;  %v1776_v24 = vadd.f32 %v1775_v22, %v1774_v20  ;;  %v1777_v25 = vpop.f32.mrb[62].mxu0 }
 0x175   : > { %v1125_v23 = vpop.f32.mrb[56].mxu1  ;;  %v1778_v29 = vpop.f32.mrb[63].mxu0 }
 0x176   : > { %1665 = vst [vmem:[%s2141_s27 + $0x68] sm:$0xff] %v1641_v21   ;;  %v1126_v26 = vadd.f32 %v1125_v23, %v965_v19  ;;  %v1127_v27 = vpop.f32.mrb[57].mxu1  ;;  %v1779_v31 = vadd.f32 %v1778_v29, %v1777_v25  ;;  %v973_v37 = vadd.f32 %v1776_v24, %v2132_v34 }
 0x177   : > { %v1128_v30 = vpop.f32.mrb[58].mxu1 }
 0x178   : > { %v1129_v32 = vadd.f32 %v1128_v30, %v968_v28  ;;  %v1130_v33 = vpop.f32.mrb[59].mxu1  ;;  %v1168_v35 = vmax.f32 %v1126_v26, 0.0  ;;  %v976_v42 = vadd.f32 %v1779_v31, %v2132_v34 }
 0x17a   : > { %v1169_v36 = vmax.f32 %v1129_v32, 0.0 }
 0x17c   : > { %v1646_v38 = vpack.c.bf16 %v1169_v36, %v1168_v35 }
 0x17d   : > { %v1133_v39 = vpop.f32.mrb[60].mxu1 }
 0x17e   : > { %1666 = vst [vmem:[%s2141_s27 + $0x70] sm:$0xff] %v1646_v38   ;;  %v1134_v40 = vadd.f32 %v1133_v39, %v973_v37  ;;  %v1135_v41 = vpop.f32.mrb[61].mxu1 }
 0x17f   : > { %v1136_v43 = vpop.f32.mrb[62].mxu1 }
 0x180   : > { %v1137_v44 = vadd.f32 %v1136_v43, %v976_v42  ;;  %v1138_v45 = vpop.f32.mrb[63].mxu1  ;;  %v1170_v46 = vmax.f32 %v1134_v40, 0.0 }
 0x182   : > { %v1171_v47 = vmax.f32 %v1137_v44, 0.0 }
 0x184   : > { %v1651_v48 = vpack.c.bf16 %v1171_v47, %v1170_v46 }
 0x186   : > { %1667 = vst [vmem:[%s2141_s27 + $0x78] sm:$0xff] %v1651_v48  }
 0x187 PF: > { %s13_s12 = sadd.s32 1, %s1918_s12  }
 0x188   : > { %p10_p4 = scmp.ge.s32.totalorder %s13_s12, 4  }
 0x18a   :  { %12 = sbr.rel (!%p10_p4) target bundleno = 1 (0x1), region = 62 }

// kernel: deeplab_forward.15
= control target key start
LH: loop header
LB: loop body
LE: loop exit
PB: predicated region body
PF: predicated region fallthrough
CT: control target
= control target key end

     0   :  { %vm626_vm0 = vcmask 785408   ;;  %s1606_s1 = inlined_call_operand.vmem [shape: bf16[864,128], index: 1, kind: input, shape index: {}]   ;;  %s1607_s0 = inlined_call_operand.vmem [shape: bf16[64,864], index: 0, kind: input, shape index: {}]   ;;  %s1608_s2 = inlined_call_operand.vmem [shape: f32[1,128], index: 2, kind: input, shape index: {}]   ;;  %s1609_s3 = inlined_call_operand.vmem [shape: bf16[64,128], index: 3, kind: output, shape index: {}]  }
   0x1   :  { %v1227_v0 = vld [vmem:[%s1606_s1 + $0x40] sm:$0xff]   ;;  %v1231_v4 = vld [vmem:[%s1606_s1 + $0x48] sm:$0xff]   ;;  %v1235_v8 = vld [vmem:[%s1606_s1 + $0x50] sm:$0xff]  }
   0x2   :  { %v1228_v1 = vld [vmem:[%s1606_s1] sm:$0xff]   ;;  %1077 = vmatprep.subr.bf16.mxu0 %v1227_v0  ;;  %v1232_v5 = vld [vmem:[%s1606_s1 + $0x8] sm:$0xff]   ;;  %v1236_v9 = vld [vmem:[%s1606_s1 + $0x10] sm:$0xff]  }
   0x3   :  { %v1229_v2 = vld [vmem:[%s1606_s1 + $0xc0] sm:$0xff]   ;;  %1078 = vmatpush3.bf16.msra.mxu0 %v1228_v1  ;;  %v1233_v6 = vld [vmem:[%s1606_s1 + $0xc8] sm:$0xff]   ;;  %v1237_v10 = vld [vmem:[%s1606_s1 + $0xd0] sm:$0xff]  }
   0x4   :  { %v1230_v3 = vld [vmem:[%s1606_s1 + $0x80] sm:$0xff]   ;;  %1117 = vmatprep.subr.bf16.mxu1 %v1229_v2  ;;  %1079 = vmatprep.subr.bf16.mxu0 %v1231_v4  ;;  %v1234_v7 = vld [vmem:[%s1606_s1 + $0x88] sm:$0xff]   ;;  %v1238_v11 = vld [vmem:[%s1606_s1 + $0x90] sm:$0xff]  }
   0x5   :  { %1118 = vmatpush3.bf16.msra.mxu1 %v1230_v3  ;;  %v1239_v12 = vld [vmem:[%s1606_s1 + $0x58] sm:$0xff]   ;;  %v1243_v16 = vld [vmem:[%s1606_s1 + $0x60] sm:$0xff]   ;;  %v1247_v20 = vld [vmem:[%s1606_s1 + $0x68] sm:$0xff]  }
   0x6   :  { %1119 = vmatprep.subr.bf16.mxu1 %v1233_v6  ;;  %v1240_v13 = vld [vmem:[%s1606_s1 + $0x18] sm:$0xff]   ;;  %v1244_v17 = vld [vmem:[%s1606_s1 + $0x20] sm:$0xff]   ;;  %v1248_v21 = vld [vmem:[%s1606_s1 + $0x28] sm:$0xff]  }
   0x7   :  { %1080 = vmatpush3.bf16.msra.mxu0 %v1232_v5  ;;  %v1241_v14 = vld [vmem:[%s1606_s1 + $0xd8] sm:$0xff]   ;;  %v1245_v18 = vld [vmem:[%s1606_s1 + $0xe0] sm:$0xff]   ;;  %v1249_v22 = vld [vmem:[%s1606_s1 + $0xe8] sm:$0xff]  }
   0x8   :  { %1081 = vmatprep.subr.bf16.mxu0 %v1235_v8  ;;  %v1242_v15 = vld [vmem:[%s1606_s1 + $0x98] sm:$0xff]   ;;  %v1246_v19 = vld [vmem:[%s1606_s1 + $0xa0] sm:$0xff]   ;;  %v1250_v23 = vld [vmem:[%s1606_s1 + $0xa8] sm:$0xff]  }
   0x9   :  { %1120 = vmatpush3.bf16.msra.mxu1 %v1234_v7  ;;  %v1251_v24 = vld [vmem:[%s1606_s1 + $0x70] sm:$0xff]   ;;  %v1255_v28 = vld [vmem:[%s1606_s1 + $0x78] sm:$0xff]   ;;  %v1260_v32 = vld [vmem:[%s1607_s0 + $0x4] ss:$28 sps:$4 sm:$0xff]  }
   0xa   :  { %1121 = vmatprep.subr.bf16.mxu1 %v1237_v10  ;;  %v1252_v25 = vld [vmem:[%s1606_s1 + $0x30] sm:$0xff]   ;;  %v1256_v29 = vld [vmem:[%s1606_s1 + $0x38] sm:$0xff]   ;;  %671 = vmatprep.mubr.bf16.mxu0 %v1260_v32  ;;  %v1262_v34 = vld [vmem:[%s1606_s1 + $0x140] sm:$0xff]  }
   0xb   :  { %1082 = vmatpush3.bf16.msra.mxu0 %v1236_v9  ;;  %v1253_v26 = vld [vmem:[%s1606_s1 + $0xf0] sm:$0xff]   ;;  %v1257_v30 = vld [vmem:[%s1606_s1 + $0xf8] sm:$0xff]   ;;  %v1263_v35 = vld [vmem:[%s1607_s0 + $0x8] ss:$28 sps:$4 sm:$0xff]  }
   0xc   :  { %1083 = vmatprep.subr.bf16.mxu0 %v1239_v12  ;;  %v1254_v27 = vld [vmem:[%s1606_s1 + $0xb0] sm:$0xff]   ;;  %v1258_v31 = vld [vmem:[%s1607_s0] ss:$28 sps:$4 sm:$0xff]   ;;  %v1265_v36 = vld [vmem:[%s1607_s0 + $0xc] ss:$28 sps:$4 sm:$0xff]  }
   0xd   :  { %1122 = vmatpush3.bf16.msra.mxu1 %v1238_v11  ;;  %v1261_v33 = vld [vmem:[%s1606_s1 + $0xb8] sm:$0xff]   ;;  %v1266_v37 = vld [vmem:[%s1606_s1 + $0x100] sm:$0xff]   ;;  %736 = vmatprep.mubr.bf16.mxu1 %v1265_v36  ;;  %v1267_v38 = vld [vmem:[%s1606_s1 + $0x148] sm:$0xff]  }
   0xe   :  { %1123 = vmatprep.subr.bf16.mxu1 %v1241_v14  ;;  %v1268_v39 = vld [vmem:[%s1606_s1 + $0x108] sm:$0xff]   ;;  %v1269_v40 = vld [vmem:[%s1607_s0 + $0x3c] ss:$28 sps:$4 sm:$0xff]   ;;  %v1272_v42 = vld [vmem:[%s1606_s1 + $0x150] sm:$0xff]  }
   0xf   :  { %1084 = vmatpush3.bf16.msra.mxu0 %v1240_v13  ;;  %v1271_v41 = vld [vmem:[%s1607_s0 + $0x38] ss:$28 sps:$4 sm:$0xff]   ;;  %v1273_v43 = vld [vmem:[%s1607_s0 + $0x44] ss:$28 sps:$4 sm:$0xff]   ;;  %v1282_v50 = vld [vmem:[%s1607_s0 + $0x70] ss:$28 sps:$4 sm:$0xff]  }
  0x10   :  { %1085 = vmatprep.subr.bf16.mxu0 %v1243_v16  ;;  %v1275_v44 = vld [vmem:[%s1606_s1 + $0x110] sm:$0xff]   ;;  %v1276_v45 = vld [vmem:[%s1607_s0 + $0x40] ss:$28 sps:$4 sm:$0xff]   ;;  %v1284_v52 = vld [vmem:[%s1606_s1 + $0x188] sm:$0xff]  }
  0x11   :  { %1124 = vmatpush3.bf16.msra.mxu1 %v1242_v15  ;;  %v1277_v46 = vld [vmem:[%s1606_s1 + $0x158] sm:$0xff]   ;;  %v1278_v47 = vld [vmem:[%s1606_s1 + $0x180] sm:$0xff]   ;;  %v1280_v49 = vld [vmem:[%s1607_s0 + $0x74] ss:$28 sps:$4 sm:$0xff]  }
  0x12   :  { %1125 = vmatprep.subr.bf16.mxu1 %v1245_v18  ;;  %v1279_v48 = vld [vmem:[%s1606_s1 + $0x118] sm:$0xff]   ;;  %v1283_v51 = vld [vmem:[%s1606_s1 + $0x160] sm:$0xff]   ;;  %v1289_v56 = vld [vmem:[%s1606_s1 + $0x168] sm:$0xff]  }
  0x13   :  { %1086 = vmatpush3.bf16.msra.mxu0 %v1244_v17  ;;  %v1285_v53 = vld [vmem:[%s1607_s0 + $0x7c] ss:$28 sps:$4 sm:$0xff]   ;;  %v1287_v54 = vld [vmem:[%s1606_s1 + $0x120] sm:$0xff]   ;;  %v1290_v57 = vld [vmem:[%s1606_s1 + $0x190] sm:$0xff]  }
  0x14   :  { %1087 = vmatprep.subr.bf16.mxu0 %v1247_v20  ;;  %v1288_v55 = vld [vmem:[%s1607_s0 + $0x78] ss:$28 sps:$4 sm:$0xff]   ;;  %v1291_v58 = vld [vmem:[%s1606_s1 + $0x128] sm:$0xff]   ;;  %v1302_v3 = vld [vmem:[%s1606_s1 + $0x1a0] sm:$0xff]  }
  0x15   :  { %1126 = vmatpush3.bf16.msra.mxu1 %v1246_v19  ;;  %v1292_v59 = vld [vmem:[%s1607_s0 + $0xac] ss:$28 sps:$4 sm:$0xff]   ;;  %v1295_v61 = vld [vmem:[%s1606_s1 + $0x170] sm:$0xff]   ;;  %v1296_v62 = vld [vmem:[%s1606_s1 + $0x198] sm:$0xff]  }
  0x16   :  { %1127 = vmatprep.subr.bf16.mxu1 %v1249_v22  ;;  %v1294_v60 = vld [vmem:[%s1607_s0 + $0xa8] ss:$28 sps:$4 sm:$0xff]   ;;  %v1297_v63 = vld [vmem:[%s1607_s0 + $0xb4] ss:$28 sps:$4 sm:$0xff]   ;;  %v1301_v2 = vld [vmem:[%s1606_s1 + $0x178] sm:$0xff]  }
  0x17   :  { %1088 = vmatpush3.bf16.msra.mxu0 %v1248_v21  ;;  %v1299_v0 = vld [vmem:[%s1606_s1 + $0x130] sm:$0xff]   ;;  %v1303_v4 = vld [vmem:[%s1606_s1 + $0x138] sm:$0xff]   ;;  %v1307_v7 = vld [vmem:[%s1606_s1 + $0x1a8] sm:$0xff]  }
  0x18   :  { %1089 = vmatprep.subr.bf16.mxu0 %v1251_v24  ;;  %v1300_v1 = vld [vmem:[%s1607_s0 + $0xb0] ss:$28 sps:$4 sm:$0xff]   ;;  %v1308_v8 = vld [vmem:[%s1607_s0 + $0x18] ss:$28 sps:$4 sm:$0xff]   ;;  %v1316_v11 = vld [vmem:[%s1607_s0 + $0x88] ss:$28 sps:$4 sm:$0xff]  }
  0x19   :  { %1128 = vmatpush3.bf16.msra.mxu1 %v1250_v23  ;;  %v1304_v5 = vld [vmem:[%s1607_s0 + $0x10] ss:$28 sps:$4 sm:$0xff]   ;;  %v1312_v12 = vld [vmem:[%s1607_s0 + $0x48] ss:$28 sps:$4 sm:$0xff]   ;;  %v1317_v14 = vld [vmem:[%s1607_s0 + $0xc0] ss:$28 sps:$4 sm:$0xff]  }
  0x1a   :  { %1129 = vmatprep.subr.bf16.mxu1 %v1253_v26  ;;  %v1306_v6 = vld [vmem:[%s1607_s0 + $0x14] ss:$28 sps:$4 sm:$0xff]   ;;  %v1310_v10 = vld [vmem:[%s1607_s0 + $0x4c] ss:$28 sps:$4 sm:$0xff]   ;;  %v1313_v13 = vld [vmem:[%s1607_s0 + $0x84] ss:$28 sps:$4 sm:$0xff]  }
  0x1b   :  { %1090 = vmatpush3.bf16.msra.mxu0 %v1252_v25  ;;  %v1309_v9 = vld [vmem:[%s1607_s0 + $0x50] ss:$28 sps:$4 sm:$0xff]   ;;  %v1315_v15 = vld [vmem:[%s1607_s0 + $0x80] ss:$28 sps:$4 sm:$0xff]   ;;  %v1320_v17 = vld [vmem:[%s1607_s0 + $0xb8] ss:$28 sps:$4 sm:$0xff]  }
  0x1c   :  { %1091 = vmatprep.subr.bf16.mxu0 %v1255_v28  ;;  %v1318_v16 = vld [vmem:[%s1607_s0 + $0xbc] ss:$28 sps:$4 sm:$0xff]   ;;  %v951_v19 = vld [vmem:[%s1608_s2] ss:$0 sm:$0xff] }
  0x1d   :  { %1130 = vmatpush3.bf16.msra.mxu1 %v1254_v27 }
  0x1e   :  { %1131 = vmatprep.subr.bf16.mxu1 %v1257_v30 }
  0x1f   :  { %1092 = vmatpush3.bf16.msra.mxu0 %v1256_v29 }
  0x20   :  { %1157 = vmatprep.subr.bf16.mxu0 %v1262_v34 }
  0x21   :  { %1132 = vmatpush3.bf16.msra.mxu1 %v1261_v33 }
  0x22   :  { %672 = vmatmul.mubr.bf16.vlgmr.msra.gmra.mrb[0].mxu0 %v1258_v31  ;;  %1207 = vmatprep.subr.bf16.mxu1 %v1278_v47 }
  0x23   :  { %1158 = vmatpush3.bf16.msra.mxu0 %v1266_v37  ;;  %679 = vmatprep.mubr.bf16.mxu0 %v1269_v40 }
  0x24   :  { %737 = vmatmul.mubr.bf16.vlgmr.msra.gmra.mrb[0].mxu1 %v1263_v35  ;;  %1159 = vmatprep.subr.bf16.mxu0 %v1267_v38 }
  0x25   :  { %744 = vmatprep.mubr.bf16.mxu1 %v1273_v43  ;;  %1208 = vmatpush3.bf16.msra.mxu1 %v1278_v47 }
  0x26   :  { %1209 = vmatprep.subr.bf16.mxu1 %v1284_v52 }
  0x27   :  { %1160 = vmatpush3.bf16.msra.mxu0 %v1268_v39 }
  0x28   :  { %1161 = vmatprep.subr.bf16.mxu0 %v1272_v42 }
  0x29   :  { %1210 = vmatpush3.bf16.msra.mxu1 %v1284_v52 }
  0x2a   :  { %680 = vmatmul.mubr.bf16.gmra.mrb[4].mxu0 %v1271_v41  ;;  %1211 = vmatprep.subr.bf16.mxu1 %v1290_v57 }
  0x2b   :  { %1162 = vmatpush3.bf16.msra.mxu0 %v1275_v44  ;;  %687 = vmatprep.mubr.bf16.mxu0 %v1280_v49 }
  0x2c   :  { %745 = vmatmul.mubr.bf16.gmra.mrb[4].mxu1 %v1276_v45  ;;  %1163 = vmatprep.subr.bf16.mxu0 %v1277_v46 }
  0x2d   :  { %752 = vmatprep.mubr.bf16.mxu1 %v1285_v53  ;;  %1212 = vmatpush3.bf16.msra.mxu1 %v1290_v57 }
  0x2e   :  { %1213 = vmatprep.subr.bf16.mxu1 %v1296_v62 }
  0x2f   :  { %1164 = vmatpush3.bf16.msra.mxu0 %v1279_v48 }
  0x30   :  { %1165 = vmatprep.subr.bf16.mxu0 %v1283_v51 }
  0x31   :  { %1214 = vmatpush3.bf16.msra.mxu1 %v1296_v62 }
  0x32   :  { %688 = vmatmul.mubr.bf16.gmra.mrb[8].mxu0 %v1282_v50  ;;  %1215 = vmatprep.subr.bf16.mxu1 %v1302_v3 }
  0x33   :  { %1166 = vmatpush3.bf16.msra.mxu0 %v1287_v54  ;;  %695 = vmatprep.mubr.bf16.mxu0 %v1292_v59 }
  0x34   :  { %753 = vmatmul.mubr.bf16.gmra.mrb[8].mxu1 %v1288_v55  ;;  %1167 = vmatprep.subr.bf16.mxu0 %v1289_v56 }
  0x35   :  { %760 = vmatprep.mubr.bf16.mxu1 %v1297_v63  ;;  %1216 = vmatpush3.bf16.msra.mxu1 %v1302_v3 }
  0x36   :  { %1217 = vmatprep.subr.bf16.mxu1 %v1307_v7 }
  0x37   :  { %1168 = vmatpush3.bf16.msra.mxu0 %v1291_v58 }
  0x38   :  { %1169 = vmatprep.subr.bf16.mxu0 %v1295_v61 }
  0x39   :  { %1218 = vmatpush3.bf16.msra.mxu1 %v1307_v7 }
  0x3a   :  { %696 = vmatmul.mubr.bf16.gmra.mrb[12].mxu0 %v1294_v60 }
  0x3b   :  { %1170 = vmatpush3.bf16.msra.mxu0 %v1299_v0  ;;  %801 = vmatprep.mubr.bf16.mxu0 %v1306_v6 }
  0x3c   :  { %761 = vmatmul.mubr.bf16.gmra.mrb[12].mxu1 %v1300_v1  ;;  %1171 = vmatprep.subr.bf16.mxu0 %v1301_v2 }
  0x3d   :  { %1219 = vmatprep.mubr.msk.bf16.mxu1 %vm626_vm0, %v1308_v8 }
  0x3f   :  { %1172 = vmatpush3.bf16.msra.mxu0 %v1303_v4 }
  0x42   :  { %802 = vmatmul.mubr.bf16.vlgmr.msra.gmra.mrb[16].mxu0 %v1304_v5 }
  0x43   :  { %809 = vmatprep.mubr.bf16.mxu0 %v1310_v10 }
  0x44   :  { %1220 = vmatmul.mubr.msk.bf16.vlgmr.msra.gmra.mrb[16].mxu1 %vm626_vm0, %v1309_v9 }
  0x45   :  { %1223 = vmatprep.mubr.msk.bf16.mxu1 %vm626_vm0, %v1316_v11 }
  0x4a   :  { %810 = vmatmul.mubr.bf16.gmra.mrb[20].mxu0 %v1312_v12 }
  0x4b   :  { %817 = vmatprep.mubr.bf16.mxu0 %v1313_v13 }
  0x4c   :  { %1224 = vmatmul.mubr.msk.bf16.gmra.mrb[20].mxu1 %vm626_vm0, %v1317_v14 }
  0x52   :  { %818 = vmatmul.mubr.bf16.gmra.mrb[24].mxu0 %v1315_v15 }
  0x53   :  { %825 = vmatprep.mubr.bf16.mxu0 %v1318_v16 }
  0x5a   :  { %826 = vmatmul.mubr.bf16.gmra.mrb[28].mxu0 %v1320_v17 }
  0xf5   :  { %v1093_v18 = vpop.f32.mrb[0].mxu0 }
  0xf6   :  { %v1094_v20 = vpop.f32.mrb[1].mxu0 }
  0xf7   :  { %v1095_v21 = vadd.f32 %v1094_v20, %v1093_v18  ;;  %v1096_v22 = vpop.f32.mrb[2].mxu0  ;;  %v1133_v23 = vpop.f32.mrb[0].mxu1 }
  0xf8   :  { %v1097_v24 = vpop.f32.mrb[3].mxu0  ;;  %v1134_v27 = vpop.f32.mrb[1].mxu1 }
  0xf9   :  { %v674_v25 = vadd.f32 %v1095_v21, %v951_v19  ;;  %v1098_v26 = vadd.f32 %v1097_v24, %v1096_v22  ;;  %v1135_v28 = vadd.f32 %v1134_v27, %v1133_v23  ;;  %v1136_v29 = vpop.f32.mrb[2].mxu1 }
  0xfa   :  { %v1137_v31 = vpop.f32.mrb[3].mxu1 }
  0xfb   :  { %v677_v30 = vadd.f32 %v1098_v26, %v951_v19  ;;  %v739_v32 = vadd.f32 %v1135_v28, %v674_v25  ;;  %v1138_v33 = vadd.f32 %v1137_v31, %v1136_v29 }
  0xfd   :  { %v1099_v34 = vpop.f32.mrb[4].mxu0  ;;  %v742_v35 = vadd.f32 %v1138_v33, %v677_v30 }
  0xfe   :  { %v1100_v36 = vpop.f32.mrb[5].mxu0 }
  0xff   :  { %v1101_v37 = vadd.f32 %v1100_v36, %v1099_v34  ;;  %v1102_v38 = vpop.f32.mrb[6].mxu0  ;;  %v1139_v39 = vpop.f32.mrb[4].mxu1 }
 0x100   :  { %v1103_v40 = vpop.f32.mrb[7].mxu0  ;;  %v1140_v43 = vpop.f32.mrb[5].mxu1 }
 0x101   :  { %v682_v41 = vadd.f32 %v1101_v37, %v951_v19  ;;  %v1104_v42 = vadd.f32 %v1103_v40, %v1102_v38  ;;  %v1141_v44 = vadd.f32 %v1140_v43, %v1139_v39  ;;  %v1142_v45 = vpop.f32.mrb[6].mxu1 }
 0x102   :  { %v1143_v47 = vpop.f32.mrb[7].mxu1 }
 0x103   :  { %v685_v46 = vadd.f32 %v1104_v42, %v951_v19  ;;  %v747_v48 = vadd.f32 %v1141_v44, %v682_v41  ;;  %v1144_v49 = vadd.f32 %v1143_v47, %v1142_v45 }
 0x105   :  { %v1105_v50 = vpop.f32.mrb[8].mxu0  ;;  %v750_v51 = vadd.f32 %v1144_v49, %v685_v46 }
 0x106   :  { %v1106_v52 = vpop.f32.mrb[9].mxu0 }
 0x107   :  { %v1107_v53 = vadd.f32 %v1106_v52, %v1105_v50  ;;  %v1108_v54 = vpop.f32.mrb[10].mxu0  ;;  %v1145_v55 = vpop.f32.mrb[8].mxu1 }
 0x108   :  { %v1109_v56 = vpop.f32.mrb[11].mxu0  ;;  %v1146_v59 = vpop.f32.mrb[9].mxu1 }
 0x109   :  { %v690_v57 = vadd.f32 %v1107_v53, %v951_v19  ;;  %v1110_v58 = vadd.f32 %v1109_v56, %v1108_v54  ;;  %v1147_v60 = vadd.f32 %v1146_v59, %v1145_v55  ;;  %v1148_v61 = vpop.f32.mrb[10].mxu1 }
 0x10a   :  { %v1149_v63 = vpop.f32.mrb[11].mxu1 }
 0x10b   :  { %v693_v62 = vadd.f32 %v1110_v58, %v951_v19  ;;  %v755_v0 = vadd.f32 %v1147_v60, %v690_v57  ;;  %v1150_v1 = vadd.f32 %v1149_v63, %v1148_v61 }
 0x10d   :  { %v1111_v2 = vpop.f32.mrb[12].mxu0  ;;  %v758_v3 = vadd.f32 %v1150_v1, %v693_v62 }
 0x10e   :  { %v1112_v4 = vpop.f32.mrb[13].mxu0 }
 0x10f   :  { %v1113_v5 = vadd.f32 %v1112_v4, %v1111_v2  ;;  %v1114_v6 = vpop.f32.mrb[14].mxu0  ;;  %v1151_v7 = vpop.f32.mrb[12].mxu1 }
 0x110   :  { %v1115_v8 = vpop.f32.mrb[15].mxu0  ;;  %v1152_v11 = vpop.f32.mrb[13].mxu1 }
 0x111   :  { %v698_v9 = vadd.f32 %v1113_v5, %v951_v19  ;;  %v1116_v10 = vadd.f32 %v1115_v8, %v1114_v6  ;;  %v1153_v12 = vadd.f32 %v1152_v11, %v1151_v7  ;;  %v1154_v13 = vpop.f32.mrb[14].mxu1 }
 0x112   :  { %v1155_v15 = vpop.f32.mrb[15].mxu1 }
 0x113   :  { %v701_v14 = vadd.f32 %v1116_v10, %v951_v19  ;;  %v763_v16 = vadd.f32 %v1153_v12, %v698_v9  ;;  %v1156_v17 = vadd.f32 %v1155_v15, %v1154_v13 }
 0x115   :  { %v766_v18 = vadd.f32 %v1156_v17, %v701_v14  ;;  %v1173_v20 = vpop.f32.mrb[16].mxu0 }
 0x116   :  { %v1174_v21 = vpop.f32.mrb[17].mxu0 }
 0x117   :  { %v1175_v22 = vadd.f32 %v1174_v21, %v1173_v20  ;;  %v1176_v23 = vpop.f32.mrb[18].mxu0  ;;  %v1221_v25 = vpop.f32.mrb[16].mxu1 }
 0x118   :  { %v1177_v24 = vpop.f32.mrb[19].mxu0  ;;  %v868_v28 = vpop.f32.mrb[17].mxu1 }
 0x119   :  { %v1178_v26 = vadd.f32 %v1177_v24, %v1176_v23  ;;  %v804_v27 = vadd.f32 %v1175_v22, %v739_v32  ;;  %v1222_v29 = vpop.f32.mrb[18].mxu1 }
 0x11a   :  { %v871_v33 = vpop.f32.mrb[19].mxu1 }
 0x11b   :  { %v869_v30 = vadd.f32 %v868_v28, %v804_v27  ;;  %v807_v31 = vadd.f32 %v1178_v26, %v742_v35 }
 0x11d   :  { %v872_v34 = vadd.f32 %v871_v33, %v807_v31  ;;  %v1179_v36 = vpop.f32.mrb[20].mxu0  ;;  %v899_v37 = vmax.f32 %v869_v30, 0.0 }
 0x11e   :  { %v1180_v19 = vpop.f32.mrb[21].mxu0 }
 0x11f   :  { %v900_v38 = vmax.f32 %v872_v34, 0.0  ;;  %v1181_v39 = vadd.f32 %v1180_v19, %v1179_v36  ;;  %v1182_v40 = vpop.f32.mrb[22].mxu0  ;;  %v1225_v42 = vpop.f32.mrb[20].mxu1 }
 0x120   :  { %v1183_v41 = vpop.f32.mrb[23].mxu0  ;;  %v884_v46 = vpop.f32.mrb[21].mxu1 }
 0x121   :  { %v1057_v43 = vpack.c.bf16 %v900_v38, %v899_v37  ;;  %v812_v44 = vadd.f32 %v1181_v39, %v747_v48  ;;  %v1184_v45 = vadd.f32 %v1183_v41, %v1182_v40  ;;  %v1226_v47 = vpop.f32.mrb[22].mxu1 }
 0x122   :  { %v887_v49 = vpop.f32.mrb[23].mxu1 }
 0x123   :  { %1058 = vst [vmem:[%s1609_s3] sm:$0xff] %v1057_v43   ;;  %v877_v32 = vadd.f32 %v1221_v25, %v812_v44  ;;  %v815_v35 = vadd.f32 %v1184_v45, %v750_v51 }
 0x125   :  { %v880_v50 = vadd.f32 %v1222_v29, %v815_v35  ;;  %v1185_v52 = vpop.f32.mrb[24].mxu0  ;;  %v901_v54 = vmax.f32 %v877_v32, 0.0 }
 0x126   :  { %v1186_v53 = vpop.f32.mrb[25].mxu0 }
 0x127   :  { %v902_v55 = vmax.f32 %v880_v50, 0.0  ;;  %v1187_v56 = vadd.f32 %v1186_v53, %v1185_v52  ;;  %v1188_v57 = vpop.f32.mrb[26].mxu0 }
 0x128   :  { %v1189_v58 = vpop.f32.mrb[27].mxu0 }
 0x129   :  { %v1062_v59 = vpack.c.bf16 %v902_v55, %v901_v54  ;;  %v1190_v48 = vadd.f32 %v1189_v58, %v1188_v57  ;;  %v820_v60 = vadd.f32 %v1187_v56, %v755_v0 }
 0x12b   :  { %1074 = vst [vmem:[%s1609_s3 + $0x8] sm:$0xff] %v1062_v59   ;;  %v885_v61 = vadd.f32 %v884_v46, %v820_v60  ;;  %v823_v62 = vadd.f32 %v1190_v48, %v758_v3 }
 0x12d   :  { %v888_v63 = vadd.f32 %v887_v49, %v823_v62  ;;  %v1191_v51 = vpop.f32.mrb[28].mxu0  ;;  %v903_v2 = vmax.f32 %v885_v61, 0.0 }
 0x12e   :  { %v1192_v1 = vpop.f32.mrb[29].mxu0 }
 0x12f   :  { %v904_v4 = vmax.f32 %v888_v63, 0.0  ;;  %v1193_v5 = vadd.f32 %v1192_v1, %v1191_v51  ;;  %v1194_v6 = vpop.f32.mrb[30].mxu0 }
 0x130   :  { %v1195_v7 = vpop.f32.mrb[31].mxu0 }
 0x131   :  { %v1067_v8 = vpack.c.bf16 %v904_v4, %v903_v2  ;;  %v828_v9 = vadd.f32 %v1193_v5, %v763_v16  ;;  %v1196_v10 = vadd.f32 %v1195_v7, %v1194_v6 }
 0x133   :  { %1075 = vst [vmem:[%s1609_s3 + $0x10] sm:$0xff] %v1067_v8   ;;  %v893_v0 = vadd.f32 %v1225_v42, %v828_v9  ;;  %v831_v11 = vadd.f32 %v1196_v10, %v766_v18 }
 0x135   :  { %v896_v12 = vadd.f32 %v1226_v47, %v831_v11  ;;  %v905_v13 = vmax.f32 %v893_v0, 0.0 }
 0x137   :  { %v906_v3 = vmax.f32 %v896_v12, 0.0 }
 0x139   :  { %v1072_v14 = vpack.c.bf16 %v906_v3, %v905_v13 }
 0x13b   :  { %1076 = vst [vmem:[%s1609_s3 + $0x18] sm:$0xff] %v1072_v14  }

// kernel: deeplab_forward.16
= control target key start
LH: loop header
LB: loop body
LE: loop exit
PB: predicated region body
PF: predicated region fallthrough
CT: control target
= control target key end

     0   :  { %vm941_vm0 = vcmask 523264   ;;  %s1995_s1 = inlined_call_operand.vmem [shape: bf16[1728,128], index: 1, kind: input, shape index: {}]   ;;  %s1996_s0 = inlined_call_operand.vmem [shape: bf16[8,1728], index: 0, kind: input, shape index: {}]   ;;  %s1997_s2 = inlined_call_operand.vmem [shape: f32[1,128], index: 2, kind: input, shape index: {}]   ;;  %s1998_s3 = inlined_call_operand.vmem [shape: bf16[8,128], index: 3, kind: output, shape index: {}]  }
   0x1   :  { %v1489_v0 = vld [vmem:[%s1995_s1 + $0x40] sm:$0xff]   ;;  %v1491_v2 = vld [vmem:[%s1995_s1 + $0x48] sm:$0xff]   ;;  %v1493_v4 = vld [vmem:[%s1995_s1 + $0x50] sm:$0xff]  }
   0x2   :  { %v1490_v1 = vld [vmem:[%s1995_s1] sm:$0xff]   ;;  %1356 = vmatprep.subr.bf16.mxu1 %v1489_v0  ;;  %v1492_v3 = vld [vmem:[%s1995_s1 + $0x8] sm:$0xff]   ;;  %v1494_v5 = vld [vmem:[%s1995_s1 + $0x10] sm:$0xff]  }
   0x3   :  { %1357 = vmatpush3.bf16.msra.mxu1 %v1490_v1  ;;  %v1495_v6 = vld [vmem:[%s1995_s1 + $0x58] sm:$0xff]   ;;  %v1499_v8 = vld [vmem:[%s1995_s1 + $0x140] sm:$0xff]   ;;  %v1503_v12 = vld [vmem:[%s1995_s1 + $0x148] sm:$0xff]  }
   0x4   :  { %1358 = vmatprep.subr.bf16.mxu1 %v1491_v2  ;;  %v1496_v7 = vld [vmem:[%s1995_s1 + $0x18] sm:$0xff]   ;;  %v1500_v9 = vld [vmem:[%s1995_s1 + $0x100] sm:$0xff]   ;;  %1400 = vmatprep.subr.bf16.mxu0 %v1499_v8  ;;  %v1504_v13 = vld [vmem:[%s1995_s1 + $0x108] sm:$0xff]  }
   0x5   :  { %v1497_v10 = vld [vmem:[%s1995_s1 + $0x60] sm:$0xff]   ;;  %1401 = vmatpush3.bf16.msra.mxu0 %v1500_v9  ;;  %v1501_v14 = vld [vmem:[%s1995_s1 + $0x68] sm:$0xff]   ;;  %v1507_v16 = vld [vmem:[%s1995_s1 + $0x150] sm:$0xff]  }
   0x6   :  { %v1498_v11 = vld [vmem:[%s1995_s1 + $0x20] sm:$0xff]   ;;  %1402 = vmatprep.subr.bf16.mxu0 %v1503_v12  ;;  %v1502_v15 = vld [vmem:[%s1995_s1 + $0x28] sm:$0xff]   ;;  %v1508_v17 = vld [vmem:[%s1995_s1 + $0x110] sm:$0xff]  }
   0x7   :  { %1359 = vmatpush3.bf16.msra.mxu1 %v1492_v3  ;;  %v1505_v18 = vld [vmem:[%s1995_s1 + $0x70] sm:$0xff]   ;;  %v1509_v20 = vld [vmem:[%s1995_s1 + $0x78] sm:$0xff]   ;;  %v15_v22 = vld [vmem:[%s1996_s0] sm:$0xff] }
   0x8   :  { %1360 = vmatprep.subr.bf16.mxu1 %v1493_v4  ;;  %v1506_v19 = vld [vmem:[%s1995_s1 + $0x30] sm:$0xff]   ;;  %v1511_v21 = vld [vmem:[%s1995_s1 + $0x158] sm:$0xff]   ;;  %v1234_v23 = vcombine.high %v15_v22, %v15_v22  ;;  %v1515_v26 = vld [vmem:[%s1995_s1 + $0xc0] sm:$0xff]   ;;  %v1233_v30 = vcombine.low %v15_v22, %v15_v22 }
   0x9   :  { %1403 = vmatpush3.bf16.msra.mxu0 %v1504_v13  ;;  %v1514_v24 = vld [vmem:[%s1995_s1 + $0x118] sm:$0xff]   ;;  %v1517_v27 = vld [vmem:[%s1995_s1 + $0x160] sm:$0xff]   ;;  %v1519_v31 = vld [vmem:[%s1995_s1 + $0xc8] sm:$0xff]  }
   0xa   :  { %1404 = vmatprep.subr.bf16.mxu0 %v1507_v16  ;;  %v1510_v25 = vld [vmem:[%s1995_s1 + $0x38] sm:$0xff]   ;;  %977 = vmatprep.mubr.bf16.mxu1 %v1234_v23  ;;  %v1518_v28 = vld [vmem:[%s1995_s1 + $0x120] sm:$0xff]   ;;  %v1521_v32 = vld [vmem:[%s1995_s1 + $0x168] sm:$0xff]  }
   0xb   :  { %1361 = vmatpush3.bf16.msra.mxu1 %v1494_v5  ;;  %v1516_v29 = vld [vmem:[%s1995_s1 + $0x80] sm:$0xff]   ;;  %v1522_v33 = vld [vmem:[%s1995_s1 + $0x128] sm:$0xff]   ;;  %v1523_v35 = vld [vmem:[%s1995_s1 + $0xd0] sm:$0xff]  }
   0xc   :  { %1362 = vmatprep.subr.bf16.mxu1 %v1495_v6  ;;  %v1520_v34 = vld [vmem:[%s1995_s1 + $0x88] sm:$0xff]   ;;  %v1525_v36 = vld [vmem:[%s1995_s1 + $0x170] sm:$0xff]   ;;  %v1527_v39 = vld [vmem:[%s1995_s1 + $0xd8] sm:$0xff]  }
   0xd   :  { %1405 = vmatpush3.bf16.msra.mxu0 %v1508_v17  ;;  %v1526_v37 = vld [vmem:[%s1995_s1 + $0x130] sm:$0xff]   ;;  %v1529_v40 = vld [vmem:[%s1995_s1 + $0x178] sm:$0xff]   ;;  %v1531_v43 = vld [vmem:[%s1995_s1 + $0xe0] sm:$0xff]  }
   0xe   :  { %1406 = vmatprep.subr.bf16.mxu0 %v1511_v21  ;;  %v1524_v38 = vld [vmem:[%s1995_s1 + $0x90] sm:$0xff]   ;;  %v1530_v41 = vld [vmem:[%s1995_s1 + $0x138] sm:$0xff]   ;;  %v1535_v47 = vld [vmem:[%s1995_s1 + $0x240] sm:$0xff]   ;;  %v1611_v21 = vmov 0  }
   0xf   :  { %1363 = vmatpush3.bf16.msra.mxu1 %v1496_v7  ;;  %v1528_v42 = vld [vmem:[%s1995_s1 + $0x98] sm:$0xff]   ;;  %v17_v44 = vld [vmem:[%s1996_s0 + $0x10] sm:$0xff]  ;;  %v1536_v48 = vld [vmem:[%s1995_s1 + $0x200] sm:$0xff]  }
  0x10   :  { %1364 = vmatprep.subr.bf16.mxu1 %v1497_v10  ;;  %v1237_v45 = vcombine.low %v17_v44, %v17_v44  ;;  %v1238_v46 = vcombine.high %v17_v44, %v17_v44  ;;  %v1532_v49 = vld [vmem:[%s1995_s1 + $0xa0] sm:$0xff]   ;;  %v1537_v50 = vld [vmem:[%s1995_s1 + $0xe8] sm:$0xff]   ;;  %v1541_v54 = vld [vmem:[%s1995_s1 + $0xf0] sm:$0xff]  }
  0x11   :  { %1407 = vmatpush3.bf16.msra.mxu0 %v1514_v24  ;;  %v1539_v51 = vld [vmem:[%s1995_s1 + $0x248] sm:$0xff]   ;;  %v1543_v55 = vld [vmem:[%s1995_s1 + $0x250] sm:$0xff]   ;;  %v1545_v58 = vld [vmem:[%s1995_s1 + $0xf8] sm:$0xff]  }
  0x12   :  { %1408 = vmatprep.subr.bf16.mxu0 %v1517_v27  ;;  %1057 = vmatprep.mubr.bf16.mxu0 %v1238_v46  ;;  %v1540_v52 = vld [vmem:[%s1995_s1 + $0x208] sm:$0xff]   ;;  %v1544_v56 = vld [vmem:[%s1995_s1 + $0x210] sm:$0xff]   ;;  %v1547_v59 = vld [vmem:[%s1995_s1 + $0x258] sm:$0xff]  }
  0x13   :  { %1365 = vmatpush3.bf16.msra.mxu1 %v1498_v11  ;;  %v1538_v53 = vld [vmem:[%s1995_s1 + $0xa8] sm:$0xff]   ;;  %v1542_v57 = vld [vmem:[%s1995_s1 + $0xb0] sm:$0xff]   ;;  %v1550_v62 = vld [vmem:[%s1995_s1 + $0x218] sm:$0xff]  }
  0x14   :  { %1366 = vmatprep.subr.bf16.mxu1 %v1501_v14  ;;  %v16_v60 = vld [vmem:[%s1996_s0 + $0x8] sm:$0xff]  ;;  %v1546_v63 = vld [vmem:[%s1995_s1 + $0xb8] sm:$0xff]   ;;  %v1551_v0 = vld [vmem:[%s1995_s1 + $0x1c0] sm:$0xff]  }
  0x15   :  { %1409 = vmatpush3.bf16.msra.mxu0 %v1518_v28  ;;  %v1236_v61 = vcombine.high %v16_v60, %v16_v60  ;;  %v1553_v1 = vld [vmem:[%s1995_s1 + $0x260] sm:$0xff]   ;;  %v1235_v4 = vcombine.low %v16_v60, %v16_v60  ;;  %v1555_v5 = vld [vmem:[%s1995_s1 + $0x1c8] sm:$0xff]   ;;  %v1559_v9 = vld [vmem:[%s1995_s1 + $0x1d0] sm:$0xff]  }
  0x16   :  { %1410 = vmatprep.subr.bf16.mxu0 %v1521_v32  ;;  %v1554_v2 = vld [vmem:[%s1995_s1 + $0x220] sm:$0xff]   ;;  %v1557_v6 = vld [vmem:[%s1995_s1 + $0x268] sm:$0xff]   ;;  %v1561_v10 = vld [vmem:[%s1995_s1 + $0x270] sm:$0xff]  }
  0x17   :  { %1367 = vmatpush3.bf16.msra.mxu1 %v1502_v15  ;;  %v1552_v3 = vld [vmem:[%s1995_s1 + $0x180] sm:$0xff]   ;;  %v1558_v7 = vld [vmem:[%s1995_s1 + $0x228] sm:$0xff]   ;;  %v1562_v11 = vld [vmem:[%s1995_s1 + $0x230] sm:$0xff]  }
  0x18   :  { %1368 = vmatprep.subr.bf16.mxu1 %v1505_v18  ;;  %v1556_v8 = vld [vmem:[%s1995_s1 + $0x188] sm:$0xff]   ;;  %v1560_v12 = vld [vmem:[%s1995_s1 + $0x190] sm:$0xff]   ;;  %v1563_v13 = vld [vmem:[%s1995_s1 + $0x1d8] sm:$0xff]  }
  0x19   :  { %1411 = vmatpush3.bf16.msra.mxu0 %v1522_v33  ;;  %v1565_v14 = vld [vmem:[%s1995_s1 + $0x278] sm:$0xff]   ;;  %v1567_v17 = vld [vmem:[%s1995_s1 + $0x1e0] sm:$0xff]   ;;  %v1572_v24 = vld [vmem:[%s1995_s1 + $0x1e8] sm:$0xff]  }
  0x1a   :  { %1412 = vmatprep.subr.bf16.mxu0 %v1525_v36  ;;  %v1566_v15 = vld [vmem:[%s1995_s1 + $0x238] sm:$0xff]   ;;  %v19_v18 = vld [vmem:[%s1996_s0 + $0x20] sm:$0xff]  ;;  %v1575_v27 = vld [vmem:[%s1995_s1 + $0x1f0] sm:$0xff]  }
  0x1b   :  { %1369 = vmatpush3.bf16.msra.mxu1 %v1506_v19  ;;  %v1564_v16 = vld [vmem:[%s1995_s1 + $0x198] sm:$0xff]   ;;  %v1241_v19 = vcombine.low %v19_v18, %v19_v18  ;;  %v1571_v22 = vld [vmem:[%s1995_s1 + $0x300] sm:$0xff]   ;;  %v1577_v28 = vld [vmem:[%s1995_s1 + $0x310] sm:$0xff]  }
  0x1c   :  { %1370 = vmatprep.subr.bf16.mxu1 %v1509_v20  ;;  %v1242_v20 = vcombine.high %v19_v18, %v19_v18  ;;  %v1568_v23 = vld [vmem:[%s1995_s1 + $0x1a0] sm:$0xff]   ;;  %v1578_v32 = vld [vmem:[%s1995_s1 + $0x1f8] sm:$0xff]   ;;  %v1590_v44 = vld [vmem:[%s1995_s1 + $0x290] sm:$0xff]  }
  0x1d   :  { %1413 = vmatpush3.bf16.msra.mxu0 %v1526_v37  ;;  %v1582_v33 = vld [vmem:[%s1995_s1 + $0x318] sm:$0xff]   ;;  %v1585_v36 = vld [vmem:[%s1995_s1 + $0x320] sm:$0xff]   ;;  %v1602_v60 = vld [vmem:[%s1995_s1 + $0x2b0] sm:$0xff]  }
  0x1e   :  { %1414 = vmatprep.subr.bf16.mxu0 %v1529_v40  ;;  %v1588_v40 = vld [vmem:[%s1995_s1 + $0x328] sm:$0xff]   ;;  %v1594_v46 = vld [vmem:[%s1995_s1 + $0x338] sm:$0xff]  }
  0x1f   :  { %1371 = vmatpush3.bf16.msra.mxu1 %v1510_v25  ;;  %v1574_v25 = vld [vmem:[%s1995_s1 + $0x308] sm:$0xff]  }
  0x20   :  { %1378 = vmatprep.subr.bf16.mxu1 %v1515_v26  ;;  %v1573_v26 = vld [vmem:[%s1995_s1 + $0x1a8] sm:$0xff]  }
  0x21   :  { %1415 = vmatpush3.bf16.msra.mxu0 %v1530_v41  ;;  %v1587_v41 = vld [vmem:[%s1995_s1 + $0x288] sm:$0xff]  }
  0x22   :  { %978 = vmatmul.mubr.bf16.vlgmr.msra.gmra.mrb[0].mxu1 %v1233_v30  ;;  %1444 = vmatprep.subr.bf16.mxu0 %v1535_v47  ;;  %v1593_v47 = vld [vmem:[%s1995_s1 + $0x298] sm:$0xff]  }
  0x23   :  { %1379 = vmatpush3.bf16.msra.mxu1 %v1516_v29  ;;  %1017 = vmatprep.mubr.bf16.mxu1 %v1236_v61  ;;  %v18_v29 = vld [vmem:[%s1996_s0 + $0x18] sm:$0xff] }
  0x24   :  { %1380 = vmatprep.subr.bf16.mxu1 %v1519_v31  ;;  %1058 = vmatmul.mubr.bf16.vlgmr.msra.gmra.mrb[0].mxu0 %v1237_v45  ;;  %v1240_v30 = vcombine.high %v18_v29, %v18_v29  ;;  %v1576_v31 = vld [vmem:[%s1995_s1 + $0x1b0] sm:$0xff]   ;;  %v1239_v37 = vcombine.low %v18_v29, %v18_v29  ;;  %v1592_v45 = vld [vmem:[%s1995_s1 + $0x2d8] sm:$0xff]  }
  0x25   :  { %1445 = vmatpush3.bf16.msra.mxu0 %v1536_v48  ;;  %1137 = vmatprep.mubr.bf16.mxu0 %v1242_v20  ;;  %v1595_v48 = vld [vmem:[%s1995_s1 + $0x2e0] sm:$0xff]   ;;  %v1604_v61 = vld [vmem:[%s1995_s1 + $0x2f8] sm:$0xff]  }
  0x26   :  { %1446 = vmatprep.subr.bf16.mxu0 %v1539_v51 }
  0x27   :  { %1381 = vmatpush3.bf16.msra.mxu1 %v1520_v34  ;;  %v1579_v34 = vld [vmem:[%s1995_s1 + $0x1b8] sm:$0xff]  }
  0x28   :  { %1382 = vmatprep.subr.bf16.mxu1 %v1523_v35  ;;  %v1583_v35 = vld [vmem:[%s1995_s1 + $0x2c0] sm:$0xff]  }
  0x29   :  { %1447 = vmatpush3.bf16.msra.mxu0 %v1540_v52  ;;  %v21_v52 = vld [vmem:[%s1996_s0 + $0x30] sm:$0xff] }
  0x2a   :  { %1448 = vmatprep.subr.bf16.mxu0 %v1543_v55  ;;  %v1598_v55 = vld [vmem:[%s1995_s1 + $0x2e8] sm:$0xff]  }
  0x2b   :  { %1383 = vmatpush3.bf16.msra.mxu1 %v1524_v38  ;;  %v1584_v38 = vld [vmem:[%s1995_s1 + $0x280] sm:$0xff]  }
  0x2c   :  { %1384 = vmatprep.subr.bf16.mxu1 %v1527_v39  ;;  %v1586_v39 = vld [vmem:[%s1995_s1 + $0x2c8] sm:$0xff]  }
  0x2d   :  { %1449 = vmatpush3.bf16.msra.mxu0 %v1544_v56  ;;  %v1600_v56 = vld [vmem:[%s1995_s1 + $0x348] sm:$0xff]  }
  0x2e   :  { %1450 = vmatprep.subr.bf16.mxu0 %v1547_v59  ;;  %v1603_v59 = vld [vmem:[%s1995_s1 + $0x350] sm:$0xff]  }
  0x2f   :  { %1385 = vmatpush3.bf16.msra.mxu1 %v1528_v42  ;;  %v1589_v42 = vld [vmem:[%s1995_s1 + $0x2d0] sm:$0xff]  }
  0x30   :  { %1386 = vmatprep.subr.bf16.mxu1 %v1531_v43  ;;  %v1591_v43 = vld [vmem:[%s1995_s1 + $0x330] sm:$0xff]  }
  0x31   :  { %1451 = vmatpush3.bf16.msra.mxu0 %v1550_v62  ;;  %v1608_v62 = vld [vmem:[%s1995_s1 + $0x358] sm:$0xff]  }
  0x32   :  { %1452 = vmatprep.subr.bf16.mxu0 %v1553_v1 }
  0x33   :  { %1387 = vmatpush3.bf16.msra.mxu1 %v1532_v49  ;;  %v1597_v49 = vld [vmem:[%s1995_s1 + $0x340] sm:$0xff]  }
  0x34   :  { %1388 = vmatprep.subr.bf16.mxu1 %v1537_v50  ;;  %v20_v50 = vld [vmem:[%s1996_s0 + $0x28] sm:$0xff] }
  0x35   :  { %1453 = vmatpush3.bf16.msra.mxu0 %v1554_v2  ;;  %v1244_v51 = vcombine.high %v20_v50, %v20_v50  ;;  %v1243_v1 = vcombine.low %v20_v50, %v20_v50 }
  0x36   :  { %1454 = vmatprep.subr.bf16.mxu0 %v1557_v6 }
  0x37   :  { %1389 = vmatpush3.bf16.msra.mxu1 %v1538_v53  ;;  %v1596_v53 = vld [vmem:[%s1995_s1 + $0x2a0] sm:$0xff]  }
  0x38   :  { %1390 = vmatprep.subr.bf16.mxu1 %v1541_v54  ;;  %v1246_v54 = vcombine.high %v21_v52, %v21_v52 }
  0x39   :  { %1455 = vmatpush3.bf16.msra.mxu0 %v1558_v7 }
  0x3a   :  { %1456 = vmatprep.subr.bf16.mxu0 %v1561_v10 }
  0x3b   :  { %1391 = vmatpush3.bf16.msra.mxu1 %v1542_v57  ;;  %v1599_v57 = vld [vmem:[%s1995_s1 + $0x2a8] sm:$0xff]  }
  0x3c   :  { %1392 = vmatprep.subr.bf16.mxu1 %v1545_v58  ;;  %v1601_v58 = vld [vmem:[%s1995_s1 + $0x2f0] sm:$0xff]  }
  0x3d   :  { %1457 = vmatpush3.bf16.msra.mxu0 %v1562_v11 }
  0x3e   :  { %1458 = vmatprep.subr.bf16.mxu0 %v1565_v14 }
  0x3f   :  { %1393 = vmatpush3.bf16.msra.mxu1 %v1546_v63  ;;  %v1605_v63 = vld [vmem:[%s1995_s1 + $0x2b8] sm:$0xff]  }
  0x40   :  { %1422 = vmatprep.subr.bf16.mxu1 %v1551_v0  ;;  %v1245_v0 = vcombine.low %v21_v52, %v21_v52 }
  0x41   :  { %1459 = vmatpush3.bf16.msra.mxu0 %v1566_v15 }
  0x42   :  { %1018 = vmatmul.mubr.bf16.vlgmr.msra.gmra.mrb[4].mxu1 %v1235_v4  ;;  %1185 = vmatprep.subr.bf16.mxu0 %v1611_v21 }
  0x43   :  { %1423 = vmatpush3.bf16.msra.mxu1 %v1552_v3  ;;  %1097 = vmatprep.mubr.bf16.mxu1 %v1240_v30 }
  0x44   :  { %1424 = vmatprep.subr.bf16.mxu1 %v1555_v5  ;;  %1138 = vmatmul.mubr.bf16.vlgmr.msra.gmra.mrb[4].mxu0 %v1241_v19 }
  0x45   :  { %1186 = vmatpush1.bf16.msra.mxu0 %v1571_v22  ;;  %1355 = vmatprep.mubr.msk.bf16.mxu0 %vm941_vm0, %v1246_v54 }
  0x46   :  { %1187 = vmatprep.subr.bf16.mxu0 %v1611_v21 }
  0x47   :  { %1425 = vmatpush3.bf16.msra.mxu1 %v1556_v8 }
  0x48   :  { %1426 = vmatprep.subr.bf16.mxu1 %v1559_v9 }
  0x49   :  { %1188 = vmatpush1.bf16.msra.mxu0 %v1574_v25 }
  0x4a   :  { %1189 = vmatprep.subr.bf16.mxu0 %v1611_v21 }
  0x4b   :  { %1427 = vmatpush3.bf16.msra.mxu1 %v1560_v12  ;;  %v1232_v12 = vld [vmem:[%s1997_s2] ss:$0 sm:$0xff] }
  0x4c   :  { %1428 = vmatprep.subr.bf16.mxu1 %v1563_v13 }
  0x4d   :  { %1190 = vmatpush1.bf16.msra.mxu0 %v1577_v28 }
  0x4e   :  { %1191 = vmatprep.subr.bf16.mxu0 %v1611_v21 }
  0x4f   :  { %1429 = vmatpush3.bf16.msra.mxu1 %v1564_v16 }
  0x50   :  { %1430 = vmatprep.subr.bf16.mxu1 %v1567_v17 }
  0x51   :  { %1192 = vmatpush1.bf16.msra.mxu0 %v1582_v33 }
  0x52   :  { %1193 = vmatprep.subr.bf16.mxu0 %v1611_v21 }
  0x53   :  { %1431 = vmatpush3.bf16.msra.mxu1 %v1568_v23 }
  0x54   :  { %1432 = vmatprep.subr.bf16.mxu1 %v1572_v24 }
  0x55   :  { %1194 = vmatpush1.bf16.msra.mxu0 %v1585_v36 }
  0x56   :  { %1195 = vmatprep.subr.bf16.mxu0 %v1611_v21 }
  0x57   :  { %1433 = vmatpush3.bf16.msra.mxu1 %v1573_v26 }
  0x58   :  { %1434 = vmatprep.subr.bf16.mxu1 %v1575_v27 }
  0x59   :  { %1196 = vmatpush1.bf16.msra.mxu0 %v1588_v40 }
  0x5a   :  { %1197 = vmatprep.subr.bf16.mxu0 %v1611_v21 }
  0x5b   :  { %1435 = vmatpush3.bf16.msra.mxu1 %v1576_v31 }
  0x5c   :  { %1436 = vmatprep.subr.bf16.mxu1 %v1578_v32 }
  0x5d   :  { %1198 = vmatpush1.bf16.msra.mxu0 %v1591_v43 }
  0x5e   :  { %1199 = vmatprep.subr.bf16.mxu0 %v1611_v21 }
  0x5f   :  { %1437 = vmatpush3.bf16.msra.mxu1 %v1579_v34 }
  0x60   :  { %1466 = vmatprep.subr.bf16.mxu1 %v1583_v35 }
  0x61   :  { %1200 = vmatpush1.bf16.msra.mxu0 %v1594_v46 }
  0x62   :  { %1098 = vmatmul.mubr.bf16.vlgmr.msra.gmra.mrb[8].mxu1 %v1239_v37  ;;  %1201 = vmatprep.subr.bf16.mxu0 %v1611_v21 }
  0x63   :  { %1467 = vmatpush3.bf16.msra.mxu1 %v1584_v38  ;;  %1177 = vmatprep.mubr.bf16.mxu1 %v1244_v51 }
  0x64   :  { %1468 = vmatprep.subr.bf16.mxu1 %v1586_v39 }
  0x65   :  { %1202 = vmatpush1.bf16.msra.mxu0 %v1597_v49 }
  0x66   :  { %1203 = vmatprep.subr.bf16.mxu0 %v1611_v21 }
  0x67   :  { %1469 = vmatpush3.bf16.msra.mxu1 %v1587_v41 }
  0x68   :  { %1470 = vmatprep.subr.bf16.mxu1 %v1589_v42 }
  0x69   :  { %1204 = vmatpush1.bf16.msra.mxu0 %v1600_v56 }
  0x6a   :  { %1205 = vmatprep.subr.bf16.mxu0 %v1611_v21 }
  0x6b   :  { %1471 = vmatpush3.bf16.msra.mxu1 %v1590_v44 }
  0x6c   :  { %1472 = vmatprep.subr.bf16.mxu1 %v1592_v45 }
  0x6d   :  { %1206 = vmatpush1.bf16.msra.mxu0 %v1603_v59 }
  0x6e   :  { %1207 = vmatprep.subr.bf16.mxu0 %v1611_v21 }
  0x6f   :  { %1473 = vmatpush3.bf16.msra.mxu1 %v1593_v47 }
  0x70   :  { %1474 = vmatprep.subr.bf16.mxu1 %v1595_v48 }
  0x71   :  { %1208 = vmatpush1.bf16.msra.mxu0 %v1608_v62 }
  0x73   :  { %1475 = vmatpush3.bf16.msra.mxu1 %v1596_v53 }
  0x74   :  { %1476 = vmatprep.subr.bf16.mxu1 %v1598_v55  ;;  %1218 = vmatmul.mubr.bf16.vlgmr.msra.gmra.mrb[8].mxu0 %v1245_v0 }
  0x77   :  { %1477 = vmatpush3.bf16.msra.mxu1 %v1599_v57 }
  0x78   :  { %1478 = vmatprep.subr.bf16.mxu1 %v1601_v58 }
  0x7b   :  { %1479 = vmatpush3.bf16.msra.mxu1 %v1602_v60 }
  0x7c   :  { %1480 = vmatprep.subr.bf16.mxu1 %v1604_v61 }
  0x7f   :  { %1481 = vmatpush3.bf16.msra.mxu1 %v1605_v63 }
  0x82   :  { %1178 = vmatmul.mubr.bf16.vlgmr.msra.gmra.mrb[12].mxu1 %v1243_v1 }
  0xf5   :  { %v1372_v2 = vpop.f32.mrb[0].mxu1 }
  0xf6   :  { %v1373_v3 = vpop.f32.mrb[1].mxu1 }
  0xf7   :  { %v1374_v4 = vadd.f32 %v1373_v3, %v1372_v2  ;;  %v1375_v5 = vpop.f32.mrb[2].mxu1  ;;  %v1416_v7 = vpop.f32.mrb[0].mxu0 }
  0xf8   :  { %v1376_v6 = vpop.f32.mrb[3].mxu1  ;;  %v1417_v8 = vpop.f32.mrb[1].mxu0 }
  0xf9   :  { %v1418_v9 = vadd.f32 %v1417_v8, %v1416_v7  ;;  %v1419_v10 = vpop.f32.mrb[2].mxu0  ;;  %v980_v15 = vadd.f32 %v1374_v4, %v1232_v12 }
  0xfa   :  { %v1420_v11 = vpop.f32.mrb[3].mxu0 }
 0x115   :  { %v1394_v13 = vpop.f32.mrb[4].mxu1 }
 0x116   :  { %v1395_v14 = vpop.f32.mrb[5].mxu1 }
 0x117   :  { %v1396_v16 = vadd.f32 %v1395_v14, %v1394_v13  ;;  %v1397_v17 = vpop.f32.mrb[6].mxu1  ;;  %v1460_v21 = vpop.f32.mrb[4].mxu0 }
 0x118   :  { %v1398_v18 = vpop.f32.mrb[7].mxu1  ;;  %v1461_v22 = vpop.f32.mrb[5].mxu0 }
 0x119   :  { %v1020_v19 = vadd.f32 %v1396_v16, %v980_v15  ;;  %v1462_v23 = vadd.f32 %v1461_v22, %v1460_v21  ;;  %v1463_v24 = vpop.f32.mrb[6].mxu0 }
 0x11a   :  { %v1464_v25 = vpop.f32.mrb[7].mxu0 }
 0x11b   :  { %v1060_v20 = vadd.f32 %v1418_v9, %v1020_v19 }
 0x135   :  { %v1438_v26 = vpop.f32.mrb[8].mxu1 }
 0x136   :  { %v1439_v27 = vpop.f32.mrb[9].mxu1 }
 0x137   :  { %v1440_v28 = vadd.f32 %v1439_v27, %v1438_v26  ;;  %v1441_v29 = vpop.f32.mrb[10].mxu1 }
 0x138   :  { %v1442_v30 = vpop.f32.mrb[11].mxu1 }
 0x139   :  { %v1100_v31 = vadd.f32 %v1440_v28, %v1060_v20 }
 0x13b   :  { %v1140_v32 = vadd.f32 %v1462_v23, %v1100_v31 }
 0x147   :  { %v1219_v33 = vpop.f32.mrb[8].mxu0 }
 0x148   :  { %v1221_v34 = vpop.f32.mrb[9].mxu0 }
 0x149   :  { %v1222_v35 = vpop.f32.mrb[10].mxu0 }
 0x14a   :  { %v1223_v37 = vpop.f32.mrb[11].mxu0 }
 0x155   :  { %v1482_v36 = vpop.f32.mrb[12].mxu1 }
 0x156   :  { %v1483_v38 = vpop.f32.mrb[13].mxu1 }
 0x157   :  { %v1484_v39 = vadd.f32 %v1483_v38, %v1482_v36  ;;  %v1485_v40 = vpop.f32.mrb[14].mxu1 }
 0x158   :  { %v1486_v41 = vpop.f32.mrb[15].mxu1 }
 0x159   :  { %v1180_v42 = vadd.f32 %v1484_v39, %v1140_v32 }
 0x15b   :  { %v1220_v43 = vadd.f32 %v1219_v33, %v1180_v42 }
 0x15d   :  { %v1225_v44 = vmax.f32 %v1220_v43, 0.0 }
 0x15f   :  { %v1226_v45 = vpack.c.bf16 %v1225_v44, %v1225_v44 }
 0x161   :  { %1227 = vst [vmem:[%s1998_s3] sm:$0xf] %v1226_v45 }

// kernel: deeplab_forward.17
= control target key start
LH: loop header
LB: loop body
LE: loop exit
PB: predicated region body
PF: predicated region fallthrough
CT: control target
= control target key end

     0   :  { %v162_v0 = vmov 0.0   ;;  %vm163_vm0 = vmmov 0   ;;  %vm61_vm1 = vcmask 523264   ;;  %s205_s1 = inlined_call_operand.vmem [shape: bf16[64,128], index: 1, kind: input, shape index: {}]   ;;  %s206_s0 = inlined_call_operand.vmem [shape: bf16[16,64], index: 0, kind: input, shape index: {}]   ;;  %s207_s2 = inlined_call_operand.vmem [shape: f32[1,128], index: 2, kind: input, shape index: {}]   ;;  %s208_s3 = inlined_call_operand.vmem [shape: bf16[16,128], index: 3, kind: output, shape index: {}]  }
   0x1   :  { %143 = vmatprep.subr.bf16.mxu0 %v162_v0  ;;  %v157_v1 = vld [vmem:[%s205_s1] sm:$0xff]   ;;  %151 = vmatprep.mubr.msk.bf16.mxu0 %vm163_vm0, %v162_v0  ;;  %v158_v2 = vld [vmem:[%s205_s1 + $0x8] sm:$0xff]   ;;  %v159_v3 = vld [vmem:[%s205_s1 + $0x10] sm:$0xff]  }
   0x2   :  { %144 = vmatpush3.bf16.msra.mxu0 %v157_v1  ;;  %v160_v4 = vld [vmem:[%s205_s1 + $0x18] sm:$0xff]   ;;  %v161_v5 = vld [vmem:[%s206_s0] sm:$0xff]  }
   0x3   :  { %145 = vmatprep.subr.bf16.mxu0 %v162_v0  ;;  %v122_v6 = vld [vmem:[%s207_s2] ss:$0 sm:$0xff] }
   0x6   :  { %146 = vmatpush3.bf16.msra.mxu0 %v158_v2 }
   0x7   :  { %147 = vmatprep.subr.bf16.mxu0 %v162_v0 }
   0xa   :  { %148 = vmatpush3.bf16.msra.mxu0 %v159_v3 }
   0xb   :  { %149 = vmatprep.subr.bf16.mxu0 %v162_v0 }
   0xe   :  { %150 = vmatpush3.bf16.msra.mxu0 %v160_v4 }
  0x11   :  { %152 = vmatmul.mubr.msk.bf16.vlgmr.msra.gmra.mrb[0].mxu0 %vm61_vm1, %v161_v5 }
  0xe4   :  { %v99_v7 = vpop.f32.mrb[0].mxu0 }
  0xe5   :  { %v100_v8 = vadd.f32 %v122_v6, %v99_v7  ;;  %v153_v9 = vpop.f32.mrb[1].mxu0 }
  0xe6   :  { %v102_v10 = vpop.f32.mrb[2].mxu0 }
  0xe7   :  { %v103_v11 = vadd.f32 %v122_v6, %v102_v10  ;;  %v154_v12 = vpop.f32.mrb[3].mxu0  ;;  %v106_v13 = vmax.f32 %v100_v8, 0.0 }
  0xe9   :  { %v107_v14 = vmax.f32 %v103_v11, 0.0 }
  0xeb   :  { %v136_v15 = vpack.c.bf16 %v107_v14, %v106_v13 }
  0xed   :  { %137 = vst [vmem:[%s208_s3] sm:$0xff] %v136_v15  }

// kernel: deeplab_forward.21
= control target key start
LH: loop header
LB: loop body
LE: loop exit
PB: predicated region body
PF: predicated region fallthrough
CT: control target
= control target key end

     0   :  { %v187_v0 = vmov 0   ;;  %vm109_vm0 = vcmask 261120   ;;  %s247_s1 = inlined_call_operand.vmem [shape: bf16[160,128], index: 1, kind: input, shape index: {}]   ;;  %s248_s0 = inlined_call_operand.vmem [shape: bf16[8,160], index: 0, kind: input, shape index: {}]   ;;  %s249_s2 = inlined_call_operand.vmem [shape: f32[1,128], index: 2, kind: input, shape index: {}]   ;;  %s250_s3 = inlined_call_operand.vmem [shape: bf16[8,128], index: 3, kind: output, shape index: {}]  }
   0x1   :  { %113 = vmatprep.subr.bf16.mxu0 %v187_v0  ;;  %v175_v1 = vld [vmem:[%s247_s1] sm:$0xff]   ;;  %v176_v2 = vld [vmem:[%s247_s1 + $0x8] sm:$0xff]   ;;  %v177_v3 = vld [vmem:[%s247_s1 + $0x10] sm:$0xff]  }
   0x2   :  { %114 = vmatpush1.bf16.msra.mxu0 %v175_v1  ;;  %v178_v4 = vld [vmem:[%s247_s1 + $0x18] sm:$0xff]   ;;  %v15_v5 = vld [vmem:[%s248_s0] sm:$0xff]  ;;  %v180_v8 = vld [vmem:[%s247_s1 + $0x28] sm:$0xff]  }
   0x3   :  { %115 = vmatprep.subr.bf16.mxu0 %v187_v0  ;;  %v162_v6 = vcombine.high %v15_v5, %v15_v5  ;;  %v179_v7 = vld [vmem:[%s247_s1 + $0x20] sm:$0xff]   ;;  %v181_v9 = vld [vmem:[%s247_s1 + $0x30] sm:$0xff]   ;;  %v182_v10 = vld [vmem:[%s247_s1 + $0x38] sm:$0xff]   ;;  %v161_v13 = vcombine.low %v15_v5, %v15_v5 }
   0x4   :  { %v183_v11 = vld [vmem:[%s247_s1 + $0x40] sm:$0xff]   ;;  %v184_v12 = vld [vmem:[%s247_s1 + $0x48] sm:$0xff]  }
   0x5   :  { %173 = vmatprep.mubr.msk.bf16.mxu0 %vm109_vm0, %v162_v6  ;;  %v160_v14 = vld [vmem:[%s249_s2] ss:$0 sm:$0xff] }
   0x6   :  { %116 = vmatpush1.bf16.msra.mxu0 %v176_v2 }
   0x7   :  { %117 = vmatprep.subr.bf16.mxu0 %v187_v0 }
   0xa   :  { %118 = vmatpush1.bf16.msra.mxu0 %v177_v3 }
   0xb   :  { %119 = vmatprep.subr.bf16.mxu0 %v187_v0 }
   0xe   :  { %120 = vmatpush1.bf16.msra.mxu0 %v178_v4 }
   0xf   :  { %121 = vmatprep.subr.bf16.mxu0 %v187_v0 }
  0x12   :  { %122 = vmatpush1.bf16.msra.mxu0 %v179_v7 }
  0x13   :  { %123 = vmatprep.subr.bf16.mxu0 %v187_v0 }
  0x16   :  { %124 = vmatpush1.bf16.msra.mxu0 %v180_v8 }
  0x17   :  { %125 = vmatprep.subr.bf16.mxu0 %v187_v0 }
  0x1a   :  { %126 = vmatpush1.bf16.msra.mxu0 %v181_v9 }
  0x1b   :  { %127 = vmatprep.subr.bf16.mxu0 %v187_v0 }
  0x1e   :  { %128 = vmatpush1.bf16.msra.mxu0 %v182_v10 }
  0x1f   :  { %129 = vmatprep.subr.bf16.mxu0 %v187_v0 }
  0x22   :  { %130 = vmatpush1.bf16.msra.mxu0 %v183_v11 }
  0x23   :  { %131 = vmatprep.subr.bf16.mxu0 %v187_v0 }
  0x26   :  { %132 = vmatpush1.bf16.msra.mxu0 %v184_v12 }
  0x29   :  { %146 = vmatmul.mubr.bf16.vlgmr.msra.gmra.mrb[0].mxu0 %v161_v13 }
  0xfc   :  { %v147_v15 = vpop.f32.mrb[0].mxu0 }
  0xfd   :  { %v148_v16 = vadd.f32 %v160_v14, %v147_v15  ;;  %v149_v17 = vpop.f32.mrb[1].mxu0 }
  0xfe   :  { %v150_v18 = vpop.f32.mrb[2].mxu0 }
  0xff   :  { %v153_v19 = vmax.f32 %v148_v16, 0.0  ;;  %v151_v20 = vpop.f32.mrb[3].mxu0 }
 0x101   :  { %v154_v21 = vpack.c.bf16 %v153_v19, %v153_v19 }
 0x103   :  { %155 = vst [vmem:[%s250_s3] sm:$0xf] %v154_v21 }

// kernel: deeplab_forward.22
= control target key start
LH: loop header
LB: loop body
LE: loop exit
PB: predicated region body
PF: predicated region fallthrough
CT: control target
= control target key end

     0   :  { %s1085_s12 = smov 0   ;;  %s1204_s0 = inlined_call_operand.vmem [shape: bf16[512,32], index: 0, kind: input, shape index: {}]   ;;  %s1205_s1 = inlined_call_operand.vmem [shape: bf16[32,128], index: 1, kind: input, shape index: {}]   ;;  %s1206_s2 = inlined_call_operand.vmem [shape: f32[1,128], index: 2, kind: input, shape index: {}]   ;;  %s1207_s3 = inlined_call_operand.vmem [shape: bf16[512,128], index: 3, kind: output, shape index: {}]  }
   0x1 LB: > { %s768_s13 = sadd.s32 4294967295, %s1063_s12   ;;  %p772_p0 = scmp.ge.s32.totalorder %s1063_s12, 1  ;;  %s1063_s12 = sphi %s1085_s12, %s13_s12  }
   0x2   : > { %p138_p1 = scmp.lt.s32.totalorder %s1063_s12, 3 }
   0x4   : > { %p139_p2 = pnand %p772_p0, %p138_p1 }
   0x5   : > { %v1039_v0 = vld [vmem:[%s1205_s1] sm:$0xff] (!%p139_p2)   ;;  %s773_s16 = sshll.u32 (!%p139_p2), %s768_s13, 5  ;;  %v1040_v1 = vld [vmem:[%s1205_s1 + $0x8] sm:$0xff] (!%p139_p2)   ;;  %vm310_vm0 = vcmask (!%p139_p2), 261120  }
   0x6   : > { %142 = sbr.rel (%p139_p2) target bundleno = 265 (0x109), region = 32  ;;  %p163_p3 = scmp.lt.s32.totalorder (!%p139_p2), %s773_s16, 63  ;;  %991 = vmatprep.subr.bf16.mxu0 (!%p139_p2), %v1039_v0  ;;  %1027 = vmatprep.subr.bf16.mxu1 (!%p139_p2), %v1039_v0  ;;  %v1144_v18 = vld [vmem:[%s1206_s2] ss:$0 sm:$0xff] (!%p139_p2) }
   0x7   : > { %992 = vmatpush3.bf16.msra.mxu0 (!%p139_p2), %v1039_v0  ;;  %1029 = vmatpush3.bf16.msra.mxu1 (!%p139_p2), %v1039_v0 }
   0x8   : > { %993 = vmatprep.subr.bf16.mxu0 (!%p139_p2), %v1040_v1  ;;  %1028 = vmatprep.subr.bf16.mxu1 (!%p139_p2), %v1040_v1 }
   0xb   : > { %994 = vmatpush3.bf16.msra.mxu0 (!%p139_p2), %v1040_v1  ;;  %1030 = vmatpush3.bf16.msra.mxu1 (!%p139_p2), %v1040_v1 }
   0xd   : > { %s1209_s16 = smov (!%p163_p3, %s773_s16), 63 }
   0xe   : > { %s774_s19 = sshll.u32 %s1209_s16, 2 }
   0xf   : > { %s1107_s22 = scalar_lea.vmem %s1204_s0, %s774_s19  ;;  %s1159_s27 = scalar_lea.vmem %s1207_s3, %s774_s19 }
  0x10   : > { %v1041_v2 = vld [vmem:[%s1107_s22] sm:$0xff]   ;;  %v1043_v4 = vld [vmem:[%s1107_s22 + $0x8] sm:$0xff]   ;;  %v1045_v6 = vld [vmem:[%s1107_s22 + $0x10] sm:$0xff]  }
  0x11   : > { %v1042_v3 = vld [vmem:[%s1107_s22 + $0x40] sm:$0xff]   ;;  %995 = vmatprep.mubr.msk.bf16.mxu0 %vm310_vm0, %v1041_v2  ;;  %v1044_v5 = vld [vmem:[%s1107_s22 + $0x48] sm:$0xff]   ;;  %v1046_v7 = vld [vmem:[%s1107_s22 + $0x50] sm:$0xff]  }
  0x12   : > { %1011 = vmatprep.mubr.msk.bf16.mxu1 %vm310_vm0, %v1042_v3  ;;  %996 = vmatmul.mubr.msk.bf16.vlgmr.msra.gmra.mrb[0].mxu0 %vm310_vm0, %v1043_v4  ;;  %v1047_v8 = vld [vmem:[%s1107_s22 + $0x18] sm:$0xff]   ;;  %v1049_v10 = vld [vmem:[%s1107_s22 + $0x20] sm:$0xff]   ;;  %v1051_v12 = vld [vmem:[%s1107_s22 + $0x28] sm:$0xff]  }
  0x13   : > { %1012 = vmatmul.mubr.msk.bf16.vlgmr.msra.gmra.mrb[0].mxu1 %vm310_vm0, %v1044_v5  ;;  %999 = vmatprep.mubr.msk.bf16.mxu0 %vm310_vm0, %v1045_v6  ;;  %v1048_v9 = vld [vmem:[%s1107_s22 + $0x58] sm:$0xff]   ;;  %v1050_v11 = vld [vmem:[%s1107_s22 + $0x60] sm:$0xff]   ;;  %v1052_v13 = vld [vmem:[%s1107_s22 + $0x68] sm:$0xff]  }
  0x14   : > { %1015 = vmatprep.mubr.msk.bf16.mxu1 %vm310_vm0, %v1046_v7  ;;  %v1053_v14 = vld [vmem:[%s1107_s22 + $0x30] sm:$0xff]   ;;  %v1055_v16 = vld [vmem:[%s1107_s22 + $0x38] sm:$0xff]  }
  0x15   : > { %v1054_v15 = vld [vmem:[%s1107_s22 + $0x70] sm:$0xff]   ;;  %v1056_v17 = vld [vmem:[%s1107_s22 + $0x78] sm:$0xff]  }
  0x1a   : > { %1000 = vmatmul.mubr.msk.bf16.gmra.mrb[4].mxu0 %vm310_vm0, %v1047_v8 }
  0x1b   : > { %1016 = vmatmul.mubr.msk.bf16.gmra.mrb[4].mxu1 %vm310_vm0, %v1048_v9  ;;  %1003 = vmatprep.mubr.msk.bf16.mxu0 %vm310_vm0, %v1049_v10 }
  0x1c   : > { %1019 = vmatprep.mubr.msk.bf16.mxu1 %vm310_vm0, %v1050_v11 }
  0x22   : > { %1004 = vmatmul.mubr.msk.bf16.gmra.mrb[8].mxu0 %vm310_vm0, %v1051_v12 }
  0x23   : > { %1020 = vmatmul.mubr.msk.bf16.gmra.mrb[8].mxu1 %vm310_vm0, %v1052_v13  ;;  %1007 = vmatprep.mubr.msk.bf16.mxu0 %vm310_vm0, %v1053_v14 }
  0x24   : > { %1023 = vmatprep.mubr.msk.bf16.mxu1 %vm310_vm0, %v1054_v15 }
  0x2a   : > { %1008 = vmatmul.mubr.msk.bf16.gmra.mrb[12].mxu0 %vm310_vm0, %v1055_v16 }
  0x2b   : > { %1024 = vmatmul.mubr.msk.bf16.gmra.mrb[12].mxu1 %vm310_vm0, %v1056_v17 }
  0xe5   : > { %v997_v19 = vpop.f32.mrb[0].mxu0 }
  0xe6   : > { %v402_v20 = vadd.f32 %v997_v19, %v1144_v18  ;;  %v1013_v21 = vpop.f32.mrb[0].mxu1  ;;  %v393_v22 = vpop.f32.mrb[1].mxu0 }
  0xe7   : > { %v466_v23 = vadd.f32 %v1013_v21, %v1144_v18  ;;  %v394_v24 = vadd.f32 %v1144_v18, %v393_v22  ;;  %v457_v25 = vpop.f32.mrb[1].mxu1  ;;  %v998_v26 = vpop.f32.mrb[2].mxu0 }
  0xe8   : > { %v458_v27 = vadd.f32 %v1144_v18, %v457_v25  ;;  %v405_v28 = vadd.f32 %v998_v26, %v1144_v18  ;;  %v1014_v29 = vpop.f32.mrb[2].mxu1  ;;  %v396_v30 = vpop.f32.mrb[3].mxu0  ;;  %v522_v34 = vmax.f32 %v402_v20, 0.0 }
  0xe9   : > { %v469_v31 = vadd.f32 %v1014_v29, %v1144_v18  ;;  %v397_v32 = vadd.f32 %v1144_v18, %v396_v30  ;;  %v460_v33 = vpop.f32.mrb[3].mxu1  ;;  %v538_v37 = vmax.f32 %v466_v23, 0.0  ;;  %v520_v38 = vmax.f32 %v394_v24, 0.0 }
  0xea   : > { %v523_v35 = vmax.f32 %v405_v28, 0.0  ;;  %v461_v36 = vadd.f32 %v1144_v18, %v460_v33  ;;  %v536_v41 = vmax.f32 %v458_v27, 0.0 }
  0xeb   : > { %v539_v39 = vmax.f32 %v469_v31, 0.0  ;;  %v521_v40 = vmax.f32 %v397_v32, 0.0 }
  0xec   : > { %v886_v42 = vpack.c.bf16 %v523_v35, %v522_v34  ;;  %v537_v43 = vmax.f32 %v461_v36, 0.0 }
  0xed   : > { %v926_v44 = vpack.c.bf16 %v539_v39, %v538_v37  ;;  %v881_v45 = vpack.c.bf16 %v521_v40, %v520_v38  ;;  %v1001_v46 = vpop.f32.mrb[4].mxu0 }
  0xee   : > { %958 = vst [vmem:[%s1159_s27 + $0x8] sm:$0xff] %v886_v42   ;;  %v921_v47 = vpack.c.bf16 %v537_v43, %v536_v41  ;;  %v418_v48 = vadd.f32 %v1001_v46, %v1144_v18  ;;  %v1017_v49 = vpop.f32.mrb[4].mxu1  ;;  %v409_v50 = vpop.f32.mrb[5].mxu0 }
  0xef   : > { %966 = vst [vmem:[%s1159_s27 + $0x48] sm:$0xff] %v926_v44   ;;  %882 = vst [vmem:[%s1159_s27] sm:$0xff] %v881_v45   ;;  %v482_v51 = vadd.f32 %v1017_v49, %v1144_v18  ;;  %v410_v52 = vadd.f32 %v1144_v18, %v409_v50  ;;  %v473_v53 = vpop.f32.mrb[5].mxu1  ;;  %v1002_v54 = vpop.f32.mrb[6].mxu0 }
  0xf0   : > { %965 = vst [vmem:[%s1159_s27 + $0x40] sm:$0xff] %v921_v47   ;;  %v474_v55 = vadd.f32 %v1144_v18, %v473_v53  ;;  %v421_v56 = vadd.f32 %v1002_v54, %v1144_v18  ;;  %v1018_v57 = vpop.f32.mrb[6].mxu1  ;;  %v412_v58 = vpop.f32.mrb[7].mxu0  ;;  %v526_v62 = vmax.f32 %v418_v48, 0.0 }
  0xf1   : > { %v485_v59 = vadd.f32 %v1018_v57, %v1144_v18  ;;  %v413_v60 = vadd.f32 %v1144_v18, %v412_v58  ;;  %v476_v61 = vpop.f32.mrb[7].mxu1  ;;  %v542_v1 = vmax.f32 %v482_v51, 0.0  ;;  %v524_v2 = vmax.f32 %v410_v52, 0.0 }
  0xf2   : > { %v527_v63 = vmax.f32 %v421_v56, 0.0  ;;  %v477_v0 = vadd.f32 %v1144_v18, %v476_v61  ;;  %v540_v5 = vmax.f32 %v474_v55, 0.0 }
  0xf3   : > { %v543_v3 = vmax.f32 %v485_v59, 0.0  ;;  %v525_v4 = vmax.f32 %v413_v60, 0.0 }
  0xf4   : > { %v896_v6 = vpack.c.bf16 %v527_v63, %v526_v62  ;;  %v541_v7 = vmax.f32 %v477_v0, 0.0 }
  0xf5   : > { %v936_v8 = vpack.c.bf16 %v543_v3, %v542_v1  ;;  %v891_v9 = vpack.c.bf16 %v525_v4, %v524_v2  ;;  %v1005_v10 = vpop.f32.mrb[8].mxu0 }
  0xf6   : > { %960 = vst [vmem:[%s1159_s27 + $0x18] sm:$0xff] %v896_v6   ;;  %v931_v11 = vpack.c.bf16 %v541_v7, %v540_v5  ;;  %v434_v12 = vadd.f32 %v1005_v10, %v1144_v18  ;;  %v1021_v13 = vpop.f32.mrb[8].mxu1  ;;  %v425_v14 = vpop.f32.mrb[9].mxu0 }
  0xf7   : > { %968 = vst [vmem:[%s1159_s27 + $0x58] sm:$0xff] %v936_v8   ;;  %959 = vst [vmem:[%s1159_s27 + $0x10] sm:$0xff] %v891_v9   ;;  %v498_v15 = vadd.f32 %v1021_v13, %v1144_v18  ;;  %v426_v16 = vadd.f32 %v1144_v18, %v425_v14  ;;  %v489_v17 = vpop.f32.mrb[9].mxu1  ;;  %v1006_v19 = vpop.f32.mrb[10].mxu0 }
  0xf8   : > { %967 = vst [vmem:[%s1159_s27 + $0x50] sm:$0xff] %v931_v11   ;;  %v490_v20 = vadd.f32 %v1144_v18, %v489_v17  ;;  %v437_v21 = vadd.f32 %v1006_v19, %v1144_v18  ;;  %v1022_v22 = vpop.f32.mrb[10].mxu1  ;;  %v428_v23 = vpop.f32.mrb[11].mxu0  ;;  %v530_v27 = vmax.f32 %v434_v12, 0.0 }
  0xf9   : > { %v501_v24 = vadd.f32 %v1022_v22, %v1144_v18  ;;  %v429_v25 = vadd.f32 %v1144_v18, %v428_v23  ;;  %v492_v26 = vpop.f32.mrb[11].mxu1  ;;  %v546_v30 = vmax.f32 %v498_v15, 0.0  ;;  %v528_v31 = vmax.f32 %v426_v16, 0.0 }
  0xfa   : > { %v531_v28 = vmax.f32 %v437_v21, 0.0  ;;  %v493_v29 = vadd.f32 %v1144_v18, %v492_v26  ;;  %v544_v34 = vmax.f32 %v490_v20, 0.0 }
  0xfb   : > { %v547_v32 = vmax.f32 %v501_v24, 0.0  ;;  %v529_v33 = vmax.f32 %v429_v25, 0.0 }
  0xfc   : > { %v906_v35 = vpack.c.bf16 %v531_v28, %v530_v27  ;;  %v545_v36 = vmax.f32 %v493_v29, 0.0 }
  0xfd   : > { %v946_v37 = vpack.c.bf16 %v547_v32, %v546_v30  ;;  %v901_v38 = vpack.c.bf16 %v529_v33, %v528_v31  ;;  %v1009_v39 = vpop.f32.mrb[12].mxu0 }
  0xfe   : > { %962 = vst [vmem:[%s1159_s27 + $0x28] sm:$0xff] %v906_v35   ;;  %v941_v40 = vpack.c.bf16 %v545_v36, %v544_v34  ;;  %v450_v41 = vadd.f32 %v1009_v39, %v1144_v18  ;;  %v1025_v42 = vpop.f32.mrb[12].mxu1  ;;  %v441_v43 = vpop.f32.mrb[13].mxu0 }
  0xff   : > { %970 = vst [vmem:[%s1159_s27 + $0x68] sm:$0xff] %v946_v37   ;;  %961 = vst [vmem:[%s1159_s27 + $0x20] sm:$0xff] %v901_v38   ;;  %v514_v44 = vadd.f32 %v1025_v42, %v1144_v18  ;;  %v442_v45 = vadd.f32 %v1144_v18, %v441_v43  ;;  %v505_v46 = vpop.f32.mrb[13].mxu1  ;;  %v1010_v47 = vpop.f32.mrb[14].mxu0 }
 0x100   : > { %969 = vst [vmem:[%s1159_s27 + $0x60] sm:$0xff] %v941_v40   ;;  %v506_v48 = vadd.f32 %v1144_v18, %v505_v46  ;;  %v453_v49 = vadd.f32 %v1010_v47, %v1144_v18  ;;  %v1026_v50 = vpop.f32.mrb[14].mxu1  ;;  %v444_v51 = vpop.f32.mrb[15].mxu0  ;;  %v534_v55 = vmax.f32 %v450_v41, 0.0 }
 0x101   : > { %v517_v52 = vadd.f32 %v1026_v50, %v1144_v18  ;;  %v445_v53 = vadd.f32 %v1144_v18, %v444_v51  ;;  %v508_v54 = vpop.f32.mrb[15].mxu1  ;;  %v550_v58 = vmax.f32 %v514_v44, 0.0  ;;  %v532_v59 = vmax.f32 %v442_v45, 0.0 }
 0x102   : > { %v535_v56 = vmax.f32 %v453_v49, 0.0  ;;  %v509_v57 = vadd.f32 %v1144_v18, %v508_v54  ;;  %v548_v62 = vmax.f32 %v506_v48, 0.0 }
 0x103   : > { %v551_v60 = vmax.f32 %v517_v52, 0.0  ;;  %v533_v61 = vmax.f32 %v445_v53, 0.0 }
 0x104   : > { %v916_v63 = vpack.c.bf16 %v535_v56, %v534_v55  ;;  %v549_v0 = vmax.f32 %v509_v57, 0.0 }
 0x105   : > { %v956_v1 = vpack.c.bf16 %v551_v60, %v550_v58  ;;  %v911_v2 = vpack.c.bf16 %v533_v61, %v532_v59 }
 0x106   : > { %964 = vst [vmem:[%s1159_s27 + $0x38] sm:$0xff] %v916_v63   ;;  %v951_v3 = vpack.c.bf16 %v549_v0, %v548_v62 }
 0x107   : > { %972 = vst [vmem:[%s1159_s27 + $0x78] sm:$0xff] %v956_v1   ;;  %963 = vst [vmem:[%s1159_s27 + $0x30] sm:$0xff] %v911_v2  }
 0x108   : > { %971 = vst [vmem:[%s1159_s27 + $0x70] sm:$0xff] %v951_v3  }
 0x109 PF: > { %s13_s12 = sadd.s32 1, %s1063_s12  }
 0x10a   : > { %p10_p4 = scmp.ge.s32.totalorder %s13_s12, 4  }
 0x10c   :  { %12 = sbr.rel (!%p10_p4) target bundleno = 1 (0x1), region = 62 }

// kernel: deeplab_forward.23
= control target key start
LH: loop header
LB: loop body
LE: loop exit
PB: predicated region body
PF: predicated region fallthrough
CT: control target
= control target key end

     0   :  { %s4613_s12 = smov 0   ;;  %s5574_s0 = inlined_call_operand.vmem [shape: bf16[512,1296], index: 0, kind: input, shape index: {}]   ;;  %s5575_s1 = inlined_call_operand.vmem [shape: bf16[1296,128], index: 1, kind: input, shape index: {}]   ;;  %s5576_s2 = inlined_call_operand.vmem [shape: f32[1,128], index: 2, kind: input, shape index: {}]   ;;  %s5577_s3 = inlined_call_operand.vmem [shape: bf16[512,128], index: 3, kind: output, shape index: {}]  }
   0x1 LB: > { %s3168_s13 = sadd.s32 4294967295, %s4591_s12   ;;  %p3172_p0 = scmp.ge.s32.totalorder %s4591_s12, 1  ;;  %s4591_s12 = sphi %s4613_s12, %s13_s12  }
   0x2   : > { %p139_p1 = scmp.lt.s32.totalorder %s4591_s12, 3 }
   0x4   : > { %p140_p2 = pnand %p3172_p0, %p139_p1 }
   0x5   : > { %v4248_v0 = vld [vmem:[%s5575_s1 + $0x40] sm:$0xff] (!%p140_p2)   ;;  %s3173_s16 = sshll.u32 (!%p140_p2), %s3168_s13, 5  ;;  %v4250_v2 = vld [vmem:[%s5575_s1 + $0x48] sm:$0xff] (!%p140_p2)   ;;  %v4252_v4 = vld [vmem:[%s5575_s1 + $0x50] sm:$0xff] (!%p140_p2)   ;;  %vm1905_vm0 = vcmask (!%p140_p2), 130048  }
   0x6   : > { %143 = sbr.rel (%p140_p2) target bundleno = 608 (0x260), region = 32  ;;  %v4249_v1 = vld [vmem:[%s5575_s1] sm:$0xff] (!%p140_p2)   ;;  %3612 = vmatprep.subr.bf16.mxu0 (!%p140_p2), %v4248_v0  ;;  %4223 = vmatprep.subr.bf16.mxu1 (!%p140_p2), %v4248_v0  ;;  %p165_p3 = scmp.lt.s32.totalorder (!%p140_p2), %s3173_s16, 63  ;;  %v4251_v3 = vld [vmem:[%s5575_s1 + $0x8] sm:$0xff] (!%p140_p2)   ;;  %v4253_v5 = vld [vmem:[%s5575_s1 + $0x10] sm:$0xff] (!%p140_p2)  }
   0x7   : > { %3613 = vmatpush3.bf16.msra.mxu0 (!%p140_p2), %v4249_v1  ;;  %4231 = vmatpush3.bf16.msra.mxu1 (!%p140_p2), %v4249_v1  ;;  %v4254_v6 = vld [vmem:[%s5575_s1 + $0x58] sm:$0xff] (!%p140_p2)   ;;  %v4256_v8 = vld [vmem:[%s5575_s1 + $0x60] sm:$0xff] (!%p140_p2)   ;;  %v4258_v10 = vld [vmem:[%s5575_s1 + $0x68] sm:$0xff] (!%p140_p2)  }
   0x8   : > { %3614 = vmatprep.subr.bf16.mxu0 (!%p140_p2), %v4250_v2  ;;  %4224 = vmatprep.subr.bf16.mxu1 (!%p140_p2), %v4250_v2  ;;  %v4255_v7 = vld [vmem:[%s5575_s1 + $0x18] sm:$0xff] (!%p140_p2)   ;;  %v4257_v9 = vld [vmem:[%s5575_s1 + $0x20] sm:$0xff] (!%p140_p2)   ;;  %v4259_v13 = vld [vmem:[%s5575_s1 + $0x28] sm:$0xff] (!%p140_p2)  }
   0x9   : > { %v4260_v14 = vld [vmem:[%s5575_s1 + $0x70] sm:$0xff] (!%p140_p2)   ;;  %v4262_v16 = vld [vmem:[%s5575_s1 + $0x78] sm:$0xff] (!%p140_p2)   ;;  %v4270_v18 = vld [vmem:[%s5575_s1 + $0xc0] sm:$0xff] (!%p140_p2)  }
   0xa   : > { %v4261_v15 = vld [vmem:[%s5575_s1 + $0x30] sm:$0xff] (!%p140_p2)   ;;  %v4263_v17 = vld [vmem:[%s5575_s1 + $0x38] sm:$0xff] (!%p140_p2)   ;;  %v4271_v21 = vld [vmem:[%s5575_s1 + $0x140] sm:$0xff] (!%p140_p2)  }
   0xb   : > { %3615 = vmatpush3.bf16.msra.mxu0 (!%p140_p2), %v4251_v3  ;;  %4232 = vmatpush3.bf16.msra.mxu1 (!%p140_p2), %v4251_v3  ;;  %v4272_v22 = vld [vmem:[%s5575_s1 + $0x80] sm:$0xff] (!%p140_p2)   ;;  %v4274_v24 = vld [vmem:[%s5575_s1 + $0xc8] sm:$0xff] (!%p140_p2)   ;;  %v4282_v32 = vld [vmem:[%s5575_s1 + $0xd0] sm:$0xff] (!%p140_p2)  }
   0xc   : > { %3616 = vmatprep.subr.bf16.mxu0 (!%p140_p2), %v4252_v4  ;;  %4225 = vmatprep.subr.bf16.mxu1 (!%p140_p2), %v4252_v4  ;;  %v4273_v23 = vld [vmem:[%s5575_s1 + $0x100] sm:$0xff] (!%p140_p2)   ;;  %v4285_v27 = vld [vmem:[%s5575_s1 + $0x148] sm:$0xff] (!%p140_p2)   ;;  %v4283_v33 = vld [vmem:[%s5575_s1 + $0x90] sm:$0xff] (!%p140_p2)  }
   0xd   : > { %s5579_s16 = smov (!%p165_p3, %s3173_s16), 63  ;;  %v4275_v28 = vld [vmem:[%s5575_s1 + $0x88] sm:$0xff]   ;;  %v4284_v34 = vld [vmem:[%s5575_s1 + $0xd8] sm:$0xff]   ;;  %v4294_v38 = vld [vmem:[%s5575_s1 + $0xe0] sm:$0xff]  }
   0xe   : > { %s4239_s29 = smul.u32 44, %s5579_s16  ;;  %v4287_v29 = vld [vmem:[%s5575_s1 + $0x108] sm:$0xff]   ;;  %v4286_v37 = vld [vmem:[%s5575_s1 + $0x98] sm:$0xff]   ;;  %v4305_v41 = vld [vmem:[%s5575_s1 + $0x150] sm:$0xff]  }
   0xf   : > { %3617 = vmatpush3.bf16.msra.mxu0 %v4253_v5  ;;  %4233 = vmatpush3.bf16.msra.mxu1 %v4253_v5  ;;  %v4295_v42 = vld [vmem:[%s5575_s1 + $0xa0] sm:$0xff]   ;;  %v4296_v43 = vld [vmem:[%s5575_s1 + $0xe8] sm:$0xff]   ;;  %v4307_v44 = vld [vmem:[%s5575_s1 + $0x110] sm:$0xff]  }
  0x10   : > { %3618 = vmatprep.subr.bf16.mxu0 %v4254_v6  ;;  %4226 = vmatprep.subr.bf16.mxu1 %v4254_v6  ;;  %s4654_s9 = scalar_lea.vmem %s5574_s0, %s4239_s29  ;;  %v4297_v47 = vld [vmem:[%s5575_s1 + $0xa8] sm:$0xff]   ;;  %v4304_v48 = vld [vmem:[%s5575_s1 + $0xf0] sm:$0xff]   ;;  %v4316_v51 = vld [vmem:[%s5575_s1 + $0x158] sm:$0xff]  }
  0x11   : > { %v4266_v11 = vld [vmem:[%s4654_s9 + $0x4] ss:$44 sps:$4 sm:$0xff]   ;;  %v4264_v19 = vld [vmem:[%s4654_s9] ss:$44 sps:$4 sm:$0xff]   ;;  %v4276_v25 = vld [vmem:[%s4654_s9 + $0x5c] ss:$44 sps:$4 sm:$0xff]  }
  0x12   : > { %v4269_v12 = vld [vmem:[%s4654_s9 + $0x424] ss:$44 sps:$4 sm:$0xff]   ;;  %1986 = vmatprep.mubr.bf16.mxu0 %v4266_v11  ;;  %v4267_v20 = vld [vmem:[%s4654_s9 + $0x420] ss:$44 sps:$4 sm:$0xff]   ;;  %v4278_v26 = vld [vmem:[%s4654_s9 + $0x47c] ss:$44 sps:$4 sm:$0xff]  }
  0x13   : > { %3619 = vmatpush3.bf16.msra.mxu0 %v4255_v7  ;;  %4234 = vmatpush3.bf16.msra.mxu1 %v4255_v7  ;;  %v4280_v30 = vld [vmem:[%s4654_s9 + $0x58] ss:$44 sps:$4 sm:$0xff]   ;;  %v4288_v35 = vld [vmem:[%s4654_s9 + $0xb4] ss:$44 sps:$4 sm:$0xff]   ;;  %v4292_v39 = vld [vmem:[%s4654_s9 + $0xb0] ss:$44 sps:$4 sm:$0xff]  }
  0x14   : > { %3620 = vmatprep.subr.bf16.mxu0 %v4256_v8  ;;  %4227 = vmatprep.subr.bf16.mxu1 %v4256_v8  ;;  %v4281_v31 = vld [vmem:[%s4654_s9 + $0x478] ss:$44 sps:$4 sm:$0xff]   ;;  %v4290_v36 = vld [vmem:[%s4654_s9 + $0x4d4] ss:$44 sps:$4 sm:$0xff]   ;;  %v4293_v40 = vld [vmem:[%s4654_s9 + $0x4d0] ss:$44 sps:$4 sm:$0xff]  }
  0x15   : > { %2082 = vmatprep.mubr.bf16.mxu1 %v4269_v12  ;;  %v4298_v45 = vld [vmem:[%s4654_s9 + $0x10c] ss:$44 sps:$4 sm:$0xff]   ;;  %v4302_v49 = vld [vmem:[%s4654_s9 + $0x108] ss:$44 sps:$4 sm:$0xff]   ;;  %v4310_v55 = vld [vmem:[%s4654_s9 + $0x164] ss:$44 sps:$4 sm:$0xff]  }
  0x16   : > { %v4300_v46 = vld [vmem:[%s4654_s9 + $0x52c] ss:$44 sps:$4 sm:$0xff]   ;;  %v4303_v50 = vld [vmem:[%s4654_s9 + $0x528] ss:$44 sps:$4 sm:$0xff]   ;;  %v4317_v60 = vld [vmem:[%s5575_s1 + $0x1c0] sm:$0xff]  }
  0x17   : > { %3621 = vmatpush3.bf16.msra.mxu0 %v4257_v9  ;;  %4235 = vmatpush3.bf16.msra.mxu1 %v4257_v9  ;;  %v4306_v52 = vld [vmem:[%s5575_s1 + $0xb0] sm:$0xff]   ;;  %v4308_v53 = vld [vmem:[%s5575_s1 + $0xf8] sm:$0xff]   ;;  %v4315_v59 = vld [vmem:[%s4654_s9 + $0x160] ss:$44 sps:$4 sm:$0xff]  }
  0x18   : > { %3622 = vmatprep.subr.bf16.mxu0 %v4258_v10  ;;  %4228 = vmatprep.subr.bf16.mxu1 %v4258_v10  ;;  %v4318_v54 = vld [vmem:[%s5575_s1 + $0x118] sm:$0xff]   ;;  %v4312_v58 = vld [vmem:[%s4654_s9 + $0x8] ss:$44 sps:$4 sm:$0xff]   ;;  %v4319_v61 = vld [vmem:[%s5575_s1 + $0x180] sm:$0xff]  }
  0x19   : > { %v4314_v56 = vld [vmem:[%s4654_s9 + $0xc] ss:$44 sps:$4 sm:$0xff]   ;;  %v4320_v62 = vld [vmem:[%s4654_s9 + $0x1bc] ss:$44 sps:$4 sm:$0xff]   ;;  %v4332_v63 = vld [vmem:[%s5575_s1 + $0x160] sm:$0xff]  }
  0x1a   : > { %v4309_v57 = vld [vmem:[%s5575_s1 + $0xb8] sm:$0xff]   ;;  %v4333_v0 = vld [vmem:[%s5575_s1 + $0x120] sm:$0xff]   ;;  %v4334_v2 = vld [vmem:[%s5575_s1 + $0x1c8] sm:$0xff]  }
  0x1b   : > { %3623 = vmatpush3.bf16.msra.mxu0 %v4259_v13  ;;  %4236 = vmatpush3.bf16.msra.mxu1 %v4259_v13  ;;  %v4322_v1 = vld [vmem:[%s4654_s9 + $0x64] ss:$44 sps:$4 sm:$0xff]   ;;  %v4335_v3 = vld [vmem:[%s5575_s1 + $0x188] sm:$0xff]   ;;  %v4326_v8 = vld [vmem:[%s4654_s9 + $0x214] ss:$44 sps:$4 sm:$0xff]  }
  0x1c   : > { %3624 = vmatprep.subr.bf16.mxu0 %v4260_v14  ;;  %4229 = vmatprep.subr.bf16.mxu1 %v4260_v14  ;;  %v4324_v4 = vld [vmem:[%s4654_s9 + $0x1b8] ss:$44 sps:$4 sm:$0xff]   ;;  %v4342_v5 = vld [vmem:[%s5575_s1 + $0x168] sm:$0xff]   ;;  %v4350_v10 = vld [vmem:[%s5575_s1 + $0x1d0] sm:$0xff]  }
  0x1d   : > { %v4343_v6 = vld [vmem:[%s5575_s1 + $0x128] sm:$0xff]   ;;  %v4351_v11 = vld [vmem:[%s5575_s1 + $0x190] sm:$0xff]   ;;  %v4331_v13 = vld [vmem:[%s4654_s9 + $0xb8] ss:$44 sps:$4 sm:$0xff]  }
  0x1e   : > { %v4325_v7 = vld [vmem:[%s4654_s9 + $0x60] ss:$44 sps:$4 sm:$0xff]   ;;  %v4328_v9 = vld [vmem:[%s4654_s9 + $0xbc] ss:$44 sps:$4 sm:$0xff]  }
  0x1f   : > { %3625 = vmatpush3.bf16.msra.mxu0 %v4261_v15  ;;  %4237 = vmatpush3.bf16.msra.mxu1 %v4261_v15  ;;  %v4330_v12 = vld [vmem:[%s4654_s9 + $0x210] ss:$44 sps:$4 sm:$0xff]   ;;  %v4336_v14 = vld [vmem:[%s4654_s9 + $0x26c] ss:$44 sps:$4 sm:$0xff]  }
  0x20   : > { %3626 = vmatprep.subr.bf16.mxu0 %v4262_v16  ;;  %4230 = vmatprep.subr.bf16.mxu1 %v4262_v16  ;;  %v4358_v15 = vld [vmem:[%s5575_s1 + $0x170] sm:$0xff]  }
  0x21   : > { %v4359_v16 = vld [vmem:[%s5575_s1 + $0x130] sm:$0xff]  }
  0x23   : > { %3627 = vmatpush3.bf16.msra.mxu0 %v4263_v17  ;;  %4238 = vmatpush3.bf16.msra.mxu1 %v4263_v17  ;;  %v4338_v17 = vld [vmem:[%s4654_s9 + $0x114] ss:$44 sps:$4 sm:$0xff]  }
  0x24   : > { %3724 = vmatprep.subr.bf16.mxu1 %v4270_v18  ;;  %3836 = vmatprep.subr.bf16.mxu0 %v4271_v21  ;;  %v4366_v18 = vld [vmem:[%s5575_s1 + $0x178] sm:$0xff]  }
  0x25   : > { %v4368_v21 = vld [vmem:[%s5575_s1 + $0x138] sm:$0xff]  }
  0x26   : > { %1987 = vmatmul.mubr.bf16.vlgmr.msra.gmra.mrb[0].mxu0 %v4264_v19  ;;  %2083 = vmatmul.mubr.bf16.vlgmr.msra.gmra.mrb[0].mxu1 %v4267_v20  ;;  %v4367_v19 = vld [vmem:[%s5575_s1 + $0x1d8] sm:$0xff]   ;;  %v4340_v20 = vld [vmem:[%s4654_s9 + $0x268] ss:$44 sps:$4 sm:$0xff]  }
  0x27   : > { %3725 = vmatpush3.bf16.msra.mxu1 %v4272_v22  ;;  %3837 = vmatpush3.bf16.msra.mxu0 %v4273_v23  ;;  %v4369_v22 = vld [vmem:[%s5575_s1 + $0x198] sm:$0xff]  }
  0x28   : > { %3726 = vmatprep.subr.bf16.mxu1 %v4274_v24  ;;  %1994 = vmatprep.mubr.bf16.mxu0 %v4276_v25  ;;  %v4341_v23 = vld [vmem:[%s4654_s9 + $0x110] ss:$44 sps:$4 sm:$0xff]   ;;  %v4346_v25 = vld [vmem:[%s4654_s9 + $0x16c] ss:$44 sps:$4 sm:$0xff]  }
  0x29   : > { %2090 = vmatprep.mubr.bf16.mxu1 %v4278_v26  ;;  %3838 = vmatprep.subr.bf16.mxu0 %v4285_v27  ;;  %v4344_v24 = vld [vmem:[%s4654_s9 + $0x2c4] ss:$44 sps:$4 sm:$0xff]   ;;  %v4348_v27 = vld [vmem:[%s4654_s9 + $0x2c0] ss:$44 sps:$4 sm:$0xff]  }
  0x2a   : > { %v4382_v26 = vld [vmem:[%s5575_s1 + $0x240] sm:$0xff]  }
  0x2b   : > { %3727 = vmatpush3.bf16.msra.mxu1 %v4275_v28  ;;  %3839 = vmatpush3.bf16.msra.mxu0 %v4287_v29  ;;  %v4349_v28 = vld [vmem:[%s4654_s9 + $0x168] ss:$44 sps:$4 sm:$0xff]  }
  0x2c   : > { %3728 = vmatprep.subr.bf16.mxu1 %v4282_v32  ;;  %3840 = vmatprep.subr.bf16.mxu0 %v4305_v41  ;;  %v4352_v29 = vld [vmem:[%s4654_s9 + $0x31c] ss:$44 sps:$4 sm:$0xff]   ;;  %v4354_v32 = vld [vmem:[%s4654_s9 + $0x1c4] ss:$44 sps:$4 sm:$0xff]   ;;  %v4370_v41 = vld [vmem:[%s4654_s9 + $0x3cc] ss:$44 sps:$4 sm:$0xff]  }
  0x2e   : > { %1995 = vmatmul.mubr.bf16.gmra.mrb[4].mxu0 %v4280_v30  ;;  %2091 = vmatmul.mubr.bf16.gmra.mrb[4].mxu1 %v4281_v31  ;;  %v4384_v30 = vld [vmem:[%s5575_s1 + $0x1e0] sm:$0xff]  }
  0x2f   : > { %3729 = vmatpush3.bf16.msra.mxu1 %v4283_v33  ;;  %2002 = vmatprep.mubr.bf16.mxu0 %v4288_v35  ;;  %v4385_v31 = vld [vmem:[%s5575_s1 + $0x1a0] sm:$0xff]  }
  0x30   : > { %3730 = vmatprep.subr.bf16.mxu1 %v4284_v34  ;;  %2098 = vmatprep.mubr.bf16.mxu1 %v4290_v36  ;;  %v4356_v33 = vld [vmem:[%s4654_s9 + $0x318] ss:$44 sps:$4 sm:$0xff]   ;;  %v4357_v34 = vld [vmem:[%s4654_s9 + $0x1c0] ss:$44 sps:$4 sm:$0xff]   ;;  %v4362_v36 = vld [vmem:[%s4654_s9 + $0x21c] ss:$44 sps:$4 sm:$0xff]  }
  0x31   : > { %3841 = vmatpush3.bf16.msra.mxu0 %v4307_v44  ;;  %v4360_v35 = vld [vmem:[%s4654_s9 + $0x374] ss:$44 sps:$4 sm:$0xff]  }
  0x32   : > { %3842 = vmatprep.subr.bf16.mxu0 %v4316_v51  ;;  %v4417_v44 = vld [vmem:[%s5575_s1 + $0x1b0] sm:$0xff]  }
  0x33   : > { %3731 = vmatpush3.bf16.msra.mxu1 %v4286_v37  ;;  %v4400_v37 = vld [vmem:[%s5575_s1 + $0x1e8] sm:$0xff]   ;;  %v4378_v51 = vld [vmem:[%s4654_s9 + $0x10] ss:$44 sps:$4 sm:$0xff]  }
  0x34   : > { %3732 = vmatprep.subr.bf16.mxu1 %v4294_v38  ;;  %v4401_v38 = vld [vmem:[%s5575_s1 + $0x1a8] sm:$0xff]  }
  0x35   : > { %3843 = vmatpush3.bf16.msra.mxu0 %v4318_v54  ;;  %v4386_v54 = vld [vmem:[%s4654_s9 + $0x324] ss:$44 sps:$4 sm:$0xff]  }
  0x36   : > { %2003 = vmatmul.mubr.bf16.gmra.mrb[8].mxu0 %v4292_v39  ;;  %2099 = vmatmul.mubr.bf16.gmra.mrb[8].mxu1 %v4293_v40  ;;  %v4364_v39 = vld [vmem:[%s4654_s9 + $0x370] ss:$44 sps:$4 sm:$0xff]   ;;  %v4365_v40 = vld [vmem:[%s4654_s9 + $0x218] ss:$44 sps:$4 sm:$0xff]  }
  0x37   : > { %3733 = vmatpush3.bf16.msra.mxu1 %v4295_v42  ;;  %2010 = vmatprep.mubr.bf16.mxu0 %v4298_v45  ;;  %v4372_v42 = vld [vmem:[%s4654_s9 + $0x274] ss:$44 sps:$4 sm:$0xff]  }
  0x38   : > { %3734 = vmatprep.subr.bf16.mxu1 %v4296_v43  ;;  %2106 = vmatprep.mubr.bf16.mxu1 %v4300_v46  ;;  %v4416_v43 = vld [vmem:[%s5575_s1 + $0x1f0] sm:$0xff]  }
  0x39   : > { %3844 = vmatprep.subr.bf16.mxu0 %v4332_v63  ;;  %v4374_v45 = vld [vmem:[%s4654_s9 + $0x3c8] ss:$44 sps:$4 sm:$0xff]   ;;  %v4375_v46 = vld [vmem:[%s4654_s9 + $0x270] ss:$44 sps:$4 sm:$0xff]  }
  0x3a   : > { %3845 = vmatpush3.bf16.msra.mxu0 %v4333_v0  ;;  %v4394_v63 = vld [vmem:[%s4654_s9 + $0xc4] ss:$44 sps:$4 sm:$0xff]  }
  0x3b   : > { %3735 = vmatpush3.bf16.msra.mxu1 %v4297_v47  ;;  %3846 = vmatprep.subr.bf16.mxu0 %v4342_v5  ;;  %v4376_v47 = vld [vmem:[%s4654_s9 + $0x2cc] ss:$44 sps:$4 sm:$0xff]   ;;  %v4415_v0 = vld [vmem:[%s5575_s1 + $0x210] sm:$0xff]  }
  0x3c   : > { %3736 = vmatprep.subr.bf16.mxu1 %v4304_v48  ;;  %v4380_v48 = vld [vmem:[%s4654_s9 + $0x14] ss:$44 sps:$4 sm:$0xff]  }
  0x3d   : > { %v4397_v5 = vld [vmem:[%s4654_s9 + $0xc0] ss:$44 sps:$4 sm:$0xff]  }
  0x3e   : > { %2011 = vmatmul.mubr.bf16.gmra.mrb[12].mxu0 %v4302_v49  ;;  %2107 = vmatmul.mubr.bf16.gmra.mrb[12].mxu1 %v4303_v50  ;;  %v4432_v49 = vld [vmem:[%s5575_s1 + $0x1f8] sm:$0xff]  }
  0x3f   : > { %3737 = vmatpush3.bf16.msra.mxu1 %v4306_v52  ;;  %2018 = vmatprep.mubr.bf16.mxu0 %v4310_v55  ;;  %v4433_v50 = vld [vmem:[%s5575_s1 + $0x1b8] sm:$0xff]   ;;  %v4381_v52 = vld [vmem:[%s4654_s9 + $0x2c8] ss:$44 sps:$4 sm:$0xff]  }
  0x40   : > { %3738 = vmatprep.subr.bf16.mxu1 %v4308_v53  ;;  %2147 = vmatprep.mubr.bf16.mxu1 %v4314_v56  ;;  %v4383_v53 = vld [vmem:[%s5575_s1 + $0x200] sm:$0xff]   ;;  %v4388_v55 = vld [vmem:[%s4654_s9 + $0x6c] ss:$44 sps:$4 sm:$0xff]  }
  0x41   : > { %3847 = vmatpush3.bf16.msra.mxu0 %v4343_v6  ;;  %v4398_v56 = vld [vmem:[%s5575_s1 + $0x248] sm:$0xff]   ;;  %v4402_v6 = vld [vmem:[%s4654_s9 + $0x3d4] ss:$44 sps:$4 sm:$0xff]  }
  0x42   : > { %3848 = vmatprep.subr.bf16.mxu0 %v4358_v15  ;;  %v4410_v15 = vld [vmem:[%s4654_s9 + $0x174] ss:$44 sps:$4 sm:$0xff]  }
  0x43   : > { %3739 = vmatpush3.bf16.msra.mxu1 %v4309_v57  ;;  %v4887_v57 = vld [vmem:[%s5575_s1 + $0x280] sm:$0xff]  }
  0x44   : > { %3948 = vmatprep.subr.bf16.mxu1 %v4317_v60  ;;  %v4390_v60 = vld [vmem:[%s4654_s9 + $0x320] ss:$44 sps:$4 sm:$0xff]  }
  0x45   : > { %3849 = vmatpush3.bf16.msra.mxu0 %v4359_v16  ;;  %v4476_v16 = vld [vmem:[%s5575_s1 + $0x230] sm:$0xff]  }
  0x46   : > { %2019 = vmatmul.mubr.bf16.gmra.mrb[16].mxu0 %v4315_v59  ;;  %2148 = vmatmul.mubr.bf16.vlgmr.msra.gmra.mrb[16].mxu1 %v4312_v58  ;;  %v4399_v58 = vld [vmem:[%s5575_s1 + $0x208] sm:$0xff]   ;;  %v4414_v59 = vld [vmem:[%s5575_s1 + $0x250] sm:$0xff]  }
  0x47   : > { %3949 = vmatpush3.bf16.msra.mxu1 %v4319_v61  ;;  %2026 = vmatprep.mubr.bf16.mxu0 %v4320_v62  ;;  %v4391_v61 = vld [vmem:[%s4654_s9 + $0x68] ss:$44 sps:$4 sm:$0xff]  }
  0x48   : > { %2155 = vmatprep.mubr.bf16.mxu1 %v4322_v1  ;;  %3950 = vmatprep.subr.bf16.mxu1 %v4334_v2  ;;  %v4392_v62 = vld [vmem:[%s4654_s9 + $0x37c] ss:$44 sps:$4 sm:$0xff]   ;;  %v4396_v2 = vld [vmem:[%s4654_s9 + $0x378] ss:$44 sps:$4 sm:$0xff]  }
  0x49   : > { %3850 = vmatprep.subr.bf16.mxu0 %v4366_v18  ;;  %v4430_v1 = vld [vmem:[%s5575_s1 + $0x258] sm:$0xff]  }
  0x4a   : > { %3851 = vmatpush3.bf16.msra.mxu0 %v4368_v21  ;;  %v4490_v18 = vld [vmem:[%s5575_s1 + $0x238] sm:$0xff]   ;;  %v4418_v21 = vld [vmem:[%s4654_s9 + $0x484] ss:$44 sps:$4 sm:$0xff]  }
  0x4b   : > { %3951 = vmatpush3.bf16.msra.mxu1 %v4335_v3  ;;  %4060 = vmatprep.subr.bf16.mxu0 %v4382_v26  ;;  %v4431_v3 = vld [vmem:[%s5575_s1 + $0x218] sm:$0xff]   ;;  %v4426_v26 = vld [vmem:[%s4654_s9 + $0x224] ss:$44 sps:$4 sm:$0xff]  }
  0x4c   : > { %3952 = vmatprep.subr.bf16.mxu1 %v4350_v10  ;;  %v4462_v10 = vld [vmem:[%s5575_s1 + $0x228] sm:$0xff]  }
  0x4e   : > { %2027 = vmatmul.mubr.bf16.gmra.mrb[20].mxu0 %v4324_v4  ;;  %2156 = vmatmul.mubr.bf16.gmra.mrb[20].mxu1 %v4325_v7  ;;  %v4446_v4 = vld [vmem:[%s5575_s1 + $0x260] sm:$0xff]   ;;  %v4404_v7 = vld [vmem:[%s4654_s9 + $0x11c] ss:$44 sps:$4 sm:$0xff]  }
  0x4f   : > { %2034 = vmatprep.mubr.bf16.mxu0 %v4326_v8  ;;  %2163 = vmatprep.mubr.bf16.mxu1 %v4328_v9  ;;  %v4447_v8 = vld [vmem:[%s5575_s1 + $0x220] sm:$0xff]   ;;  %v4461_v9 = vld [vmem:[%s5575_s1 + $0x268] sm:$0xff]  }
  0x50   : > { %3953 = vmatpush3.bf16.msra.mxu1 %v4351_v11  ;;  %v4475_v11 = vld [vmem:[%s5575_s1 + $0x270] sm:$0xff]  }
  0x51   : > { %3954 = vmatprep.subr.bf16.mxu1 %v4367_v19  ;;  %v4412_v19 = vld [vmem:[%s4654_s9 + $0x428] ss:$44 sps:$4 sm:$0xff]  }
  0x54   : > { %3955 = vmatpush3.bf16.msra.mxu1 %v4369_v22  ;;  %v4420_v22 = vld [vmem:[%s4654_s9 + $0x1cc] ss:$44 sps:$4 sm:$0xff]  }
  0x55   : > { %3956 = vmatprep.subr.bf16.mxu1 %v4384_v30  ;;  %v4436_v30 = vld [vmem:[%s4654_s9 + $0x27c] ss:$44 sps:$4 sm:$0xff]  }
  0x56   : > { %2035 = vmatmul.mubr.bf16.gmra.mrb[24].mxu0 %v4330_v12  ;;  %2164 = vmatmul.mubr.bf16.gmra.mrb[24].mxu1 %v4331_v13  ;;  %v4406_v12 = vld [vmem:[%s4654_s9 + $0x3d0] ss:$44 sps:$4 sm:$0xff]   ;;  %v4407_v13 = vld [vmem:[%s4654_s9 + $0x118] ss:$44 sps:$4 sm:$0xff]  }
  0x57   : > { %2042 = vmatprep.mubr.bf16.mxu0 %v4336_v14  ;;  %2171 = vmatprep.mubr.bf16.mxu1 %v4338_v17  ;;  %v4408_v14 = vld [vmem:[%s4654_s9 + $0x42c] ss:$44 sps:$4 sm:$0xff]  }
  0x58   : > { %3957 = vmatpush3.bf16.msra.mxu1 %v4385_v31  ;;  %v4489_v17 = vld [vmem:[%s5575_s1 + $0x278] sm:$0xff]  }
  0x59   : > { %3958 = vmatprep.subr.bf16.mxu1 %v4400_v37  ;;  %v4438_v31 = vld [vmem:[%s4654_s9 + $0x530] ss:$44 sps:$4 sm:$0xff]   ;;  %v4449_v37 = vld [vmem:[%s4654_s9 + $0x32c] ss:$44 sps:$4 sm:$0xff]  }
  0x5c   : > { %3959 = vmatpush3.bf16.msra.mxu1 %v4401_v38  ;;  %v4451_v38 = vld [vmem:[%s4654_s9 + $0x74] ss:$44 sps:$4 sm:$0xff]  }
  0x5d   : > { %3960 = vmatprep.subr.bf16.mxu1 %v4416_v43  ;;  %v4459_v43 = vld [vmem:[%s4654_s9 + $0x380] ss:$44 sps:$4 sm:$0xff]  }
  0x5e   : > { %2043 = vmatmul.mubr.bf16.gmra.mrb[28].mxu0 %v4340_v20  ;;  %2172 = vmatmul.mubr.bf16.gmra.mrb[28].mxu1 %v4341_v23  ;;  %v4413_v20 = vld [vmem:[%s4654_s9 + $0x170] ss:$44 sps:$4 sm:$0xff]   ;;  %v4422_v23 = vld [vmem:[%s4654_s9 + $0x480] ss:$44 sps:$4 sm:$0xff]  }
  0x5f   : > { %2050 = vmatprep.mubr.bf16.mxu0 %v4344_v24  ;;  %2179 = vmatprep.mubr.bf16.mxu1 %v4346_v25  ;;  %v4423_v24 = vld [vmem:[%s4654_s9 + $0x1c8] ss:$44 sps:$4 sm:$0xff]  }
  0x60   : > { %3961 = vmatpush3.bf16.msra.mxu1 %v4417_v44  ;;  %v4424_v25 = vld [vmem:[%s4654_s9 + $0x4dc] ss:$44 sps:$4 sm:$0xff]  }
  0x61   : > { %3962 = vmatprep.subr.bf16.mxu1 %v4432_v49  ;;  %v4460_v44 = vld [vmem:[%s4654_s9 + $0xc8] ss:$44 sps:$4 sm:$0xff]  }
  0x62   : > { %v4469_v49 = vld [vmem:[%s4654_s9 + $0x434] ss:$44 sps:$4 sm:$0xff]  }
  0x64   : > { %3963 = vmatpush3.bf16.msra.mxu1 %v4433_v50  ;;  %v4471_v50 = vld [vmem:[%s4654_s9 + $0x17c] ss:$44 sps:$4 sm:$0xff]  }
  0x65   : > { %4189 = vmatprep.subr.bf16.mxu1 %v4887_v57 }
  0x66   : > { %2051 = vmatmul.mubr.bf16.gmra.mrb[32].mxu0 %v4348_v27  ;;  %2180 = vmatmul.mubr.bf16.gmra.mrb[32].mxu1 %v4349_v28  ;;  %v4428_v27 = vld [vmem:[%s4654_s9 + $0x4d8] ss:$44 sps:$4 sm:$0xff]   ;;  %v4429_v28 = vld [vmem:[%s4654_s9 + $0x220] ss:$44 sps:$4 sm:$0xff]  }
  0x67   : > { %2058 = vmatprep.mubr.bf16.mxu0 %v4352_v29  ;;  %2187 = vmatprep.mubr.bf16.mxu1 %v4354_v32  ;;  %v4434_v29 = vld [vmem:[%s4654_s9 + $0x534] ss:$44 sps:$4 sm:$0xff]   ;;  %v4439_v32 = vld [vmem:[%s4654_s9 + $0x278] ss:$44 sps:$4 sm:$0xff]  }
  0x6e   : > { %2059 = vmatmul.mubr.bf16.gmra.mrb[36].mxu0 %v4356_v33  ;;  %2188 = vmatmul.mubr.bf16.gmra.mrb[36].mxu1 %v4357_v34  ;;  %v4440_v33 = vld [vmem:[%s4654_s9 + $0x2d4] ss:$44 sps:$4 sm:$0xff]   ;;  %v4444_v34 = vld [vmem:[%s4654_s9 + $0x1c] ss:$44 sps:$4 sm:$0xff]  }
  0x6f   : > { %2066 = vmatprep.mubr.bf16.mxu0 %v4360_v35  ;;  %2195 = vmatprep.mubr.bf16.mxu1 %v4362_v36  ;;  %v4442_v35 = vld [vmem:[%s4654_s9 + $0x18] ss:$44 sps:$4 sm:$0xff]   ;;  %v4445_v36 = vld [vmem:[%s4654_s9 + $0x2d0] ss:$44 sps:$4 sm:$0xff]  }
  0x76   : > { %2067 = vmatmul.mubr.bf16.gmra.mrb[40].mxu0 %v4364_v39  ;;  %2196 = vmatmul.mubr.bf16.gmra.mrb[40].mxu1 %v4365_v40  ;;  %v4453_v39 = vld [vmem:[%s4654_s9 + $0x328] ss:$44 sps:$4 sm:$0xff]   ;;  %v4454_v40 = vld [vmem:[%s4654_s9 + $0x70] ss:$44 sps:$4 sm:$0xff]  }
  0x77   : > { %2074 = vmatprep.mubr.bf16.mxu0 %v4370_v41  ;;  %2203 = vmatprep.mubr.bf16.mxu1 %v4372_v42  ;;  %v4455_v41 = vld [vmem:[%s4654_s9 + $0x384] ss:$44 sps:$4 sm:$0xff]   ;;  %v4457_v42 = vld [vmem:[%s4654_s9 + $0xcc] ss:$44 sps:$4 sm:$0xff]  }
  0x7e   : > { %2075 = vmatmul.mubr.bf16.gmra.mrb[44].mxu0 %v4374_v45  ;;  %2204 = vmatmul.mubr.bf16.gmra.mrb[44].mxu1 %v4375_v46  ;;  %v4463_v45 = vld [vmem:[%s4654_s9 + $0x3dc] ss:$44 sps:$4 sm:$0xff]   ;;  %v4465_v46 = vld [vmem:[%s4654_s9 + $0x124] ss:$44 sps:$4 sm:$0xff]  }
  0x7f   : > { %2211 = vmatprep.mubr.bf16.mxu1 %v4376_v47  ;;  %2308 = vmatprep.mubr.bf16.mxu0 %v4380_v48  ;;  %v4467_v47 = vld [vmem:[%s4654_s9 + $0x3d8] ss:$44 sps:$4 sm:$0xff]   ;;  %v4468_v48 = vld [vmem:[%s4654_s9 + $0x120] ss:$44 sps:$4 sm:$0xff]  }
  0x86   : > { %2212 = vmatmul.mubr.bf16.gmra.mrb[48].mxu1 %v4381_v52  ;;  %2309 = vmatmul.mubr.bf16.vlgmr.msra.gmra.mrb[48].mxu0 %v4378_v51  ;;  %v4473_v51 = vld [vmem:[%s4654_s9 + $0x430] ss:$44 sps:$4 sm:$0xff]   ;;  %v4474_v52 = vld [vmem:[%s4654_s9 + $0x178] ss:$44 sps:$4 sm:$0xff]  }
  0x87   : > { %4061 = vmatpush3.bf16.msra.mxu0 %v4383_v53  ;;  %2219 = vmatprep.mubr.bf16.mxu1 %v4386_v54  ;;  %v4477_v53 = vld [vmem:[%s4654_s9 + $0x48c] ss:$44 sps:$4 sm:$0xff]   ;;  %v4479_v54 = vld [vmem:[%s4654_s9 + $0x1d4] ss:$44 sps:$4 sm:$0xff]  }
  0x88   : > { %2316 = vmatprep.mubr.bf16.mxu0 %v4388_v55  ;;  %4062 = vmatprep.subr.bf16.mxu0 %v4398_v56  ;;  %v4481_v55 = vld [vmem:[%s4654_s9 + $0x488] ss:$44 sps:$4 sm:$0xff]   ;;  %v4482_v56 = vld [vmem:[%s4654_s9 + $0x1d0] ss:$44 sps:$4 sm:$0xff]  }
  0x8b   : > { %4063 = vmatpush3.bf16.msra.mxu0 %v4399_v58  ;;  %v4485_v58 = vld [vmem:[%s4654_s9 + $0x22c] ss:$44 sps:$4 sm:$0xff]  }
  0x8c   : > { %4064 = vmatprep.subr.bf16.mxu0 %v4414_v59  ;;  %v4487_v59 = vld [vmem:[%s4654_s9 + $0x4e0] ss:$44 sps:$4 sm:$0xff]  }
  0x8e   : > { %2220 = vmatmul.mubr.bf16.gmra.mrb[52].mxu1 %v4390_v60  ;;  %2317 = vmatmul.mubr.bf16.gmra.mrb[52].mxu0 %v4391_v61  ;;  %v4488_v60 = vld [vmem:[%s4654_s9 + $0x228] ss:$44 sps:$4 sm:$0xff]  }
  0x8f   : > { %2227 = vmatprep.mubr.bf16.mxu1 %v4392_v62  ;;  %2324 = vmatprep.mubr.bf16.mxu0 %v4394_v63  ;;  %v4491_v61 = vld [vmem:[%s4654_s9 + $0x53c] ss:$44 sps:$4 sm:$0xff]   ;;  %v4493_v62 = vld [vmem:[%s4654_s9 + $0x284] ss:$44 sps:$4 sm:$0xff]  }
  0x90   : > { %4065 = vmatpush3.bf16.msra.mxu0 %v4415_v0 }
  0x91   : > { %4066 = vmatprep.subr.bf16.mxu0 %v4430_v1 }
  0x94   : > { %4067 = vmatpush3.bf16.msra.mxu0 %v4431_v3  ;;  %v4495_v3 = vld [vmem:[%s4654_s9 + $0x538] ss:$44 sps:$4 sm:$0xff]  }
  0x95   : > { %4068 = vmatprep.subr.bf16.mxu0 %v4446_v4  ;;  %v4496_v4 = vld [vmem:[%s4654_s9 + $0x280] ss:$44 sps:$4 sm:$0xff]  }
  0x96   : > { %2228 = vmatmul.mubr.bf16.gmra.mrb[56].mxu1 %v4396_v2  ;;  %2325 = vmatmul.mubr.bf16.gmra.mrb[56].mxu0 %v4397_v5 }
  0x97   : > { %2235 = vmatprep.mubr.bf16.mxu1 %v4402_v6  ;;  %2332 = vmatprep.mubr.bf16.mxu0 %v4404_v7 }
  0x98   : > { %4069 = vmatpush3.bf16.msra.mxu0 %v4447_v8 }
  0x99   : > { %4070 = vmatprep.subr.bf16.mxu0 %v4461_v9  ;;  %v4497_v9 = vld [vmem:[%s4654_s9 + $0x2dc] ss:$44 sps:$4 sm:$0xff]  }
  0x9c   : > { %4071 = vmatpush3.bf16.msra.mxu0 %v4462_v10  ;;  %v4501_v10 = vld [vmem:[%s4654_s9 + $0x24] ss:$44 sps:$4 sm:$0xff]  }
  0x9d   : > { %4072 = vmatprep.subr.bf16.mxu0 %v4475_v11 }
  0x9e   : > { %2236 = vmatmul.mubr.bf16.gmra.mrb[60].mxu1 %v4406_v12  ;;  %2333 = vmatmul.mubr.bf16.gmra.mrb[60].mxu0 %v4407_v13 }
  0x9f   : > { %2243 = vmatprep.mubr.bf16.mxu1 %v4408_v14  ;;  %2340 = vmatprep.mubr.bf16.mxu0 %v4410_v15 }
  0xa0   : > { %4073 = vmatpush3.bf16.msra.mxu0 %v4476_v16 }
  0xa1   : > { %4074 = vmatprep.subr.bf16.mxu0 %v4489_v17 }
  0xa4   : > { %4075 = vmatpush3.bf16.msra.mxu0 %v4490_v18 }
  0xa6   : > { %2244 = vmatmul.mubr.bf16.gmra.mrb[64].mxu1 %v4412_v19  ;;  %2341 = vmatmul.mubr.bf16.gmra.mrb[64].mxu0 %v4413_v20  ;;  %v4499_v19 = vld [vmem:[%s4654_s9 + $0x20] ss:$44 sps:$4 sm:$0xff]   ;;  %v4502_v20 = vld [vmem:[%s4654_s9 + $0x2d8] ss:$44 sps:$4 sm:$0xff]  }
  0xa7   : > { %2251 = vmatprep.mubr.bf16.mxu1 %v4418_v21  ;;  %2348 = vmatprep.mubr.bf16.mxu0 %v4420_v22 }
  0xae   : > { %2252 = vmatmul.mubr.bf16.gmra.mrb[68].mxu1 %v4422_v23  ;;  %2349 = vmatmul.mubr.bf16.gmra.mrb[68].mxu0 %v4423_v24 }
  0xaf   : > { %2259 = vmatprep.mubr.bf16.mxu1 %v4424_v25  ;;  %2356 = vmatprep.mubr.bf16.mxu0 %v4426_v26  ;;  %v4503_v25 = vld [vmem:[%s4654_s9 + $0x334] ss:$44 sps:$4 sm:$0xff]   ;;  %v4505_v26 = vld [vmem:[%s4654_s9 + $0x7c] ss:$44 sps:$4 sm:$0xff]  }
  0xb6   : > { %2260 = vmatmul.mubr.bf16.gmra.mrb[72].mxu1 %v4428_v27  ;;  %2357 = vmatmul.mubr.bf16.gmra.mrb[72].mxu0 %v4429_v28 }
  0xb7   : > { %2267 = vmatprep.mubr.bf16.mxu1 %v4434_v29  ;;  %2364 = vmatprep.mubr.bf16.mxu0 %v4436_v30 }
  0xbe   : > { %2268 = vmatmul.mubr.bf16.gmra.mrb[76].mxu1 %v4438_v31  ;;  %2365 = vmatmul.mubr.bf16.gmra.mrb[76].mxu0 %v4439_v32 }
  0xbf   : > { %2372 = vmatprep.mubr.bf16.mxu0 %v4440_v33  ;;  %2469 = vmatprep.mubr.bf16.mxu1 %v4444_v34 }
  0xc6   : > { %2373 = vmatmul.mubr.bf16.gmra.mrb[80].mxu0 %v4445_v36  ;;  %2470 = vmatmul.mubr.bf16.vlgmr.msra.gmra.mrb[80].mxu1 %v4442_v35  ;;  %v4507_v35 = vld [vmem:[%s4654_s9 + $0x330] ss:$44 sps:$4 sm:$0xff]   ;;  %v4508_v36 = vld [vmem:[%s4654_s9 + $0x78] ss:$44 sps:$4 sm:$0xff]  }
  0xc7   : > { %4190 = vmatpush3.bf16.msra.mxu1 %v4887_v57  ;;  %2380 = vmatprep.mubr.bf16.mxu0 %v4449_v37  ;;  %v4483_v57 = vld [vmem:[%s4654_s9 + $0x4e4] ss:$44 sps:$4 sm:$0xff]  }
  0xc8   : > { %2477 = vmatprep.mubr.bf16.mxu1 %v4451_v38 }
  0xce   : > { %2381 = vmatmul.mubr.bf16.gmra.mrb[84].mxu0 %v4453_v39  ;;  %2478 = vmatmul.mubr.bf16.gmra.mrb[84].mxu1 %v4454_v40 }
  0xcf   : > { %2388 = vmatprep.mubr.bf16.mxu0 %v4455_v41  ;;  %2485 = vmatprep.mubr.bf16.mxu1 %v4457_v42  ;;  %v4509_v41 = vld [vmem:[%s4654_s9 + $0x38c] ss:$44 sps:$4 sm:$0xff]   ;;  %v4511_v42 = vld [vmem:[%s4654_s9 + $0xd4] ss:$44 sps:$4 sm:$0xff]  }
  0xd6   : > { %2389 = vmatmul.mubr.bf16.gmra.mrb[88].mxu0 %v4459_v43  ;;  %2486 = vmatmul.mubr.bf16.gmra.mrb[88].mxu1 %v4460_v44 }
  0xd7   : > { %2396 = vmatprep.mubr.bf16.mxu0 %v4463_v45  ;;  %2493 = vmatprep.mubr.bf16.mxu1 %v4465_v46 }
  0xde   : > { %2397 = vmatmul.mubr.bf16.gmra.mrb[92].mxu0 %v4467_v47  ;;  %2494 = vmatmul.mubr.bf16.gmra.mrb[92].mxu1 %v4468_v48 }
  0xdf   : > { %2404 = vmatprep.mubr.bf16.mxu0 %v4469_v49  ;;  %2501 = vmatprep.mubr.bf16.mxu1 %v4471_v50 }
  0xe6   : > { %2405 = vmatmul.mubr.bf16.gmra.mrb[96].mxu0 %v4473_v51  ;;  %2502 = vmatmul.mubr.bf16.gmra.mrb[96].mxu1 %v4474_v52  ;;  %v4513_v51 = vld [vmem:[%s4654_s9 + $0x388] ss:$44 sps:$4 sm:$0xff]   ;;  %v4514_v52 = vld [vmem:[%s4654_s9 + $0xd0] ss:$44 sps:$4 sm:$0xff]  }
  0xe7   : > { %2412 = vmatprep.mubr.bf16.mxu0 %v4477_v53  ;;  %2509 = vmatprep.mubr.bf16.mxu1 %v4479_v54 }
  0xee   : > { %2413 = vmatmul.mubr.bf16.gmra.mrb[100].mxu0 %v4481_v55  ;;  %2510 = vmatmul.mubr.bf16.gmra.mrb[100].mxu1 %v4482_v56 }
  0xef   : > { %2420 = vmatprep.mubr.bf16.mxu0 %v4483_v57  ;;  %2517 = vmatprep.mubr.bf16.mxu1 %v4485_v58  ;;  %v4515_v57 = vld [vmem:[%s4654_s9 + $0x3e4] ss:$44 sps:$4 sm:$0xff]   ;;  %v4517_v58 = vld [vmem:[%s4654_s9 + $0x12c] ss:$44 sps:$4 sm:$0xff]  }
  0xf6   : > { %2421 = vmatmul.mubr.bf16.gmra.mrb[104].mxu0 %v4487_v59  ;;  %2518 = vmatmul.mubr.bf16.gmra.mrb[104].mxu1 %v4488_v60 }
  0xf7   : > { %2428 = vmatprep.mubr.bf16.mxu0 %v4491_v61  ;;  %2525 = vmatprep.mubr.bf16.mxu1 %v4493_v62 }
  0xf9   : > { %v3628_v63 = vpop.f32.mrb[0].mxu0  ;;  %v3700_v0 = vpop.f32.mrb[0].mxu1 }
  0xfa   : > { %v3629_v1 = vpop.f32.mrb[1].mxu0  ;;  %v3701_v2 = vpop.f32.mrb[1].mxu1 }
  0xfb   : > { %v4988_v5 = vadd.f32 %v3629_v1, %v3628_v63  ;;  %v3631_v6 = vpop.f32.mrb[2].mxu0  ;;  %v4990_v7 = vadd.f32 %v3701_v2, %v3700_v0  ;;  %v3703_v8 = vpop.f32.mrb[2].mxu1  ;;  %v5037_v63 = vld [vmem:[%s5576_s2] ss:$0 sm:$0xff] }
  0xfc   : > { %v3632_v11 = vpop.f32.mrb[3].mxu0  ;;  %v3704_v12 = vpop.f32.mrb[3].mxu1 }
  0xfd   : > { %v4994_v13 = vadd.f32 %v3632_v11, %v3631_v6  ;;  %v4996_v14 = vadd.f32 %v3704_v12, %v3703_v8  ;;  %v4520_v6 = vld [vmem:[%s4654_s9 + $0x128] ss:$44 sps:$4 sm:$0xff]   ;;  %v1989_v8 = vadd.f32 %v4988_v5, %v5037_v63 }
  0xfe   : > { %2429 = vmatmul.mubr.bf16.gmra.mrb[108].mxu0 %v4495_v3  ;;  %2526 = vmatmul.mubr.bf16.gmra.mrb[108].mxu1 %v4496_v4  ;;  %v4519_v4 = vld [vmem:[%s4654_s9 + $0x3e0] ss:$44 sps:$4 sm:$0xff]  }
  0xff   : > { %2533 = vmatprep.mubr.bf16.mxu1 %v4497_v9  ;;  %2630 = vmatprep.mubr.bf16.mxu0 %v4501_v10 }
 0x101   : > { %v3634_v15 = vpop.f32.mrb[4].mxu0  ;;  %v3706_v16 = vpop.f32.mrb[4].mxu1 }
 0x102   : > { %v3635_v17 = vpop.f32.mrb[5].mxu0  ;;  %v3707_v18 = vpop.f32.mrb[5].mxu1 }
 0x103   : > { %v5000_v21 = vadd.f32 %v3635_v17, %v3634_v15  ;;  %v3637_v22 = vpop.f32.mrb[6].mxu0  ;;  %v5002_v23 = vadd.f32 %v3707_v18, %v3706_v16  ;;  %v3709_v24 = vpop.f32.mrb[6].mxu1  ;;  %v4521_v15 = vld [vmem:[%s4654_s9 + $0x43c] ss:$44 sps:$4 sm:$0xff]   ;;  %v4523_v16 = vld [vmem:[%s4654_s9 + $0x184] ss:$44 sps:$4 sm:$0xff]  }
 0x104   : > { %v3638_v27 = vpop.f32.mrb[7].mxu0  ;;  %v3710_v28 = vpop.f32.mrb[7].mxu1 }
 0x105   : > { %v5006_v29 = vadd.f32 %v3638_v27, %v3637_v22  ;;  %v5008_v30 = vadd.f32 %v3710_v28, %v3709_v24 }
 0x106   : > { %2534 = vmatmul.mubr.bf16.gmra.mrb[112].mxu1 %v4502_v20  ;;  %2631 = vmatmul.mubr.bf16.vlgmr.msra.gmra.mrb[112].mxu0 %v4499_v19  ;;  %v1992_v19 = vadd.f32 %v4994_v13, %v5037_v63  ;;  %v1997_v13 = vadd.f32 %v5000_v21, %v5037_v63 }
 0x107   : > { %2541 = vmatprep.mubr.bf16.mxu1 %v4503_v25  ;;  %2638 = vmatprep.mubr.bf16.mxu0 %v4505_v26 }
 0x109   : > { %v3640_v31 = vpop.f32.mrb[8].mxu0  ;;  %v3712_v32 = vpop.f32.mrb[8].mxu1 }
 0x10a   : > { %v3641_v33 = vpop.f32.mrb[9].mxu0  ;;  %v3713_v34 = vpop.f32.mrb[9].mxu1 }
 0x10b   : > { %v5012_v37 = vadd.f32 %v3641_v33, %v3640_v31  ;;  %v3643_v38 = vpop.f32.mrb[10].mxu0  ;;  %v5014_v39 = vadd.f32 %v3713_v34, %v3712_v32  ;;  %v3715_v40 = vpop.f32.mrb[10].mxu1  ;;  %v4525_v31 = vld [vmem:[%s4654_s9 + $0x438] ss:$44 sps:$4 sm:$0xff]   ;;  %v4526_v32 = vld [vmem:[%s4654_s9 + $0x180] ss:$44 sps:$4 sm:$0xff]  }
 0x10c   : > { %v3644_v43 = vpop.f32.mrb[11].mxu0  ;;  %v3716_v44 = vpop.f32.mrb[11].mxu1 }
 0x10d   : > { %v5018_v45 = vadd.f32 %v3644_v43, %v3643_v38  ;;  %v5020_v46 = vadd.f32 %v3716_v44, %v3715_v40  ;;  %v4527_v38 = vld [vmem:[%s4654_s9 + $0x494] ss:$44 sps:$4 sm:$0xff]   ;;  %v4529_v40 = vld [vmem:[%s4654_s9 + $0x1dc] ss:$44 sps:$4 sm:$0xff]   ;;  %v2000_v43 = vadd.f32 %v5006_v29, %v5037_v63  ;;  %v2005_v29 = vadd.f32 %v5012_v37, %v5037_v63 }
 0x10e   : > { %2542 = vmatmul.mubr.bf16.gmra.mrb[116].mxu1 %v4507_v35  ;;  %2639 = vmatmul.mubr.bf16.gmra.mrb[116].mxu0 %v4508_v36 }
 0x10f   : > { %2549 = vmatprep.mubr.bf16.mxu1 %v4509_v41  ;;  %2646 = vmatprep.mubr.bf16.mxu0 %v4511_v42 }
 0x111   : > { %v3646_v47 = vpop.f32.mrb[12].mxu0  ;;  %v3718_v48 = vpop.f32.mrb[12].mxu1 }
 0x112   : > { %v3647_v49 = vpop.f32.mrb[13].mxu0  ;;  %v3719_v50 = vpop.f32.mrb[13].mxu1 }
 0x113   : > { %v5024_v53 = vadd.f32 %v3647_v49, %v3646_v47  ;;  %v3649_v54 = vpop.f32.mrb[14].mxu0  ;;  %v5026_v55 = vadd.f32 %v3719_v50, %v3718_v48  ;;  %v3721_v56 = vpop.f32.mrb[14].mxu1 }
 0x114   : > { %v3650_v59 = vpop.f32.mrb[15].mxu0  ;;  %v3722_v60 = vpop.f32.mrb[15].mxu1 }
 0x115   : > { %v5030_v61 = vadd.f32 %v3650_v59, %v3649_v54  ;;  %v5032_v62 = vadd.f32 %v3722_v60, %v3721_v56  ;;  %v4531_v54 = vld [vmem:[%s4654_s9 + $0x490] ss:$44 sps:$4 sm:$0xff]   ;;  %v4532_v56 = vld [vmem:[%s4654_s9 + $0x1d8] ss:$44 sps:$4 sm:$0xff]  }
 0x116   : > { %2550 = vmatmul.mubr.bf16.gmra.mrb[120].mxu1 %v4513_v51  ;;  %2647 = vmatmul.mubr.bf16.gmra.mrb[120].mxu0 %v4514_v52 }
 0x117   : > { %2557 = vmatprep.mubr.bf16.mxu1 %v4515_v57  ;;  %2654 = vmatprep.mubr.bf16.mxu0 %v4517_v58 }
 0x119   : > { %v3652_v0 = vpop.f32.mrb[16].mxu0  ;;  %v3740_v1 = vpop.f32.mrb[16].mxu1 }
 0x11a   : > { %v3653_v2 = vpop.f32.mrb[17].mxu0  ;;  %v3741_v3 = vpop.f32.mrb[17].mxu1 }
 0x11b   : > { %v5043_v9 = vadd.f32 %v3653_v2, %v3652_v0  ;;  %v3742_v10 = vadd.f32 %v3741_v3, %v3740_v1  ;;  %v3655_v11 = vpop.f32.mrb[18].mxu0  ;;  %v3743_v12 = vpop.f32.mrb[18].mxu1  ;;  %v4533_v0 = vld [vmem:[%s4654_s9 + $0x4ec] ss:$44 sps:$4 sm:$0xff]   ;;  %v4535_v1 = vld [vmem:[%s4654_s9 + $0x234] ss:$44 sps:$4 sm:$0xff]  }
 0x11c   : > { %v3656_v17 = vpop.f32.mrb[19].mxu0  ;;  %v3744_v18 = vpop.f32.mrb[19].mxu1 }
 0x11d   : > { %v5049_v20 = vadd.f32 %v3742_v10, %v1989_v8  ;;  %v5051_v22 = vadd.f32 %v3656_v17, %v3655_v11  ;;  %v3745_v24 = vadd.f32 %v3744_v18, %v3743_v12  ;;  %v4537_v17 = vld [vmem:[%s4654_s9 + $0x4e8] ss:$44 sps:$4 sm:$0xff]   ;;  %v4538_v18 = vld [vmem:[%s4654_s9 + $0x230] ss:$44 sps:$4 sm:$0xff]  }
 0x11e   : > { %2558 = vmatmul.mubr.bf16.gmra.mrb[124].mxu1 %v4519_v4  ;;  %2655 = vmatmul.mubr.bf16.gmra.mrb[124].mxu0 %v4520_v6  ;;  %v2008_v4 = vadd.f32 %v5018_v45, %v5037_v63  ;;  %v2013_v45 = vadd.f32 %v5024_v53, %v5037_v63 }
 0x11f   : > { %v5053_v5 = vadd.f32 %v3745_v24, %v1992_v19  ;;  %2565 = vmatprep.mubr.bf16.mxu1 %v4521_v15  ;;  %2662 = vmatprep.mubr.bf16.mxu0 %v4523_v16 }
 0x121   : > { %v3658_v25 = vpop.f32.mrb[20].mxu0  ;;  %v3746_v26 = vpop.f32.mrb[20].mxu1 }
 0x122   : > { %v3659_v27 = vpop.f32.mrb[21].mxu0  ;;  %v3747_v28 = vpop.f32.mrb[21].mxu1 }
 0x123   : > { %v5059_v33 = vadd.f32 %v3659_v27, %v3658_v25  ;;  %v3748_v34 = vadd.f32 %v3747_v28, %v3746_v26  ;;  %v3661_v35 = vpop.f32.mrb[22].mxu0  ;;  %v3749_v36 = vpop.f32.mrb[22].mxu1  ;;  %v4539_v27 = vld [vmem:[%s4654_s9 + $0x544] ss:$44 sps:$4 sm:$0xff]   ;;  %v4541_v28 = vld [vmem:[%s4654_s9 + $0x28c] ss:$44 sps:$4 sm:$0xff]  }
 0x124   : > { %v3662_v41 = vpop.f32.mrb[23].mxu0  ;;  %v3750_v42 = vpop.f32.mrb[23].mxu1 }
 0x125   : > { %v5065_v44 = vadd.f32 %v3748_v34, %v1997_v13  ;;  %v5067_v47 = vadd.f32 %v3662_v41, %v3661_v35  ;;  %v3751_v48 = vadd.f32 %v3750_v42, %v3749_v36  ;;  %v2016_v13 = vadd.f32 %v5030_v61, %v5037_v63 }
 0x126   : > { %2566 = vmatmul.mubr.bf16.gmra.mrb[128].mxu1 %v4525_v31  ;;  %2663 = vmatmul.mubr.bf16.gmra.mrb[128].mxu0 %v4526_v32  ;;  %v2021_v61 = vadd.f32 %v5043_v9, %v5037_v63 }
 0x127   : > { %v5069_v21 = vadd.f32 %v3751_v48, %v2000_v43  ;;  %2573 = vmatprep.mubr.bf16.mxu1 %v4527_v38  ;;  %2670 = vmatprep.mubr.bf16.mxu0 %v4529_v40  ;;  %v4543_v43 = vld [vmem:[%s4654_s9 + $0x540] ss:$44 sps:$4 sm:$0xff]   ;;  %v4544_v48 = vld [vmem:[%s4654_s9 + $0x288] ss:$44 sps:$4 sm:$0xff]  }
 0x129   : > { %v3664_v49 = vpop.f32.mrb[24].mxu0  ;;  %v3752_v50 = vpop.f32.mrb[24].mxu1 }
 0x12a   : > { %v3665_v51 = vpop.f32.mrb[25].mxu0  ;;  %v3753_v52 = vpop.f32.mrb[25].mxu1 }
 0x12b   : > { %v5075_v57 = vadd.f32 %v3665_v51, %v3664_v49  ;;  %v3754_v58 = vadd.f32 %v3753_v52, %v3752_v50  ;;  %v3667_v59 = vpop.f32.mrb[26].mxu0  ;;  %v3755_v60 = vpop.f32.mrb[26].mxu1 }
 0x12c   : > { %v3668_v2 = vpop.f32.mrb[27].mxu0  ;;  %v3756_v3 = vpop.f32.mrb[27].mxu1 }
 0x12d   : > { %v5081_v6 = vadd.f32 %v3754_v58, %v2005_v29  ;;  %v5083_v8 = vadd.f32 %v3668_v2, %v3667_v59  ;;  %v3757_v10 = vadd.f32 %v3756_v3, %v3755_v60  ;;  %v2024_v59 = vadd.f32 %v5051_v22, %v5037_v63  ;;  %v4549_v22 = vld [vmem:[%s4654_s9 + $0x80] ss:$44 sps:$4 sm:$0xff]  }
 0x12e   : > { %2574 = vmatmul.mubr.bf16.gmra.mrb[132].mxu1 %v4531_v54  ;;  %2671 = vmatmul.mubr.bf16.gmra.mrb[132].mxu0 %v4532_v56  ;;  %v4545_v54 = vld [vmem:[%s4654_s9 + $0x2e4] ss:$44 sps:$4 sm:$0xff]   ;;  %v4547_v56 = vld [vmem:[%s4654_s9 + $0x28] ss:$44 sps:$4 sm:$0xff]  }
 0x12f   : > { %v5085_v37 = vadd.f32 %v3757_v10, %v2008_v4  ;;  %2581 = vmatprep.mubr.bf16.mxu1 %v4533_v0  ;;  %2678 = vmatprep.mubr.bf16.mxu0 %v4535_v1 }
 0x131   : > { %v3670_v11 = vpop.f32.mrb[28].mxu0  ;;  %v3758_v12 = vpop.f32.mrb[28].mxu1 }
 0x132   : > { %v3671_v15 = vpop.f32.mrb[29].mxu0  ;;  %v3759_v16 = vpop.f32.mrb[29].mxu1 }
 0x133   : > { %v5091_v19 = vadd.f32 %v3671_v15, %v3670_v11  ;;  %v3760_v24 = vadd.f32 %v3759_v16, %v3758_v12  ;;  %v3673_v25 = vpop.f32.mrb[30].mxu0  ;;  %v3761_v26 = vpop.f32.mrb[30].mxu1  ;;  %v4548_v11 = vld [vmem:[%s4654_s9 + $0x2e0] ss:$44 sps:$4 sm:$0xff]   ;;  %v2029_v12 = vadd.f32 %v5059_v33, %v5037_v63 }
 0x134   : > { %v3674_v31 = vpop.f32.mrb[31].mxu0  ;;  %v3762_v32 = vpop.f32.mrb[31].mxu1 }
 0x135   : > { %v5097_v34 = vadd.f32 %v3760_v24, %v2013_v45  ;;  %v5099_v35 = vadd.f32 %v3674_v31, %v3673_v25  ;;  %v3763_v36 = vadd.f32 %v3762_v32, %v3761_v26  ;;  %v4550_v45 = vld [vmem:[%s4654_s9 + $0x33c] ss:$44 sps:$4 sm:$0xff]   ;;  %v4552_v24 = vld [vmem:[%s4654_s9 + $0xd8] ss:$44 sps:$4 sm:$0xff]  }
 0x136   : > { %2582 = vmatmul.mubr.bf16.gmra.mrb[136].mxu1 %v4537_v17  ;;  %2679 = vmatmul.mubr.bf16.gmra.mrb[136].mxu0 %v4538_v18 }
 0x137   : > { %v5101_v53 = vadd.f32 %v3763_v36, %v2016_v13  ;;  %2589 = vmatprep.mubr.bf16.mxu1 %v4539_v27  ;;  %2686 = vmatprep.mubr.bf16.mxu0 %v4541_v28  ;;  %v2032_v27 = vadd.f32 %v5067_v47, %v5037_v63  ;;  %v4553_v47 = vld [vmem:[%s4654_s9 + $0x338] ss:$44 sps:$4 sm:$0xff]  }
 0x139   : > { %v3676_v38 = vpop.f32.mrb[32].mxu0  ;;  %v3764_v40 = vpop.f32.mrb[32].mxu1 }
 0x13a   : > { %v3677_v41 = vpop.f32.mrb[33].mxu0  ;;  %v3765_v42 = vpop.f32.mrb[33].mxu1 }
 0x13b   : > { %v5107_v49 = vadd.f32 %v3677_v41, %v3676_v38  ;;  %v3766_v50 = vadd.f32 %v3765_v42, %v3764_v40  ;;  %v3679_v51 = vpop.f32.mrb[34].mxu0  ;;  %v3767_v52 = vpop.f32.mrb[34].mxu1  ;;  %v4554_v41 = vld [vmem:[%s4654_s9 + $0x130] ss:$44 sps:$4 sm:$0xff]   ;;  %v2037_v42 = vadd.f32 %v5075_v57, %v5037_v63 }
 0x13c   : > { %v3680_v29 = vpop.f32.mrb[35].mxu0  ;;  %v3768_v58 = vpop.f32.mrb[35].mxu1 }
 0x13d   : > { %v5113_v60 = vadd.f32 %v3766_v50, %v2021_v61  ;;  %v5115_v0 = vadd.f32 %v3680_v29, %v3679_v51  ;;  %v3769_v9 = vadd.f32 %v3768_v58, %v3767_v52  ;;  %v4555_v51 = vld [vmem:[%s4654_s9 + $0x394] ss:$44 sps:$4 sm:$0xff]   ;;  %v2040_v29 = vadd.f32 %v5083_v8, %v5037_v63  ;;  %v4558_v8 = vld [vmem:[%s4654_s9 + $0x390] ss:$44 sps:$4 sm:$0xff]  }
 0x13e   : > { %2590 = vmatmul.mubr.bf16.gmra.mrb[140].mxu1 %v4543_v43  ;;  %2687 = vmatmul.mubr.bf16.gmra.mrb[140].mxu0 %v4544_v48  ;;  %v4557_v52 = vld [vmem:[%s4654_s9 + $0x188] ss:$44 sps:$4 sm:$0xff]  }
 0x13f   : > { %v5117_v1 = vadd.f32 %v3769_v9, %v2024_v59  ;;  %2694 = vmatprep.mubr.bf16.mxu0 %v4545_v54  ;;  %4191 = vmatprep.mubr.msk.bf16.mxu1 %vm1905_vm0, %v4547_v56 }
 0x141   : > { %v3682_v2 = vpop.f32.mrb[36].mxu0  ;;  %v3770_v3 = vpop.f32.mrb[36].mxu1 }
 0x142   : > { %v3683_v4 = vpop.f32.mrb[37].mxu0  ;;  %v3771_v10 = vpop.f32.mrb[37].mxu1 }
 0x143   : > { %v5124_v15 = vadd.f32 %v3683_v4, %v3682_v2  ;;  %v3772_v16 = vadd.f32 %v3771_v10, %v3770_v3  ;;  %v3685_v17 = vpop.f32.mrb[38].mxu0  ;;  %v3773_v18 = vpop.f32.mrb[38].mxu1 }
 0x144   : > { %v3686_v25 = vpop.f32.mrb[39].mxu0  ;;  %v3774_v26 = vpop.f32.mrb[39].mxu1 }
 0x145   : > { %v5130_v28 = vadd.f32 %v3772_v16, %v2029_v12  ;;  %v5132_v31 = vadd.f32 %v3686_v25, %v3685_v17  ;;  %v3775_v32 = vadd.f32 %v3774_v26, %v3773_v18 }
 0x146   : > { %2695 = vmatmul.mubr.bf16.gmra.mrb[144].mxu0 %v4548_v11  ;;  %4192 = vmatmul.mubr.msk.bf16.vlgmr.msra.gmra.mrb[144].mxu1 %vm1905_vm0, %v4549_v22  ;;  %v4559_v11 = vld [vmem:[%s4654_s9 + $0x1e0] ss:$44 sps:$4 sm:$0xff]   ;;  %v2045_v22 = vadd.f32 %v5091_v19, %v5037_v63 }
 0x147   : > { %v5135_v33 = vadd.f32 %v3775_v32, %v2032_v27  ;;  %2702 = vmatprep.mubr.bf16.mxu0 %v4550_v45  ;;  %4195 = vmatprep.mubr.msk.bf16.mxu1 %vm1905_vm0, %v4552_v24  ;;  %v4560_v45 = vld [vmem:[%s4654_s9 + $0x3ec] ss:$44 sps:$4 sm:$0xff]   ;;  %v2048_v27 = vadd.f32 %v5099_v35, %v5037_v63  ;;  %v4563_v35 = vld [vmem:[%s4654_s9 + $0x3e8] ss:$44 sps:$4 sm:$0xff]  }
 0x148   : > { %v4562_v24 = vld [vmem:[%s4654_s9 + $0x238] ss:$44 sps:$4 sm:$0xff]  }
 0x149   : > { %v3688_v13 = vpop.f32.mrb[40].mxu0  ;;  %v3776_v36 = vpop.f32.mrb[40].mxu1 }
 0x14a   : > { %v3689_v38 = vpop.f32.mrb[41].mxu0  ;;  %v3777_v40 = vpop.f32.mrb[41].mxu1 }
 0x14b   : > { %v5142_v43 = vadd.f32 %v3689_v38, %v3688_v13  ;;  %v3778_v48 = vadd.f32 %v3777_v40, %v3776_v36  ;;  %v3691_v61 = vpop.f32.mrb[42].mxu0  ;;  %v3779_v50 = vpop.f32.mrb[42].mxu1 }
 0x14c   : > { %v3692_v54 = vpop.f32.mrb[43].mxu0  ;;  %v3780_v56 = vpop.f32.mrb[43].mxu1 }
 0x14d   : > { %v5148_v58 = vadd.f32 %v3778_v48, %v2037_v42  ;;  %v5150_v59 = vadd.f32 %v3692_v54, %v3691_v61  ;;  %v3781_v9 = vadd.f32 %v3780_v56, %v3779_v50  ;;  %v4564_v42 = vld [vmem:[%s4654_s9 + $0x290] ss:$44 sps:$4 sm:$0xff]   ;;  %v2053_v48 = vadd.f32 %v5107_v49, %v5037_v63  ;;  %v4567_v56 = vld [vmem:[%s4654_s9 + $0x2e8] ss:$44 sps:$4 sm:$0xff]  }
 0x14e   : > { %2703 = vmatmul.mubr.bf16.gmra.mrb[148].mxu0 %v4553_v47  ;;  %4196 = vmatmul.mubr.msk.bf16.gmra.mrb[148].mxu1 %vm1905_vm0, %v4554_v41  ;;  %v4565_v54 = vld [vmem:[%s4654_s9 + $0x444] ss:$44 sps:$4 sm:$0xff]  }
 0x14f   : > { %v5153_v57 = vadd.f32 %v3781_v9, %v2040_v29  ;;  %2710 = vmatprep.mubr.bf16.mxu0 %v4555_v51  ;;  %4199 = vmatprep.mubr.msk.bf16.mxu1 %vm1905_vm0, %v4557_v52  ;;  %v2056_v29 = vadd.f32 %v5115_v0, %v5037_v63 }
 0x151   : > { %v3694_v2 = vpop.f32.mrb[44].mxu0  ;;  %v3782_v3 = vpop.f32.mrb[44].mxu1 }
 0x152   : > { %v3695_v4 = vpop.f32.mrb[45].mxu0  ;;  %v3783_v10 = vpop.f32.mrb[45].mxu1 }
 0x153   : > { %v5160_v12 = vadd.f32 %v3695_v4, %v3694_v2  ;;  %v3784_v16 = vadd.f32 %v3783_v10, %v3782_v3  ;;  %v3697_v17 = vpop.f32.mrb[46].mxu0  ;;  %v3785_v18 = vpop.f32.mrb[46].mxu1 }
 0x154   : > { %v3698_v25 = vpop.f32.mrb[47].mxu0  ;;  %v3786_v26 = vpop.f32.mrb[47].mxu1 }
 0x155   : > { %v5166_v32 = vadd.f32 %v3784_v16, %v2045_v22  ;;  %v5168_v13 = vadd.f32 %v3698_v25, %v3697_v17  ;;  %v3787_v36 = vadd.f32 %v3786_v26, %v3785_v18  ;;  %v4568_v17 = vld [vmem:[%s4654_s9 + $0x440] ss:$44 sps:$4 sm:$0xff]  }
 0x156   : > { %2711 = vmatmul.mubr.bf16.gmra.mrb[152].mxu0 %v4558_v8  ;;  %4200 = vmatmul.mubr.msk.bf16.gmra.mrb[152].mxu1 %vm1905_vm0, %v4559_v11  ;;  %v4569_v18 = vld [vmem:[%s4654_s9 + $0x340] ss:$44 sps:$4 sm:$0xff]  }
 0x157   : > { %v5171_v19 = vadd.f32 %v3787_v36, %v2048_v27  ;;  %2718 = vmatprep.mubr.bf16.mxu0 %v4560_v45  ;;  %4203 = vmatprep.mubr.msk.bf16.mxu1 %vm1905_vm0, %v4562_v24  ;;  %v2061_v45 = vadd.f32 %v5124_v15, %v5037_v63  ;;  %v4570_v36 = vld [vmem:[%s4654_s9 + $0x49c] ss:$44 sps:$4 sm:$0xff]  }
 0x159   : > { %v3788_v38 = vpop.f32.mrb[48].mxu1  ;;  %v3852_v40 = vpop.f32.mrb[48].mxu0 }
 0x15a   : > { %v3789_v47 = vpop.f32.mrb[49].mxu1  ;;  %v3853_v41 = vpop.f32.mrb[49].mxu0 }
 0x15b   : > { %v3790_v61 = vadd.f32 %v3789_v47, %v3788_v38  ;;  %v3854_v50 = vadd.f32 %v3853_v41, %v3852_v40  ;;  %v3791_v51 = vpop.f32.mrb[50].mxu1  ;;  %v3855_v52 = vpop.f32.mrb[50].mxu0  ;;  %v4572_v38 = vld [vmem:[%s4654_s9 + $0x398] ss:$44 sps:$4 sm:$0xff]  }
 0x15c   : > { %v3792_v9 = vpop.f32.mrb[51].mxu1  ;;  %v3856_v2 = vpop.f32.mrb[51].mxu0 }
 0x15d   : > { %v5182_v3 = vadd.f32 %v3790_v61, %v2053_v48  ;;  %v5185_v4 = vadd.f32 %v3854_v50, %v5049_v20  ;;  %v3793_v10 = vadd.f32 %v3792_v9, %v3791_v51  ;;  %v3857_v49 = vadd.f32 %v3856_v2, %v3855_v52  ;;  %v4573_v52 = vld [vmem:[%s4654_s9 + $0x498] ss:$44 sps:$4 sm:$0xff]  }
 0x15e   : > { %2719 = vmatmul.mubr.bf16.gmra.mrb[156].mxu0 %v4563_v35  ;;  %4204 = vmatmul.mubr.msk.bf16.gmra.mrb[156].mxu1 %vm1905_vm0, %v4564_v42 }
 0x15f   : > { %v5188_v8 = vadd.f32 %v3793_v10, %v2056_v29  ;;  %v5191_v0 = vadd.f32 %v3857_v49, %v5053_v5  ;;  %2726 = vmatprep.mubr.bf16.mxu0 %v4565_v54  ;;  %4207 = vmatprep.mubr.msk.bf16.mxu1 %vm1905_vm0, %v4567_v56  ;;  %v2064_v5 = vadd.f32 %v5132_v31, %v5037_v63  ;;  %v4574_v54 = vld [vmem:[%s4654_s9 + $0x3f0] ss:$44 sps:$4 sm:$0xff]   ;;  %v4575_v49 = vld [vmem:[%s4654_s9 + $0x4f4] ss:$44 sps:$4 sm:$0xff]  }
 0x160   : > { %v2069_v56 = vadd.f32 %v5142_v43, %v5037_v63 }
 0x161   : > { %v3794_v11 = vpop.f32.mrb[52].mxu1  ;;  %v3858_v22 = vpop.f32.mrb[52].mxu0 }
 0x162   : > { %v3795_v16 = vpop.f32.mrb[53].mxu1  ;;  %v3859_v20 = vpop.f32.mrb[53].mxu0 }
 0x163   : > { %v3796_v24 = vadd.f32 %v3795_v16, %v3794_v11  ;;  %v3860_v25 = vadd.f32 %v3859_v20, %v3858_v22  ;;  %v3797_v26 = vpop.f32.mrb[54].mxu1  ;;  %v3861_v27 = vpop.f32.mrb[54].mxu0  ;;  %v4577_v11 = vld [vmem:[%s4654_s9 + $0x448] ss:$44 sps:$4 sm:$0xff]  }
 0x164   : > { %v3798_v40 = vpop.f32.mrb[55].mxu1  ;;  %v3862_v47 = vpop.f32.mrb[55].mxu0 }
 0x165   : > { %v5202_v41 = vadd.f32 %v3796_v24, %v2061_v45  ;;  %v5205_v35 = vadd.f32 %v3860_v25, %v5065_v44  ;;  %v3799_v42 = vadd.f32 %v3798_v40, %v3797_v26  ;;  %v3863_v15 = vadd.f32 %v3862_v47, %v3861_v27  ;;  %v4578_v27 = vld [vmem:[%s4654_s9 + $0x4f0] ss:$44 sps:$4 sm:$0xff]  }
 0x166   : > { %2727 = vmatmul.mubr.bf16.gmra.mrb[160].mxu0 %v4568_v17  ;;  %4208 = vmatmul.mubr.msk.bf16.gmra.mrb[160].mxu1 %vm1905_vm0, %v4569_v18 }
 0x167   : > { %v5208_v48 = vadd.f32 %v3799_v42, %v2064_v5  ;;  %v5211_v31 = vadd.f32 %v3863_v15, %v5069_v21  ;;  %2734 = vmatprep.mubr.bf16.mxu0 %v4570_v36  ;;  %4211 = vmatprep.mubr.msk.bf16.mxu1 %vm1905_vm0, %v4572_v38  ;;  %v2072_v21 = vadd.f32 %v5150_v59, %v5037_v63  ;;  %v4579_v36 = vld [vmem:[%s4654_s9 + $0x4a0] ss:$44 sps:$4 sm:$0xff]  }
 0x168   : > { %v2077_v38 = vadd.f32 %v5160_v12, %v5037_v63  ;;  %v4580_v15 = vld [vmem:[%s4654_s9 + $0x54c] ss:$44 sps:$4 sm:$0xff]  }
 0x169   : > { %v3800_v61 = vpop.f32.mrb[56].mxu1  ;;  %v3864_v50 = vpop.f32.mrb[56].mxu0 }
 0x16a   : > { %v3801_v51 = vpop.f32.mrb[57].mxu1  ;;  %v3865_v44 = vpop.f32.mrb[57].mxu0 }
 0x16b   : > { %v3802_v29 = vadd.f32 %v3801_v51, %v3800_v61  ;;  %v3866_v9 = vadd.f32 %v3865_v44, %v3864_v50  ;;  %v3803_v2 = vpop.f32.mrb[58].mxu1  ;;  %v3867_v10 = vpop.f32.mrb[58].mxu0  ;;  %v4582_v61 = vld [vmem:[%s4654_s9 + $0x4f8] ss:$44 sps:$4 sm:$0xff]  }
 0x16c   : > { %v3804_v22 = vpop.f32.mrb[59].mxu1  ;;  %v3868_v16 = vpop.f32.mrb[59].mxu0 }
 0x16d   : > { %v5222_v20 = vadd.f32 %v3802_v29, %v2069_v56  ;;  %v5225_v17 = vadd.f32 %v3866_v9, %v5081_v6  ;;  %v3805_v18 = vadd.f32 %v3804_v22, %v3803_v2  ;;  %v3869_v43 = vadd.f32 %v3868_v16, %v3867_v10 }
 0x16e   : > { %2735 = vmatmul.mubr.bf16.gmra.mrb[164].mxu0 %v4573_v52  ;;  %4212 = vmatmul.mubr.msk.bf16.gmra.mrb[164].mxu1 %vm1905_vm0, %v4574_v54 }
 0x16f   : > { %v5228_v45 = vadd.f32 %v3805_v18, %v2072_v21  ;;  %v5231_v59 = vadd.f32 %v3869_v43, %v5085_v37  ;;  %2742 = vmatprep.mubr.bf16.mxu0 %v4575_v49  ;;  %4215 = vmatprep.mubr.msk.bf16.mxu1 %vm1905_vm0, %v4577_v11  ;;  %v2080_v37 = vadd.f32 %v5168_v13, %v5037_v63  ;;  %v4583_v49 = vld [vmem:[%s4654_s9 + $0x548] ss:$44 sps:$4 sm:$0xff]  }
 0x170   : > { %v2085_v11 = vadd.f32 %v4990_v7, %v5037_v63 }
 0x171   : > { %v3806_v24 = vpop.f32.mrb[60].mxu1  ;;  %v3870_v25 = vpop.f32.mrb[60].mxu0 }
 0x172   : > { %v3807_v26 = vpop.f32.mrb[61].mxu1  ;;  %v3871_v6 = vpop.f32.mrb[61].mxu0 }
 0x173   : > { %v3808_v5 = vadd.f32 %v3807_v26, %v3806_v24  ;;  %v3872_v40 = vadd.f32 %v3871_v6, %v3870_v25  ;;  %v3809_v47 = vpop.f32.mrb[62].mxu1  ;;  %v3873_v42 = vpop.f32.mrb[62].mxu0 }
 0x174   : > { %v3810_v50 = vpop.f32.mrb[63].mxu1  ;;  %v3874_v51 = vpop.f32.mrb[63].mxu0 }
 0x175   : > { %v5242_v44 = vadd.f32 %v3808_v5, %v2077_v38  ;;  %v5245_v52 = vadd.f32 %v3872_v40, %v5097_v34  ;;  %v3811_v54 = vadd.f32 %v3810_v50, %v3809_v47  ;;  %v3875_v12 = vadd.f32 %v3874_v51, %v3873_v42  ;;  %v4584_v34 = vld [vmem:[%s4654_s9 + $0x550] ss:$44 sps:$4 sm:$0xff]   ;;  %s3176_s9 = sshll.u32 %s5579_s16, 2 }
 0x176   : > { %2743 = vmatmul.mubr.bf16.gmra.mrb[168].mxu0 %v4578_v27  ;;  %4216 = vmatmul.mubr.msk.bf16.gmra.mrb[168].mxu1 %vm1905_vm0, %v4579_v36  ;;  %v2093_v47 = vadd.f32 %v5002_v23, %v5037_v63  ;;  %s5516_s15 = scalar_lea.vmem %s5577_s3, %s3176_s9 }
 0x177   : > { %v5248_v56 = vadd.f32 %v3811_v54, %v2080_v37  ;;  %v5251_v29 = vadd.f32 %v3875_v12, %v5101_v53  ;;  %2750 = vmatprep.mubr.bf16.mxu0 %v4580_v15  ;;  %4219 = vmatprep.mubr.msk.bf16.mxu1 %vm1905_vm0, %v4582_v61  ;;  %v2088_v53 = vadd.f32 %v4996_v14, %v5037_v63 }
 0x178   : > { %v2096_v37 = vadd.f32 %v5008_v30, %v5037_v63  ;;  %v2101_v30 = vadd.f32 %v5014_v39, %v5037_v63 }
 0x179   : > { %v3812_v13 = vpop.f32.mrb[64].mxu1  ;;  %v3876_v9 = vpop.f32.mrb[64].mxu0 }
 0x17a   : > { %v3813_v2 = vpop.f32.mrb[65].mxu1  ;;  %v3877_v10 = vpop.f32.mrb[65].mxu0 }
 0x17b   : > { %v3814_v21 = vadd.f32 %v3813_v2, %v3812_v13  ;;  %v3878_v22 = vadd.f32 %v3877_v10, %v3876_v9  ;;  %v3815_v16 = vpop.f32.mrb[66].mxu1  ;;  %v3879_v18 = vpop.f32.mrb[66].mxu0 }
 0x17c   : > { %v3816_v43 = vpop.f32.mrb[67].mxu1  ;;  %v3880_v24 = vpop.f32.mrb[67].mxu0 }
 0x17d   : > { %v5260_v25 = vadd.f32 %v3814_v21, %v2085_v11  ;;  %v5263_v26 = vadd.f32 %v3878_v22, %v5113_v60  ;;  %v3817_v6 = vadd.f32 %v3816_v43, %v3815_v16  ;;  %v3881_v27 = vadd.f32 %v3880_v24, %v3879_v18 }
 0x17e   : > { %2751 = vmatmul.mubr.bf16.gmra.mrb[172].mxu0 %v4583_v49  ;;  %4220 = vmatmul.mubr.msk.bf16.gmra.mrb[172].mxu1 %vm1905_vm0, %v4584_v34 }
 0x17f   : > { %v5266_v7 = vadd.f32 %v3817_v6, %v2088_v53  ;;  %v5269_v36 = vadd.f32 %v3881_v27, %v5117_v1 }
 0x181   : > { %v3818_v38 = vpop.f32.mrb[68].mxu1  ;;  %v3882_v5 = vpop.f32.mrb[68].mxu0 }
 0x182   : > { %v3819_v14 = vpop.f32.mrb[69].mxu1  ;;  %v3883_v40 = vpop.f32.mrb[69].mxu0 }
 0x183   : > { %v3820_v42 = vadd.f32 %v3819_v14, %v3818_v38  ;;  %v3884_v60 = vadd.f32 %v3883_v40, %v3882_v5  ;;  %v3821_v15 = vpop.f32.mrb[70].mxu1  ;;  %v3885_v61 = vpop.f32.mrb[70].mxu0 }
 0x184   : > { %v3822_v50 = vpop.f32.mrb[71].mxu1  ;;  %v3886_v51 = vpop.f32.mrb[71].mxu0 }
 0x185   : > { %v5275_v54 = vadd.f32 %v3820_v42, %v2093_v47  ;;  %v5278_v1 = vadd.f32 %v3884_v60, %v5130_v28  ;;  %v3823_v12 = vadd.f32 %v3822_v50, %v3821_v15  ;;  %v3887_v13 = vadd.f32 %v3886_v51, %v3885_v61 }
 0x186   : > { %v2104_v28 = vadd.f32 %v5020_v46, %v5037_v63  ;;  %v2109_v46 = vadd.f32 %v5026_v55, %v5037_v63 }
 0x187   : > { %v5280_v9 = vadd.f32 %v3823_v12, %v2096_v37  ;;  %v5283_v23 = vadd.f32 %v3887_v13, %v5135_v33 }
 0x189   : > { %v3824_v2 = vpop.f32.mrb[72].mxu1  ;;  %v3888_v10 = vpop.f32.mrb[72].mxu0 }
 0x18a   : > { %v3825_v49 = vpop.f32.mrb[73].mxu1  ;;  %v3889_v34 = vpop.f32.mrb[73].mxu0 }
 0x18b   : > { %v3826_v11 = vadd.f32 %v3825_v49, %v3824_v2  ;;  %v3890_v21 = vadd.f32 %v3889_v34, %v3888_v10  ;;  %v3827_v22 = vpop.f32.mrb[74].mxu1  ;;  %v3891_v16 = vpop.f32.mrb[74].mxu0 }
 0x18c   : > { %v3828_v18 = vpop.f32.mrb[75].mxu1  ;;  %v3892_v53 = vpop.f32.mrb[75].mxu0 }
 0x18d   : > { %v5289_v43 = vadd.f32 %v3826_v11, %v2101_v30  ;;  %v5292_v33 = vadd.f32 %v3890_v21, %v5148_v58  ;;  %v3829_v24 = vadd.f32 %v3828_v18, %v3827_v22  ;;  %v3893_v6 = vadd.f32 %v3892_v53, %v3891_v16 }
 0x18e   : > { %v2112_v58 = vadd.f32 %v5032_v62, %v5037_v63 }
 0x18f   : > { %v5294_v27 = vadd.f32 %v3829_v24, %v2104_v28  ;;  %v5297_v39 = vadd.f32 %v3893_v6, %v5153_v57 }
 0x191   : > { %v3830_v38 = vpop.f32.mrb[76].mxu1  ;;  %v3894_v5 = vpop.f32.mrb[76].mxu0 }
 0x192   : > { %v3831_v14 = vpop.f32.mrb[77].mxu1  ;;  %v3895_v40 = vpop.f32.mrb[77].mxu0 }
 0x193   : > { %v3832_v47 = vadd.f32 %v3831_v14, %v3830_v38  ;;  %v3896_v42 = vadd.f32 %v3895_v40, %v3894_v5  ;;  %v3833_v60 = vpop.f32.mrb[78].mxu1  ;;  %v3897_v15 = vpop.f32.mrb[78].mxu0 }
 0x194   : > { %v3834_v61 = vpop.f32.mrb[79].mxu1  ;;  %v3898_v37 = vpop.f32.mrb[79].mxu0 }
 0x195   : > { %v5303_v50 = vadd.f32 %v3832_v47, %v2109_v46  ;;  %v5306_v57 = vadd.f32 %v3896_v42, %v5166_v32  ;;  %v3835_v51 = vadd.f32 %v3834_v61, %v3833_v60  ;;  %v3899_v12 = vadd.f32 %v3898_v37, %v3897_v15 }
 0x197   : > { %v5308_v13 = vadd.f32 %v3835_v51, %v2112_v58  ;;  %v5311_v55 = vadd.f32 %v3899_v12, %v5171_v19 }
 0x199   : > { %v3900_v2 = vpop.f32.mrb[80].mxu0  ;;  %v3964_v10 = vpop.f32.mrb[80].mxu1 }
 0x19a   : > { %v3901_v49 = vpop.f32.mrb[81].mxu0  ;;  %v3965_v34 = vpop.f32.mrb[81].mxu1 }
 0x19b   : > { %v3902_v30 = vadd.f32 %v3901_v49, %v3900_v2  ;;  %v3966_v62 = vadd.f32 %v3965_v34, %v3964_v10  ;;  %v3903_v63 = vpop.f32.mrb[82].mxu0  ;;  %v3967_v11 = vpop.f32.mrb[82].mxu1 }
 0x19c   : > { %v3904_v21 = vpop.f32.mrb[83].mxu0  ;;  %v3968_v22 = vpop.f32.mrb[83].mxu1 }
 0x19d   : > { %v5314_v32 = vadd.f32 %v3902_v30, %v5182_v3  ;;  %v5317_v16 = vadd.f32 %v3966_v62, %v5185_v4  ;;  %v3905_v28 = vadd.f32 %v3904_v21, %v3903_v63  ;;  %v3969_v18 = vadd.f32 %v3968_v22, %v3967_v11 }
 0x19f   : > { %v5320_v19 = vadd.f32 %v3905_v28, %v5188_v8  ;;  %v5323_v53 = vadd.f32 %v3969_v18, %v5191_v0 }
 0x1a1   : > { %v3906_v24 = vpop.f32.mrb[84].mxu0  ;;  %v3970_v6 = vpop.f32.mrb[84].mxu1 }
 0x1a2   : > { %v3907_v38 = vpop.f32.mrb[85].mxu0  ;;  %v3971_v5 = vpop.f32.mrb[85].mxu1 }
 0x1a3   : > { %v3908_v14 = vadd.f32 %v3907_v38, %v3906_v24  ;;  %v3972_v40 = vadd.f32 %v3971_v5, %v3970_v6  ;;  %v3909_v46 = vpop.f32.mrb[86].mxu0  ;;  %v3973_v3 = vpop.f32.mrb[86].mxu1 }
 0x1a4   : > { %v3910_v47 = vpop.f32.mrb[87].mxu0  ;;  %v3974_v42 = vpop.f32.mrb[87].mxu1 }
 0x1a5   : > { %v5326_v4 = vadd.f32 %v3908_v14, %v5202_v41  ;;  %v5329_v60 = vadd.f32 %v3972_v40, %v5205_v35  ;;  %v3911_v8 = vadd.f32 %v3910_v47, %v3909_v46  ;;  %v3975_v15 = vadd.f32 %v3974_v42, %v3973_v3 }
 0x1a7   : > { %v5332_v0 = vadd.f32 %v3911_v8, %v5208_v48  ;;  %v5335_v58 = vadd.f32 %v3975_v15, %v5211_v31 }
 0x1a9   : > { %v3912_v61 = vpop.f32.mrb[88].mxu0  ;;  %v3976_v37 = vpop.f32.mrb[88].mxu1 }
 0x1aa   : > { %v3913_v51 = vpop.f32.mrb[89].mxu0  ;;  %v3977_v12 = vpop.f32.mrb[89].mxu1 }
 0x1ab   : > { %v3914_v2 = vadd.f32 %v3913_v51, %v3912_v61  ;;  %v3978_v10 = vadd.f32 %v3977_v12, %v3976_v37  ;;  %v3915_v49 = vpop.f32.mrb[90].mxu0  ;;  %v3979_v41 = vpop.f32.mrb[90].mxu1 }
 0x1ac   : > { %v3916_v34 = vpop.f32.mrb[91].mxu0  ;;  %v3980_v30 = vpop.f32.mrb[91].mxu1 }
 0x1ad   : > { %v5338_v35 = vadd.f32 %v3914_v2, %v5222_v20  ;;  %v5341_v62 = vadd.f32 %v3978_v10, %v5225_v17  ;;  %v3917_v48 = vadd.f32 %v3916_v34, %v3915_v49  ;;  %v3981_v63 = vadd.f32 %v3980_v30, %v3979_v41 }
 0x1af   : > { %v5344_v31 = vadd.f32 %v3917_v48, %v5228_v45  ;;  %v5347_v11 = vadd.f32 %v3981_v63, %v5231_v59 }
 0x1b1   : > { %v3918_v21 = vpop.f32.mrb[92].mxu0  ;;  %v3982_v22 = vpop.f32.mrb[92].mxu1 }
 0x1b2   : > { %v3919_v28 = vpop.f32.mrb[93].mxu0  ;;  %v3983_v18 = vpop.f32.mrb[93].mxu1 }
 0x1b3   : > { %v3920_v24 = vadd.f32 %v3919_v28, %v3918_v21  ;;  %v3984_v6 = vadd.f32 %v3983_v18, %v3982_v22  ;;  %v3921_v38 = vpop.f32.mrb[94].mxu0  ;;  %v3985_v20 = vpop.f32.mrb[94].mxu1 }
 0x1b4   : > { %v3922_v5 = vpop.f32.mrb[95].mxu0  ;;  %v3986_v14 = vpop.f32.mrb[95].mxu1 }
 0x1b5   : > { %v5350_v17 = vadd.f32 %v3920_v24, %v5242_v44  ;;  %v5353_v40 = vadd.f32 %v3984_v6, %v5245_v52  ;;  %v3923_v45 = vadd.f32 %v3922_v5, %v3921_v38  ;;  %v3987_v46 = vadd.f32 %v3986_v14, %v3985_v20 }
 0x1b7   : > { %v5356_v59 = vadd.f32 %v3923_v45, %v5248_v56  ;;  %v5359_v3 = vadd.f32 %v3987_v46, %v5251_v29 }
 0x1b9   : > { %v3924_v47 = vpop.f32.mrb[96].mxu0  ;;  %v3988_v42 = vpop.f32.mrb[96].mxu1 }
 0x1ba   : > { %v3925_v8 = vpop.f32.mrb[97].mxu0  ;;  %v3989_v15 = vpop.f32.mrb[97].mxu1 }
 0x1bb   : > { %v3926_v61 = vadd.f32 %v3925_v8, %v3924_v47  ;;  %v3990_v37 = vadd.f32 %v3989_v15, %v3988_v42  ;;  %v3927_v51 = vpop.f32.mrb[98].mxu0  ;;  %v3991_v44 = vpop.f32.mrb[98].mxu1 }
 0x1bc   : > { %v3928_v12 = vpop.f32.mrb[99].mxu0  ;;  %v3992_v2 = vpop.f32.mrb[99].mxu1 }
 0x1bd   : > { %v5362_v52 = vadd.f32 %v3926_v61, %v5260_v25  ;;  %v5365_v10 = vadd.f32 %v3990_v37, %v5263_v26  ;;  %v3929_v56 = vadd.f32 %v3928_v12, %v3927_v51  ;;  %v3993_v49 = vadd.f32 %v3992_v2, %v3991_v44 }
 0x1bf   : > { %v5368_v29 = vadd.f32 %v3929_v56, %v5266_v7  ;;  %v5371_v41 = vadd.f32 %v3993_v49, %v5269_v36 }
 0x1c1   : > { %v3930_v34 = vpop.f32.mrb[100].mxu0  ;;  %v3994_v30 = vpop.f32.mrb[100].mxu1 }
 0x1c2   : > { %v3931_v48 = vpop.f32.mrb[101].mxu0  ;;  %v3995_v63 = vpop.f32.mrb[101].mxu1 }
 0x1c3   : > { %v3932_v21 = vadd.f32 %v3931_v48, %v3930_v34  ;;  %v3996_v22 = vadd.f32 %v3995_v63, %v3994_v30  ;;  %v3933_v28 = vpop.f32.mrb[102].mxu0  ;;  %v3997_v25 = vpop.f32.mrb[102].mxu1 }
 0x1c4   : > { %v3934_v18 = vpop.f32.mrb[103].mxu0  ;;  %v3998_v24 = vpop.f32.mrb[103].mxu1 }
 0x1c5   : > { %v5374_v26 = vadd.f32 %v3932_v21, %v5275_v54  ;;  %v5377_v6 = vadd.f32 %v3996_v22, %v5278_v1  ;;  %v3935_v7 = vadd.f32 %v3934_v18, %v3933_v28  ;;  %v3999_v38 = vadd.f32 %v3998_v24, %v3997_v25 }
 0x1c7   : > { %v5380_v36 = vadd.f32 %v3935_v7, %v5280_v9  ;;  %v5383_v20 = vadd.f32 %v3999_v38, %v5283_v23 }
 0x1c9   : > { %v3936_v5 = vpop.f32.mrb[104].mxu0  ;;  %v4000_v14 = vpop.f32.mrb[104].mxu1 }
 0x1ca   : > { %v3937_v45 = vpop.f32.mrb[105].mxu0  ;;  %v4001_v46 = vpop.f32.mrb[105].mxu1 }
 0x1cb   : > { %v3938_v47 = vadd.f32 %v3937_v45, %v3936_v5  ;;  %v4002_v42 = vadd.f32 %v4001_v46, %v4000_v14  ;;  %v3939_v8 = vpop.f32.mrb[106].mxu0  ;;  %v4003_v54 = vpop.f32.mrb[106].mxu1 }
 0x1cc   : > { %v3940_v15 = vpop.f32.mrb[107].mxu0  ;;  %v4004_v61 = vpop.f32.mrb[107].mxu1 }
 0x1cd   : > { %v5386_v1 = vadd.f32 %v3938_v47, %v5289_v43  ;;  %v5389_v37 = vadd.f32 %v4002_v42, %v5292_v33  ;;  %v3941_v9 = vadd.f32 %v3940_v15, %v3939_v8  ;;  %v4005_v51 = vadd.f32 %v4004_v61, %v4003_v54 }
 0x1cf   : > { %v5392_v23 = vadd.f32 %v3941_v9, %v5294_v27  ;;  %v5395_v44 = vadd.f32 %v4005_v51, %v5297_v39 }
 0x1d1   : > { %v3942_v12 = vpop.f32.mrb[108].mxu0  ;;  %v4006_v2 = vpop.f32.mrb[108].mxu1 }
 0x1d2   : > { %v3943_v56 = vpop.f32.mrb[109].mxu0  ;;  %v4007_v49 = vpop.f32.mrb[109].mxu1 }
 0x1d3   : > { %v3944_v34 = vadd.f32 %v3943_v56, %v3942_v12  ;;  %v4008_v30 = vadd.f32 %v4007_v49, %v4006_v2  ;;  %v3945_v48 = vpop.f32.mrb[110].mxu0  ;;  %v4009_v43 = vpop.f32.mrb[110].mxu1 }
 0x1d4   : > { %v3946_v63 = vpop.f32.mrb[111].mxu0  ;;  %v4010_v21 = vpop.f32.mrb[111].mxu1 }
 0x1d5   : > { %v5398_v33 = vadd.f32 %v3944_v34, %v5303_v50  ;;  %v5401_v22 = vadd.f32 %v4008_v30, %v5306_v57  ;;  %v3947_v27 = vadd.f32 %v3946_v63, %v3945_v48  ;;  %v4011_v28 = vadd.f32 %v4010_v21, %v4009_v43 }
 0x1d7   : > { %v5404_v39 = vadd.f32 %v3947_v27, %v5308_v13  ;;  %v5407_v25 = vadd.f32 %v4011_v28, %v5311_v55 }
 0x1d9   : > { %v4012_v18 = vpop.f32.mrb[112].mxu1  ;;  %v4076_v24 = vpop.f32.mrb[112].mxu0 }
 0x1da   : > { %v4013_v7 = vpop.f32.mrb[113].mxu1  ;;  %v4077_v38 = vpop.f32.mrb[113].mxu0 }
 0x1db   : > { %v4014_v5 = vadd.f32 %v4013_v7, %v4012_v18  ;;  %v4078_v14 = vadd.f32 %v4077_v38, %v4076_v24  ;;  %v4015_v45 = vpop.f32.mrb[114].mxu1  ;;  %v4079_v50 = vpop.f32.mrb[114].mxu0 }
 0x1dc   : > { %v4016_v46 = vpop.f32.mrb[115].mxu1  ;;  %v4080_v47 = vpop.f32.mrb[115].mxu0 }
 0x1dd   : > { %v5410_v57 = vadd.f32 %v4014_v5, %v5314_v32  ;;  %v4017_v42 = vadd.f32 %v4016_v46, %v4015_v45  ;;  %v4081_v8 = vadd.f32 %v4080_v47, %v4079_v50  ;;  %v5413_v13 = vadd.f32 %v4078_v14, %v5317_v16 }
 0x1df   : > { %v5416_v55 = vadd.f32 %v4017_v42, %v5320_v19  ;;  %v5419_v54 = vadd.f32 %v4081_v8, %v5323_v53 }
 0x1e1   : > { %v4018_v15 = vpop.f32.mrb[116].mxu1  ;;  %v4082_v61 = vpop.f32.mrb[116].mxu0 }
 0x1e2   : > { %v4019_v9 = vpop.f32.mrb[117].mxu1  ;;  %v4083_v51 = vpop.f32.mrb[117].mxu0 }
 0x1e3   : > { %v4020_v12 = vadd.f32 %v4019_v9, %v4018_v15  ;;  %v4084_v2 = vadd.f32 %v4083_v51, %v4082_v61  ;;  %v4021_v56 = vpop.f32.mrb[118].mxu1  ;;  %v4085_v32 = vpop.f32.mrb[118].mxu0 }
 0x1e4   : > { %v4022_v49 = vpop.f32.mrb[119].mxu1  ;;  %v4086_v34 = vpop.f32.mrb[119].mxu0 }
 0x1e5   : > { %v5422_v30 = vadd.f32 %v4020_v12, %v5326_v4  ;;  %v4023_v16 = vadd.f32 %v4022_v49, %v4021_v56  ;;  %v4087_v48 = vadd.f32 %v4086_v34, %v4085_v32  ;;  %v5425_v19 = vadd.f32 %v4084_v2, %v5329_v60 }
 0x1e7   : > { %v5428_v53 = vadd.f32 %v4023_v16, %v5332_v0  ;;  %v5431_v43 = vadd.f32 %v4087_v48, %v5335_v58 }
 0x1e9   : > { %v4024_v63 = vpop.f32.mrb[120].mxu1  ;;  %v4088_v21 = vpop.f32.mrb[120].mxu0 }
 0x1ea   : > { %v4025_v27 = vpop.f32.mrb[121].mxu1  ;;  %v4089_v28 = vpop.f32.mrb[121].mxu0 }
 0x1eb   : > { %v4026_v18 = vadd.f32 %v4025_v27, %v4024_v63  ;;  %v4090_v24 = vadd.f32 %v4089_v28, %v4088_v21  ;;  %v4027_v7 = vpop.f32.mrb[122].mxu1  ;;  %v4091_v4 = vpop.f32.mrb[122].mxu0 }
 0x1ec   : > { %v4028_v38 = vpop.f32.mrb[123].mxu1  ;;  %v4092_v5 = vpop.f32.mrb[123].mxu0 }
 0x1ed   : > { %v5434_v14 = vadd.f32 %v4026_v18, %v5338_v35  ;;  %v4029_v60 = vadd.f32 %v4028_v38, %v4027_v7  ;;  %v4093_v45 = vadd.f32 %v4092_v5, %v4091_v4  ;;  %v5437_v0 = vadd.f32 %v4090_v24, %v5341_v62 }
 0x1ef   : > { %v5440_v58 = vadd.f32 %v4029_v60, %v5344_v31  ;;  %v5443_v50 = vadd.f32 %v4093_v45, %v5347_v11 }
 0x1f1   : > { %v4030_v46 = vpop.f32.mrb[124].mxu1  ;;  %v4094_v47 = vpop.f32.mrb[124].mxu0 }
 0x1f2   : > { %v4031_v42 = vpop.f32.mrb[125].mxu1  ;;  %v4095_v8 = vpop.f32.mrb[125].mxu0 }
 0x1f3   : > { %v4032_v15 = vadd.f32 %v4031_v42, %v4030_v46  ;;  %v4096_v61 = vadd.f32 %v4095_v8, %v4094_v47  ;;  %v4033_v9 = vpop.f32.mrb[126].mxu1  ;;  %v4097_v35 = vpop.f32.mrb[126].mxu0 }
 0x1f4   : > { %v4034_v51 = vpop.f32.mrb[127].mxu1  ;;  %v4098_v12 = vpop.f32.mrb[127].mxu0 }
 0x1f5   : > { %v5446_v2 = vadd.f32 %v4032_v15, %v5350_v17  ;;  %v4035_v62 = vadd.f32 %v4034_v51, %v4033_v9  ;;  %v4099_v56 = vadd.f32 %v4098_v12, %v4097_v35  ;;  %v5449_v31 = vadd.f32 %v4096_v61, %v5353_v40 }
 0x1f7   : > { %v5452_v11 = vadd.f32 %v4035_v62, %v5356_v59  ;;  %v5455_v32 = vadd.f32 %v4099_v56, %v5359_v3 }
 0x1f9   : > { %v4036_v49 = vpop.f32.mrb[128].mxu1  ;;  %v4100_v34 = vpop.f32.mrb[128].mxu0 }
 0x1fa   : > { %v4037_v16 = vpop.f32.mrb[129].mxu1  ;;  %v4101_v48 = vpop.f32.mrb[129].mxu0 }
 0x1fb   : > { %v4038_v63 = vadd.f32 %v4037_v16, %v4036_v49  ;;  %v4102_v21 = vadd.f32 %v4101_v48, %v4100_v34  ;;  %v4039_v27 = vpop.f32.mrb[130].mxu1  ;;  %v4103_v17 = vpop.f32.mrb[130].mxu0 }
 0x1fc   : > { %v4040_v28 = vpop.f32.mrb[131].mxu1  ;;  %v4104_v18 = vpop.f32.mrb[131].mxu0 }
 0x1fd   : > { %v5458_v24 = vadd.f32 %v4038_v63, %v5362_v52  ;;  %v4041_v40 = vadd.f32 %v4040_v28, %v4039_v27  ;;  %v4105_v7 = vadd.f32 %v4104_v18, %v4103_v17  ;;  %v5461_v59 = vadd.f32 %v4102_v21, %v5365_v10 }
 0x1ff   : > { %v5464_v3 = vadd.f32 %v4041_v40, %v5368_v29  ;;  %v5467_v4 = vadd.f32 %v4105_v7, %v5371_v41 }
 0x201   : > { %v4042_v38 = vpop.f32.mrb[132].mxu1  ;;  %v4106_v5 = vpop.f32.mrb[132].mxu0 }
 0x202   : > { %v4043_v60 = vpop.f32.mrb[133].mxu1  ;;  %v4107_v45 = vpop.f32.mrb[133].mxu0 }
 0x203   : > { %v4044_v46 = vadd.f32 %v4043_v60, %v4042_v38  ;;  %v4108_v47 = vadd.f32 %v4107_v45, %v4106_v5  ;;  %v4045_v42 = vpop.f32.mrb[134].mxu1  ;;  %v4109_v52 = vpop.f32.mrb[134].mxu0 }
 0x204   : > { %v4046_v8 = vpop.f32.mrb[135].mxu1  ;;  %v4110_v15 = vpop.f32.mrb[135].mxu0 }
 0x205   : > { %v5470_v61 = vadd.f32 %v4044_v46, %v5374_v26  ;;  %v4047_v10 = vadd.f32 %v4046_v8, %v4045_v42  ;;  %v4111_v9 = vadd.f32 %v4110_v15, %v4109_v52  ;;  %v5473_v29 = vadd.f32 %v4108_v47, %v5377_v6 }
 0x207   : > { %v5476_v41 = vadd.f32 %v4047_v10, %v5380_v36  ;;  %v5479_v35 = vadd.f32 %v4111_v9, %v5383_v20 }
 0x209   : > { %v4048_v51 = vpop.f32.mrb[136].mxu1  ;;  %v4112_v12 = vpop.f32.mrb[136].mxu0 }
 0x20a   : > { %v4049_v62 = vpop.f32.mrb[137].mxu1  ;;  %v4113_v56 = vpop.f32.mrb[137].mxu0 }
 0x20b   : > { %v4050_v49 = vadd.f32 %v4049_v62, %v4048_v51  ;;  %v4114_v34 = vadd.f32 %v4113_v56, %v4112_v12  ;;  %v4051_v16 = vpop.f32.mrb[138].mxu1  ;;  %v4115_v26 = vpop.f32.mrb[138].mxu0 }
 0x20c   : > { %v4052_v48 = vpop.f32.mrb[139].mxu1  ;;  %v4116_v63 = vpop.f32.mrb[139].mxu0 }
 0x20d   : > { %v5482_v21 = vadd.f32 %v4050_v49, %v5386_v1  ;;  %v4053_v6 = vadd.f32 %v4052_v48, %v4051_v16  ;;  %v4117_v27 = vadd.f32 %v4116_v63, %v4115_v26  ;;  %v5485_v36 = vadd.f32 %v4114_v34, %v5389_v37 }
 0x20f   : > { %v5488_v20 = vadd.f32 %v4053_v6, %v5392_v23  ;;  %v5491_v17 = vadd.f32 %v4117_v27, %v5395_v44 }
 0x211   : > { %v4054_v28 = vpop.f32.mrb[140].mxu1  ;;  %v4118_v18 = vpop.f32.mrb[140].mxu0 }
 0x212   : > { %v4055_v40 = vpop.f32.mrb[141].mxu1  ;;  %v4119_v7 = vpop.f32.mrb[141].mxu0 }
 0x213   : > { %v4056_v38 = vadd.f32 %v4055_v40, %v4054_v28  ;;  %v4120_v5 = vadd.f32 %v4119_v7, %v4118_v18  ;;  %v4057_v60 = vpop.f32.mrb[142].mxu1  ;;  %v4121_v1 = vpop.f32.mrb[142].mxu0 }
 0x214   : > { %v4058_v45 = vpop.f32.mrb[143].mxu1  ;;  %v4122_v46 = vpop.f32.mrb[143].mxu0 }
 0x215   : > { %v5494_v37 = vadd.f32 %v4056_v38, %v5398_v33  ;;  %v4059_v47 = vadd.f32 %v4058_v45, %v4057_v60  ;;  %v4123_v23 = vadd.f32 %v4122_v46, %v4121_v1  ;;  %v5497_v42 = vadd.f32 %v4120_v5, %v5401_v22 }
 0x217   : > { %v5500_v44 = vadd.f32 %v4059_v47, %v5404_v39  ;;  %v5503_v52 = vadd.f32 %v4123_v23, %v5407_v25 }
 0x219   : > { %v4124_v8 = vpop.f32.mrb[144].mxu0  ;;  %v4193_v15 = vpop.f32.mrb[144].mxu1 }
 0x21a   : > { %v2802_v10 = vadd.f32 %v4193_v15, %v5425_v19  ;;  %v4125_v9 = vpop.f32.mrb[145].mxu0  ;;  %v2793_v51 = vpop.f32.mrb[145].mxu1 }
 0x21b   : > { %v4126_v12 = vadd.f32 %v4125_v9, %v4124_v8  ;;  %v2794_v33 = vadd.f32 %v2793_v51, %v5413_v13  ;;  %v4127_v62 = vpop.f32.mrb[146].mxu0  ;;  %v4194_v56 = vpop.f32.mrb[146].mxu1 }
 0x21c   : > { %v2805_v22 = vadd.f32 %v4194_v56, %v5431_v43  ;;  %v4128_v49 = vpop.f32.mrb[147].mxu0  ;;  %v2796_v39 = vpop.f32.mrb[147].mxu1  ;;  %v2922_v26 = vmax.f32 %v2802_v10, 0.0 }
 0x21d   : > { %v4129_v34 = vadd.f32 %v4128_v49, %v4127_v62  ;;  %v2797_v25 = vadd.f32 %v2796_v39, %v5419_v54  ;;  %v5511_v16 = vadd.f32 %v4126_v12, %v5410_v57  ;;  %v2920_v48 = vmax.f32 %v2794_v33, 0.0 }
 0x21e   : > { %v2923_v19 = vmax.f32 %v2805_v22, 0.0 }
 0x21f   : > { %v2921_v13 = vmax.f32 %v2797_v25, 0.0  ;;  %v5519_v43 = vadd.f32 %v4129_v34, %v5416_v55 }
 0x220   : > { %v3525_v63 = vpack.c.bf16 %v2923_v19, %v2922_v26 }
 0x221   : > { %v3520_v6 = vpack.c.bf16 %v2921_v13, %v2920_v48  ;;  %v4130_v54 = vpop.f32.mrb[148].mxu0  ;;  %v4197_v27 = vpop.f32.mrb[148].mxu1 }
 0x222   : > { %3597 = vst [vmem:[%s5516_s15 + $0x8] sm:$0xff] %v3525_v63   ;;  %v2818_v57 = vadd.f32 %v4197_v27, %v5449_v31  ;;  %v4131_v28 = vpop.f32.mrb[149].mxu0  ;;  %v2809_v18 = vpop.f32.mrb[149].mxu1 }
 0x223   : > { %3521 = vst [vmem:[%s5516_s15] sm:$0xff] %v3520_v6   ;;  %v4132_v40 = vadd.f32 %v4131_v28, %v4130_v54  ;;  %v2810_v7 = vadd.f32 %v2809_v18, %v5437_v0  ;;  %v4133_v38 = vpop.f32.mrb[150].mxu0  ;;  %v4198_v5 = vpop.f32.mrb[150].mxu1 }
 0x224   : > { %v2821_v60 = vadd.f32 %v4198_v5, %v5455_v32  ;;  %v4134_v55 = vpop.f32.mrb[151].mxu0  ;;  %v2812_v1 = vpop.f32.mrb[151].mxu1  ;;  %v2926_v31 = vmax.f32 %v2818_v57, 0.0 }
 0x225   : > { %v4135_v45 = vadd.f32 %v4134_v55, %v4133_v38  ;;  %v2813_v46 = vadd.f32 %v2812_v1, %v5443_v50  ;;  %v2705_v47 = vadd.f32 %v4132_v40, %v5422_v30  ;;  %v2924_v8 = vmax.f32 %v2810_v7, 0.0 }
 0x226   : > { %v2927_v23 = vmax.f32 %v2821_v60, 0.0 }
 0x227   : > { %v2925_v15 = vmax.f32 %v2813_v46, 0.0  ;;  %v2708_v10 = vadd.f32 %v4135_v45, %v5428_v53 }
 0x228   : > { %v3535_v0 = vpack.c.bf16 %v2927_v23, %v2926_v31 }
 0x229   : > { %v3530_v9 = vpack.c.bf16 %v2925_v15, %v2924_v8  ;;  %v4136_v51 = vpop.f32.mrb[152].mxu0  ;;  %v4201_v12 = vpop.f32.mrb[152].mxu1 }
 0x22a   : > { %3599 = vst [vmem:[%s5516_s15 + $0x18] sm:$0xff] %v3535_v0   ;;  %v2834_v32 = vadd.f32 %v4201_v12, %v5473_v29  ;;  %v4137_v33 = vpop.f32.mrb[153].mxu0  ;;  %v2825_v62 = vpop.f32.mrb[153].mxu1 }
 0x22b   : > { %3598 = vst [vmem:[%s5516_s15 + $0x10] sm:$0xff] %v3530_v9   ;;  %v4138_v56 = vadd.f32 %v4137_v33, %v4136_v51  ;;  %v2826_v50 = vadd.f32 %v2825_v62, %v5461_v59  ;;  %v4139_v30 = vpop.f32.mrb[154].mxu0  ;;  %v4202_v22 = vpop.f32.mrb[154].mxu1 }
 0x22c   : > { %v2837_v49 = vadd.f32 %v4202_v22, %v5479_v35  ;;  %v4140_v39 = vpop.f32.mrb[155].mxu0  ;;  %v2828_v53 = vpop.f32.mrb[155].mxu1  ;;  %v2930_v29 = vmax.f32 %v2834_v32, 0.0 }
 0x22d   : > { %v4141_v34 = vadd.f32 %v4140_v39, %v4139_v30  ;;  %v2829_v25 = vadd.f32 %v2828_v53, %v5467_v4  ;;  %v5536_v26 = vadd.f32 %v4138_v56, %v5434_v14  ;;  %v2928_v48 = vmax.f32 %v2826_v50, 0.0 }
 0x22e   : > { %v2931_v19 = vmax.f32 %v2837_v49, 0.0 }
 0x22f   : > { %v2929_v13 = vmax.f32 %v2829_v25, 0.0  ;;  %v5539_v59 = vadd.f32 %v4141_v34, %v5440_v58 }
 0x230   : > { %v3545_v63 = vpack.c.bf16 %v2931_v19, %v2930_v29 }
 0x231   : > { %v3540_v6 = vpack.c.bf16 %v2929_v13, %v2928_v48  ;;  %v4142_v54 = vpop.f32.mrb[156].mxu0  ;;  %v4205_v35 = vpop.f32.mrb[156].mxu1 }
 0x232   : > { %3601 = vst [vmem:[%s5516_s15 + $0x28] sm:$0xff] %v3545_v63   ;;  %v2850_v27 = vadd.f32 %v4205_v35, %v5497_v42  ;;  %v4143_v57 = vpop.f32.mrb[157].mxu0  ;;  %v2841_v28 = vpop.f32.mrb[157].mxu1 }
 0x233   : > { %3600 = vst [vmem:[%s5516_s15 + $0x20] sm:$0xff] %v3540_v6   ;;  %v4144_v4 = vadd.f32 %v4143_v57, %v4142_v54  ;;  %v2842_v14 = vadd.f32 %v2841_v28, %v5485_v36  ;;  %v4145_v18 = vpop.f32.mrb[158].mxu0  ;;  %v4206_v40 = vpop.f32.mrb[158].mxu1 }
 0x234   : > { %v2853_v7 = vadd.f32 %v4206_v40, %v5503_v52  ;;  %v4146_v58 = vpop.f32.mrb[159].mxu0  ;;  %v2844_v38 = vpop.f32.mrb[159].mxu1  ;;  %v2934_v42 = vmax.f32 %v2850_v27, 0.0 }
 0x235   : > { %v4147_v5 = vadd.f32 %v4146_v58, %v4145_v18  ;;  %v2845_v60 = vadd.f32 %v2844_v38, %v5491_v17  ;;  %v2721_v55 = vadd.f32 %v4144_v4, %v5446_v2  ;;  %v2932_v45 = vmax.f32 %v2842_v14, 0.0 }
 0x236   : > { %v2935_v1 = vmax.f32 %v2853_v7, 0.0 }
 0x237   : > { %v2933_v46 = vmax.f32 %v2845_v60, 0.0  ;;  %v2724_v31 = vadd.f32 %v4147_v5, %v5452_v11 }
 0x238   : > { %v3555_v36 = vpack.c.bf16 %v2935_v1, %v2934_v42 }
 0x239   : > { %v3550_v23 = vpack.c.bf16 %v2933_v46, %v2932_v45  ;;  %v4148_v8 = vpop.f32.mrb[160].mxu0  ;;  %v4209_v15 = vpop.f32.mrb[160].mxu1 }
 0x23a   : > { %3603 = vst [vmem:[%s5516_s15 + $0x38] sm:$0xff] %v3555_v36   ;;  %v2866_v52 = vadd.f32 %v4209_v15, %v2705_v47  ;;  %v4149_v0 = vpop.f32.mrb[161].mxu0  ;;  %v2857_v9 = vpop.f32.mrb[161].mxu1 }
 0x23b   : > { %3602 = vst [vmem:[%s5516_s15 + $0x30] sm:$0xff] %v3550_v23   ;;  %v4150_v51 = vadd.f32 %v4149_v0, %v4148_v8  ;;  %v2858_v17 = vadd.f32 %v2857_v9, %v5511_v16  ;;  %v4151_v12 = vpop.f32.mrb[162].mxu0  ;;  %v4210_v2 = vpop.f32.mrb[162].mxu1 }
 0x23c   : > { %v2869_v32 = vadd.f32 %v4210_v2, %v2708_v10  ;;  %v4152_v33 = vpop.f32.mrb[163].mxu0  ;;  %v2860_v62 = vpop.f32.mrb[163].mxu1  ;;  %v2938_v30 = vmax.f32 %v2866_v52, 0.0 }
 0x23d   : > { %v4153_v56 = vadd.f32 %v4152_v33, %v4151_v12  ;;  %v2861_v11 = vadd.f32 %v2860_v62, %v5519_v43  ;;  %v2729_v50 = vadd.f32 %v4150_v51, %v5458_v24  ;;  %v2936_v22 = vmax.f32 %v2858_v17, 0.0 }
 0x23e   : > { %v2939_v47 = vmax.f32 %v2869_v32, 0.0 }
 0x23f   : > { %v2937_v49 = vmax.f32 %v2861_v11, 0.0  ;;  %v2732_v39 = vadd.f32 %v4153_v56, %v5464_v3 }
 0x240   : > { %v3565_v53 = vpack.c.bf16 %v2939_v47, %v2938_v30 }
 0x241   : > { %v3560_v16 = vpack.c.bf16 %v2937_v49, %v2936_v22  ;;  %v4154_v34 = vpop.f32.mrb[164].mxu0  ;;  %v4213_v25 = vpop.f32.mrb[164].mxu1 }
 0x242   : > { %3605 = vst [vmem:[%s5516_s15 + $0x48] sm:$0xff] %v3565_v53   ;;  %v2882_v10 = vadd.f32 %v4213_v25, %v2721_v55  ;;  %v4155_v29 = vpop.f32.mrb[165].mxu0  ;;  %v2873_v19 = vpop.f32.mrb[165].mxu1 }
 0x243   : > { %3604 = vst [vmem:[%s5516_s15 + $0x40] sm:$0xff] %v3560_v16   ;;  %v4156_v48 = vadd.f32 %v4155_v29, %v4154_v34  ;;  %v2874_v43 = vadd.f32 %v2873_v19, %v5536_v26  ;;  %v4157_v13 = vpop.f32.mrb[166].mxu0  ;;  %v4214_v24 = vpop.f32.mrb[166].mxu1 }
 0x244   : > { %v2885_v63 = vadd.f32 %v4214_v24, %v2724_v31  ;;  %v4158_v6 = vpop.f32.mrb[167].mxu0  ;;  %v2876_v54 = vpop.f32.mrb[167].mxu1  ;;  %v2942_v57 = vmax.f32 %v2882_v10, 0.0 }
 0x245   : > { %v4159_v35 = vadd.f32 %v4158_v6, %v4157_v13  ;;  %v2877_v3 = vadd.f32 %v2876_v54, %v5539_v59  ;;  %v2737_v27 = vadd.f32 %v4156_v48, %v5470_v61  ;;  %v2940_v4 = vmax.f32 %v2874_v43, 0.0 }
 0x246   : > { %v2943_v28 = vmax.f32 %v2885_v63, 0.0 }
 0x247   : > { %v2941_v14 = vmax.f32 %v2877_v3, 0.0  ;;  %v2740_v18 = vadd.f32 %v4159_v35, %v5476_v41 }
 0x248   : > { %v3575_v40 = vpack.c.bf16 %v2943_v28, %v2942_v57 }
 0x249   : > { %v3570_v26 = vpack.c.bf16 %v2941_v14, %v2940_v4  ;;  %v4160_v7 = vpop.f32.mrb[168].mxu0  ;;  %v4217_v58 = vpop.f32.mrb[168].mxu1 }
 0x24a   : > { %3607 = vst [vmem:[%s5516_s15 + $0x58] sm:$0xff] %v3575_v40   ;;  %v2898_v38 = vadd.f32 %v4217_v58, %v2737_v27  ;;  %v4161_v5 = vpop.f32.mrb[169].mxu0  ;;  %v2889_v60 = vpop.f32.mrb[169].mxu1 }
 0x24b   : > { %3606 = vst [vmem:[%s5516_s15 + $0x50] sm:$0xff] %v3570_v26   ;;  %v4162_v55 = vadd.f32 %v4161_v5, %v4160_v7  ;;  %v2890_v42 = vadd.f32 %v2889_v60, %v2729_v50  ;;  %v4163_v59 = vpop.f32.mrb[170].mxu0  ;;  %v4218_v1 = vpop.f32.mrb[170].mxu1 }
 0x24c   : > { %v2901_v61 = vadd.f32 %v4218_v1, %v2740_v18  ;;  %v4164_v45 = vpop.f32.mrb[171].mxu0  ;;  %v2892_v46 = vpop.f32.mrb[171].mxu1  ;;  %v2946_v23 = vmax.f32 %v2898_v38, 0.0 }
 0x24d   : > { %v4165_v31 = vadd.f32 %v4164_v45, %v4163_v59  ;;  %v2893_v41 = vadd.f32 %v2892_v46, %v2732_v39  ;;  %v2745_v36 = vadd.f32 %v4162_v55, %v5482_v21  ;;  %v2944_v15 = vmax.f32 %v2890_v42, 0.0 }
 0x24e   : > { %v2947_v8 = vmax.f32 %v2901_v61, 0.0 }
 0x24f   : > { %v2945_v52 = vmax.f32 %v2893_v41, 0.0  ;;  %v2748_v0 = vadd.f32 %v4165_v31, %v5488_v20 }
 0x250   : > { %v3585_v9 = vpack.c.bf16 %v2947_v8, %v2946_v23 }
 0x251   : > { %v3580_v51 = vpack.c.bf16 %v2945_v52, %v2944_v15  ;;  %v4166_v17 = vpop.f32.mrb[172].mxu0  ;;  %v4221_v12 = vpop.f32.mrb[172].mxu1 }
 0x252   : > { %3609 = vst [vmem:[%s5516_s15 + $0x68] sm:$0xff] %v3585_v9   ;;  %v4167_v2 = vpop.f32.mrb[173].mxu0  ;;  %v2905_v32 = vpop.f32.mrb[173].mxu1 }
 0x253   : > { %3608 = vst [vmem:[%s5516_s15 + $0x60] sm:$0xff] %v3580_v51   ;;  %v4168_v33 = vadd.f32 %v4167_v2, %v4166_v17  ;;  %v2906_v62 = vadd.f32 %v2905_v32, %v2745_v36  ;;  %v4169_v56 = vpop.f32.mrb[174].mxu0  ;;  %v4222_v11 = vpop.f32.mrb[174].mxu1 }
 0x254   : > { %v4170_v21 = vpop.f32.mrb[175].mxu0  ;;  %v2908_v50 = vpop.f32.mrb[175].mxu1 }
 0x255   : > { %v2753_v30 = vadd.f32 %v4168_v33, %v5494_v37  ;;  %v4171_v47 = vadd.f32 %v4170_v21, %v4169_v56  ;;  %v2909_v20 = vadd.f32 %v2908_v50, %v2748_v0  ;;  %v2948_v49 = vmax.f32 %v2906_v62, 0.0 }
 0x257   : > { %v2914_v22 = vadd.f32 %v4221_v12, %v2753_v30  ;;  %v2756_v39 = vadd.f32 %v4171_v47, %v5500_v44  ;;  %v2949_v53 = vmax.f32 %v2909_v20, 0.0 }
 0x259   : > { %v2917_v16 = vadd.f32 %v4222_v11, %v2756_v39  ;;  %v3590_v34 = vpack.c.bf16 %v2949_v53, %v2948_v49  ;;  %v2950_v25 = vmax.f32 %v2914_v22, 0.0 }
 0x25b   : > { %v2951_v10 = vmax.f32 %v2917_v16, 0.0  ;;  %3610 = vst [vmem:[%s5516_s15 + $0x70] sm:$0xff] %v3590_v34  }
 0x25d   : > { %v3595_v29 = vpack.c.bf16 %v2951_v10, %v2950_v25 }
 0x25f   : > { %3611 = vst [vmem:[%s5516_s15 + $0x78] sm:$0xff] %v3595_v29  }
 0x260 PF: > { %s13_s12 = sadd.s32 1, %s4591_s12  }
 0x261   : > { %p10_p4 = scmp.ge.s32.totalorder %s13_s12, 4  }
 0x263   :  { %12 = sbr.rel (!%p10_p4) target bundleno = 1 (0x1), region = 62 }

// kernel: deeplab_forward.25
= control target key start
LH: loop header
LB: loop body
LE: loop exit
PB: predicated region body
PF: predicated region fallthrough
CT: control target
= control target key end

     0   :  { %s766_s12 = smov 0   ;;  %s898_s0 = inlined_call_operand.vmem [shape: bf16[512,32], index: 0, kind: input, shape index: {}]   ;;  %s899_s1 = inlined_call_operand.vmem [shape: bf16[32,128], index: 1, kind: input, shape index: {}]   ;;  %s900_s2 = inlined_call_operand.vmem [shape: f32[1,128], index: 2, kind: input, shape index: {}]   ;;  %s901_s3 = inlined_call_operand.vmem [shape: f32[512,128], index: 3, kind: output, shape index: {}]  }
   0x1 LB: > { %s608_s13 = sadd.s32 4294967295, %s744_s12   ;;  %p612_p0 = scmp.ge.s32.totalorder %s744_s12, 1  ;;  %s744_s12 = sphi %s766_s12, %s13_s12  }
   0x2   : > { %p138_p1 = scmp.lt.s32.totalorder %s744_s12, 3 }
   0x4   : > { %p139_p2 = pnand %p612_p0, %p138_p1 }
   0x5   : > { %v720_v0 = vld [vmem:[%s899_s1] sm:$0xff] (!%p139_p2)   ;;  %s613_s16 = sshll.u32 (!%p139_p2), %s608_s13, 5  ;;  %v721_v1 = vld [vmem:[%s899_s1 + $0x8] sm:$0xff] (!%p139_p2)   ;;  %vm310_vm0 = vcmask (!%p139_p2), 261120  }
   0x6   : > { %142 = sbr.rel (%p139_p2) target bundleno = 261 (0x105), region = 32  ;;  %p163_p3 = scmp.lt.s32.totalorder (!%p139_p2), %s613_s16, 63  ;;  %672 = vmatprep.subr.bf16.mxu0 (!%p139_p2), %v720_v0  ;;  %708 = vmatprep.subr.bf16.mxu1 (!%p139_p2), %v720_v0  ;;  %v824_v18 = vld [vmem:[%s900_s2] ss:$0 sm:$0xff] (!%p139_p2) }
   0x7   : > { %673 = vmatpush3.bf16.msra.mxu0 (!%p139_p2), %v720_v0  ;;  %710 = vmatpush3.bf16.msra.mxu1 (!%p139_p2), %v720_v0 }
   0x8   : > { %674 = vmatprep.subr.bf16.mxu0 (!%p139_p2), %v721_v1  ;;  %709 = vmatprep.subr.bf16.mxu1 (!%p139_p2), %v721_v1 }
   0xb   : > { %675 = vmatpush3.bf16.msra.mxu0 (!%p139_p2), %v721_v1  ;;  %711 = vmatpush3.bf16.msra.mxu1 (!%p139_p2), %v721_v1 }
   0xd   : > { %s903_s16 = smov (!%p163_p3, %s613_s16), 63 }
   0xe   : > { %s614_s19 = sshll.u32 %s903_s16, 2  ;;  %s616_s23 = sshll.u32 %s903_s16, 3 }
   0xf   : > { %s786_s22 = scalar_lea.vmem %s898_s0, %s614_s19  ;;  %s829_s28 = scalar_lea.vmem %s901_s3, %s616_s23 }
  0x10   : > { %v722_v2 = vld [vmem:[%s786_s22] sm:$0xff]   ;;  %v724_v4 = vld [vmem:[%s786_s22 + $0x8] sm:$0xff]   ;;  %v726_v6 = vld [vmem:[%s786_s22 + $0x10] sm:$0xff]  }
  0x11   : > { %v723_v3 = vld [vmem:[%s786_s22 + $0x40] sm:$0xff]   ;;  %676 = vmatprep.mubr.msk.bf16.mxu0 %vm310_vm0, %v722_v2  ;;  %v725_v5 = vld [vmem:[%s786_s22 + $0x48] sm:$0xff]   ;;  %v727_v7 = vld [vmem:[%s786_s22 + $0x50] sm:$0xff]  }
  0x12   : > { %692 = vmatprep.mubr.msk.bf16.mxu1 %vm310_vm0, %v723_v3  ;;  %677 = vmatmul.mubr.msk.bf16.vlgmr.msra.gmra.mrb[0].mxu0 %vm310_vm0, %v724_v4  ;;  %v728_v8 = vld [vmem:[%s786_s22 + $0x18] sm:$0xff]   ;;  %v730_v10 = vld [vmem:[%s786_s22 + $0x20] sm:$0xff]   ;;  %v732_v12 = vld [vmem:[%s786_s22 + $0x28] sm:$0xff]  }
  0x13   : > { %693 = vmatmul.mubr.msk.bf16.vlgmr.msra.gmra.mrb[0].mxu1 %vm310_vm0, %v725_v5  ;;  %680 = vmatprep.mubr.msk.bf16.mxu0 %vm310_vm0, %v726_v6  ;;  %v729_v9 = vld [vmem:[%s786_s22 + $0x58] sm:$0xff]   ;;  %v731_v11 = vld [vmem:[%s786_s22 + $0x60] sm:$0xff]   ;;  %v733_v13 = vld [vmem:[%s786_s22 + $0x68] sm:$0xff]  }
  0x14   : > { %696 = vmatprep.mubr.msk.bf16.mxu1 %vm310_vm0, %v727_v7  ;;  %v734_v14 = vld [vmem:[%s786_s22 + $0x30] sm:$0xff]   ;;  %v736_v16 = vld [vmem:[%s786_s22 + $0x38] sm:$0xff]  }
  0x15   : > { %v735_v15 = vld [vmem:[%s786_s22 + $0x70] sm:$0xff]   ;;  %v737_v17 = vld [vmem:[%s786_s22 + $0x78] sm:$0xff]  }
  0x1a   : > { %681 = vmatmul.mubr.msk.bf16.gmra.mrb[4].mxu0 %vm310_vm0, %v728_v8 }
  0x1b   : > { %697 = vmatmul.mubr.msk.bf16.gmra.mrb[4].mxu1 %vm310_vm0, %v729_v9  ;;  %684 = vmatprep.mubr.msk.bf16.mxu0 %vm310_vm0, %v730_v10 }
  0x1c   : > { %700 = vmatprep.mubr.msk.bf16.mxu1 %vm310_vm0, %v731_v11 }
  0x22   : > { %685 = vmatmul.mubr.msk.bf16.gmra.mrb[8].mxu0 %vm310_vm0, %v732_v12 }
  0x23   : > { %701 = vmatmul.mubr.msk.bf16.gmra.mrb[8].mxu1 %vm310_vm0, %v733_v13  ;;  %688 = vmatprep.mubr.msk.bf16.mxu0 %vm310_vm0, %v734_v14 }
  0x24   : > { %704 = vmatprep.mubr.msk.bf16.mxu1 %vm310_vm0, %v735_v15 }
  0x2a   : > { %689 = vmatmul.mubr.msk.bf16.gmra.mrb[12].mxu0 %vm310_vm0, %v736_v16 }
  0x2b   : > { %705 = vmatmul.mubr.msk.bf16.gmra.mrb[12].mxu1 %vm310_vm0, %v737_v17 }
  0xe5   : > { %v678_v19 = vpop.f32.mrb[0].mxu0 }
  0xe6   : > { %v402_v20 = vadd.f32 %v678_v19, %v824_v18  ;;  %v694_v21 = vpop.f32.mrb[0].mxu1  ;;  %v393_v22 = vpop.f32.mrb[1].mxu0 }
  0xe7   : > { %v466_v23 = vadd.f32 %v694_v21, %v824_v18  ;;  %v394_v24 = vadd.f32 %v824_v18, %v393_v22  ;;  %v457_v25 = vpop.f32.mrb[1].mxu1  ;;  %v679_v26 = vpop.f32.mrb[2].mxu0 }
  0xe8   : > { %522 = vst [vmem:[%s829_s28 + $0x10] sm:$0xff] %v402_v20  ;;  %v458_v27 = vadd.f32 %v824_v18, %v457_v25  ;;  %v405_v28 = vadd.f32 %v679_v26, %v824_v18  ;;  %v695_v29 = vpop.f32.mrb[2].mxu1  ;;  %v396_v30 = vpop.f32.mrb[3].mxu0 }
  0xe9   : > { %538 = vst [vmem:[%s829_s28 + $0x90] sm:$0xff] %v466_v23  ;;  %520 = vst [vmem:[%s829_s28] sm:$0xff] %v394_v24  ;;  %v469_v31 = vadd.f32 %v695_v29, %v824_v18  ;;  %v397_v32 = vadd.f32 %v824_v18, %v396_v30  ;;  %v460_v33 = vpop.f32.mrb[3].mxu1 }
  0xea   : > { %536 = vst [vmem:[%s829_s28 + $0x80] sm:$0xff] %v458_v27  ;;  %523 = vst [vmem:[%s829_s28 + $0x18] sm:$0xff] %v405_v28  ;;  %v461_v34 = vadd.f32 %v824_v18, %v460_v33 }
  0xeb   : > { %539 = vst [vmem:[%s829_s28 + $0x98] sm:$0xff] %v469_v31  ;;  %521 = vst [vmem:[%s829_s28 + $0x8] sm:$0xff] %v397_v32 }
  0xec   : > { %537 = vst [vmem:[%s829_s28 + $0x88] sm:$0xff] %v461_v34 }
  0xed   : > { %v682_v35 = vpop.f32.mrb[4].mxu0 }
  0xee   : > { %v418_v36 = vadd.f32 %v682_v35, %v824_v18  ;;  %v698_v37 = vpop.f32.mrb[4].mxu1  ;;  %v409_v38 = vpop.f32.mrb[5].mxu0 }
  0xef   : > { %v482_v39 = vadd.f32 %v698_v37, %v824_v18  ;;  %v410_v40 = vadd.f32 %v824_v18, %v409_v38  ;;  %v473_v41 = vpop.f32.mrb[5].mxu1  ;;  %v683_v42 = vpop.f32.mrb[6].mxu0 }
  0xf0   : > { %526 = vst [vmem:[%s829_s28 + $0x30] sm:$0xff] %v418_v36  ;;  %v474_v43 = vadd.f32 %v824_v18, %v473_v41  ;;  %v421_v44 = vadd.f32 %v683_v42, %v824_v18  ;;  %v699_v45 = vpop.f32.mrb[6].mxu1  ;;  %v412_v46 = vpop.f32.mrb[7].mxu0 }
  0xf1   : > { %542 = vst [vmem:[%s829_s28 + $0xb0] sm:$0xff] %v482_v39  ;;  %524 = vst [vmem:[%s829_s28 + $0x20] sm:$0xff] %v410_v40  ;;  %v485_v47 = vadd.f32 %v699_v45, %v824_v18  ;;  %v413_v48 = vadd.f32 %v824_v18, %v412_v46  ;;  %v476_v49 = vpop.f32.mrb[7].mxu1 }
  0xf2   : > { %540 = vst [vmem:[%s829_s28 + $0xa0] sm:$0xff] %v474_v43  ;;  %527 = vst [vmem:[%s829_s28 + $0x38] sm:$0xff] %v421_v44  ;;  %v477_v50 = vadd.f32 %v824_v18, %v476_v49 }
  0xf3   : > { %543 = vst [vmem:[%s829_s28 + $0xb8] sm:$0xff] %v485_v47  ;;  %525 = vst [vmem:[%s829_s28 + $0x28] sm:$0xff] %v413_v48 }
  0xf4   : > { %541 = vst [vmem:[%s829_s28 + $0xa8] sm:$0xff] %v477_v50 }
  0xf5   : > { %v686_v51 = vpop.f32.mrb[8].mxu0 }
  0xf6   : > { %v434_v52 = vadd.f32 %v686_v51, %v824_v18  ;;  %v702_v53 = vpop.f32.mrb[8].mxu1  ;;  %v425_v54 = vpop.f32.mrb[9].mxu0 }
  0xf7   : > { %v498_v55 = vadd.f32 %v702_v53, %v824_v18  ;;  %v426_v56 = vadd.f32 %v824_v18, %v425_v54  ;;  %v489_v57 = vpop.f32.mrb[9].mxu1  ;;  %v687_v58 = vpop.f32.mrb[10].mxu0 }
  0xf8   : > { %530 = vst [vmem:[%s829_s28 + $0x50] sm:$0xff] %v434_v52  ;;  %v490_v59 = vadd.f32 %v824_v18, %v489_v57  ;;  %v437_v60 = vadd.f32 %v687_v58, %v824_v18  ;;  %v703_v61 = vpop.f32.mrb[10].mxu1  ;;  %v428_v62 = vpop.f32.mrb[11].mxu0 }
  0xf9   : > { %546 = vst [vmem:[%s829_s28 + $0xd0] sm:$0xff] %v498_v55  ;;  %528 = vst [vmem:[%s829_s28 + $0x40] sm:$0xff] %v426_v56  ;;  %v501_v63 = vadd.f32 %v703_v61, %v824_v18  ;;  %v429_v0 = vadd.f32 %v824_v18, %v428_v62  ;;  %v492_v1 = vpop.f32.mrb[11].mxu1 }
  0xfa   : > { %544 = vst [vmem:[%s829_s28 + $0xc0] sm:$0xff] %v490_v59  ;;  %531 = vst [vmem:[%s829_s28 + $0x58] sm:$0xff] %v437_v60  ;;  %v493_v2 = vadd.f32 %v824_v18, %v492_v1 }
  0xfb   : > { %547 = vst [vmem:[%s829_s28 + $0xd8] sm:$0xff] %v501_v63  ;;  %529 = vst [vmem:[%s829_s28 + $0x48] sm:$0xff] %v429_v0 }
  0xfc   : > { %545 = vst [vmem:[%s829_s28 + $0xc8] sm:$0xff] %v493_v2 }
  0xfd   : > { %v690_v3 = vpop.f32.mrb[12].mxu0 }
  0xfe   : > { %v450_v4 = vadd.f32 %v690_v3, %v824_v18  ;;  %v706_v5 = vpop.f32.mrb[12].mxu1  ;;  %v441_v6 = vpop.f32.mrb[13].mxu0 }
  0xff   : > { %v514_v7 = vadd.f32 %v706_v5, %v824_v18  ;;  %v442_v8 = vadd.f32 %v824_v18, %v441_v6  ;;  %v505_v9 = vpop.f32.mrb[13].mxu1  ;;  %v691_v10 = vpop.f32.mrb[14].mxu0 }
 0x100   : > { %534 = vst [vmem:[%s829_s28 + $0x70] sm:$0xff] %v450_v4  ;;  %v506_v11 = vadd.f32 %v824_v18, %v505_v9  ;;  %v453_v12 = vadd.f32 %v691_v10, %v824_v18  ;;  %v707_v13 = vpop.f32.mrb[14].mxu1  ;;  %v444_v14 = vpop.f32.mrb[15].mxu0 }
 0x101   : > { %550 = vst [vmem:[%s829_s28 + $0xf0] sm:$0xff] %v514_v7  ;;  %532 = vst [vmem:[%s829_s28 + $0x60] sm:$0xff] %v442_v8  ;;  %v517_v15 = vadd.f32 %v707_v13, %v824_v18  ;;  %v445_v16 = vadd.f32 %v824_v18, %v444_v14  ;;  %v508_v17 = vpop.f32.mrb[15].mxu1 }
 0x102   : > { %548 = vst [vmem:[%s829_s28 + $0xe0] sm:$0xff] %v506_v11  ;;  %535 = vst [vmem:[%s829_s28 + $0x78] sm:$0xff] %v453_v12  ;;  %v509_v19 = vadd.f32 %v824_v18, %v508_v17 }
 0x103   : > { %551 = vst [vmem:[%s829_s28 + $0xf8] sm:$0xff] %v517_v15  ;;  %533 = vst [vmem:[%s829_s28 + $0x68] sm:$0xff] %v445_v16 }
 0x104   : > { %549 = vst [vmem:[%s829_s28 + $0xe8] sm:$0xff] %v509_v19 }
 0x105 PF: > { %s13_s12 = sadd.s32 1, %s744_s12  }
 0x106   : > { %p10_p4 = scmp.ge.s32.totalorder %s13_s12, 4  }
 0x108   :  { %12 = sbr.rel (!%p10_p4) target bundleno = 1 (0x1), region = 62 }

// kernel: deeplab_forward.24
= control target key start
LH: loop header
LB: loop body
LE: loop exit
PB: predicated region body
PF: predicated region fallthrough
CT: control target
= control target key end

     0   :  { %s3268_s12 = smov 0   ;;  %s3846_s0 = inlined_call_operand.vmem [shape: bf16[512,864], index: 0, kind: input, shape index: {}]   ;;  %s3847_s1 = inlined_call_operand.vmem [shape: bf16[864,128], index: 1, kind: input, shape index: {}]   ;;  %s3848_s2 = inlined_call_operand.vmem [shape: f32[1,128], index: 2, kind: input, shape index: {}]   ;;  %s3849_s3 = inlined_call_operand.vmem [shape: bf16[512,128], index: 3, kind: output, shape index: {}]  }
   0x1 LB: > { %s2246_s13 = sadd.s32 4294967295, %s3246_s12   ;;  %p2250_p0 = scmp.ge.s32.totalorder %s3246_s12, 1  ;;  %s3246_s12 = sphi %s3268_s12, %s13_s12  }
   0x2   : > { %p139_p1 = scmp.lt.s32.totalorder %s3246_s12, 3 }
   0x4   : > { %p140_p2 = pnand %p2250_p0, %p139_p1 }
   0x5   : > { %v3026_v0 = vld [vmem:[%s3847_s1 + $0x40] sm:$0xff] (!%p140_p2)   ;;  %s2251_s16 = sshll.u32 (!%p140_p2), %s2246_s13, 5  ;;  %v3028_v2 = vld [vmem:[%s3847_s1 + $0x48] sm:$0xff] (!%p140_p2)   ;;  %v3030_v4 = vld [vmem:[%s3847_s1 + $0x50] sm:$0xff] (!%p140_p2)   ;;  %vm1305_vm0 = vcmask (!%p140_p2), 785408  }
   0x6   : > { %143 = sbr.rel (%p140_p2) target bundleno = 480 (0x1e0), region = 32  ;;  %v3027_v1 = vld [vmem:[%s3847_s1] sm:$0xff] (!%p140_p2)   ;;  %2599 = vmatprep.subr.bf16.mxu0 (!%p140_p2), %v3026_v0  ;;  %3001 = vmatprep.subr.bf16.mxu1 (!%p140_p2), %v3026_v0  ;;  %p165_p3 = scmp.lt.s32.totalorder (!%p140_p2), %s2251_s16, 63  ;;  %v3029_v3 = vld [vmem:[%s3847_s1 + $0x8] sm:$0xff] (!%p140_p2)   ;;  %v3031_v5 = vld [vmem:[%s3847_s1 + $0x10] sm:$0xff] (!%p140_p2)  }
   0x7   : > { %2600 = vmatpush3.bf16.msra.mxu0 (!%p140_p2), %v3027_v1  ;;  %3009 = vmatpush3.bf16.msra.mxu1 (!%p140_p2), %v3027_v1  ;;  %v3032_v6 = vld [vmem:[%s3847_s1 + $0x58] sm:$0xff] (!%p140_p2)   ;;  %v3034_v8 = vld [vmem:[%s3847_s1 + $0x60] sm:$0xff] (!%p140_p2)   ;;  %v3036_v10 = vld [vmem:[%s3847_s1 + $0x68] sm:$0xff] (!%p140_p2)  }
   0x8   : > { %2601 = vmatprep.subr.bf16.mxu0 (!%p140_p2), %v3028_v2  ;;  %3002 = vmatprep.subr.bf16.mxu1 (!%p140_p2), %v3028_v2  ;;  %v3033_v7 = vld [vmem:[%s3847_s1 + $0x18] sm:$0xff] (!%p140_p2)   ;;  %v3035_v9 = vld [vmem:[%s3847_s1 + $0x20] sm:$0xff] (!%p140_p2)   ;;  %v3037_v13 = vld [vmem:[%s3847_s1 + $0x28] sm:$0xff] (!%p140_p2)  }
   0x9   : > { %v3038_v14 = vld [vmem:[%s3847_s1 + $0x70] sm:$0xff] (!%p140_p2)   ;;  %v3040_v16 = vld [vmem:[%s3847_s1 + $0x78] sm:$0xff] (!%p140_p2)   ;;  %v3048_v18 = vld [vmem:[%s3847_s1 + $0xc0] sm:$0xff] (!%p140_p2)  }
   0xa   : > { %v3039_v15 = vld [vmem:[%s3847_s1 + $0x30] sm:$0xff] (!%p140_p2)   ;;  %v3041_v17 = vld [vmem:[%s3847_s1 + $0x38] sm:$0xff] (!%p140_p2)   ;;  %v3049_v21 = vld [vmem:[%s3847_s1 + $0x140] sm:$0xff] (!%p140_p2)  }
   0xb   : > { %2602 = vmatpush3.bf16.msra.mxu0 (!%p140_p2), %v3029_v3  ;;  %3010 = vmatpush3.bf16.msra.mxu1 (!%p140_p2), %v3029_v3  ;;  %v3050_v22 = vld [vmem:[%s3847_s1 + $0x80] sm:$0xff] (!%p140_p2)   ;;  %v3052_v24 = vld [vmem:[%s3847_s1 + $0xc8] sm:$0xff] (!%p140_p2)   ;;  %v3060_v32 = vld [vmem:[%s3847_s1 + $0xd0] sm:$0xff] (!%p140_p2)  }
   0xc   : > { %2603 = vmatprep.subr.bf16.mxu0 (!%p140_p2), %v3030_v4  ;;  %3003 = vmatprep.subr.bf16.mxu1 (!%p140_p2), %v3030_v4  ;;  %v3051_v23 = vld [vmem:[%s3847_s1 + $0x100] sm:$0xff] (!%p140_p2)   ;;  %v3063_v27 = vld [vmem:[%s3847_s1 + $0x148] sm:$0xff] (!%p140_p2)   ;;  %v3061_v33 = vld [vmem:[%s3847_s1 + $0x90] sm:$0xff] (!%p140_p2)  }
   0xd   : > { %s3851_s16 = smov (!%p165_p3, %s2251_s16), 63  ;;  %v3053_v28 = vld [vmem:[%s3847_s1 + $0x88] sm:$0xff]   ;;  %v3062_v34 = vld [vmem:[%s3847_s1 + $0xd8] sm:$0xff]   ;;  %v3072_v38 = vld [vmem:[%s3847_s1 + $0xe0] sm:$0xff]  }
   0xe   : > { %s3017_s29 = smul.u32 28, %s3851_s16  ;;  %v3065_v29 = vld [vmem:[%s3847_s1 + $0x108] sm:$0xff]   ;;  %v3064_v37 = vld [vmem:[%s3847_s1 + $0x98] sm:$0xff]   ;;  %v3083_v41 = vld [vmem:[%s3847_s1 + $0x150] sm:$0xff]   ;;  %s2254_s4 = sshll.u32 %s3851_s16, 2 }
   0xf   : > { %2604 = vmatpush3.bf16.msra.mxu0 %v3031_v5  ;;  %3011 = vmatpush3.bf16.msra.mxu1 %v3031_v5  ;;  %v3073_v42 = vld [vmem:[%s3847_s1 + $0xa0] sm:$0xff]   ;;  %v3074_v43 = vld [vmem:[%s3847_s1 + $0xe8] sm:$0xff]   ;;  %v3085_v44 = vld [vmem:[%s3847_s1 + $0x110] sm:$0xff]   ;;  %s3788_s7 = scalar_lea.vmem %s3849_s3, %s2254_s4 }
  0x10   : > { %2605 = vmatprep.subr.bf16.mxu0 %v3032_v6  ;;  %3004 = vmatprep.subr.bf16.mxu1 %v3032_v6  ;;  %s3309_s9 = scalar_lea.vmem %s3846_s0, %s3017_s29  ;;  %v3075_v47 = vld [vmem:[%s3847_s1 + $0xa8] sm:$0xff]   ;;  %v3082_v48 = vld [vmem:[%s3847_s1 + $0xf0] sm:$0xff]   ;;  %v3094_v51 = vld [vmem:[%s3847_s1 + $0x158] sm:$0xff]  }
  0x11   : > { %v3044_v11 = vld [vmem:[%s3309_s9 + $0x4] ss:$28 sps:$4 sm:$0xff]   ;;  %v3054_v25 = vld [vmem:[%s3309_s9 + $0x3c] ss:$28 sps:$4 sm:$0xff]   ;;  %v3066_v35 = vld [vmem:[%s3309_s9 + $0x74] ss:$28 sps:$4 sm:$0xff]  }
  0x12   : > { %v3047_v12 = vld [vmem:[%s3309_s9 + $0x2a4] ss:$28 sps:$4 sm:$0xff]   ;;  %1386 = vmatprep.mubr.bf16.mxu0 %v3044_v11  ;;  %v3056_v26 = vld [vmem:[%s3309_s9 + $0x2dc] ss:$28 sps:$4 sm:$0xff]   ;;  %v3068_v36 = vld [vmem:[%s3309_s9 + $0x314] ss:$28 sps:$4 sm:$0xff]  }
  0x13   : > { %2606 = vmatpush3.bf16.msra.mxu0 %v3033_v7  ;;  %3012 = vmatpush3.bf16.msra.mxu1 %v3033_v7  ;;  %v3042_v19 = vld [vmem:[%s3309_s9] ss:$28 sps:$4 sm:$0xff]   ;;  %v3058_v30 = vld [vmem:[%s3309_s9 + $0x38] ss:$28 sps:$4 sm:$0xff]   ;;  %v3070_v39 = vld [vmem:[%s3309_s9 + $0x70] ss:$28 sps:$4 sm:$0xff]  }
  0x14   : > { %2607 = vmatprep.subr.bf16.mxu0 %v3034_v8  ;;  %3005 = vmatprep.subr.bf16.mxu1 %v3034_v8  ;;  %v3045_v20 = vld [vmem:[%s3309_s9 + $0x2a0] ss:$28 sps:$4 sm:$0xff]   ;;  %v3059_v31 = vld [vmem:[%s3309_s9 + $0x2d8] ss:$28 sps:$4 sm:$0xff]   ;;  %v3071_v40 = vld [vmem:[%s3309_s9 + $0x310] ss:$28 sps:$4 sm:$0xff]  }
  0x15   : > { %1482 = vmatprep.mubr.bf16.mxu1 %v3047_v12  ;;  %v3076_v45 = vld [vmem:[%s3309_s9 + $0xac] ss:$28 sps:$4 sm:$0xff]   ;;  %v3084_v52 = vld [vmem:[%s3847_s1 + $0xb0] sm:$0xff]   ;;  %v3096_v53 = vld [vmem:[%s3847_s1 + $0x118] sm:$0xff]  }
  0x16   : > { %v3078_v46 = vld [vmem:[%s3309_s9 + $0x34c] ss:$28 sps:$4 sm:$0xff]   ;;  %v3088_v54 = vld [vmem:[%s3309_s9 + $0xe4] ss:$28 sps:$4 sm:$0xff]   ;;  %v3086_v55 = vld [vmem:[%s3847_s1 + $0xf8] sm:$0xff]  }
  0x17   : > { %2608 = vmatpush3.bf16.msra.mxu0 %v3035_v9  ;;  %3013 = vmatpush3.bf16.msra.mxu1 %v3035_v9  ;;  %v3080_v49 = vld [vmem:[%s3309_s9 + $0xa8] ss:$28 sps:$4 sm:$0xff]   ;;  %v3087_v57 = vld [vmem:[%s3847_s1 + $0xb8] sm:$0xff]   ;;  %v3103_v6 = vld [vmem:[%s3309_s9 + $0x154] ss:$28 sps:$4 sm:$0xff]  }
  0x18   : > { %2609 = vmatprep.subr.bf16.mxu0 %v3036_v10  ;;  %3006 = vmatprep.subr.bf16.mxu1 %v3036_v10  ;;  %v3081_v50 = vld [vmem:[%s3309_s9 + $0x348] ss:$28 sps:$4 sm:$0xff]   ;;  %v3093_v62 = vld [vmem:[%s3309_s9 + $0xe0] ss:$28 sps:$4 sm:$0xff]   ;;  %v3101_v4 = vld [vmem:[%s3309_s9 + $0x118] ss:$28 sps:$4 sm:$0xff]  }
  0x19   : > { %v3092_v56 = vld [vmem:[%s3309_s9 + $0xc] ss:$28 sps:$4 sm:$0xff]   ;;  %v3095_v58 = vld [vmem:[%s3847_s1 + $0x180] sm:$0xff]   ;;  %v3097_v63 = vld [vmem:[%s3309_s9 + $0x11c] ss:$28 sps:$4 sm:$0xff]  }
  0x1a   : > { %v3090_v59 = vld [vmem:[%s3309_s9 + $0x8] ss:$28 sps:$4 sm:$0xff]   ;;  %v3102_v5 = vld [vmem:[%s3309_s9 + $0x40] ss:$28 sps:$4 sm:$0xff]   ;;  %v3132_v8 = vld [vmem:[%s3847_s1 + $0x170] sm:$0xff]  }
  0x1b   : > { %2610 = vmatpush3.bf16.msra.mxu0 %v3037_v13  ;;  %3014 = vmatpush3.bf16.msra.mxu1 %v3037_v13  ;;  %v3109_v60 = vld [vmem:[%s3847_s1 + $0x160] sm:$0xff]   ;;  %v3117_v1 = vld [vmem:[%s3847_s1 + $0x188] sm:$0xff]   ;;  %v3105_v7 = vld [vmem:[%s3309_s9 + $0x7c] ss:$28 sps:$4 sm:$0xff]  }
  0x1c   : > { %2611 = vmatprep.subr.bf16.mxu0 %v3038_v14  ;;  %3007 = vmatprep.subr.bf16.mxu1 %v3038_v14  ;;  %v3110_v61 = vld [vmem:[%s3847_s1 + $0x120] sm:$0xff]   ;;  %v3118_v2 = vld [vmem:[%s3847_s1 + $0x168] sm:$0xff]   ;;  %v3133_v9 = vld [vmem:[%s3847_s1 + $0x130] sm:$0xff]  }
  0x1d   : > { %v3099_v0 = vld [vmem:[%s3309_s9 + $0x44] ss:$28 sps:$4 sm:$0xff]   ;;  %v3119_v3 = vld [vmem:[%s3847_s1 + $0x128] sm:$0xff]   ;;  %v3108_v11 = vld [vmem:[%s3309_s9 + $0x78] ss:$28 sps:$4 sm:$0xff]  }
  0x1e   : > { %v3107_v10 = vld [vmem:[%s3309_s9 + $0x150] ss:$28 sps:$4 sm:$0xff]  }
  0x1f   : > { %2612 = vmatpush3.bf16.msra.mxu0 %v3039_v15  ;;  %3015 = vmatpush3.bf16.msra.mxu1 %v3039_v15  ;;  %v3111_v12 = vld [vmem:[%s3309_s9 + $0x18c] ss:$28 sps:$4 sm:$0xff]   ;;  %v3138_v13 = vld [vmem:[%s3847_s1 + $0x190] sm:$0xff]   ;;  %v3141_v15 = vld [vmem:[%s3847_s1 + $0x178] sm:$0xff]  }
  0x20   : > { %2613 = vmatprep.subr.bf16.mxu0 %v3040_v16  ;;  %3008 = vmatprep.subr.bf16.mxu1 %v3040_v16  ;;  %v3113_v14 = vld [vmem:[%s3309_s9 + $0xb4] ss:$28 sps:$4 sm:$0xff]   ;;  %v3142_v16 = vld [vmem:[%s3847_s1 + $0x138] sm:$0xff]  }
  0x23   : > { %2614 = vmatpush3.bf16.msra.mxu0 %v3041_v17  ;;  %3016 = vmatpush3.bf16.msra.mxu1 %v3041_v17  ;;  %v3115_v17 = vld [vmem:[%s3309_s9 + $0x188] ss:$28 sps:$4 sm:$0xff]  }
  0x24   : > { %2711 = vmatprep.subr.bf16.mxu1 %v3048_v18  ;;  %2823 = vmatprep.subr.bf16.mxu0 %v3049_v21  ;;  %v3116_v18 = vld [vmem:[%s3309_s9 + $0xb0] ss:$28 sps:$4 sm:$0xff]  }
  0x25   : > { %v3122_v21 = vld [vmem:[%s3309_s9 + $0xec] ss:$28 sps:$4 sm:$0xff]  }
  0x26   : > { %1387 = vmatmul.mubr.bf16.vlgmr.msra.gmra.mrb[0].mxu0 %v3042_v19  ;;  %1483 = vmatmul.mubr.bf16.vlgmr.msra.gmra.mrb[0].mxu1 %v3045_v20  ;;  %v3120_v19 = vld [vmem:[%s3309_s9 + $0x1c4] ss:$28 sps:$4 sm:$0xff]   ;;  %v3155_v20 = vld [vmem:[%s3847_s1 + $0x198] sm:$0xff]  }
  0x27   : > { %2712 = vmatpush3.bf16.msra.mxu1 %v3050_v22  ;;  %2824 = vmatpush3.bf16.msra.mxu0 %v3051_v23  ;;  %v3124_v22 = vld [vmem:[%s3309_s9 + $0x1c0] ss:$28 sps:$4 sm:$0xff]   ;;  %v3125_v23 = vld [vmem:[%s3309_s9 + $0xe8] ss:$28 sps:$4 sm:$0xff]  }
  0x28   : > { %2713 = vmatprep.subr.bf16.mxu1 %v3052_v24  ;;  %1394 = vmatprep.mubr.bf16.mxu0 %v3054_v25  ;;  %v3126_v24 = vld [vmem:[%s3309_s9 + $0x1fc] ss:$28 sps:$4 sm:$0xff]   ;;  %v3128_v25 = vld [vmem:[%s3309_s9 + $0x124] ss:$28 sps:$4 sm:$0xff]  }
  0x29   : > { %1490 = vmatprep.mubr.bf16.mxu1 %v3056_v26  ;;  %2825 = vmatprep.subr.bf16.mxu0 %v3063_v27  ;;  %v3174_v26 = vld [vmem:[%s3847_s1 + $0x1a0] sm:$0xff]   ;;  %v3130_v27 = vld [vmem:[%s3309_s9 + $0x1f8] ss:$28 sps:$4 sm:$0xff]  }
  0x2b   : > { %2714 = vmatpush3.bf16.msra.mxu1 %v3053_v28  ;;  %2826 = vmatpush3.bf16.msra.mxu0 %v3065_v29  ;;  %v3131_v28 = vld [vmem:[%s3309_s9 + $0x120] ss:$28 sps:$4 sm:$0xff]   ;;  %v3134_v29 = vld [vmem:[%s3309_s9 + $0x234] ss:$28 sps:$4 sm:$0xff]  }
  0x2c   : > { %2715 = vmatprep.subr.bf16.mxu1 %v3060_v32  ;;  %2827 = vmatprep.subr.bf16.mxu0 %v3083_v41  ;;  %v3139_v32 = vld [vmem:[%s3309_s9 + $0x230] ss:$28 sps:$4 sm:$0xff]   ;;  %v3154_v41 = vld [vmem:[%s3309_s9 + $0x1c8] ss:$28 sps:$4 sm:$0xff]  }
  0x2e   : > { %1395 = vmatmul.mubr.bf16.gmra.mrb[4].mxu0 %v3058_v30  ;;  %1491 = vmatmul.mubr.bf16.gmra.mrb[4].mxu1 %v3059_v31  ;;  %v3136_v30 = vld [vmem:[%s3309_s9 + $0x15c] ss:$28 sps:$4 sm:$0xff]   ;;  %v3191_v31 = vld [vmem:[%s3847_s1 + $0x1a8] sm:$0xff]  }
  0x2f   : > { %2716 = vmatpush3.bf16.msra.mxu1 %v3061_v33  ;;  %1402 = vmatprep.mubr.bf16.mxu0 %v3066_v35  ;;  %v3140_v33 = vld [vmem:[%s3309_s9 + $0x158] ss:$28 sps:$4 sm:$0xff]  }
  0x30   : > { %2717 = vmatprep.subr.bf16.mxu1 %v3062_v34  ;;  %1498 = vmatprep.mubr.bf16.mxu1 %v3068_v36  ;;  %v3143_v34 = vld [vmem:[%s3309_s9 + $0x26c] ss:$28 sps:$4 sm:$0xff]   ;;  %v3145_v35 = vld [vmem:[%s3309_s9 + $0x194] ss:$28 sps:$4 sm:$0xff]  }
  0x31   : > { %2828 = vmatpush3.bf16.msra.mxu0 %v3085_v44  ;;  %v3147_v36 = vld [vmem:[%s3309_s9 + $0x268] ss:$28 sps:$4 sm:$0xff]   ;;  %v3160_v44 = vld [vmem:[%s3309_s9 + $0x200] ss:$28 sps:$4 sm:$0xff]  }
  0x32   : > { %2829 = vmatprep.subr.bf16.mxu0 %v3094_v51  ;;  %v3170_v51 = vld [vmem:[%s3309_s9 + $0xbc] ss:$28 sps:$4 sm:$0xff]  }
  0x33   : > { %2718 = vmatpush3.bf16.msra.mxu1 %v3064_v37  ;;  %v3148_v37 = vld [vmem:[%s3309_s9 + $0x190] ss:$28 sps:$4 sm:$0xff]  }
  0x34   : > { %2719 = vmatprep.subr.bf16.mxu1 %v3072_v38  ;;  %v3149_v38 = vld [vmem:[%s3309_s9 + $0x1cc] ss:$28 sps:$4 sm:$0xff]  }
  0x35   : > { %2830 = vmatpush3.bf16.msra.mxu0 %v3096_v53  ;;  %v3173_v53 = vld [vmem:[%s3309_s9 + $0xb8] ss:$28 sps:$4 sm:$0xff]  }
  0x36   : > { %1403 = vmatmul.mubr.bf16.gmra.mrb[8].mxu0 %v3070_v39  ;;  %1499 = vmatmul.mubr.bf16.gmra.mrb[8].mxu1 %v3071_v40  ;;  %v3153_v39 = vld [vmem:[%s3309_s9 + $0x14] ss:$28 sps:$4 sm:$0xff]  }
  0x37   : > { %2720 = vmatpush3.bf16.msra.mxu1 %v3073_v42  ;;  %1410 = vmatprep.mubr.bf16.mxu0 %v3076_v45  ;;  %v3151_v40 = vld [vmem:[%s3309_s9 + $0x10] ss:$28 sps:$4 sm:$0xff]   ;;  %v3156_v42 = vld [vmem:[%s3309_s9 + $0x204] ss:$28 sps:$4 sm:$0xff]  }
  0x38   : > { %2721 = vmatprep.subr.bf16.mxu1 %v3074_v43  ;;  %1506 = vmatprep.mubr.bf16.mxu1 %v3078_v46  ;;  %v3158_v43 = vld [vmem:[%s3309_s9 + $0x4c] ss:$28 sps:$4 sm:$0xff]   ;;  %v3162_v46 = vld [vmem:[%s3309_s9 + $0x23c] ss:$28 sps:$4 sm:$0xff]  }
  0x39   : > { %2831 = vmatprep.subr.bf16.mxu0 %v3109_v60  ;;  %v3161_v45 = vld [vmem:[%s3309_s9 + $0x48] ss:$28 sps:$4 sm:$0xff]   ;;  %v3185_v60 = vld [vmem:[%s3309_s9 + $0x2e0] ss:$28 sps:$4 sm:$0xff]  }
  0x3a   : > { %2832 = vmatpush3.bf16.msra.mxu0 %v3110_v61  ;;  %v3186_v61 = vld [vmem:[%s3309_s9 + $0x128] ss:$28 sps:$4 sm:$0xff]  }
  0x3b   : > { %2722 = vmatpush3.bf16.msra.mxu1 %v3075_v47  ;;  %2833 = vmatprep.subr.bf16.mxu0 %v3118_v2  ;;  %v3164_v47 = vld [vmem:[%s3309_s9 + $0x84] ss:$28 sps:$4 sm:$0xff]   ;;  %v3194_v2 = vld [vmem:[%s3309_s9 + $0x354] ss:$28 sps:$4 sm:$0xff]  }
  0x3c   : > { %2723 = vmatprep.subr.bf16.mxu1 %v3082_v48  ;;  %v3166_v48 = vld [vmem:[%s3309_s9 + $0x238] ss:$28 sps:$4 sm:$0xff]  }
  0x3e   : > { %1411 = vmatmul.mubr.bf16.gmra.mrb[12].mxu0 %v3080_v49  ;;  %1507 = vmatmul.mubr.bf16.gmra.mrb[12].mxu1 %v3081_v50  ;;  %v3167_v49 = vld [vmem:[%s3309_s9 + $0x80] ss:$28 sps:$4 sm:$0xff]   ;;  %v3168_v50 = vld [vmem:[%s3309_s9 + $0x274] ss:$28 sps:$4 sm:$0xff]  }
  0x3f   : > { %2724 = vmatpush3.bf16.msra.mxu1 %v3084_v52  ;;  %1418 = vmatprep.mubr.bf16.mxu0 %v3088_v54  ;;  %v3172_v52 = vld [vmem:[%s3309_s9 + $0x270] ss:$28 sps:$4 sm:$0xff]  }
  0x40   : > { %2725 = vmatprep.subr.bf16.mxu1 %v3086_v55  ;;  %1547 = vmatprep.mubr.bf16.mxu1 %v3092_v56  ;;  %v3175_v54 = vld [vmem:[%s3309_s9 + $0x2ac] ss:$28 sps:$4 sm:$0xff]   ;;  %v3177_v55 = vld [vmem:[%s3309_s9 + $0xf4] ss:$28 sps:$4 sm:$0xff]  }
  0x41   : > { %2834 = vmatpush3.bf16.msra.mxu0 %v3119_v3  ;;  %v3179_v56 = vld [vmem:[%s3309_s9 + $0x2a8] ss:$28 sps:$4 sm:$0xff]   ;;  %v3196_v3 = vld [vmem:[%s3309_s9 + $0x19c] ss:$28 sps:$4 sm:$0xff]  }
  0x42   : > { %2835 = vmatprep.subr.bf16.mxu0 %v3132_v8  ;;  %v3203_v8 = vld [vmem:[%s3309_s9 + $0x1d0] ss:$28 sps:$4 sm:$0xff]  }
  0x43   : > { %2726 = vmatpush3.bf16.msra.mxu1 %v3087_v57  ;;  %v3180_v57 = vld [vmem:[%s3309_s9 + $0xf0] ss:$28 sps:$4 sm:$0xff]  }
  0x44   : > { %2957 = vmatprep.subr.bf16.mxu1 %v3095_v58 }
  0x45   : > { %2836 = vmatpush3.bf16.msra.mxu0 %v3133_v9  ;;  %v3204_v9 = vld [vmem:[%s3309_s9 + $0x50] ss:$28 sps:$4 sm:$0xff]  }
  0x46   : > { %1419 = vmatmul.mubr.bf16.gmra.mrb[16].mxu0 %v3093_v62  ;;  %1548 = vmatmul.mubr.bf16.vlgmr.msra.gmra.mrb[16].mxu1 %v3090_v59  ;;  %v3183_v59 = vld [vmem:[%s3309_s9 + $0x12c] ss:$28 sps:$4 sm:$0xff]   ;;  %v3187_v62 = vld [vmem:[%s3309_s9 + $0x31c] ss:$28 sps:$4 sm:$0xff]  }
  0x47   : > { %2958 = vmatpush3.bf16.msra.mxu1 %v3095_v58  ;;  %1426 = vmatprep.mubr.bf16.mxu0 %v3097_v63  ;;  %v3181_v58 = vld [vmem:[%s3309_s9 + $0x2e4] ss:$28 sps:$4 sm:$0xff]  }
  0x48   : > { %1555 = vmatprep.mubr.bf16.mxu1 %v3099_v0  ;;  %2959 = vmatprep.subr.bf16.mxu1 %v3117_v1  ;;  %v3189_v63 = vld [vmem:[%s3309_s9 + $0x164] ss:$28 sps:$4 sm:$0xff]   ;;  %v3192_v0 = vld [vmem:[%s3309_s9 + $0x318] ss:$28 sps:$4 sm:$0xff]  }
  0x49   : > { %2837 = vmatprep.subr.bf16.mxu0 %v3141_v15  ;;  %v3212_v15 = vld [vmem:[%s3309_s9 + $0xf8] ss:$28 sps:$4 sm:$0xff]  }
  0x4a   : > { %2838 = vmatpush3.bf16.msra.mxu0 %v3142_v16  ;;  %v3213_v16 = vld [vmem:[%s3309_s9 + $0x240] ss:$28 sps:$4 sm:$0xff]  }
  0x4b   : > { %2960 = vmatpush3.bf16.msra.mxu1 %v3117_v1  ;;  %v3193_v1 = vld [vmem:[%s3309_s9 + $0x160] ss:$28 sps:$4 sm:$0xff]  }
  0x4c   : > { %2961 = vmatprep.subr.bf16.mxu1 %v3138_v13 }
  0x4e   : > { %1427 = vmatmul.mubr.bf16.gmra.mrb[20].mxu0 %v3101_v4  ;;  %1556 = vmatmul.mubr.bf16.gmra.mrb[20].mxu1 %v3102_v5  ;;  %v3198_v4 = vld [vmem:[%s3309_s9 + $0x350] ss:$28 sps:$4 sm:$0xff]   ;;  %v3199_v5 = vld [vmem:[%s3309_s9 + $0x198] ss:$28 sps:$4 sm:$0xff]  }
  0x4f   : > { %1434 = vmatprep.mubr.bf16.mxu0 %v3103_v6  ;;  %1563 = vmatprep.mubr.bf16.mxu1 %v3105_v7  ;;  %v3200_v6 = vld [vmem:[%s3309_s9 + $0x1d4] ss:$28 sps:$4 sm:$0xff]  }
  0x50   : > { %2962 = vmatpush3.bf16.msra.mxu1 %v3138_v13  ;;  %v3202_v7 = vld [vmem:[%s3309_s9 + $0x18] ss:$28 sps:$4 sm:$0xff]   ;;  %v3209_v13 = vld [vmem:[%s3309_s9 + $0xc0] ss:$28 sps:$4 sm:$0xff]  }
  0x51   : > { %2963 = vmatprep.subr.bf16.mxu1 %v3155_v20 }
  0x54   : > { %2964 = vmatpush3.bf16.msra.mxu1 %v3155_v20  ;;  %v3218_v20 = vld [vmem:[%s3309_s9 + $0x278] ss:$28 sps:$4 sm:$0xff]  }
  0x55   : > { %2965 = vmatprep.subr.bf16.mxu1 %v3174_v26 }
  0x56   : > { %1435 = vmatmul.mubr.bf16.gmra.mrb[24].mxu0 %v3107_v10  ;;  %1564 = vmatmul.mubr.bf16.gmra.mrb[24].mxu1 %v3108_v11  ;;  %v3205_v10 = vld [vmem:[%s3309_s9 + $0x20c] ss:$28 sps:$4 sm:$0xff]  }
  0x57   : > { %1442 = vmatprep.mubr.bf16.mxu0 %v3111_v12  ;;  %1571 = vmatprep.mubr.bf16.mxu1 %v3113_v14  ;;  %v3207_v11 = vld [vmem:[%s3309_s9 + $0x88] ss:$28 sps:$4 sm:$0xff]  }
  0x58   : > { %2966 = vmatpush3.bf16.msra.mxu1 %v3174_v26  ;;  %v3208_v12 = vld [vmem:[%s3309_s9 + $0x208] ss:$28 sps:$4 sm:$0xff]  }
  0x59   : > { %2967 = vmatprep.subr.bf16.mxu1 %v3191_v31  ;;  %v3210_v14 = vld [vmem:[%s3309_s9 + $0x244] ss:$28 sps:$4 sm:$0xff]   ;;  %v3225_v26 = vld [vmem:[%s3309_s9 + $0x2ec] ss:$28 sps:$4 sm:$0xff]  }
  0x5c   : > { %2968 = vmatpush3.bf16.msra.mxu1 %v3191_v31  ;;  %v3232_v31 = vld [vmem:[%s3309_s9 + $0x2b8] ss:$28 sps:$4 sm:$0xff]  }
  0x5e   : > { %1443 = vmatmul.mubr.bf16.gmra.mrb[28].mxu0 %v3115_v17  ;;  %1572 = vmatmul.mubr.bf16.gmra.mrb[28].mxu1 %v3116_v18  ;;  %v3214_v17 = vld [vmem:[%s3309_s9 + $0x130] ss:$28 sps:$4 sm:$0xff]   ;;  %v3215_v18 = vld [vmem:[%s3309_s9 + $0x27c] ss:$28 sps:$4 sm:$0xff]  }
  0x5f   : > { %1450 = vmatprep.mubr.bf16.mxu0 %v3120_v19  ;;  %1579 = vmatprep.mubr.bf16.mxu1 %v3122_v21  ;;  %v3217_v19 = vld [vmem:[%s3309_s9 + $0x168] ss:$28 sps:$4 sm:$0xff]   ;;  %v3219_v21 = vld [vmem:[%s3309_s9 + $0x1a0] ss:$28 sps:$4 sm:$0xff]  }
  0x66   : > { %1451 = vmatmul.mubr.bf16.gmra.mrb[32].mxu0 %v3124_v22  ;;  %1580 = vmatmul.mubr.bf16.gmra.mrb[32].mxu1 %v3125_v23  ;;  %v3220_v22 = vld [vmem:[%s3309_s9 + $0x2b4] ss:$28 sps:$4 sm:$0xff]  }
  0x67   : > { %1458 = vmatprep.mubr.bf16.mxu0 %v3126_v24  ;;  %1587 = vmatprep.mubr.bf16.mxu1 %v3128_v25  ;;  %v3222_v23 = vld [vmem:[%s3309_s9 + $0x1d8] ss:$28 sps:$4 sm:$0xff]   ;;  %v3223_v24 = vld [vmem:[%s3309_s9 + $0x2b0] ss:$28 sps:$4 sm:$0xff]  }
  0x68   : > { %v3224_v25 = vld [vmem:[%s3309_s9 + $0x210] ss:$28 sps:$4 sm:$0xff]  }
  0x6e   : > { %1459 = vmatmul.mubr.bf16.gmra.mrb[36].mxu0 %v3130_v27  ;;  %1588 = vmatmul.mubr.bf16.gmra.mrb[36].mxu1 %v3131_v28  ;;  %v3227_v27 = vld [vmem:[%s3309_s9 + $0x248] ss:$28 sps:$4 sm:$0xff]  }
  0x6f   : > { %1466 = vmatprep.mubr.bf16.mxu0 %v3134_v29  ;;  %1595 = vmatprep.mubr.bf16.mxu1 %v3136_v30  ;;  %v3228_v28 = vld [vmem:[%s3309_s9 + $0x2e8] ss:$28 sps:$4 sm:$0xff]   ;;  %v3229_v29 = vld [vmem:[%s3309_s9 + $0x280] ss:$28 sps:$4 sm:$0xff]  }
  0x70   : > { %v3230_v30 = vld [vmem:[%s3309_s9 + $0x324] ss:$28 sps:$4 sm:$0xff]  }
  0x76   : > { %1467 = vmatmul.mubr.bf16.gmra.mrb[40].mxu0 %v3139_v32  ;;  %1596 = vmatmul.mubr.bf16.gmra.mrb[40].mxu1 %v3140_v33  ;;  %v3233_v32 = vld [vmem:[%s3309_s9 + $0x320] ss:$28 sps:$4 sm:$0xff]   ;;  %v3234_v33 = vld [vmem:[%s3309_s9 + $0x2f0] ss:$28 sps:$4 sm:$0xff]  }
  0x77   : > { %1474 = vmatprep.mubr.bf16.mxu0 %v3143_v34  ;;  %1603 = vmatprep.mubr.bf16.mxu1 %v3145_v35  ;;  %v3235_v34 = vld [vmem:[%s3309_s9 + $0x35c] ss:$28 sps:$4 sm:$0xff]   ;;  %v3237_v35 = vld [vmem:[%s3309_s9 + $0x328] ss:$28 sps:$4 sm:$0xff]  }
  0x7e   : > { %1475 = vmatmul.mubr.bf16.gmra.mrb[44].mxu0 %v3147_v36  ;;  %1604 = vmatmul.mubr.bf16.gmra.mrb[44].mxu1 %v3148_v37 }
  0x7f   : > { %1611 = vmatprep.mubr.bf16.mxu1 %v3149_v38  ;;  %1708 = vmatprep.mubr.bf16.mxu0 %v3153_v39 }
  0x86   : > { %1612 = vmatmul.mubr.bf16.gmra.mrb[48].mxu1 %v3154_v41  ;;  %1709 = vmatmul.mubr.bf16.vlgmr.msra.gmra.mrb[48].mxu0 %v3151_v40  ;;  %v3238_v40 = vld [vmem:[%s3309_s9 + $0x358] ss:$28 sps:$4 sm:$0xff]   ;;  %v3239_v41 = vld [vmem:[%s3309_s9 + $0x360] ss:$28 sps:$4 sm:$0xff]  }
  0x87   : > { %1619 = vmatprep.mubr.bf16.mxu1 %v3156_v42  ;;  %1716 = vmatprep.mubr.bf16.mxu0 %v3158_v43 }
  0x8e   : > { %1620 = vmatmul.mubr.bf16.gmra.mrb[52].mxu1 %v3160_v44  ;;  %1717 = vmatmul.mubr.bf16.gmra.mrb[52].mxu0 %v3161_v45 }
  0x8f   : > { %1627 = vmatprep.mubr.bf16.mxu1 %v3162_v46  ;;  %1724 = vmatprep.mubr.bf16.mxu0 %v3164_v47 }
  0x96   : > { %1628 = vmatmul.mubr.bf16.gmra.mrb[56].mxu1 %v3166_v48  ;;  %1725 = vmatmul.mubr.bf16.gmra.mrb[56].mxu0 %v3167_v49 }
  0x97   : > { %1635 = vmatprep.mubr.bf16.mxu1 %v3168_v50  ;;  %1732 = vmatprep.mubr.bf16.mxu0 %v3170_v51 }
  0x9e   : > { %1636 = vmatmul.mubr.bf16.gmra.mrb[60].mxu1 %v3172_v52  ;;  %1733 = vmatmul.mubr.bf16.gmra.mrb[60].mxu0 %v3173_v53 }
  0x9f   : > { %1643 = vmatprep.mubr.bf16.mxu1 %v3175_v54  ;;  %1740 = vmatprep.mubr.bf16.mxu0 %v3177_v55 }
  0xa6   : > { %1644 = vmatmul.mubr.bf16.gmra.mrb[64].mxu1 %v3179_v56  ;;  %1741 = vmatmul.mubr.bf16.gmra.mrb[64].mxu0 %v3180_v57 }
  0xa7   : > { %1651 = vmatprep.mubr.bf16.mxu1 %v3181_v58  ;;  %1748 = vmatprep.mubr.bf16.mxu0 %v3183_v59 }
  0xae   : > { %1652 = vmatmul.mubr.bf16.gmra.mrb[68].mxu1 %v3185_v60  ;;  %1749 = vmatmul.mubr.bf16.gmra.mrb[68].mxu0 %v3186_v61 }
  0xaf   : > { %1659 = vmatprep.mubr.bf16.mxu1 %v3187_v62  ;;  %1756 = vmatprep.mubr.bf16.mxu0 %v3189_v63 }
  0xb6   : > { %1660 = vmatmul.mubr.bf16.gmra.mrb[72].mxu1 %v3192_v0  ;;  %1757 = vmatmul.mubr.bf16.gmra.mrb[72].mxu0 %v3193_v1 }
  0xb7   : > { %1667 = vmatprep.mubr.bf16.mxu1 %v3194_v2  ;;  %1764 = vmatprep.mubr.bf16.mxu0 %v3196_v3 }
  0xbe   : > { %1668 = vmatmul.mubr.bf16.gmra.mrb[76].mxu1 %v3198_v4  ;;  %1765 = vmatmul.mubr.bf16.gmra.mrb[76].mxu0 %v3199_v5 }
  0xbf   : > { %1772 = vmatprep.mubr.bf16.mxu0 %v3200_v6  ;;  %2969 = vmatprep.mubr.msk.bf16.mxu1 %vm1305_vm0, %v3202_v7 }
  0xc6   : > { %1773 = vmatmul.mubr.bf16.gmra.mrb[80].mxu0 %v3203_v8  ;;  %2970 = vmatmul.mubr.msk.bf16.vlgmr.msra.gmra.mrb[80].mxu1 %vm1305_vm0, %v3204_v9 }
  0xc7   : > { %1780 = vmatprep.mubr.bf16.mxu0 %v3205_v10  ;;  %2973 = vmatprep.mubr.msk.bf16.mxu1 %vm1305_vm0, %v3207_v11 }
  0xce   : > { %1781 = vmatmul.mubr.bf16.gmra.mrb[84].mxu0 %v3208_v12  ;;  %2974 = vmatmul.mubr.msk.bf16.gmra.mrb[84].mxu1 %vm1305_vm0, %v3209_v13 }
  0xcf   : > { %1788 = vmatprep.mubr.bf16.mxu0 %v3210_v14  ;;  %2977 = vmatprep.mubr.msk.bf16.mxu1 %vm1305_vm0, %v3212_v15 }
  0xd6   : > { %1789 = vmatmul.mubr.bf16.gmra.mrb[88].mxu0 %v3213_v16  ;;  %2978 = vmatmul.mubr.msk.bf16.gmra.mrb[88].mxu1 %vm1305_vm0, %v3214_v17 }
  0xd7   : > { %1796 = vmatprep.mubr.bf16.mxu0 %v3215_v18  ;;  %2981 = vmatprep.mubr.msk.bf16.mxu1 %vm1305_vm0, %v3217_v19 }
  0xde   : > { %1797 = vmatmul.mubr.bf16.gmra.mrb[92].mxu0 %v3218_v20  ;;  %2982 = vmatmul.mubr.msk.bf16.gmra.mrb[92].mxu1 %vm1305_vm0, %v3219_v21 }
  0xdf   : > { %1804 = vmatprep.mubr.bf16.mxu0 %v3220_v22  ;;  %2985 = vmatprep.mubr.msk.bf16.mxu1 %vm1305_vm0, %v3222_v23  ;;  %v3593_v22 = vld [vmem:[%s3848_s2] ss:$0 sm:$0xff] }
  0xe6   : > { %1805 = vmatmul.mubr.bf16.gmra.mrb[96].mxu0 %v3223_v24  ;;  %2986 = vmatmul.mubr.msk.bf16.gmra.mrb[96].mxu1 %vm1305_vm0, %v3224_v25 }
  0xe7   : > { %1812 = vmatprep.mubr.bf16.mxu0 %v3225_v26  ;;  %2989 = vmatprep.mubr.msk.bf16.mxu1 %vm1305_vm0, %v3227_v27 }
  0xee   : > { %1813 = vmatmul.mubr.bf16.gmra.mrb[100].mxu0 %v3228_v28  ;;  %2990 = vmatmul.mubr.msk.bf16.gmra.mrb[100].mxu1 %vm1305_vm0, %v3229_v29 }
  0xef   : > { %1820 = vmatprep.mubr.bf16.mxu0 %v3230_v30  ;;  %2993 = vmatprep.mubr.msk.bf16.mxu1 %vm1305_vm0, %v3232_v31 }
  0xf6   : > { %1821 = vmatmul.mubr.bf16.gmra.mrb[104].mxu0 %v3233_v32  ;;  %2994 = vmatmul.mubr.msk.bf16.gmra.mrb[104].mxu1 %vm1305_vm0, %v3234_v33 }
  0xf7   : > { %1828 = vmatprep.mubr.bf16.mxu0 %v3235_v34  ;;  %2997 = vmatprep.mubr.msk.bf16.mxu1 %vm1305_vm0, %v3237_v35 }
  0xf9   : > { %v2615_v36 = vpop.f32.mrb[0].mxu0  ;;  %v2687_v37 = vpop.f32.mrb[0].mxu1 }
  0xfa   : > { %v2616_v38 = vpop.f32.mrb[1].mxu0  ;;  %v2688_v39 = vpop.f32.mrb[1].mxu1 }
  0xfb   : > { %v2617_v42 = vadd.f32 %v2616_v38, %v2615_v36  ;;  %v2618_v43 = vpop.f32.mrb[2].mxu0  ;;  %v3573_v44 = vadd.f32 %v2688_v39, %v2687_v37  ;;  %v2690_v45 = vpop.f32.mrb[2].mxu1 }
  0xfc   : > { %v2619_v46 = vpop.f32.mrb[3].mxu0  ;;  %v2691_v47 = vpop.f32.mrb[3].mxu1 }
  0xfd   : > { %v2620_v48 = vadd.f32 %v2619_v46, %v2618_v43  ;;  %v3575_v49 = vadd.f32 %v2691_v47, %v2690_v45  ;;  %v1389_v27 = vadd.f32 %v2617_v42, %v3593_v22 }
  0xfe   : > { %1829 = vmatmul.mubr.bf16.gmra.mrb[108].mxu0 %v3238_v40  ;;  %2998 = vmatmul.mubr.msk.bf16.gmra.mrb[108].mxu1 %vm1305_vm0, %v3239_v41 }
  0xff   : > { %v1392_v34 = vadd.f32 %v2620_v48, %v3593_v22 }
 0x101   : > { %v2621_v50 = vpop.f32.mrb[4].mxu0  ;;  %v2693_v51 = vpop.f32.mrb[4].mxu1 }
 0x102   : > { %v2622_v52 = vpop.f32.mrb[5].mxu0  ;;  %v2694_v53 = vpop.f32.mrb[5].mxu1 }
 0x103   : > { %v2623_v54 = vadd.f32 %v2622_v52, %v2621_v50  ;;  %v2624_v55 = vpop.f32.mrb[6].mxu0  ;;  %v3578_v56 = vadd.f32 %v2694_v53, %v2693_v51  ;;  %v2696_v57 = vpop.f32.mrb[6].mxu1 }
 0x104   : > { %v2625_v58 = vpop.f32.mrb[7].mxu0  ;;  %v2697_v59 = vpop.f32.mrb[7].mxu1 }
 0x105   : > { %v2626_v60 = vadd.f32 %v2625_v58, %v2624_v55  ;;  %v3580_v61 = vadd.f32 %v2697_v59, %v2696_v57  ;;  %v1397_v42 = vadd.f32 %v2623_v54, %v3593_v22 }
 0x107   : > { %v1400_v48 = vadd.f32 %v2626_v60, %v3593_v22 }
 0x109   : > { %v2627_v62 = vpop.f32.mrb[8].mxu0  ;;  %v2699_v63 = vpop.f32.mrb[8].mxu1 }
 0x10a   : > { %v2628_v0 = vpop.f32.mrb[9].mxu0  ;;  %v2700_v1 = vpop.f32.mrb[9].mxu1 }
 0x10b   : > { %v2629_v2 = vadd.f32 %v2628_v0, %v2627_v62  ;;  %v2630_v3 = vpop.f32.mrb[10].mxu0  ;;  %v3582_v4 = vadd.f32 %v2700_v1, %v2699_v63  ;;  %v2702_v5 = vpop.f32.mrb[10].mxu1 }
 0x10c   : > { %v2631_v6 = vpop.f32.mrb[11].mxu0  ;;  %v2703_v7 = vpop.f32.mrb[11].mxu1 }
 0x10d   : > { %v2632_v8 = vadd.f32 %v2631_v6, %v2630_v3  ;;  %v3584_v9 = vadd.f32 %v2703_v7, %v2702_v5  ;;  %v1405_v54 = vadd.f32 %v2629_v2, %v3593_v22 }
 0x10f   : > { %v1408_v60 = vadd.f32 %v2632_v8, %v3593_v22 }
 0x111   : > { %v2633_v10 = vpop.f32.mrb[12].mxu0  ;;  %v2705_v11 = vpop.f32.mrb[12].mxu1 }
 0x112   : > { %v2634_v12 = vpop.f32.mrb[13].mxu0  ;;  %v2706_v13 = vpop.f32.mrb[13].mxu1 }
 0x113   : > { %v2635_v14 = vadd.f32 %v2634_v12, %v2633_v10  ;;  %v2636_v15 = vpop.f32.mrb[14].mxu0  ;;  %v3586_v16 = vadd.f32 %v2706_v13, %v2705_v11  ;;  %v2708_v17 = vpop.f32.mrb[14].mxu1 }
 0x114   : > { %v2637_v18 = vpop.f32.mrb[15].mxu0  ;;  %v2709_v19 = vpop.f32.mrb[15].mxu1 }
 0x115   : > { %v2638_v20 = vadd.f32 %v2637_v18, %v2636_v15  ;;  %v3588_v21 = vadd.f32 %v2709_v19, %v2708_v17  ;;  %v1413_v2 = vadd.f32 %v2635_v14, %v3593_v22 }
 0x117   : > { %v1416_v8 = vadd.f32 %v2638_v20, %v3593_v22 }
 0x119   : > { %v2639_v23 = vpop.f32.mrb[16].mxu0  ;;  %v2727_v24 = vpop.f32.mrb[16].mxu1 }
 0x11a   : > { %v2640_v25 = vpop.f32.mrb[17].mxu0  ;;  %v2728_v26 = vpop.f32.mrb[17].mxu1 }
 0x11b   : > { %v3596_v28 = vadd.f32 %v2640_v25, %v2639_v23  ;;  %v2729_v29 = vadd.f32 %v2728_v26, %v2727_v24  ;;  %v2642_v30 = vpop.f32.mrb[18].mxu0  ;;  %v2730_v31 = vpop.f32.mrb[18].mxu1 }
 0x11c   : > { %v2643_v32 = vpop.f32.mrb[19].mxu0  ;;  %v2731_v33 = vpop.f32.mrb[19].mxu1 }
 0x11d   : > { %v3599_v35 = vadd.f32 %v2729_v29, %v1389_v27  ;;  %v2644_v36 = vadd.f32 %v2643_v32, %v2642_v30  ;;  %v2732_v37 = vadd.f32 %v2731_v33, %v2730_v31  ;;  %v1421_v14 = vadd.f32 %v3596_v28, %v3593_v22 }
 0x11f   : > { %v3601_v38 = vadd.f32 %v2732_v37, %v1392_v34 }
 0x121   : > { %v2645_v39 = vpop.f32.mrb[20].mxu0  ;;  %v2733_v40 = vpop.f32.mrb[20].mxu1 }
 0x122   : > { %v2646_v41 = vpop.f32.mrb[21].mxu0  ;;  %v2734_v43 = vpop.f32.mrb[21].mxu1 }
 0x123   : > { %v3604_v45 = vadd.f32 %v2646_v41, %v2645_v39  ;;  %v2735_v46 = vadd.f32 %v2734_v43, %v2733_v40  ;;  %v2648_v47 = vpop.f32.mrb[22].mxu0  ;;  %v2736_v50 = vpop.f32.mrb[22].mxu1 }
 0x124   : > { %v2649_v51 = vpop.f32.mrb[23].mxu0  ;;  %v2737_v52 = vpop.f32.mrb[23].mxu1 }
 0x125   : > { %v3607_v53 = vadd.f32 %v2735_v46, %v1397_v42  ;;  %v2650_v55 = vadd.f32 %v2649_v51, %v2648_v47  ;;  %v2738_v57 = vadd.f32 %v2737_v52, %v2736_v50  ;;  %v1424_v51 = vadd.f32 %v2644_v36, %v3593_v22 }
 0x126   : > { %v1429_v28 = vadd.f32 %v3604_v45, %v3593_v22 }
 0x127   : > { %v3609_v58 = vadd.f32 %v2738_v57, %v1400_v48 }
 0x129   : > { %v2651_v59 = vpop.f32.mrb[24].mxu0  ;;  %v2739_v62 = vpop.f32.mrb[24].mxu1 }
 0x12a   : > { %v2652_v63 = vpop.f32.mrb[25].mxu0  ;;  %v2740_v0 = vpop.f32.mrb[25].mxu1 }
 0x12b   : > { %v3612_v1 = vadd.f32 %v2652_v63, %v2651_v59  ;;  %v2741_v3 = vadd.f32 %v2740_v0, %v2739_v62  ;;  %v2654_v5 = vpop.f32.mrb[26].mxu0  ;;  %v2742_v6 = vpop.f32.mrb[26].mxu1 }
 0x12c   : > { %v2655_v7 = vpop.f32.mrb[27].mxu0  ;;  %v2743_v10 = vpop.f32.mrb[27].mxu1 }
 0x12d   : > { %v3615_v11 = vadd.f32 %v2741_v3, %v1405_v54  ;;  %v2656_v12 = vadd.f32 %v2655_v7, %v2654_v5  ;;  %v2744_v13 = vadd.f32 %v2743_v10, %v2742_v6  ;;  %v1437_v45 = vadd.f32 %v3612_v1, %v3593_v22 }
 0x12f   : > { %v3617_v15 = vadd.f32 %v2744_v13, %v1408_v60  ;;  %v1432_v60 = vadd.f32 %v2650_v55, %v3593_v22 }
 0x131   : > { %v2657_v17 = vpop.f32.mrb[28].mxu0  ;;  %v2745_v18 = vpop.f32.mrb[28].mxu1 }
 0x132   : > { %v2658_v19 = vpop.f32.mrb[29].mxu0  ;;  %v2746_v23 = vpop.f32.mrb[29].mxu1 }
 0x133   : > { %v3620_v24 = vadd.f32 %v2658_v19, %v2657_v17  ;;  %v2747_v25 = vadd.f32 %v2746_v23, %v2745_v18  ;;  %v2660_v26 = vpop.f32.mrb[30].mxu0  ;;  %v2748_v27 = vpop.f32.mrb[30].mxu1 }
 0x134   : > { %v2661_v29 = vpop.f32.mrb[31].mxu0  ;;  %v2749_v30 = vpop.f32.mrb[31].mxu1 }
 0x135   : > { %v3623_v31 = vadd.f32 %v2747_v25, %v1413_v2  ;;  %v2662_v32 = vadd.f32 %v2661_v29, %v2660_v26  ;;  %v2750_v33 = vadd.f32 %v2749_v30, %v2748_v27 }
 0x137   : > { %v3625_v34 = vadd.f32 %v2750_v33, %v1416_v8 }
 0x139   : > { %v2663_v37 = vpop.f32.mrb[32].mxu0  ;;  %v2751_v39 = vpop.f32.mrb[32].mxu1 }
 0x13a   : > { %v2664_v40 = vpop.f32.mrb[33].mxu0  ;;  %v2752_v41 = vpop.f32.mrb[33].mxu1 }
 0x13b   : > { %v3629_v43 = vadd.f32 %v2664_v40, %v2663_v37  ;;  %v2753_v42 = vadd.f32 %v2752_v41, %v2751_v39  ;;  %v2666_v46 = vpop.f32.mrb[34].mxu0  ;;  %v2754_v47 = vpop.f32.mrb[34].mxu1  ;;  %v1440_v37 = vadd.f32 %v2656_v12, %v3593_v22 }
 0x13c   : > { %v2667_v50 = vpop.f32.mrb[35].mxu0  ;;  %v2755_v20 = vpop.f32.mrb[35].mxu1 }
 0x13d   : > { %v3632_v52 = vadd.f32 %v2753_v42, %v1421_v14  ;;  %v2668_v48 = vadd.f32 %v2667_v50, %v2666_v46  ;;  %v2756_v57 = vadd.f32 %v2755_v20, %v2754_v47  ;;  %v1445_v50 = vadd.f32 %v3620_v24, %v3593_v22 }
 0x13f   : > { %v3634_v59 = vadd.f32 %v2756_v57, %v1424_v51 }
 0x141   : > { %v2669_v62 = vpop.f32.mrb[36].mxu0  ;;  %v2757_v63 = vpop.f32.mrb[36].mxu1 }
 0x142   : > { %v2670_v0 = vpop.f32.mrb[37].mxu0  ;;  %v2758_v54 = vpop.f32.mrb[37].mxu1 }
 0x143   : > { %v3638_v3 = vadd.f32 %v2670_v0, %v2669_v62  ;;  %v2759_v5 = vadd.f32 %v2758_v54, %v2757_v63  ;;  %v2672_v6 = vpop.f32.mrb[38].mxu0  ;;  %v2760_v7 = vpop.f32.mrb[38].mxu1  ;;  %v1448_v0 = vadd.f32 %v2662_v32, %v3593_v22  ;;  %v1456_v32 = vadd.f32 %v2668_v48, %v3593_v22 }
 0x144   : > { %v2673_v10 = vpop.f32.mrb[39].mxu0  ;;  %v2761_v36 = vpop.f32.mrb[39].mxu1 }
 0x145   : > { %v3641_v13 = vadd.f32 %v2759_v5, %v1429_v28  ;;  %v2674_v17 = vadd.f32 %v2673_v10, %v2672_v6  ;;  %v2762_v18 = vadd.f32 %v2761_v36, %v2760_v7  ;;  %v1461_v48 = vadd.f32 %v3638_v3, %v3593_v22 }
 0x147   : > { %v3643_v19 = vadd.f32 %v2762_v18, %v1432_v60  ;;  %v1453_v60 = vadd.f32 %v3629_v43, %v3593_v22 }
 0x149   : > { %v2675_v23 = vpop.f32.mrb[40].mxu0  ;;  %v2763_v2 = vpop.f32.mrb[40].mxu1 }
 0x14a   : > { %v2676_v25 = vpop.f32.mrb[41].mxu0  ;;  %v2764_v26 = vpop.f32.mrb[41].mxu1 }
 0x14b   : > { %v3647_v27 = vadd.f32 %v2676_v25, %v2675_v23  ;;  %v2765_v29 = vadd.f32 %v2764_v26, %v2763_v2  ;;  %v2678_v30 = vpop.f32.mrb[42].mxu0  ;;  %v2766_v8 = vpop.f32.mrb[42].mxu1 }
 0x14c   : > { %v2679_v33 = vpop.f32.mrb[43].mxu0  ;;  %v2767_v55 = vpop.f32.mrb[43].mxu1 }
 0x14d   : > { %v3650_v39 = vadd.f32 %v2765_v29, %v1437_v45  ;;  %v3652_v40 = vadd.f32 %v2679_v33, %v2678_v30  ;;  %v2768_v41 = vadd.f32 %v2767_v55, %v2766_v8 }
 0x14f   : > { %v3654_v14 = vadd.f32 %v2768_v41, %v1440_v37 }
 0x151   : > { %v2681_v42 = vpop.f32.mrb[44].mxu0  ;;  %v2769_v46 = vpop.f32.mrb[44].mxu1 }
 0x152   : > { %v2682_v47 = vpop.f32.mrb[45].mxu0  ;;  %v2770_v1 = vpop.f32.mrb[45].mxu1 }
 0x153   : > { %v3658_v20 = vadd.f32 %v2682_v47, %v2681_v42  ;;  %v2771_v51 = vadd.f32 %v2770_v1, %v2769_v46  ;;  %v2684_v57 = vpop.f32.mrb[46].mxu0  ;;  %v2772_v62 = vpop.f32.mrb[46].mxu1 }
 0x154   : > { %v2685_v12 = vpop.f32.mrb[47].mxu0  ;;  %v2773_v63 = vpop.f32.mrb[47].mxu1 }
 0x155   : > { %v3661_v54 = vadd.f32 %v2771_v51, %v1445_v50  ;;  %v3663_v28 = vadd.f32 %v2685_v12, %v2684_v57  ;;  %v2774_v5 = vadd.f32 %v2773_v63, %v2772_v62  ;;  %v1464_v57 = vadd.f32 %v2674_v17, %v3593_v22 }
 0x156   : > { %v1469_v17 = vadd.f32 %v3647_v27, %v3593_v22 }
 0x157   : > { %v3665_v6 = vadd.f32 %v2774_v5, %v1448_v0 }
 0x159   : > { %v2775_v7 = vpop.f32.mrb[48].mxu1  ;;  %v2839_v10 = vpop.f32.mrb[48].mxu0 }
 0x15a   : > { %v2776_v36 = vpop.f32.mrb[49].mxu1  ;;  %v2840_v24 = vpop.f32.mrb[49].mxu0 }
 0x15b   : > { %v2777_v18 = vadd.f32 %v2776_v36, %v2775_v7  ;;  %v2841_v23 = vadd.f32 %v2840_v24, %v2839_v10  ;;  %v2778_v2 = vpop.f32.mrb[50].mxu1  ;;  %v2842_v25 = vpop.f32.mrb[50].mxu0 }
 0x15c   : > { %v2779_v26 = vpop.f32.mrb[51].mxu1  ;;  %v2843_v45 = vpop.f32.mrb[51].mxu0 }
 0x15d   : > { %v3670_v29 = vadd.f32 %v2777_v18, %v1453_v60  ;;  %v2780_v30 = vadd.f32 %v2779_v26, %v2778_v2  ;;  %v2844_v8 = vadd.f32 %v2843_v45, %v2842_v25  ;;  %v3673_v33 = vadd.f32 %v2841_v23, %v3599_v35 }
 0x15f   : > { %v3675_v55 = vadd.f32 %v2780_v30, %v1456_v32  ;;  %v3678_v37 = vadd.f32 %v2844_v8, %v3601_v38 }
 0x161   : > { %v2781_v43 = vpop.f32.mrb[52].mxu1  ;;  %v2845_v41 = vpop.f32.mrb[52].mxu0 }
 0x162   : > { %v2782_v42 = vpop.f32.mrb[53].mxu1  ;;  %v2846_v46 = vpop.f32.mrb[53].mxu0 }
 0x163   : > { %v2783_v47 = vadd.f32 %v2782_v42, %v2781_v43  ;;  %v2847_v1 = vadd.f32 %v2846_v46, %v2845_v41  ;;  %v2784_v50 = vpop.f32.mrb[54].mxu1  ;;  %v2848_v51 = vpop.f32.mrb[54].mxu0 }
 0x164   : > { %v2785_v35 = vpop.f32.mrb[55].mxu1  ;;  %v2849_v62 = vpop.f32.mrb[55].mxu0 }
 0x165   : > { %v3683_v12 = vadd.f32 %v2783_v47, %v1461_v48  ;;  %v2786_v63 = vadd.f32 %v2785_v35, %v2784_v50  ;;  %v2850_v38 = vadd.f32 %v2849_v62, %v2848_v51  ;;  %v3686_v0 = vadd.f32 %v2847_v1, %v3607_v53 }
 0x166   : > { %v1472_v53 = vadd.f32 %v3652_v40, %v3593_v22  ;;  %v1477_v40 = vadd.f32 %v3658_v20, %v3593_v22 }
 0x167   : > { %v3688_v5 = vadd.f32 %v2786_v63, %v1464_v57  ;;  %v3691_v7 = vadd.f32 %v2850_v38, %v3609_v58 }
 0x169   : > { %v2787_v3 = vpop.f32.mrb[56].mxu1  ;;  %v2851_v10 = vpop.f32.mrb[56].mxu0 }
 0x16a   : > { %v2788_v36 = vpop.f32.mrb[57].mxu1  ;;  %v2852_v24 = vpop.f32.mrb[57].mxu0 }
 0x16b   : > { %v2789_v60 = vadd.f32 %v2788_v36, %v2787_v3  ;;  %v2853_v18 = vadd.f32 %v2852_v24, %v2851_v10  ;;  %v2790_v23 = vpop.f32.mrb[58].mxu1  ;;  %v2854_v2 = vpop.f32.mrb[58].mxu0 }
 0x16c   : > { %v2791_v25 = vpop.f32.mrb[59].mxu1  ;;  %v2855_v32 = vpop.f32.mrb[59].mxu0 }
 0x16d   : > { %v3697_v26 = vadd.f32 %v2789_v60, %v1469_v17  ;;  %v2792_v58 = vadd.f32 %v2791_v25, %v2790_v23  ;;  %v2856_v45 = vadd.f32 %v2855_v32, %v2854_v2  ;;  %v3700_v30 = vadd.f32 %v2853_v18, %v3615_v11 }
 0x16e   : > { %v1480_v11 = vadd.f32 %v3663_v28, %v3593_v22  ;;  %v1485_v28 = vadd.f32 %v3573_v44, %v3593_v22 }
 0x16f   : > { %v3702_v8 = vadd.f32 %v2792_v58, %v1472_v53  ;;  %v3705_v27 = vadd.f32 %v2856_v45, %v3617_v15 }
 0x171   : > { %v2793_v43 = vpop.f32.mrb[60].mxu1  ;;  %v2857_v41 = vpop.f32.mrb[60].mxu0 }
 0x172   : > { %v2794_v42 = vpop.f32.mrb[61].mxu1  ;;  %v2858_v46 = vpop.f32.mrb[61].mxu0 }
 0x173   : > { %v2795_v48 = vadd.f32 %v2794_v42, %v2793_v43  ;;  %v2859_v47 = vadd.f32 %v2858_v46, %v2857_v41  ;;  %v2796_v1 = vpop.f32.mrb[62].mxu1  ;;  %v2860_v50 = vpop.f32.mrb[62].mxu0 }
 0x174   : > { %v2797_v51 = vpop.f32.mrb[63].mxu1  ;;  %v2861_v57 = vpop.f32.mrb[63].mxu0 }
 0x175   : > { %v3711_v35 = vadd.f32 %v2795_v48, %v1477_v40  ;;  %v2798_v15 = vadd.f32 %v2797_v51, %v2796_v1  ;;  %v2862_v62 = vadd.f32 %v2861_v57, %v2860_v50  ;;  %v3714_v63 = vadd.f32 %v2859_v47, %v3623_v31 }
 0x176   : > { %v1488_v31 = vadd.f32 %v3575_v49, %v3593_v22  ;;  %v1493_v49 = vadd.f32 %v3578_v56, %v3593_v22 }
 0x177   : > { %v3716_v38 = vadd.f32 %v2798_v15, %v1480_v11  ;;  %v3719_v20 = vadd.f32 %v2862_v62, %v3625_v34 }
 0x179   : > { %v2799_v3 = vpop.f32.mrb[64].mxu1  ;;  %v2863_v10 = vpop.f32.mrb[64].mxu0 }
 0x17a   : > { %v2800_v36 = vpop.f32.mrb[65].mxu1  ;;  %v2864_v24 = vpop.f32.mrb[65].mxu0 }
 0x17b   : > { %v2801_v17 = vadd.f32 %v2800_v36, %v2799_v3  ;;  %v2865_v60 = vadd.f32 %v2864_v24, %v2863_v10  ;;  %v2802_v18 = vpop.f32.mrb[66].mxu1  ;;  %v2866_v23 = vpop.f32.mrb[66].mxu0 }
 0x17c   : > { %v2803_v2 = vpop.f32.mrb[67].mxu1  ;;  %v2867_v53 = vpop.f32.mrb[67].mxu0 }
 0x17d   : > { %v3725_v25 = vadd.f32 %v2801_v17, %v1485_v28  ;;  %v2804_v34 = vadd.f32 %v2803_v2, %v2802_v18  ;;  %v2868_v32 = vadd.f32 %v2867_v53, %v2866_v23  ;;  %v3728_v58 = vadd.f32 %v2865_v60, %v3632_v52 }
 0x17e   : > { %v1496_v52 = vadd.f32 %v3580_v61, %v3593_v22  ;;  %v1501_v61 = vadd.f32 %v3582_v4, %v3593_v22 }
 0x17f   : > { %v3730_v45 = vadd.f32 %v2804_v34, %v1488_v31  ;;  %v3733_v44 = vadd.f32 %v2868_v32, %v3634_v59 }
 0x181   : > { %v2805_v43 = vpop.f32.mrb[68].mxu1  ;;  %v2869_v41 = vpop.f32.mrb[68].mxu0 }
 0x182   : > { %v2806_v42 = vpop.f32.mrb[69].mxu1  ;;  %v2870_v46 = vpop.f32.mrb[69].mxu0 }
 0x183   : > { %v2807_v40 = vadd.f32 %v2806_v42, %v2805_v43  ;;  %v2871_v48 = vadd.f32 %v2870_v46, %v2869_v41  ;;  %v2808_v47 = vpop.f32.mrb[70].mxu1  ;;  %v2872_v1 = vpop.f32.mrb[70].mxu0 }
 0x184   : > { %v2809_v50 = vpop.f32.mrb[71].mxu1  ;;  %v2873_v11 = vpop.f32.mrb[71].mxu0 }
 0x185   : > { %v3739_v51 = vadd.f32 %v2807_v40, %v1493_v49  ;;  %v2810_v59 = vadd.f32 %v2809_v50, %v2808_v47  ;;  %v2874_v57 = vadd.f32 %v2873_v11, %v2872_v1  ;;  %v3742_v15 = vadd.f32 %v2871_v48, %v3641_v13 }
 0x186   : > { %v1504_v13 = vadd.f32 %v3584_v9, %v3593_v22  ;;  %v1509_v9 = vadd.f32 %v3586_v16, %v3593_v22 }
 0x187   : > { %v3744_v62 = vadd.f32 %v2810_v59, %v1496_v52  ;;  %v3747_v56 = vadd.f32 %v2874_v57, %v3643_v19 }
 0x189   : > { %v2811_v3 = vpop.f32.mrb[72].mxu1  ;;  %v2875_v10 = vpop.f32.mrb[72].mxu0 }
 0x18a   : > { %v2812_v36 = vpop.f32.mrb[73].mxu1  ;;  %v2876_v24 = vpop.f32.mrb[73].mxu0 }
 0x18b   : > { %v2813_v28 = vadd.f32 %v2812_v36, %v2811_v3  ;;  %v2877_v17 = vadd.f32 %v2876_v24, %v2875_v10  ;;  %v2814_v60 = vpop.f32.mrb[74].mxu1  ;;  %v2878_v18 = vpop.f32.mrb[74].mxu0 }
 0x18c   : > { %v2815_v23 = vpop.f32.mrb[75].mxu1  ;;  %v2879_v31 = vpop.f32.mrb[75].mxu0 }
 0x18d   : > { %v3753_v2 = vadd.f32 %v2813_v28, %v1501_v61  ;;  %v2816_v19 = vadd.f32 %v2815_v23, %v2814_v60  ;;  %v2880_v53 = vadd.f32 %v2879_v31, %v2878_v18  ;;  %v3756_v34 = vadd.f32 %v2877_v17, %v3650_v39 }
 0x18e   : > { %v1512_v39 = vadd.f32 %v3588_v21, %v3593_v22 }
 0x18f   : > { %v3758_v32 = vadd.f32 %v2816_v19, %v1504_v13  ;;  %v3761_v4 = vadd.f32 %v2880_v53, %v3654_v14 }
 0x191   : > { %v2817_v43 = vpop.f32.mrb[76].mxu1  ;;  %v2881_v41 = vpop.f32.mrb[76].mxu0 }
 0x192   : > { %v2818_v42 = vpop.f32.mrb[77].mxu1  ;;  %v2882_v46 = vpop.f32.mrb[77].mxu0 }
 0x193   : > { %v2819_v49 = vadd.f32 %v2818_v42, %v2817_v43  ;;  %v2883_v40 = vadd.f32 %v2882_v46, %v2881_v41  ;;  %v2820_v48 = vpop.f32.mrb[78].mxu1  ;;  %v2884_v47 = vpop.f32.mrb[78].mxu0 }
 0x194   : > { %v2821_v1 = vpop.f32.mrb[79].mxu1  ;;  %v2885_v52 = vpop.f32.mrb[79].mxu0 }
 0x195   : > { %v3767_v50 = vadd.f32 %v2819_v49, %v1509_v9  ;;  %v2822_v14 = vadd.f32 %v2821_v1, %v2820_v48  ;;  %v2886_v11 = vadd.f32 %v2885_v52, %v2884_v47  ;;  %v3770_v59 = vadd.f32 %v2883_v40, %v3661_v54 }
 0x197   : > { %v3772_v57 = vadd.f32 %v2822_v14, %v1512_v39  ;;  %v3775_v16 = vadd.f32 %v2886_v11, %v3665_v6 }
 0x199   : > { %v2887_v3 = vpop.f32.mrb[80].mxu0  ;;  %v2971_v10 = vpop.f32.mrb[80].mxu1 }
 0x19a   : > { %v1880_v36 = vadd.f32 %v2971_v10, %v3686_v0  ;;  %v2888_v21 = vpop.f32.mrb[81].mxu0  ;;  %v1871_v22 = vpop.f32.mrb[81].mxu1 }
 0x19b   : > { %v2889_v24 = vadd.f32 %v2888_v21, %v2887_v3  ;;  %v1872_v61 = vadd.f32 %v1871_v22, %v3673_v33  ;;  %v2890_v28 = vpop.f32.mrb[82].mxu0  ;;  %v2972_v17 = vpop.f32.mrb[82].mxu1 }
 0x19c   : > { %v1883_v54 = vadd.f32 %v2972_v17, %v3691_v7  ;;  %v2891_v60 = vpop.f32.mrb[83].mxu0  ;;  %v1874_v18 = vpop.f32.mrb[83].mxu1  ;;  %v2000_v31 = vmax.f32 %v1880_v36, 0.0 }
 0x19d   : > { %v2892_v13 = vadd.f32 %v2891_v60, %v2890_v28  ;;  %v1875_v6 = vadd.f32 %v1874_v18, %v3678_v37  ;;  %v3783_v23 = vadd.f32 %v2889_v24, %v3670_v29  ;;  %v1998_v19 = vmax.f32 %v1872_v61, 0.0 }
 0x19e   : > { %v2001_v0 = vmax.f32 %v1883_v54, 0.0 }
 0x19f   : > { %v1999_v33 = vmax.f32 %v1875_v6, 0.0  ;;  %v3791_v7 = vadd.f32 %v2892_v13, %v3675_v55 }
 0x1a0   : > { %v2512_v53 = vpack.c.bf16 %v2001_v0, %v2000_v31 }
 0x1a1   : > { %v2507_v43 = vpack.c.bf16 %v1999_v33, %v1998_v19  ;;  %v2893_v37 = vpop.f32.mrb[84].mxu0  ;;  %v2975_v41 = vpop.f32.mrb[84].mxu1 }
 0x1a2   : > { %2584 = vst [vmem:[%s3788_s7 + $0x8] sm:$0xff] %v2512_v53   ;;  %v1896_v29 = vadd.f32 %v2975_v41, %v3714_v63  ;;  %v2894_v42 = vpop.f32.mrb[85].mxu0  ;;  %v1887_v46 = vpop.f32.mrb[85].mxu1 }
 0x1a3   : > { %2508 = vst [vmem:[%s3788_s7] sm:$0xff] %v2507_v43   ;;  %v2895_v9 = vadd.f32 %v2894_v42, %v2893_v37  ;;  %v1888_v49 = vadd.f32 %v1887_v46, %v3700_v30  ;;  %v2896_v40 = vpop.f32.mrb[86].mxu0  ;;  %v2976_v48 = vpop.f32.mrb[86].mxu1 }
 0x1a4   : > { %v1899_v47 = vadd.f32 %v2976_v48, %v3719_v20  ;;  %v2897_v55 = vpop.f32.mrb[87].mxu0  ;;  %v1890_v39 = vpop.f32.mrb[87].mxu1  ;;  %v2004_v63 = vmax.f32 %v1896_v29, 0.0 }
 0x1a5   : > { %v2898_v1 = vadd.f32 %v2897_v55, %v2896_v40  ;;  %v1891_v52 = vadd.f32 %v1890_v39, %v3705_v27  ;;  %v1783_v14 = vadd.f32 %v2895_v9, %v3683_v12  ;;  %v2002_v3 = vmax.f32 %v1888_v49, 0.0 }
 0x1a6   : > { %v2005_v11 = vmax.f32 %v1899_v47, 0.0 }
 0x1a7   : > { %v2003_v10 = vmax.f32 %v1891_v52, 0.0  ;;  %v1786_v36 = vadd.f32 %v2898_v1, %v3688_v5 }
 0x1a8   : > { %v2522_v30 = vpack.c.bf16 %v2005_v11, %v2004_v63 }
 0x1a9   : > { %v2517_v21 = vpack.c.bf16 %v2003_v10, %v2002_v3  ;;  %v2899_v22 = vpop.f32.mrb[88].mxu0  ;;  %v2979_v24 = vpop.f32.mrb[88].mxu1 }
 0x1aa   : > { %2586 = vst [vmem:[%s3788_s7 + $0x18] sm:$0xff] %v2522_v30   ;;  %v1912_v20 = vadd.f32 %v2979_v24, %v3742_v15  ;;  %v2900_v61 = vpop.f32.mrb[89].mxu0  ;;  %v1903_v28 = vpop.f32.mrb[89].mxu1 }
 0x1ab   : > { %2585 = vst [vmem:[%s3788_s7 + $0x10] sm:$0xff] %v2517_v21   ;;  %v2901_v17 = vadd.f32 %v2900_v61, %v2899_v22  ;;  %v1904_v27 = vadd.f32 %v1903_v28, %v3728_v58  ;;  %v2902_v12 = vpop.f32.mrb[90].mxu0  ;;  %v2980_v54 = vpop.f32.mrb[90].mxu1 }
 0x1ac   : > { %v1915_v60 = vadd.f32 %v2980_v54, %v3747_v56  ;;  %v2903_v18 = vpop.f32.mrb[91].mxu0  ;;  %v1906_v5 = vpop.f32.mrb[91].mxu1  ;;  %v2008_v15 = vmax.f32 %v1912_v20, 0.0 }
 0x1ad   : > { %v2904_v13 = vadd.f32 %v2903_v18, %v2902_v12  ;;  %v1907_v6 = vadd.f32 %v1906_v5, %v3733_v44  ;;  %v3808_v31 = vadd.f32 %v2901_v17, %v3697_v26  ;;  %v2006_v19 = vmax.f32 %v1904_v27, 0.0 }
 0x1ae   : > { %v2009_v0 = vmax.f32 %v1915_v60, 0.0 }
 0x1af   : > { %v2007_v33 = vmax.f32 %v1907_v6, 0.0  ;;  %v3811_v58 = vadd.f32 %v2904_v13, %v3702_v8 }
 0x1b0   : > { %v2532_v53 = vpack.c.bf16 %v2009_v0, %v2008_v15 }
 0x1b1   : > { %v2527_v43 = vpack.c.bf16 %v2007_v33, %v2006_v19  ;;  %v2905_v37 = vpop.f32.mrb[92].mxu0  ;;  %v2983_v56 = vpop.f32.mrb[92].mxu1 }
 0x1b2   : > { %2588 = vst [vmem:[%s3788_s7 + $0x28] sm:$0xff] %v2532_v53   ;;  %v1928_v41 = vadd.f32 %v2983_v56, %v3770_v59  ;;  %v2906_v29 = vpop.f32.mrb[93].mxu0  ;;  %v1919_v42 = vpop.f32.mrb[93].mxu1 }
 0x1b3   : > { %2587 = vst [vmem:[%s3788_s7 + $0x20] sm:$0xff] %v2527_v43   ;;  %v2907_v44 = vadd.f32 %v2906_v29, %v2905_v37  ;;  %v1920_v26 = vadd.f32 %v1919_v42, %v3756_v34  ;;  %v2908_v46 = vpop.f32.mrb[94].mxu0  ;;  %v2984_v9 = vpop.f32.mrb[94].mxu1 }
 0x1b4   : > { %v1931_v49 = vadd.f32 %v2984_v9, %v3775_v16  ;;  %v2909_v8 = vpop.f32.mrb[95].mxu0  ;;  %v1922_v40 = vpop.f32.mrb[95].mxu1  ;;  %v2012_v59 = vmax.f32 %v1928_v41, 0.0 }
 0x1b5   : > { %v2910_v48 = vadd.f32 %v2909_v8, %v2908_v46  ;;  %v1923_v47 = vadd.f32 %v1922_v40, %v3761_v4  ;;  %v1799_v55 = vadd.f32 %v2907_v44, %v3711_v35  ;;  %v2010_v1 = vmax.f32 %v1920_v26, 0.0 }
 0x1b6   : > { %v2013_v39 = vmax.f32 %v1931_v49, 0.0 }
 0x1b7   : > { %v2011_v52 = vmax.f32 %v1923_v47, 0.0  ;;  %v1802_v63 = vadd.f32 %v2910_v48, %v3716_v38 }
 0x1b8   : > { %v2542_v34 = vpack.c.bf16 %v2013_v39, %v2012_v59 }
 0x1b9   : > { %v2537_v11 = vpack.c.bf16 %v2011_v52, %v2010_v1  ;;  %v2911_v3 = vpop.f32.mrb[96].mxu0  ;;  %v2987_v10 = vpop.f32.mrb[96].mxu1 }
 0x1ba   : > { %2590 = vst [vmem:[%s3788_s7 + $0x38] sm:$0xff] %v2542_v34   ;;  %v1944_v16 = vadd.f32 %v2987_v10, %v1783_v14  ;;  %v2912_v30 = vpop.f32.mrb[97].mxu0  ;;  %v1935_v21 = vpop.f32.mrb[97].mxu1 }
 0x1bb   : > { %2589 = vst [vmem:[%s3788_s7 + $0x30] sm:$0xff] %v2537_v11   ;;  %v2913_v22 = vadd.f32 %v2912_v30, %v2911_v3  ;;  %v1936_v4 = vadd.f32 %v1935_v21, %v3783_v23  ;;  %v2914_v24 = vpop.f32.mrb[98].mxu0  ;;  %v2988_v35 = vpop.f32.mrb[98].mxu1 }
 0x1bc   : > { %v1947_v20 = vadd.f32 %v2988_v35, %v1786_v36  ;;  %v2915_v61 = vpop.f32.mrb[99].mxu0  ;;  %v1938_v28 = vpop.f32.mrb[99].mxu1  ;;  %v2016_v12 = vmax.f32 %v1944_v16, 0.0 }
 0x1bd   : > { %v2916_v17 = vadd.f32 %v2915_v61, %v2914_v24  ;;  %v1939_v38 = vadd.f32 %v1938_v28, %v3791_v7  ;;  %v1807_v27 = vadd.f32 %v2913_v22, %v3725_v25  ;;  %v2014_v54 = vmax.f32 %v1936_v4, 0.0 }
 0x1be   : > { %v2017_v14 = vmax.f32 %v1947_v20, 0.0 }
 0x1bf   : > { %v2015_v60 = vmax.f32 %v1939_v38, 0.0  ;;  %v1810_v18 = vadd.f32 %v2916_v17, %v3730_v45 }
 0x1c0   : > { %v2552_v5 = vpack.c.bf16 %v2017_v14, %v2016_v12 }
 0x1c1   : > { %v2547_v23 = vpack.c.bf16 %v2015_v60, %v2014_v54  ;;  %v2917_v13 = vpop.f32.mrb[100].mxu0  ;;  %v2991_v6 = vpop.f32.mrb[100].mxu1 }
 0x1c2   : > { %2592 = vst [vmem:[%s3788_s7 + $0x48] sm:$0xff] %v2552_v5   ;;  %v1960_v36 = vadd.f32 %v2991_v6, %v1799_v55  ;;  %v2918_v15 = vpop.f32.mrb[101].mxu0  ;;  %v1951_v0 = vpop.f32.mrb[101].mxu1 }
 0x1c3   : > { %2591 = vst [vmem:[%s3788_s7 + $0x40] sm:$0xff] %v2547_v23   ;;  %v2919_v19 = vadd.f32 %v2918_v15, %v2917_v13  ;;  %v1952_v7 = vadd.f32 %v1951_v0, %v3808_v31  ;;  %v2920_v33 = vpop.f32.mrb[102].mxu0  ;;  %v2992_v25 = vpop.f32.mrb[102].mxu1 }
 0x1c4   : > { %v1963_v53 = vadd.f32 %v2992_v25, %v1802_v63  ;;  %v2921_v43 = vpop.f32.mrb[103].mxu0  ;;  %v1954_v37 = vpop.f32.mrb[103].mxu1  ;;  %v2020_v29 = vmax.f32 %v1960_v36, 0.0 }
 0x1c5   : > { %v2922_v56 = vadd.f32 %v2921_v43, %v2920_v33  ;;  %v1955_v45 = vadd.f32 %v1954_v37, %v3811_v58  ;;  %v1815_v41 = vadd.f32 %v2919_v19, %v3739_v51  ;;  %v2018_v44 = vmax.f32 %v1952_v7, 0.0 }
 0x1c6   : > { %v2021_v42 = vmax.f32 %v1963_v53, 0.0 }
 0x1c7   : > { %v2019_v26 = vmax.f32 %v1955_v45, 0.0  ;;  %v1818_v46 = vadd.f32 %v2922_v56, %v3744_v62 }
 0x1c8   : > { %v2562_v9 = vpack.c.bf16 %v2021_v42, %v2020_v29 }
 0x1c9   : > { %v2557_v31 = vpack.c.bf16 %v2019_v26, %v2018_v44  ;;  %v2923_v49 = vpop.f32.mrb[104].mxu0  ;;  %v2995_v8 = vpop.f32.mrb[104].mxu1 }
 0x1ca   : > { %2594 = vst [vmem:[%s3788_s7 + $0x58] sm:$0xff] %v2562_v9   ;;  %v1976_v40 = vadd.f32 %v2995_v8, %v1815_v41  ;;  %v2924_v48 = vpop.f32.mrb[105].mxu0  ;;  %v1967_v47 = vpop.f32.mrb[105].mxu1 }
 0x1cb   : > { %2593 = vst [vmem:[%s3788_s7 + $0x50] sm:$0xff] %v2557_v31   ;;  %v2925_v55 = vadd.f32 %v2924_v48, %v2923_v49  ;;  %v1968_v59 = vadd.f32 %v1967_v47, %v1807_v27  ;;  %v2926_v58 = vpop.f32.mrb[106].mxu0  ;;  %v2996_v39 = vpop.f32.mrb[106].mxu1 }
 0x1cc   : > { %v1979_v51 = vadd.f32 %v2996_v39, %v1818_v46  ;;  %v2927_v1 = vpop.f32.mrb[107].mxu0  ;;  %v1970_v52 = vpop.f32.mrb[107].mxu1  ;;  %v2024_v11 = vmax.f32 %v1976_v40, 0.0 }
 0x1cd   : > { %v2928_v63 = vadd.f32 %v2927_v1, %v2926_v58  ;;  %v1971_v62 = vadd.f32 %v1970_v52, %v1810_v18  ;;  %v1823_v34 = vadd.f32 %v2925_v55, %v3753_v2  ;;  %v2022_v10 = vmax.f32 %v1968_v59, 0.0 }
 0x1ce   : > { %v2025_v3 = vmax.f32 %v1979_v51, 0.0 }
 0x1cf   : > { %v2023_v16 = vmax.f32 %v1971_v62, 0.0  ;;  %v1826_v30 = vadd.f32 %v2928_v63, %v3758_v32 }
 0x1d0   : > { %v2572_v21 = vpack.c.bf16 %v2025_v3, %v2024_v11 }
 0x1d1   : > { %v2567_v22 = vpack.c.bf16 %v2023_v16, %v2022_v10  ;;  %v2929_v4 = vpop.f32.mrb[108].mxu0  ;;  %v2999_v24 = vpop.f32.mrb[108].mxu1 }
 0x1d2   : > { %2596 = vst [vmem:[%s3788_s7 + $0x68] sm:$0xff] %v2572_v21   ;;  %v2930_v35 = vpop.f32.mrb[109].mxu0  ;;  %v1983_v20 = vpop.f32.mrb[109].mxu1 }
 0x1d3   : > { %2595 = vst [vmem:[%s3788_s7 + $0x60] sm:$0xff] %v2567_v22   ;;  %v2931_v61 = vadd.f32 %v2930_v35, %v2929_v4  ;;  %v1984_v28 = vadd.f32 %v1983_v20, %v1823_v34  ;;  %v2932_v17 = vpop.f32.mrb[110].mxu0  ;;  %v3000_v38 = vpop.f32.mrb[110].mxu1 }
 0x1d4   : > { %v2933_v2 = vpop.f32.mrb[111].mxu0  ;;  %v1986_v27 = vpop.f32.mrb[111].mxu1 }
 0x1d5   : > { %v1831_v12 = vadd.f32 %v2931_v61, %v3767_v50  ;;  %v2934_v14 = vadd.f32 %v2933_v2, %v2932_v17  ;;  %v1987_v32 = vadd.f32 %v1986_v27, %v1826_v30  ;;  %v2026_v60 = vmax.f32 %v1984_v28, 0.0 }
 0x1d7   : > { %v1992_v54 = vadd.f32 %v2999_v24, %v1831_v12  ;;  %v1834_v18 = vadd.f32 %v2934_v14, %v3772_v57  ;;  %v2027_v5 = vmax.f32 %v1987_v32, 0.0 }
 0x1d9   : > { %v1995_v23 = vadd.f32 %v3000_v38, %v1834_v18  ;;  %v2577_v13 = vpack.c.bf16 %v2027_v5, %v2026_v60  ;;  %v2028_v6 = vmax.f32 %v1992_v54, 0.0 }
 0x1db   : > { %v2029_v36 = vmax.f32 %v1995_v23, 0.0  ;;  %2597 = vst [vmem:[%s3788_s7 + $0x70] sm:$0xff] %v2577_v13  }
 0x1dd   : > { %v2582_v15 = vpack.c.bf16 %v2029_v36, %v2028_v6 }
 0x1df   : > { %2598 = vst [vmem:[%s3788_s7 + $0x78] sm:$0xff] %v2582_v15  }
 0x1e0 PF: > { %s13_s12 = sadd.s32 1, %s3246_s12  }
 0x1e1   : > { %p10_p4 = scmp.ge.s32.totalorder %s13_s12, 4  }
 0x1e3   :  { %12 = sbr.rel (!%p10_p4) target bundleno = 1 (0x1), region = 62 }

</bundles_post_ra>
